<compile_context>
chip_gen: v6e
topology: v6e:2x2x1
jax: 0.10.0
libtpu: 0.0.40
codegen_flags: <defaults>
</compile_context>

<pallas_src>
from functools import partial

import jax
import jax.numpy as jnp
from jax import lax
from jax.experimental import pallas as pl
from jax.experimental.pallas import tpu as pltpu

# Problem sizes (small, consistent with a node-feature matrix input).
N = 64    # number of nodes / batch rows
D = 32    # feature dim of the ODE state
H = 64    # hidden dim of the odefunc MLP

NUM_STEPS = 16  # fixed RK4 steps over [0, T]
LANE = 128      # TPU lane width


def _round_up(x, m):
    return (x + m - 1) // m * m


def _ode_rk4_kernel(x_ref, w1_ref, b1_ref, w2_ref, b2_ref, o_ref,
                    *, dt, num_steps):
    """Integrate dy/dt = f(y) with classical RK4 entirely in VMEM.

    dt / num_steps are baked compile-time Python constants (T is static).
    Weights arrive pre-cast to bf16; state / elementwise math stay f32.
    """
    n_blk = x_ref.shape[0]
    hp = w1_ref.shape[1]
    dp = w2_ref.shape[1]

    # Load weights once (bf16); they stay VMEM/vreg-resident for the whole
    # integration: [128,128] bf16 = 8 vregs each.
    w1 = w1_ref[...]
    w2 = w2_ref[...]

    # Hoist bias broadcasts out of the time loop (JAX does not CSE
    # broadcast_in_dim -> would otherwise be re-emitted every stage).
    # Biases stay f32: they are added to the f32 MXU accumulation.
    b1 = jnp.broadcast_to(b1_ref[...], (n_blk, hp))
    b2 = jnp.broadcast_to(b2_ref[...], (n_blk, dp))

    # Compile-time scalar constants (no per-step scalar->vector broadcasts).
    half_dt = 0.5 * dt
    dt_sixth = dt / 6.0

    def f(y):
        # bf16 MXU operands, f32 accumulation (single MXU pass per matmul on
        # all generations); tanh and the adds stay f32.
        hid = jnp.tanh(
            jnp.dot(y.astype(jnp.bfloat16), w1,
                    preferred_element_type=jnp.float32) + b1)
        return jnp.dot(hid.astype(jnp.bfloat16), w2,
                       preferred_element_type=jnp.float32) + b2

    def step(_, y):
        # Incremental RK4 combine: only y, acc and the current k are live
        # (instead of k1..k4 simultaneously) -> no vreg spills in the fully
        # unrolled body.
        k = f(y)
        acc = k
        k = f(y + half_dt * k)
        acc = acc + 2.0 * k
        k = f(y + half_dt * k)
        acc = acc + 2.0 * k
        k = f(y + dt * k)
        acc = acc + k
        return y + dt_sixth * acc

    y0 = x_ref[...].astype(jnp.float32)
    # num_steps is static -> fully unroll so the LLO scheduler sees the whole
    # dependency chain and the loop/branch scalar overhead disappears.
    yT = lax.fori_loop(0, num_steps, step, y0, unroll=True)
    o_ref[...] = yT.astype(o_ref.dtype)


def _pick_block_n(n):
    """Largest 8-aligned divisor of n that is <= min(64, n // 2).

    <= 64 keeps the fully-unrolled RK4 body comfortably inside the 64-vreg
    file (vregs, not VMEM, are the scarce resource here); >= 2 blocks lets
    the "parallel" grid axis shard across both TensorCores on v7x.  Falls
    back to a single full-extent block when n is small or not 8-aligned
    (full-extent blocks are always legal), so odd N no longer traps.
    """
    if n < 16 or n % 8 != 0:
        return n
    cap = min(64, n // 2)
    for bn in range(cap - cap % 8, 7, -8):
        if n % bn == 0:
            return bn
    return n


def ode_block_forward(x, w1, b1, w2, b2, T=1, num_steps=NUM_STEPS,
                      block_n=None):
    """Pallas equivalent of ODEBlock.forward(x, T): returns state at t=T."""
    n, d = x.shape
    h = w1.shape[1]

    dp = _round_up(d, LANE)
    hp = _round_up(h, LANE)

    # Zero-pad the feature dims to the 128-lane width.  Padded lanes of the
    # state remain exactly zero for the whole integration (padded weight
    # rows/cols and bias entries are zero), so semantics are unchanged; the
    # matmul K/N dims become full MXU tiles and every store is lane-dense.
    x_p = jnp.pad(x, ((0, 0), (0, dp - d))) if dp != d else x
    w1_p = jnp.pad(w1, ((0, dp - d), (0, hp - h)))
    w2_p = jnp.pad(w2, ((0, hp - h), (0, dp - d)))
    b1_p = jnp.pad(b1.reshape(1, -1), ((0, 0), (0, hp - h)))
    b2_p = jnp.pad(b2.reshape(1, -1), ((0, 0), (0, dp - d)))

    # Pre-cast weights to bf16 outside the kernel: halves the weight DMA and
    # makes all 128 dependent matmuls single-pass bf16 on the MXU.
    w1_p = w1_p.astype(jnp.bfloat16)
    w2_p = w2_p.astype(jnp.bfloat16)
    b1_p = b1_p.astype(jnp.float32)
    b2_p = b2_p.astype(jnp.float32)

    if block_n is None:
        block_n = _pick_block_n(n)
    assert n % block_n == 0, "block_n must divide N"
    grid = (n // block_n,)

    dt = float(T) / float(num_steps)
    kernel = partial(_ode_rk4_kernel, dt=dt, num_steps=num_steps)

    out_p = pl.pallas_call(
        kernel,
        out_shape=jax.ShapeDtypeStruct((n, dp), x.dtype),
        grid=grid,
        in_specs=[
            pl.BlockSpec((block_n, dp), lambda i: (i, 0)),   # x   (tiled on N)
            pl.BlockSpec((dp, hp), lambda i: (0, 0)),        # W1  (resident)
            pl.BlockSpec((1, hp), lambda i: (0, 0)),         # b1  (resident)
            pl.BlockSpec((hp, dp), lambda i: (0, 0)),        # W2  (resident)
            pl.BlockSpec((1, dp), lambda i: (0, 0)),         # b2  (resident)
        ],
        out_specs=pl.BlockSpec((block_n, dp), lambda i: (i, 0)),
        compiler_params=pltpu.CompilerParams(
            dimension_semantics=("parallel",)),
    )(x_p, w1_p, b1_p, w2_p, b2_p)

    return out_p[:, :d] if dp != d else out_p


class ODEBlockPallas:
    """Mirror of torchgde ODEBlock with a fixed-step RK4 Pallas backend."""

    # TODO(synk): adaptive dopri5/dopri8/adams (the module's default method)
    # with rtol/atol step control has no static-shape Pallas equivalent; the
    # fixed-step RK4 solver (ODESolvers.RK4) is used instead.  use_adjoint
    # only changes the backward pass; the forward is identical.
    # TODO(synk): forward_batched / trajectory (multiple output timestamps)
    # not implemented.

    def __init__(self, params, method="rk4", rtol=1e-3, atol=1e-4,
                 use_adjoint=True):
        self.params = params
        self.method = method
        self.rtol = rtol
        self.atol = atol
        self.use_adjoint = use_adjoint

    def forward(self, x, T: int = 1):
        w1, b1, w2, b2 = self.params
        return ode_block_forward(x, w1, b1, w2, b2, T=T)

    __call__ = forward


def _reference_forward(x, w1, b1, w2, b2, T=1, num_steps=NUM_STEPS,
                       mxu_bf16=True):
    """Pure-JAX reference of the same fixed-step RK4 integration.

    mxu_bf16=True mirrors the kernel's bf16-operand / f32-accumulate matmuls
    (algorithm-identical check); mxu_bf16=False is the full-f32 baseline used
    only as a loose numerics sanity guard.
    """
    dt = float(T) / float(num_steps)
    half_dt = 0.5 * dt
    dt_sixth = dt / 6.0
    cast = (lambda a: a.astype(jnp.bfloat16)) if mxu_bf16 else (lambda a: a)
    w1c, w2c = cast(w1), cast(w2)

    def f(y):
        hid = jnp.tanh(jnp.dot(cast(y), w1c,
                               preferred_element_type=jnp.float32) + b1)
        return jnp.dot(cast(hid), w2c,
                       preferred_element_type=jnp.float32) + b2

    y = x.astype(jnp.float32)
    for _ in range(num_steps):
        k1 = f(y)
        k2 = f(y + half_dt * k1)
        k3 = f(y + half_dt * k2)
        k4 = f(y + dt * k3)
        y = y + dt_sixth * (k1 + 2.0 * k2 + 2.0 * k3 + k4)
    return y.astype(x.dtype)


if __name__ == "__main__":
    key = jax.random.PRNGKey(0)
    kx, k1, k2, k3, k4 = jax.random.split(key, 5)

    # Deterministic synthetic parameters for the odefunc MLP.
    x = jax.random.normal(kx, (N, D), dtype=jnp.float32)
    w1 = jax.random.normal(k1, (D, H), dtype=jnp.float32) * (1.0 / jnp.sqrt(D))
    b1 = jax.random.normal(k2, (1, H), dtype=jnp.float32) * 0.1
    w2 = jax.random.normal(k3, (H, D), dtype=jnp.float32) * (1.0 / jnp.sqrt(H))
    b2 = jax.random.normal(k4, (1, D), dtype=jnp.float32) * 0.1

    block = ODEBlockPallas((w1, b1, w2, b2), method="rk4")

    out = block(x, T=1)
    out = jax.block_until_ready(out)
    assert out.shape == x.shape and out.dtype == x.dtype

    # Primary check: algorithm-identical pure-JAX reference (same bf16 MXU
    # operands, same f32 accumulation) -> tight tolerance.
    ref_bf16 = _reference_forward(x, w1, b1, w2, b2, T=1, mxu_bf16=True)
    assert jnp.allclose(out, ref_bf16, rtol=2e-3, atol=2e-3), \
        "mismatch vs bf16-matched reference"

    # Sanity guard vs the full-f32 baseline: bf16 operand rounding compounds
    # over 64 sequential f-evaluations, so the tolerance is re-baselined
    # (loose) per the numerics review.
    ref_f32 = _reference_forward(x, w1, b1, w2, b2, T=1, mxu_bf16=False)
    assert jnp.allclose(out, ref_f32, rtol=1e-1, atol=1e-1), \
        "drift vs f32 reference larger than expected"

    print("KERNEL_OK")
</pallas_src>

<mosaic_0001>
module attributes {stable_mosaic.version = 11 : i64} {
  func.func @_ode_rk4_kernel(%arg0: i32, %arg1: memref<32x128xf32, #tpu.memory_space<vmem>>, %arg2: memref<128x128xbf16, #tpu.memory_space<vmem>>, %arg3: memref<1x128xf32, #tpu.memory_space<vmem>>, %arg4: memref<128x128xbf16, #tpu.memory_space<vmem>>, %arg5: memref<1x128xf32, #tpu.memory_space<vmem>>, %arg6: memref<32x128xf32, #tpu.memory_space<vmem>>) attributes {dimension_semantics = [#tpu.dimension_semantics<parallel>], iteration_bounds = array<i64: 2>, scalar_prefetch = 0 : i64, scratch_operands = 0 : i64, tpu.core_type = #tpu.core_type<tc>, window_params = [{transform_indices = @transform_0, window_bounds = array<i64: 32, 128>}, {pipeline_mode = #tpu.pipeline_mode<synchronous>, transform_indices = @transform_1, window_bounds = array<i64: 128, 128>}, {pipeline_mode = #tpu.pipeline_mode<synchronous>, transform_indices = @transform_2, window_bounds = array<i64: 1, 128>}, {pipeline_mode = #tpu.pipeline_mode<synchronous>, transform_indices = @transform_3, window_bounds = array<i64: 128, 128>}, {pipeline_mode = #tpu.pipeline_mode<synchronous>, transform_indices = @transform_4, window_bounds = array<i64: 1, 128>}, {transform_indices = @transform_5, window_bounds = array<i64: 32, 128>}]} {
    %c0 = arith.constant 0 : index
    %c0_0 = arith.constant 0 : index
    %0 = vector.load %arg2[%c0, %c0_0] : memref<128x128xbf16, #tpu.memory_space<vmem>>, vector<128x128xbf16>
    %c0_1 = arith.constant 0 : index
    %c0_2 = arith.constant 0 : index
    %1 = vector.load %arg4[%c0_1, %c0_2] : memref<128x128xbf16, #tpu.memory_space<vmem>>, vector<128x128xbf16>
    %c0_3 = arith.constant 0 : index
    %c0_4 = arith.constant 0 : index
    %2 = vector.load %arg3[%c0_3, %c0_4] : memref<1x128xf32, #tpu.memory_space<vmem>>, vector<1x128xf32>
    %3 = vector.shape_cast %2 : vector<1x128xf32> to vector<1x128xf32>
    %4 = vector.broadcast %3 : vector<1x128xf32> to vector<32x128xf32>
    %c0_5 = arith.constant 0 : index
    %c0_6 = arith.constant 0 : index
    %5 = vector.load %arg5[%c0_5, %c0_6] : memref<1x128xf32, #tpu.memory_space<vmem>>, vector<1x128xf32>
    %6 = vector.shape_cast %5 : vector<1x128xf32> to vector<1x128xf32>
    %7 = vector.broadcast %6 : vector<1x128xf32> to vector<32x128xf32>
    %c0_7 = arith.constant 0 : index
    %c0_8 = arith.constant 0 : index
    %8 = vector.load %arg1[%c0_7, %c0_8] : memref<32x128xf32, #tpu.memory_space<vmem>>, vector<32x128xf32>
    %c0_i32 = arith.constant 0 : i32
    %9 = arith.truncf %8 : vector<32x128xf32> to vector<32x128xbf16>
    %cst = arith.constant dense<0.000000e+00> : vector<32x128xf32>
    %10 = tpu.matmul %9, %0, %cst {dimension_numbers = #tpu.dot_dimension_numbers<[1], [0], [0], [1], [0, 0, 1, 1], [], []>} : vector<32x128xbf16>, vector<128x128xbf16>, vector<32x128xf32> -> vector<32x128xf32>
    %11 = arith.addf %10, %4 : vector<32x128xf32>
    %12 = math.tanh %11 : vector<32x128xf32>
    %13 = arith.truncf %12 : vector<32x128xf32> to vector<32x128xbf16>
    %cst_9 = arith.constant dense<0.000000e+00> : vector<32x128xf32>
    %14 = tpu.matmul %13, %1, %cst_9 {dimension_numbers = #tpu.dot_dimension_numbers<[1], [0], [0], [1], [0, 0, 1, 1], [], []>} : vector<32x128xbf16>, vector<128x128xbf16>, vector<32x128xf32> -> vector<32x128xf32>
    %15 = arith.addf %14, %7 : vector<32x128xf32>
    %cst_10 = arith.constant 3.125000e-02 : f32
    %16 = vector.broadcast %cst_10 : f32 to vector<32x128xf32>
    %17 = arith.mulf %16, %15 : vector<32x128xf32>
    %18 = arith.addf %8, %17 : vector<32x128xf32>
    %19 = arith.truncf %18 : vector<32x128xf32> to vector<32x128xbf16>
    %cst_11 = arith.constant dense<0.000000e+00> : vector<32x128xf32>
    %20 = tpu.matmul %19, %0, %cst_11 {dimension_numbers = #tpu.dot_dimension_numbers<[1], [0], [0], [1], [0, 0, 1, 1], [], []>} : vector<32x128xbf16>, vector<128x128xbf16>, vector<32x128xf32> -> vector<32x128xf32>
    %21 = arith.addf %20, %4 : vector<32x128xf32>
    %22 = math.tanh %21 : vector<32x128xf32>
    %23 = arith.truncf %22 : vector<32x128xf32> to vector<32x128xbf16>
    %cst_12 = arith.constant dense<0.000000e+00> : vector<32x128xf32>
    %24 = tpu.matmul %23, %1, %cst_12 {dimension_numbers = #tpu.dot_dimension_numbers<[1], [0], [0], [1], [0, 0, 1, 1], [], []>} : vector<32x128xbf16>, vector<128x128xbf16>, vector<32x128xf32> -> vector<32x128xf32>
    %25 = arith.addf %24, %7 : vector<32x128xf32>
    %cst_13 = arith.constant 2.000000e+00 : f32
    %26 = vector.broadcast %cst_13 : f32 to vector<32x128xf32>
    %27 = arith.mulf %26, %25 : vector<32x128xf32>
    %28 = arith.addf %15, %27 : vector<32x128xf32>
    %cst_14 = arith.constant 3.125000e-02 : f32
    %29 = vector.broadcast %cst_14 : f32 to vector<32x128xf32>
    %30 = arith.mulf %29, %25 : vector<32x128xf32>
    %31 = arith.addf %8, %30 : vector<32x128xf32>
    %32 = arith.truncf %31 : vector<32x128xf32> to vector<32x128xbf16>
    %cst_15 = arith.constant dense<0.000000e+00> : vector<32x128xf32>
    %33 = tpu.matmul %32, %0, %cst_15 {dimension_numbers = #tpu.dot_dimension_numbers<[1], [0], [0], [1], [0, 0, 1, 1], [], []>} : vector<32x128xbf16>, vector<128x128xbf16>, vector<32x128xf32> -> vector<32x128xf32>
    %34 = arith.addf %33, %4 : vector<32x128xf32>
    %35 = math.tanh %34 : vector<32x128xf32>
    %36 = arith.truncf %35 : vector<32x128xf32> to vector<32x128xbf16>
    %cst_16 = arith.constant dense<0.000000e+00> : vector<32x128xf32>
    %37 = tpu.matmul %36, %1, %cst_16 {dimension_numbers = #tpu.dot_dimension_numbers<[1], [0], [0], [1], [0, 0, 1, 1], [], []>} : vector<32x128xbf16>, vector<128x128xbf16>, vector<32x128xf32> -> vector<32x128xf32>
    %38 = arith.addf %37, %7 : vector<32x128xf32>
    %cst_17 = arith.constant 2.000000e+00 : f32
    %39 = vector.broadcast %cst_17 : f32 to vector<32x128xf32>
    %40 = arith.mulf %39, %38 : vector<32x128xf32>
    %41 = arith.addf %28, %40 : vector<32x128xf32>
    %cst_18 = arith.constant 6.250000e-02 : f32
    %42 = vector.broadcast %cst_18 : f32 to vector<32x128xf32>
    %43 = arith.mulf %42, %38 : vector<32x128xf32>
    %44 = arith.addf %8, %43 : vector<32x128xf32>
    %45 = arith.truncf %44 : vector<32x128xf32> to vector<32x128xbf16>
    %cst_19 = arith.constant dense<0.000000e+00> : vector<32x128xf32>
    %46 = tpu.matmul %45, %0, %cst_19 {dimension_numbers = #tpu.dot_dimension_numbers<[1], [0], [0], [1], [0, 0, 1, 1], [], []>} : vector<32x128xbf16>, vector<128x128xbf16>, vector<32x128xf32> -> vector<32x128xf32>
    %47 = arith.addf %46, %4 : vector<32x128xf32>
    %48 = math.tanh %47 : vector<32x128xf32>
    %49 = arith.truncf %48 : vector<32x128xf32> to vector<32x128xbf16>
    %cst_20 = arith.constant dense<0.000000e+00> : vector<32x128xf32>
    %50 = tpu.matmul %49, %1, %cst_20 {dimension_numbers = #tpu.dot_dimension_numbers<[1], [0], [0], [1], [0, 0, 1, 1], [], []>} : vector<32x128xbf16>, vector<128x128xbf16>, vector<32x128xf32> -> vector<32x128xf32>
    %51 = arith.addf %50, %7 : vector<32x128xf32>
    %52 = arith.addf %41, %51 : vector<32x128xf32>
    %cst_21 = arith.constant 0.010416667 : f32
    %53 = vector.broadcast %cst_21 : f32 to vector<32x128xf32>
    %54 = arith.mulf %53, %52 : vector<32x128xf32>
    %55 = arith.addf %8, %54 : vector<32x128xf32>
    %c1_i32 = arith.constant 1 : i32
    %56 = arith.truncf %55 : vector<32x128xf32> to vector<32x128xbf16>
    %cst_22 = arith.constant dense<0.000000e+00> : vector<32x128xf32>
    %57 = tpu.matmul %56, %0, %cst_22 {dimension_numbers = #tpu.dot_dimension_numbers<[1], [0], [0], [1], [0, 0, 1, 1], [], []>} : vector<32x128xbf16>, vector<128x128xbf16>, vector<32x128xf32> -> vector<32x128xf32>
    %58 = arith.addf %57, %4 : vector<32x128xf32>
    %59 = math.tanh %58 : vector<32x128xf32>
    %60 = arith.truncf %59 : vector<32x128xf32> to vector<32x128xbf16>
    %cst_23 = arith.constant dense<0.000000e+00> : vector<32x128xf32>
    %61 = tpu.matmul %60, %1, %cst_23 {dimension_numbers = #tpu.dot_dimension_numbers<[1], [0], [0], [1], [0, 0, 1, 1], [], []>} : vector<32x128xbf16>, vector<128x128xbf16>, vector<32x128xf32> -> vector<32x128xf32>
    %62 = arith.addf %61, %7 : vector<32x128xf32>
    %cst_24 = arith.constant 3.125000e-02 : f32
    %63 = vector.broadcast %cst_24 : f32 to vector<32x128xf32>
    %64 = arith.mulf %63, %62 : vector<32x128xf32>
    %65 = arith.addf %55, %64 : vector<32x128xf32>
    %66 = arith.truncf %65 : vector<32x128xf32> to vector<32x128xbf16>
    %cst_25 = arith.constant dense<0.000000e+00> : vector<32x128xf32>
    %67 = tpu.matmul %66, %0, %cst_25 {dimension_numbers = #tpu.dot_dimension_numbers<[1], [0], [0], [1], [0, 0, 1, 1], [], []>} : vector<32x128xbf16>, vector<128x128xbf16>, vector<32x128xf32> -> vector<32x128xf32>
    %68 = arith.addf %67, %4 : vector<32x128xf32>
    %69 = math.tanh %68 : vector<32x128xf32>
    %70 = arith.truncf %69 : vector<32x128xf32> to vector<32x128xbf16>
    %cst_26 = arith.constant dense<0.000000e+00> : vector<32x128xf32>
    %71 = tpu.matmul %70, %1, %cst_26 {dimension_numbers = #tpu.dot_dimension_numbers<[1], [0], [0], [1], [0, 0, 1, 1], [], []>} : vector<32x128xbf16>, vector<128x128xbf16>, vector<32x128xf32> -> vector<32x128xf32>
    %72 = arith.addf %71, %7 : vector<32x128xf32>
    %cst_27 = arith.constant 2.000000e+00 : f32
    %73 = vector.broadcast %cst_27 : f32 to vector<32x128xf32>
    %74 = arith.mulf %73, %72 : vector<32x128xf32>
    %75 = arith.addf %62, %74 : vector<32x128xf32>
    %cst_28 = arith.constant 3.125000e-02 : f32
    %76 = vector.broadcast %cst_28 : f32 to vector<32x128xf32>
    %77 = arith.mulf %76, %72 : vector<32x128xf32>
    %78 = arith.addf %55, %77 : vector<32x128xf32>
    %79 = arith.truncf %78 : vector<32x128xf32> to vector<32x128xbf16>
    %cst_29 = arith.constant dense<0.000000e+00> : vector<32x128xf32>
    %80 = tpu.matmul %79, %0, %cst_29 {dimension_numbers = #tpu.dot_dimension_numbers<[1], [0], [0], [1], [0, 0, 1, 1], [], []>} : vector<32x128xbf16>, vector<128x128xbf16>, vector<32x128xf32> -> vector<32x128xf32>
    %81 = arith.addf %80, %4 : vector<32x128xf32>
    %82 = math.tanh %81 : vector<32x128xf32>
    %83 = arith.truncf %82 : vector<32x128xf32> to vector<32x128xbf16>
    %cst_30 = arith.constant dense<0.000000e+00> : vector<32x128xf32>
    %84 = tpu.matmul %83, %1, %cst_30 {dimension_numbers = #tpu.dot_dimension_numbers<[1], [0], [0], [1], [0, 0, 1, 1], [], []>} : vector<32x128xbf16>, vector<128x128xbf16>, vector<32x128xf32> -> vector<32x128xf32>
    %85 = arith.addf %84, %7 : vector<32x128xf32>
    %cst_31 = arith.constant 2.000000e+00 : f32
    %86 = vector.broadcast %cst_31 : f32 to vector<32x128xf32>
    %87 = arith.mulf %86, %85 : vector<32x128xf32>
    %88 = arith.addf %75, %87 : vector<32x128xf32>
    %cst_32 = arith.constant 6.250000e-02 : f32
    %89 = vector.broadcast %cst_32 : f32 to vector<32x128xf32>
    %90 = arith.mulf %89, %85 : vector<32x128xf32>
    %91 = arith.addf %55, %90 : vector<32x128xf32>
    %92 = arith.truncf %91 : vector<32x128xf32> to vector<32x128xbf16>
    %cst_33 = arith.constant dense<0.000000e+00> : vector<32x128xf32>
    %93 = tpu.matmul %92, %0, %cst_33 {dimension_numbers = #tpu.dot_dimension_numbers<[1], [0], [0], [1], [0, 0, 1, 1], [], []>} : vector<32x128xbf16>, vector<128x128xbf16>, vector<32x128xf32> -> vector<32x128xf32>
    %94 = arith.addf %93, %4 : vector<32x128xf32>
    %95 = math.tanh %94 : vector<32x128xf32>
    %96 = arith.truncf %95 : vector<32x128xf32> to vector<32x128xbf16>
    %cst_34 = arith.constant dense<0.000000e+00> : vector<32x128xf32>
    %97 = tpu.matmul %96, %1, %cst_34 {dimension_numbers = #tpu.dot_dimension_numbers<[1], [0], [0], [1], [0, 0, 1, 1], [], []>} : vector<32x128xbf16>, vector<128x128xbf16>, vector<32x128xf32> -> vector<32x128xf32>
    %98 = arith.addf %97, %7 : vector<32x128xf32>
    %99 = arith.addf %88, %98 : vector<32x128xf32>
    %cst_35 = arith.constant 0.010416667 : f32
    %100 = vector.broadcast %cst_35 : f32 to vector<32x128xf32>
    %101 = arith.mulf %100, %99 : vector<32x128xf32>
    %102 = arith.addf %55, %101 : vector<32x128xf32>
    %c2_i32 = arith.constant 2 : i32
    %103 = arith.truncf %102 : vector<32x128xf32> to vector<32x128xbf16>
    %cst_36 = arith.constant dense<0.000000e+00> : vector<32x128xf32>
    %104 = tpu.matmul %103, %0, %cst_36 {dimension_numbers = #tpu.dot_dimension_numbers<[1], [0], [0], [1], [0, 0, 1, 1], [], []>} : vector<32x128xbf16>, vector<128x128xbf16>, vector<32x128xf32> -> vector<32x128xf32>
    %105 = arith.addf %104, %4 : vector<32x128xf32>
    %106 = math.tanh %105 : vector<32x128xf32>
    %107 = arith.truncf %106 : vector<32x128xf32> to vector<32x128xbf16>
    %cst_37 = arith.constant dense<0.000000e+00> : vector<32x128xf32>
    %108 = tpu.matmul %107, %1, %cst_37 {dimension_numbers = #tpu.dot_dimension_numbers<[1], [0], [0], [1], [0, 0, 1, 1], [], []>} : vector<32x128xbf16>, vector<128x128xbf16>, vector<32x128xf32> -> vector<32x128xf32>
    %109 = arith.addf %108, %7 : vector<32x128xf32>
    %cst_38 = arith.constant 3.125000e-02 : f32
    %110 = vector.broadcast %cst_38 : f32 to vector<32x128xf32>
    %111 = arith.mulf %110, %109 : vector<32x128xf32>
    %112 = arith.addf %102, %111 : vector<32x128xf32>
    %113 = arith.truncf %112 : vector<32x128xf32> to vector<32x128xbf16>
    %cst_39 = arith.constant dense<0.000000e+00> : vector<32x128xf32>
    %114 = tpu.matmul %113, %0, %cst_39 {dimension_numbers = #tpu.dot_dimension_numbers<[1], [0], [0], [1], [0, 0, 1, 1], [], []>} : vector<32x128xbf16>, vector<128x128xbf16>, vector<32x128xf32> -> vector<32x128xf32>
    %115 = arith.addf %114, %4 : vector<32x128xf32>
    %116 = math.tanh %115 : vector<32x128xf32>
    %117 = arith.truncf %116 : vector<32x128xf32> to vector<32x128xbf16>
    %cst_40 = arith.constant dense<0.000000e+00> : vector<32x128xf32>
    %118 = tpu.matmul %117, %1, %cst_40 {dimension_numbers = #tpu.dot_dimension_numbers<[1], [0], [0], [1], [0, 0, 1, 1], [], []>} : vector<32x128xbf16>, vector<128x128xbf16>, vector<32x128xf32> -> vector<32x128xf32>
    %119 = arith.addf %118, %7 : vector<32x128xf32>
    %cst_41 = arith.constant 2.000000e+00 : f32
    %120 = vector.broadcast %cst_41 : f32 to vector<32x128xf32>
    %121 = arith.mulf %120, %119 : vector<32x128xf32>
    %122 = arith.addf %109, %121 : vector<32x128xf32>
    %cst_42 = arith.constant 3.125000e-02 : f32
    %123 = vector.broadcast %cst_42 : f32 to vector<32x128xf32>
    %124 = arith.mulf %123, %119 : vector<32x128xf32>
    %125 = arith.addf %102, %124 : vector<32x128xf32>
    %126 = arith.truncf %125 : vector<32x128xf32> to vector<32x128xbf16>
    %cst_43 = arith.constant dense<0.000000e+00> : vector<32x128xf32>
    %127 = tpu.matmul %126, %0, %cst_43 {dimension_numbers = #tpu.dot_dimension_numbers<[1], [0], [0], [1], [0, 0, 1, 1], [], []>} : vector<32x128xbf16>, vector<128x128xbf16>, vector<32x128xf32> -> vector<32x128xf32>
    %128 = arith.addf %127, %4 : vector<32x128xf32>
    %129 = math.tanh %128 : vector<32x128xf32>
    %130 = arith.truncf %129 : vector<32x128xf32> to vector<32x128xbf16>
    %cst_44 = arith.constant dense<0.000000e+00> : vector<32x128xf32>
    %131 = tpu.matmul %130, %1, %cst_44 {dimension_numbers = #tpu.dot_dimension_numbers<[1], [0], [0], [1], [0, 0, 1, 1], [], []>} : vector<32x128xbf16>, vector<128x128xbf16>, vector<32x128xf32> -> vector<32x128xf32>
    %132 = arith.addf %131, %7 : vector<32x128xf32>
    %cst_45 = arith.constant 2.000000e+00 : f32
    %133 = vector.broadcast %cst_45 : f32 to vector<32x128xf32>
    %134 = arith.mulf %133, %132 : vector<32x128xf32>
    %135 = arith.addf %122, %134 : vector<32x128xf32>
    %cst_46 = arith.constant 6.250000e-02 : f32
    %136 = vector.broadcast %cst_46 : f32 to vector<32x128xf32>
    %137 = arith.mulf %136, %132 : vector<32x128xf32>
    %138 = arith.addf %102, %137 : vector<32x128xf32>
    %139 = arith.truncf %138 : vector<32x128xf32> to vector<32x128xbf16>
    %cst_47 = arith.constant dense<0.000000e+00> : vector<32x128xf32>
    %140 = tpu.matmul %139, %0, %cst_47 {dimension_numbers = #tpu.dot_dimension_numbers<[1], [0], [0], [1], [0, 0, 1, 1], [], []>} : vector<32x128xbf16>, vector<128x128xbf16>, vector<32x128xf32> -> vector<32x128xf32>
    %141 = arith.addf %140, %4 : vector<32x128xf32>
    %142 = math.tanh %141 : vector<32x128xf32>
    %143 = arith.truncf %142 : vector<32x128xf32> to vector<32x128xbf16>
    %cst_48 = arith.constant dense<0.000000e+00> : vector<32x128xf32>
    %144 = tpu.matmul %143, %1, %cst_48 {dimension_numbers = #tpu.dot_dimension_numbers<[1], [0], [0], [1], [0, 0, 1, 1], [], []>} : vector<32x128xbf16>, vector<128x128xbf16>, vector<32x128xf32> -> vector<32x128xf32>
    %145 = arith.addf %144, %7 : vector<32x128xf32>
    %146 = arith.addf %135, %145 : vector<32x128xf32>
    %cst_49 = arith.constant 0.010416667 : f32
    %147 = vector.broadcast %cst_49 : f32 to vector<32x128xf32>
    %148 = arith.mulf %147, %146 : vector<32x128xf32>
    %149 = arith.addf %102, %148 : vector<32x128xf32>
    %c3_i32 = arith.constant 3 : i32
    %150 = arith.truncf %149 : vector<32x128xf32> to vector<32x128xbf16>
    %cst_50 = arith.constant dense<0.000000e+00> : vector<32x128xf32>
    %151 = tpu.matmul %150, %0, %cst_50 {dimension_numbers = #tpu.dot_dimension_numbers<[1], [0], [0], [1], [0, 0, 1, 1], [], []>} : vector<32x128xbf16>, vector<128x128xbf16>, vector<32x128xf32> -> vector<32x128xf32>
    %152 = arith.addf %151, %4 : vector<32x128xf32>
    %153 = math.tanh %152 : vector<32x128xf32>
    %154 = arith.truncf %153 : vector<32x128xf32> to vector<32x128xbf16>
    %cst_51 = arith.constant dense<0.000000e+00> : vector<32x128xf32>
    %155 = tpu.matmul %154, %1, %cst_51 {dimension_numbers = #tpu.dot_dimension_numbers<[1], [0], [0], [1], [0, 0, 1, 1], [], []>} : vector<32x128xbf16>, vector<128x128xbf16>, vector<32x128xf32> -> vector<32x128xf32>
    %156 = arith.addf %155, %7 : vector<32x128xf32>
    %cst_52 = arith.constant 3.125000e-02 : f32
    %157 = vector.broadcast %cst_52 : f32 to vector<32x128xf32>
    %158 = arith.mulf %157, %156 : vector<32x128xf32>
    %159 = arith.addf %149, %158 : vector<32x128xf32>
    %160 = arith.truncf %159 : vector<32x128xf32> to vector<32x128xbf16>
    %cst_53 = arith.constant dense<0.000000e+00> : vector<32x128xf32>
    %161 = tpu.matmul %160, %0, %cst_53 {dimension_numbers = #tpu.dot_dimension_numbers<[1], [0], [0], [1], [0, 0, 1, 1], [], []>} : vector<32x128xbf16>, vector<128x128xbf16>, vector<32x128xf32> -> vector<32x128xf32>
    %162 = arith.addf %161, %4 : vector<32x128xf32>
    %163 = math.tanh %162 : vector<32x128xf32>
    %164 = arith.truncf %163 : vector<32x128xf32> to vector<32x128xbf16>
    %cst_54 = arith.constant dense<0.000000e+00> : vector<32x128xf32>
    %165 = tpu.matmul %164, %1, %cst_54 {dimension_numbers = #tpu.dot_dimension_numbers<[1], [0], [0], [1], [0, 0, 1, 1], [], []>} : vector<32x128xbf16>, vector<128x128xbf16>, vector<32x128xf32> -> vector<32x128xf32>
    %166 = arith.addf %165, %7 : vector<32x128xf32>
    %cst_55 = arith.constant 2.000000e+00 : f32
    %167 = vector.broadcast %cst_55 : f32 to vector<32x128xf32>
    %168 = arith.mulf %167, %166 : vector<32x128xf32>
    %169 = arith.addf %156, %168 : vector<32x128xf32>
    %cst_56 = arith.constant 3.125000e-02 : f32
    %170 = vector.broadcast %cst_56 : f32 to vector<32x128xf32>
    %171 = arith.mulf %170, %166 : vector<32x128xf32>
    %172 = arith.addf %149, %171 : vector<32x128xf32>
    %173 = arith.truncf %172 : vector<32x128xf32> to vector<32x128xbf16>
    %cst_57 = arith.constant dense<0.000000e+00> : vector<32x128xf32>
    %174 = tpu.matmul %173, %0, %cst_57 {dimension_numbers = #tpu.dot_dimension_numbers<[1], [0], [0], [1], [0, 0, 1, 1], [], []>} : vector<32x128xbf16>, vector<128x128xbf16>, vector<32x128xf32> -> vector<32x128xf32>
    %175 = arith.addf %174, %4 : vector<32x128xf32>
    %176 = math.tanh %175 : vector<32x128xf32>
    %177 = arith.truncf %176 : vector<32x128xf32> to vector<32x128xbf16>
    %cst_58 = arith.constant dense<0.000000e+00> : vector<32x128xf32>
    %178 = tpu.matmul %177, %1, %cst_58 {dimension_numbers = #tpu.dot_dimension_numbers<[1], [0], [0], [1], [0, 0, 1, 1], [], []>} : vector<32x128xbf16>, vector<128x128xbf16>, vector<32x128xf32> -> vector<32x128xf32>
    %179 = arith.addf %178, %7 : vector<32x128xf32>
    %cst_59 = arith.constant 2.000000e+00 : f32
    %180 = vector.broadcast %cst_59 : f32 to vector<32x128xf32>
    %181 = arith.mulf %180, %179 : vector<32x128xf32>
    %182 = arith.addf %169, %181 : vector<32x128xf32>
    %cst_60 = arith.constant 6.250000e-02 : f32
    %183 = vector.broadcast %cst_60 : f32 to vector<32x128xf32>
    %184 = arith.mulf %183, %179 : vector<32x128xf32>
    %185 = arith.addf %149, %184 : vector<32x128xf32>
    %186 = arith.truncf %185 : vector<32x128xf32> to vector<32x128xbf16>
    %cst_61 = arith.constant dense<0.000000e+00> : vector<32x128xf32>
    %187 = tpu.matmul %186, %0, %cst_61 {dimension_numbers = #tpu.dot_dimension_numbers<[1], [0], [0], [1], [0, 0, 1, 1], [], []>} : vector<32x128xbf16>, vector<128x128xbf16>, vector<32x128xf32> -> vector<32x128xf32>
    %188 = arith.addf %187, %4 : vector<32x128xf32>
    %189 = math.tanh %188 : vector<32x128xf32>
    %190 = arith.truncf %189 : vector<32x128xf32> to vector<32x128xbf16>
    %cst_62 = arith.constant dense<0.000000e+00> : vector<32x128xf32>
    %191 = tpu.matmul %190, %1, %cst_62 {dimension_numbers = #tpu.dot_dimension_numbers<[1], [0], [0], [1], [0, 0, 1, 1], [], []>} : vector<32x128xbf16>, vector<128x128xbf16>, vector<32x128xf32> -> vector<32x128xf32>
    %192 = arith.addf %191, %7 : vector<32x128xf32>
    %193 = arith.addf %182, %192 : vector<32x128xf32>
    %cst_63 = arith.constant 0.010416667 : f32
    %194 = vector.broadcast %cst_63 : f32 to vector<32x128xf32>
    %195 = arith.mulf %194, %193 : vector<32x128xf32>
    %196 = arith.addf %149, %195 : vector<32x128xf32>
    %c4_i32 = arith.constant 4 : i32
    %197 = arith.truncf %196 : vector<32x128xf32> to vector<32x128xbf16>
    %cst_64 = arith.constant dense<0.000000e+00> : vector<32x128xf32>
    %198 = tpu.matmul %197, %0, %cst_64 {dimension_numbers = #tpu.dot_dimension_numbers<[1], [0], [0], [1], [0, 0, 1, 1], [], []>} : vector<32x128xbf16>, vector<128x128xbf16>, vector<32x128xf32> -> vector<32x128xf32>
    %199 = arith.addf %198, %4 : vector<32x128xf32>
    %200 = math.tanh %199 : vector<32x128xf32>
    %201 = arith.truncf %200 : vector<32x128xf32> to vector<32x128xbf16>
    %cst_65 = arith.constant dense<0.000000e+00> : vector<32x128xf32>
    %202 = tpu.matmul %201, %1, %cst_65 {dimension_numbers = #tpu.dot_dimension_numbers<[1], [0], [0], [1], [0, 0, 1, 1], [], []>} : vector<32x128xbf16>, vector<128x128xbf16>, vector<32x128xf32> -> vector<32x128xf32>
    %203 = arith.addf %202, %7 : vector<32x128xf32>
    %cst_66 = arith.constant 3.125000e-02 : f32
    %204 = vector.broadcast %cst_66 : f32 to vector<32x128xf32>
    %205 = arith.mulf %204, %203 : vector<32x128xf32>
    %206 = arith.addf %196, %205 : vector<32x128xf32>
    %207 = arith.truncf %206 : vector<32x128xf32> to vector<32x128xbf16>
    %cst_67 = arith.constant dense<0.000000e+00> : vector<32x128xf32>
    %208 = tpu.matmul %207, %0, %cst_67 {dimension_numbers = #tpu.dot_dimension_numbers<[1], [0], [0], [1], [0, 0, 1, 1], [], []>} : vector<32x128xbf16>, vector<128x128xbf16>, vector<32x128xf32> -> vector<32x128xf32>
    %209 = arith.addf %208, %4 : vector<32x128xf32>
    %210 = math.tanh %209 : vector<32x128xf32>
    %211 = arith.truncf %210 : vector<32x128xf32> to vector<32x128xbf16>
    %cst_68 = arith.constant dense<0.000000e+00> : vector<32x128xf32>
    %212 = tpu.matmul %211, %1, %cst_68 {dimension_numbers = #tpu.dot_dimension_numbers<[1], [0], [0], [1], [0, 0, 1, 1], [], []>} : vector<32x128xbf16>, vector<128x128xbf16>, vector<32x128xf32> -> vector<32x128xf32>
    %213 = arith.addf %212, %7 : vector<32x128xf32>
    %cst_69 = arith.constant 2.000000e+00 : f32
    %214 = vector.broadcast %cst_69 : f32 to vector<32x128xf32>
    %215 = arith.mulf %214, %213 : vector<32x128xf32>
    %216 = arith.addf %203, %215 : vector<32x128xf32>
    %cst_70 = arith.constant 3.125000e-02 : f32
    %217 = vector.broadcast %cst_70 : f32 to vector<32x128xf32>
    %218 = arith.mulf %217, %213 : vector<32x128xf32>
    %219 = arith.addf %196, %218 : vector<32x128xf32>
    %220 = arith.truncf %219 : vector<32x128xf32> to vector<32x128xbf16>
    %cst_71 = arith.constant dense<0.000000e+00> : vector<32x128xf32>
    %221 = tpu.matmul %220, %0, %cst_71 {dimension_numbers = #tpu.dot_dimension_numbers<[1], [0], [0], [1], [0, 0, 1, 1], [], []>} : vector<32x128xbf16>, vector<128x128xbf16>, vector<32x128xf32> -> vector<32x128xf32>
    %222 = arith.addf %221, %4 : vector<32x128xf32>
    %223 = math.tanh %222 : vector<32x128xf32>
    %224 = arith.truncf %223 : vector<32x128xf32> to vector<32x128xbf16>
    %cst_72 = arith.constant dense<0.000000e+00> : vector<32x128xf32>
    %225 = tpu.matmul %224, %1, %cst_72 {dimension_numbers = #tpu.dot_dimension_numbers<[1], [0], [0], [1], [0, 0, 1, 1], [], []>} : vector<32x128xbf16>, vector<128x128xbf16>, vector<32x128xf32> -> vector<32x128xf32>
    %226 = arith.addf %225, %7 : vector<32x128xf32>
    %cst_73 = arith.constant 2.000000e+00 : f32
    %227 = vector.broadcast %cst_73 : f32 to vector<32x128xf32>
    %228 = arith.mulf %227, %226 : vector<32x128xf32>
    %229 = arith.addf %216, %228 : vector<32x128xf32>
    %cst_74 = arith.constant 6.250000e-02 : f32
    %230 = vector.broadcast %cst_74 : f32 to vector<32x128xf32>
    %231 = arith.mulf %230, %226 : vector<32x128xf32>
    %232 = arith.addf %196, %231 : vector<32x128xf32>
    %233 = arith.truncf %232 : vector<32x128xf32> to vector<32x128xbf16>
    %cst_75 = arith.constant dense<0.000000e+00> : vector<32x128xf32>
    %234 = tpu.matmul %233, %0, %cst_75 {dimension_numbers = #tpu.dot_dimension_numbers<[1], [0], [0], [1], [0, 0, 1, 1], [], []>} : vector<32x128xbf16>, vector<128x128xbf16>, vector<32x128xf32> -> vector<32x128xf32>
    %235 = arith.addf %234, %4 : vector<32x128xf32>
    %236 = math.tanh %235 : vector<32x128xf32>
    %237 = arith.truncf %236 : vector<32x128xf32> to vector<32x128xbf16>
    %cst_76 = arith.constant dense<0.000000e+00> : vector<32x128xf32>
    %238 = tpu.matmul %237, %1, %cst_76 {dimension_numbers = #tpu.dot_dimension_numbers<[1], [0], [0], [1], [0, 0, 1, 1], [], []>} : vector<32x128xbf16>, vector<128x128xbf16>, vector<32x128xf32> -> vector<32x128xf32>
    %239 = arith.addf %238, %7 : vector<32x128xf32>
    %240 = arith.addf %229, %239 : vector<32x128xf32>
    %cst_77 = arith.constant 0.010416667 : f32
    %241 = vector.broadcast %cst_77 : f32 to vector<32x128xf32>
    %242 = arith.mulf %241, %240 : vector<32x128xf32>
    %243 = arith.addf %196, %242 : vector<32x128xf32>
    %c5_i32 = arith.constant 5 : i32
    %244 = arith.truncf %243 : vector<32x128xf32> to vector<32x128xbf16>
    %cst_78 = arith.constant dense<0.000000e+00> : vector<32x128xf32>
    %245 = tpu.matmul %244, %0, %cst_78 {dimension_numbers = #tpu.dot_dimension_numbers<[1], [0], [0], [1], [0, 0, 1, 1], [], []>} : vector<32x128xbf16>, vector<128x128xbf16>, vector<32x128xf32> -> vector<32x128xf32>
    %246 = arith.addf %245, %4 : vector<32x128xf32>
    %247 = math.tanh %246 : vector<32x128xf32>
    %248 = arith.truncf %247 : vector<32x128xf32> to vector<32x128xbf16>
    %cst_79 = arith.constant dense<0.000000e+00> : vector<32x128xf32>
    %249 = tpu.matmul %248, %1, %cst_79 {dimension_numbers = #tpu.dot_dimension_numbers<[1], [0], [0], [1], [0, 0, 1, 1], [], []>} : vector<32x128xbf16>, vector<128x128xbf16>, vector<32x128xf32> -> vector<32x128xf32>
    %250 = arith.addf %249, %7 : vector<32x128xf32>
    %cst_80 = arith.constant 3.125000e-02 : f32
    %251 = vector.broadcast %cst_80 : f32 to vector<32x128xf32>
    %252 = arith.mulf %251, %250 : vector<32x128xf32>
    %253 = arith.addf %243, %252 : vector<32x128xf32>
    %254 = arith.truncf %253 : vector<32x128xf32> to vector<32x128xbf16>
    %cst_81 = arith.constant dense<0.000000e+00> : vector<32x128xf32>
    %255 = tpu.matmul %254, %0, %cst_81 {dimension_numbers = #tpu.dot_dimension_numbers<[1], [0], [0], [1], [0, 0, 1, 1], [], []>} : vector<32x128xbf16>, vector<128x128xbf16>, vector<32x128xf32> -> vector<32x128xf32>
    %256 = arith.addf %255, %4 : vector<32x128xf32>
    %257 = math.tanh %256 : vector<32x128xf32>
    %258 = arith.truncf %257 : vector<32x128xf32> to vector<32x128xbf16>
    %cst_82 = arith.constant dense<0.000000e+00> : vector<32x128xf32>
    %259 = tpu.matmul %258, %1, %cst_82 {dimension_numbers = #tpu.dot_dimension_numbers<[1], [0], [0], [1], [0, 0, 1, 1], [], []>} : vector<32x128xbf16>, vector<128x128xbf16>, vector<32x128xf32> -> vector<32x128xf32>
    %260 = arith.addf %259, %7 : vector<32x128xf32>
    %cst_83 = arith.constant 2.000000e+00 : f32
    %261 = vector.broadcast %cst_83 : f32 to vector<32x128xf32>
    %262 = arith.mulf %261, %260 : vector<32x128xf32>
    %263 = arith.addf %250, %262 : vector<32x128xf32>
    %cst_84 = arith.constant 3.125000e-02 : f32
    %264 = vector.broadcast %cst_84 : f32 to vector<32x128xf32>
    %265 = arith.mulf %264, %260 : vector<32x128xf32>
    %266 = arith.addf %243, %265 : vector<32x128xf32>
    %267 = arith.truncf %266 : vector<32x128xf32> to vector<32x128xbf16>
    %cst_85 = arith.constant dense<0.000000e+00> : vector<32x128xf32>
    %268 = tpu.matmul %267, %0, %cst_85 {dimension_numbers = #tpu.dot_dimension_numbers<[1], [0], [0], [1], [0, 0, 1, 1], [], []>} : vector<32x128xbf16>, vector<128x128xbf16>, vector<32x128xf32> -> vector<32x128xf32>
    %269 = arith.addf %268, %4 : vector<32x128xf32>
    %270 = math.tanh %269 : vector<32x128xf32>
    %271 = arith.truncf %270 : vector<32x128xf32> to vector<32x128xbf16>
    %cst_86 = arith.constant dense<0.000000e+00> : vector<32x128xf32>
    %272 = tpu.matmul %271, %1, %cst_86 {dimension_numbers = #tpu.dot_dimension_numbers<[1], [0], [0], [1], [0, 0, 1, 1], [], []>} : vector<32x128xbf16>, vector<128x128xbf16>, vector<32x128xf32> -> vector<32x128xf32>
    %273 = arith.addf %272, %7 : vector<32x128xf32>
    %cst_87 = arith.constant 2.000000e+00 : f32
    %274 = vector.broadcast %cst_87 : f32 to vector<32x128xf32>
    %275 = arith.mulf %274, %273 : vector<32x128xf32>
    %276 = arith.addf %263, %275 : vector<32x128xf32>
    %cst_88 = arith.constant 6.250000e-02 : f32
    %277 = vector.broadcast %cst_88 : f32 to vector<32x128xf32>
    %278 = arith.mulf %277, %273 : vector<32x128xf32>
    %279 = arith.addf %243, %278 : vector<32x128xf32>
    %280 = arith.truncf %279 : vector<32x128xf32> to vector<32x128xbf16>
    %cst_89 = arith.constant dense<0.000000e+00> : vector<32x128xf32>
    %281 = tpu.matmul %280, %0, %cst_89 {dimension_numbers = #tpu.dot_dimension_numbers<[1], [0], [0], [1], [0, 0, 1, 1], [], []>} : vector<32x128xbf16>, vector<128x128xbf16>, vector<32x128xf32> -> vector<32x128xf32>
    %282 = arith.addf %281, %4 : vector<32x128xf32>
    %283 = math.tanh %282 : vector<32x128xf32>
    %284 = arith.truncf %283 : vector<32x128xf32> to vector<32x128xbf16>
    %cst_90 = arith.constant dense<0.000000e+00> : vector<32x128xf32>
    %285 = tpu.matmul %284, %1, %cst_90 {dimension_numbers = #tpu.dot_dimension_numbers<[1], [0], [0], [1], [0, 0, 1, 1], [], []>} : vector<32x128xbf16>, vector<128x128xbf16>, vector<32x128xf32> -> vector<32x128xf32>
    %286 = arith.addf %285, %7 : vector<32x128xf32>
    %287 = arith.addf %276, %286 : vector<32x128xf32>
    %cst_91 = arith.constant 0.010416667 : f32
    %288 = vector.broadcast %cst_91 : f32 to vector<32x128xf32>
    %289 = arith.mulf %288, %287 : vector<32x128xf32>
    %290 = arith.addf %243, %289 : vector<32x128xf32>
    %c6_i32 = arith.constant 6 : i32
    %291 = arith.truncf %290 : vector<32x128xf32> to vector<32x128xbf16>
    %cst_92 = arith.constant dense<0.000000e+00> : vector<32x128xf32>
    %292 = tpu.matmul %291, %0, %cst_92 {dimension_numbers = #tpu.dot_dimension_numbers<[1], [0], [0], [1], [0, 0, 1, 1], [], []>} : vector<32x128xbf16>, vector<128x128xbf16>, vector<32x128xf32> -> vector<32x128xf32>
    %293 = arith.addf %292, %4 : vector<32x128xf32>
    %294 = math.tanh %293 : vector<32x128xf32>
    %295 = arith.truncf %294 : vector<32x128xf32> to vector<32x128xbf16>
    %cst_93 = arith.constant dense<0.000000e+00> : vector<32x128xf32>
    %296 = tpu.matmul %295, %1, %cst_93 {dimension_numbers = #tpu.dot_dimension_numbers<[1], [0], [0], [1], [0, 0, 1, 1], [], []>} : vector<32x128xbf16>, vector<128x128xbf16>, vector<32x128xf32> -> vector<32x128xf32>
    %297 = arith.addf %296, %7 : vector<32x128xf32>
    %cst_94 = arith.constant 3.125000e-02 : f32
    %298 = vector.broadcast %cst_94 : f32 to vector<32x128xf32>
    %299 = arith.mulf %298, %297 : vector<32x128xf32>
    %300 = arith.addf %290, %299 : vector<32x128xf32>
    %301 = arith.truncf %300 : vector<32x128xf32> to vector<32x128xbf16>
    %cst_95 = arith.constant dense<0.000000e+00> : vector<32x128xf32>
    %302 = tpu.matmul %301, %0, %cst_95 {dimension_numbers = #tpu.dot_dimension_numbers<[1], [0], [0], [1], [0, 0, 1, 1], [], []>} : vector<32x128xbf16>, vector<128x128xbf16>, vector<32x128xf32> -> vector<32x128xf32>
    %303 = arith.addf %302, %4 : vector<32x128xf32>
    %304 = math.tanh %303 : vector<32x128xf32>
    %305 = arith.truncf %304 : vector<32x128xf32> to vector<32x128xbf16>
    %cst_96 = arith.constant dense<0.000000e+00> : vector<32x128xf32>
    %306 = tpu.matmul %305, %1, %cst_96 {dimension_numbers = #tpu.dot_dimension_numbers<[1], [0], [0], [1], [0, 0, 1, 1], [], []>} : vector<32x128xbf16>, vector<128x128xbf16>, vector<32x128xf32> -> vector<32x128xf32>
    %307 = arith.addf %306, %7 : vector<32x128xf32>
    %cst_97 = arith.constant 2.000000e+00 : f32
    %308 = vector.broadcast %cst_97 : f32 to vector<32x128xf32>
    %309 = arith.mulf %308, %307 : vector<32x128xf32>
    %310 = arith.addf %297, %309 : vector<32x128xf32>
    %cst_98 = arith.constant 3.125000e-02 : f32
    %311 = vector.broadcast %cst_98 : f32 to vector<32x128xf32>
    %312 = arith.mulf %311, %307 : vector<32x128xf32>
    %313 = arith.addf %290, %312 : vector<32x128xf32>
    %314 = arith.truncf %313 : vector<32x128xf32> to vector<32x128xbf16>
    %cst_99 = arith.constant dense<0.000000e+00> : vector<32x128xf32>
    %315 = tpu.matmul %314, %0, %cst_99 {dimension_numbers = #tpu.dot_dimension_numbers<[1], [0], [0], [1], [0, 0, 1, 1], [], []>} : vector<32x128xbf16>, vector<128x128xbf16>, vector<32x128xf32> -> vector<32x128xf32>
    %316 = arith.addf %315, %4 : vector<32x128xf32>
    %317 = math.tanh %316 : vector<32x128xf32>
    %318 = arith.truncf %317 : vector<32x128xf32> to vector<32x128xbf16>
    %cst_100 = arith.constant dense<0.000000e+00> : vector<32x128xf32>
    %319 = tpu.matmul %318, %1, %cst_100 {dimension_numbers = #tpu.dot_dimension_numbers<[1], [0], [0], [1], [0, 0, 1, 1], [], []>} : vector<32x128xbf16>, vector<128x128xbf16>, vector<32x128xf32> -> vector<32x128xf32>
    %320 = arith.addf %319, %7 : vector<32x128xf32>
    %cst_101 = arith.constant 2.000000e+00 : f32
    %321 = vector.broadcast %cst_101 : f32 to vector<32x128xf32>
    %322 = arith.mulf %321, %320 : vector<32x128xf32>
    %323 = arith.addf %310, %322 : vector<32x128xf32>
    %cst_102 = arith.constant 6.250000e-02 : f32
    %324 = vector.broadcast %cst_102 : f32 to vector<32x128xf32>
    %325 = arith.mulf %324, %320 : vector<32x128xf32>
    %326 = arith.addf %290, %325 : vector<32x128xf32>
    %327 = arith.truncf %326 : vector<32x128xf32> to vector<32x128xbf16>
    %cst_103 = arith.constant dense<0.000000e+00> : vector<32x128xf32>
    %328 = tpu.matmul %327, %0, %cst_103 {dimension_numbers = #tpu.dot_dimension_numbers<[1], [0], [0], [1], [0, 0, 1, 1], [], []>} : vector<32x128xbf16>, vector<128x128xbf16>, vector<32x128xf32> -> vector<32x128xf32>
    %329 = arith.addf %328, %4 : vector<32x128xf32>
    %330 = math.tanh %329 : vector<32x128xf32>
    %331 = arith.truncf %330 : vector<32x128xf32> to vector<32x128xbf16>
    %cst_104 = arith.constant dense<0.000000e+00> : vector<32x128xf32>
    %332 = tpu.matmul %331, %1, %cst_104 {dimension_numbers = #tpu.dot_dimension_numbers<[1], [0], [0], [1], [0, 0, 1, 1], [], []>} : vector<32x128xbf16>, vector<128x128xbf16>, vector<32x128xf32> -> vector<32x128xf32>
    %333 = arith.addf %332, %7 : vector<32x128xf32>
    %334 = arith.addf %323, %333 : vector<32x128xf32>
    %cst_105 = arith.constant 0.010416667 : f32
    %335 = vector.broadcast %cst_105 : f32 to vector<32x128xf32>
    %336 = arith.mulf %335, %334 : vector<32x128xf32>
    %337 = arith.addf %290, %336 : vector<32x128xf32>
    %c7_i32 = arith.constant 7 : i32
    %338 = arith.truncf %337 : vector<32x128xf32> to vector<32x128xbf16>
    %cst_106 = arith.constant dense<0.000000e+00> : vector<32x128xf32>
    %339 = tpu.matmul %338, %0, %cst_106 {dimension_numbers = #tpu.dot_dimension_numbers<[1], [0], [0], [1], [0, 0, 1, 1], [], []>} : vector<32x128xbf16>, vector<128x128xbf16>, vector<32x128xf32> -> vector<32x128xf32>
    %340 = arith.addf %339, %4 : vector<32x128xf32>
    %341 = math.tanh %340 : vector<32x128xf32>
    %342 = arith.truncf %341 : vector<32x128xf32> to vector<32x128xbf16>
    %cst_107 = arith.constant dense<0.000000e+00> : vector<32x128xf32>
    %343 = tpu.matmul %342, %1, %cst_107 {dimension_numbers = #tpu.dot_dimension_numbers<[1], [0], [0], [1], [0, 0, 1, 1], [], []>} : vector<32x128xbf16>, vector<128x128xbf16>, vector<32x128xf32> -> vector<32x128xf32>
    %344 = arith.addf %343, %7 : vector<32x128xf32>
    %cst_108 = arith.constant 3.125000e-02 : f32
    %345 = vector.broadcast %cst_108 : f32 to vector<32x128xf32>
    %346 = arith.mulf %345, %344 : vector<32x128xf32>
    %347 = arith.addf %337, %346 : vector<32x128xf32>
    %348 = arith.truncf %347 : vector<32x128xf32> to vector<32x128xbf16>
    %cst_109 = arith.constant dense<0.000000e+00> : vector<32x128xf32>
    %349 = tpu.matmul %348, %0, %cst_109 {dimension_numbers = #tpu.dot_dimension_numbers<[1], [0], [0], [1], [0, 0, 1, 1], [], []>} : vector<32x128xbf16>, vector<128x128xbf16>, vector<32x128xf32> -> vector<32x128xf32>
    %350 = arith.addf %349, %4 : vector<32x128xf32>
    %351 = math.tanh %350 : vector<32x128xf32>
    %352 = arith.truncf %351 : vector<32x128xf32> to vector<32x128xbf16>
    %cst_110 = arith.constant dense<0.000000e+00> : vector<32x128xf32>
    %353 = tpu.matmul %352, %1, %cst_110 {dimension_numbers = #tpu.dot_dimension_numbers<[1], [0], [0], [1], [0, 0, 1, 1], [], []>} : vector<32x128xbf16>, vector<128x128xbf16>, vector<32x128xf32> -> vector<32x128xf32>
    %354 = arith.addf %353, %7 : vector<32x128xf32>
    %cst_111 = arith.constant 2.000000e+00 : f32
    %355 = vector.broadcast %cst_111 : f32 to vector<32x128xf32>
    %356 = arith.mulf %355, %354 : vector<32x128xf32>
    %357 = arith.addf %344, %356 : vector<32x128xf32>
    %cst_112 = arith.constant 3.125000e-02 : f32
    %358 = vector.broadcast %cst_112 : f32 to vector<32x128xf32>
    %359 = arith.mulf %358, %354 : vector<32x128xf32>
    %360 = arith.addf %337, %359 : vector<32x128xf32>
    %361 = arith.truncf %360 : vector<32x128xf32> to vector<32x128xbf16>
    %cst_113 = arith.constant dense<0.000000e+00> : vector<32x128xf32>
    %362 = tpu.matmul %361, %0, %cst_113 {dimension_numbers = #tpu.dot_dimension_numbers<[1], [0], [0], [1], [0, 0, 1, 1], [], []>} : vector<32x128xbf16>, vector<128x128xbf16>, vector<32x128xf32> -> vector<32x128xf32>
    %363 = arith.addf %362, %4 : vector<32x128xf32>
    %364 = math.tanh %363 : vector<32x128xf32>
    %365 = arith.truncf %364 : vector<32x128xf32> to vector<32x128xbf16>
    %cst_114 = arith.constant dense<0.000000e+00> : vector<32x128xf32>
    %366 = tpu.matmul %365, %1, %cst_114 {dimension_numbers = #tpu.dot_dimension_numbers<[1], [0], [0], [1], [0, 0, 1, 1], [], []>} : vector<32x128xbf16>, vector<128x128xbf16>, vector<32x128xf32> -> vector<32x128xf32>
    %367 = arith.addf %366, %7 : vector<32x128xf32>
    %cst_115 = arith.constant 2.000000e+00 : f32
    %368 = vector.broadcast %cst_115 : f32 to vector<32x128xf32>
    %369 = arith.mulf %368, %367 : vector<32x128xf32>
    %370 = arith.addf %357, %369 : vector<32x128xf32>
    %cst_116 = arith.constant 6.250000e-02 : f32
    %371 = vector.broadcast %cst_116 : f32 to vector<32x128xf32>
    %372 = arith.mulf %371, %367 : vector<32x128xf32>
    %373 = arith.addf %337, %372 : vector<32x128xf32>
    %374 = arith.truncf %373 : vector<32x128xf32> to vector<32x128xbf16>
    %cst_117 = arith.constant dense<0.000000e+00> : vector<32x128xf32>
    %375 = tpu.matmul %374, %0, %cst_117 {dimension_numbers = #tpu.dot_dimension_numbers<[1], [0], [0], [1], [0, 0, 1, 1], [], []>} : vector<32x128xbf16>, vector<128x128xbf16>, vector<32x128xf32> -> vector<32x128xf32>
    %376 = arith.addf %375, %4 : vector<32x128xf32>
    %377 = math.tanh %376 : vector<32x128xf32>
    %378 = arith.truncf %377 : vector<32x128xf32> to vector<32x128xbf16>
    %cst_118 = arith.constant dense<0.000000e+00> : vector<32x128xf32>
    %379 = tpu.matmul %378, %1, %cst_118 {dimension_numbers = #tpu.dot_dimension_numbers<[1], [0], [0], [1], [0, 0, 1, 1], [], []>} : vector<32x128xbf16>, vector<128x128xbf16>, vector<32x128xf32> -> vector<32x128xf32>
    %380 = arith.addf %379, %7 : vector<32x128xf32>
    %381 = arith.addf %370, %380 : vector<32x128xf32>
    %cst_119 = arith.constant 0.010416667 : f32
    %382 = vector.broadcast %cst_119 : f32 to vector<32x128xf32>
    %383 = arith.mulf %382, %381 : vector<32x128xf32>
    %384 = arith.addf %337, %383 : vector<32x128xf32>
    %c8_i32 = arith.constant 8 : i32
    %385 = arith.truncf %384 : vector<32x128xf32> to vector<32x128xbf16>
    %cst_120 = arith.constant dense<0.000000e+00> : vector<32x128xf32>
    %386 = tpu.matmul %385, %0, %cst_120 {dimension_numbers = #tpu.dot_dimension_numbers<[1], [0], [0], [1], [0, 0, 1, 1], [], []>} : vector<32x128xbf16>, vector<128x128xbf16>, vector<32x128xf32> -> vector<32x128xf32>
    %387 = arith.addf %386, %4 : vector<32x128xf32>
    %388 = math.tanh %387 : vector<32x128xf32>
    %389 = arith.truncf %388 : vector<32x128xf32> to vector<32x128xbf16>
    %cst_121 = arith.constant dense<0.000000e+00> : vector<32x128xf32>
    %390 = tpu.matmul %389, %1, %cst_121 {dimension_numbers = #tpu.dot_dimension_numbers<[1], [0], [0], [1], [0, 0, 1, 1], [], []>} : vector<32x128xbf16>, vector<128x128xbf16>, vector<32x128xf32> -> vector<32x128xf32>
    %391 = arith.addf %390, %7 : vector<32x128xf32>
    %cst_122 = arith.constant 3.125000e-02 : f32
    %392 = vector.broadcast %cst_122 : f32 to vector<32x128xf32>
    %393 = arith.mulf %392, %391 : vector<32x128xf32>
    %394 = arith.addf %384, %393 : vector<32x128xf32>
    %395 = arith.truncf %394 : vector<32x128xf32> to vector<32x128xbf16>
    %cst_123 = arith.constant dense<0.000000e+00> : vector<32x128xf32>
    %396 = tpu.matmul %395, %0, %cst_123 {dimension_numbers = #tpu.dot_dimension_numbers<[1], [0], [0], [1], [0, 0, 1, 1], [], []>} : vector<32x128xbf16>, vector<128x128xbf16>, vector<32x128xf32> -> vector<32x128xf32>
    %397 = arith.addf %396, %4 : vector<32x128xf32>
    %398 = math.tanh %397 : vector<32x128xf32>
    %399 = arith.truncf %398 : vector<32x128xf32> to vector<32x128xbf16>
    %cst_124 = arith.constant dense<0.000000e+00> : vector<32x128xf32>
    %400 = tpu.matmul %399, %1, %cst_124 {dimension_numbers = #tpu.dot_dimension_numbers<[1], [0], [0], [1], [0, 0, 1, 1], [], []>} : vector<32x128xbf16>, vector<128x128xbf16>, vector<32x128xf32> -> vector<32x128xf32>
    %401 = arith.addf %400, %7 : vector<32x128xf32>
    %cst_125 = arith.constant 2.000000e+00 : f32
    %402 = vector.broadcast %cst_125 : f32 to vector<32x128xf32>
    %403 = arith.mulf %402, %401 : vector<32x128xf32>
    %404 = arith.addf %391, %403 : vector<32x128xf32>
    %cst_126 = arith.constant 3.125000e-02 : f32
    %405 = vector.broadcast %cst_126 : f32 to vector<32x128xf32>
    %406 = arith.mulf %405, %401 : vector<32x128xf32>
    %407 = arith.addf %384, %406 : vector<32x128xf32>
    %408 = arith.truncf %407 : vector<32x128xf32> to vector<32x128xbf16>
    %cst_127 = arith.constant dense<0.000000e+00> : vector<32x128xf32>
    %409 = tpu.matmul %408, %0, %cst_127 {dimension_numbers = #tpu.dot_dimension_numbers<[1], [0], [0], [1], [0, 0, 1, 1], [], []>} : vector<32x128xbf16>, vector<128x128xbf16>, vector<32x128xf32> -> vector<32x128xf32>
    %410 = arith.addf %409, %4 : vector<32x128xf32>
    %411 = math.tanh %410 : vector<32x128xf32>
    %412 = arith.truncf %411 : vector<32x128xf32> to vector<32x128xbf16>
    %cst_128 = arith.constant dense<0.000000e+00> : vector<32x128xf32>
    %413 = tpu.matmul %412, %1, %cst_128 {dimension_numbers = #tpu.dot_dimension_numbers<[1], [0], [0], [1], [0, 0, 1, 1], [], []>} : vector<32x128xbf16>, vector<128x128xbf16>, vector<32x128xf32> -> vector<32x128xf32>
    %414 = arith.addf %413, %7 : vector<32x128xf32>
    %cst_129 = arith.constant 2.000000e+00 : f32
    %415 = vector.broadcast %cst_129 : f32 to vector<32x128xf32>
    %416 = arith.mulf %415, %414 : vector<32x128xf32>
    %417 = arith.addf %404, %416 : vector<32x128xf32>
    %cst_130 = arith.constant 6.250000e-02 : f32
    %418 = vector.broadcast %cst_130 : f32 to vector<32x128xf32>
    %419 = arith.mulf %418, %414 : vector<32x128xf32>
    %420 = arith.addf %384, %419 : vector<32x128xf32>
    %421 = arith.truncf %420 : vector<32x128xf32> to vector<32x128xbf16>
    %cst_131 = arith.constant dense<0.000000e+00> : vector<32x128xf32>
    %422 = tpu.matmul %421, %0, %cst_131 {dimension_numbers = #tpu.dot_dimension_numbers<[1], [0], [0], [1], [0, 0, 1, 1], [], []>} : vector<32x128xbf16>, vector<128x128xbf16>, vector<32x128xf32> -> vector<32x128xf32>
    %423 = arith.addf %422, %4 : vector<32x128xf32>
    %424 = math.tanh %423 : vector<32x128xf32>
    %425 = arith.truncf %424 : vector<32x128xf32> to vector<32x128xbf16>
    %cst_132 = arith.constant dense<0.000000e+00> : vector<32x128xf32>
    %426 = tpu.matmul %425, %1, %cst_132 {dimension_numbers = #tpu.dot_dimension_numbers<[1], [0], [0], [1], [0, 0, 1, 1], [], []>} : vector<32x128xbf16>, vector<128x128xbf16>, vector<32x128xf32> -> vector<32x128xf32>
    %427 = arith.addf %426, %7 : vector<32x128xf32>
    %428 = arith.addf %417, %427 : vector<32x128xf32>
    %cst_133 = arith.constant 0.010416667 : f32
    %429 = vector.broadcast %cst_133 : f32 to vector<32x128xf32>
    %430 = arith.mulf %429, %428 : vector<32x128xf32>
    %431 = arith.addf %384, %430 : vector<32x128xf32>
    %c9_i32 = arith.constant 9 : i32
    %432 = arith.truncf %431 : vector<32x128xf32> to vector<32x128xbf16>
    %cst_134 = arith.constant dense<0.000000e+00> : vector<32x128xf32>
    %433 = tpu.matmul %432, %0, %cst_134 {dimension_numbers = #tpu.dot_dimension_numbers<[1], [0], [0], [1], [0, 0, 1, 1], [], []>} : vector<32x128xbf16>, vector<128x128xbf16>, vector<32x128xf32> -> vector<32x128xf32>
    %434 = arith.addf %433, %4 : vector<32x128xf32>
    %435 = math.tanh %434 : vector<32x128xf32>
    %436 = arith.truncf %435 : vector<32x128xf32> to vector<32x128xbf16>
    %cst_135 = arith.constant dense<0.000000e+00> : vector<32x128xf32>
    %437 = tpu.matmul %436, %1, %cst_135 {dimension_numbers = #tpu.dot_dimension_numbers<[1], [0], [0], [1], [0, 0, 1, 1], [], []>} : vector<32x128xbf16>, vector<128x128xbf16>, vector<32x128xf32> -> vector<32x128xf32>
    %438 = arith.addf %437, %7 : vector<32x128xf32>
    %cst_136 = arith.constant 3.125000e-02 : f32
    %439 = vector.broadcast %cst_136 : f32 to vector<32x128xf32>
    %440 = arith.mulf %439, %438 : vector<32x128xf32>
    %441 = arith.addf %431, %440 : vector<32x128xf32>
    %442 = arith.truncf %441 : vector<32x128xf32> to vector<32x128xbf16>
    %cst_137 = arith.constant dense<0.000000e+00> : vector<32x128xf32>
    %443 = tpu.matmul %442, %0, %cst_137 {dimension_numbers = #tpu.dot_dimension_numbers<[1], [0], [0], [1], [0, 0, 1, 1], [], []>} : vector<32x128xbf16>, vector<128x128xbf16>, vector<32x128xf32> -> vector<32x128xf32>
    %444 = arith.addf %443, %4 : vector<32x128xf32>
    %445 = math.tanh %444 : vector<32x128xf32>
    %446 = arith.truncf %445 : vector<32x128xf32> to vector<32x128xbf16>
    %cst_138 = arith.constant dense<0.000000e+00> : vector<32x128xf32>
    %447 = tpu.matmul %446, %1, %cst_138 {dimension_numbers = #tpu.dot_dimension_numbers<[1], [0], [0], [1], [0, 0, 1, 1], [], []>} : vector<32x128xbf16>, vector<128x128xbf16>, vector<32x128xf32> -> vector<32x128xf32>
    %448 = arith.addf %447, %7 : vector<32x128xf32>
    %cst_139 = arith.constant 2.000000e+00 : f32
    %449 = vector.broadcast %cst_139 : f32 to vector<32x128xf32>
    %450 = arith.mulf %449, %448 : vector<32x128xf32>
    %451 = arith.addf %438, %450 : vector<32x128xf32>
    %cst_140 = arith.constant 3.125000e-02 : f32
    %452 = vector.broadcast %cst_140 : f32 to vector<32x128xf32>
    %453 = arith.mulf %452, %448 : vector<32x128xf32>
    %454 = arith.addf %431, %453 : vector<32x128xf32>
    %455 = arith.truncf %454 : vector<32x128xf32> to vector<32x128xbf16>
    %cst_141 = arith.constant dense<0.000000e+00> : vector<32x128xf32>
    %456 = tpu.matmul %455, %0, %cst_141 {dimension_numbers = #tpu.dot_dimension_numbers<[1], [0], [0], [1], [0, 0, 1, 1], [], []>} : vector<32x128xbf16>, vector<128x128xbf16>, vector<32x128xf32> -> vector<32x128xf32>
    %457 = arith.addf %456, %4 : vector<32x128xf32>
    %458 = math.tanh %457 : vector<32x128xf32>
    %459 = arith.truncf %458 : vector<32x128xf32> to vector<32x128xbf16>
    %cst_142 = arith.constant dense<0.000000e+00> : vector<32x128xf32>
    %460 = tpu.matmul %459, %1, %cst_142 {dimension_numbers = #tpu.dot_dimension_numbers<[1], [0], [0], [1], [0, 0, 1, 1], [], []>} : vector<32x128xbf16>, vector<128x128xbf16>, vector<32x128xf32> -> vector<32x128xf32>
    %461 = arith.addf %460, %7 : vector<32x128xf32>
    %cst_143 = arith.constant 2.000000e+00 : f32
    %462 = vector.broadcast %cst_143 : f32 to vector<32x128xf32>
    %463 = arith.mulf %462, %461 : vector<32x128xf32>
    %464 = arith.addf %451, %463 : vector<32x128xf32>
    %cst_144 = arith.constant 6.250000e-02 : f32
    %465 = vector.broadcast %cst_144 : f32 to vector<32x128xf32>
    %466 = arith.mulf %465, %461 : vector<32x128xf32>
    %467 = arith.addf %431, %466 : vector<32x128xf32>
    %468 = arith.truncf %467 : vector<32x128xf32> to vector<32x128xbf16>
    %cst_145 = arith.constant dense<0.000000e+00> : vector<32x128xf32>
    %469 = tpu.matmul %468, %0, %cst_145 {dimension_numbers = #tpu.dot_dimension_numbers<[1], [0], [0], [1], [0, 0, 1, 1], [], []>} : vector<32x128xbf16>, vector<128x128xbf16>, vector<32x128xf32> -> vector<32x128xf32>
    %470 = arith.addf %469, %4 : vector<32x128xf32>
    %471 = math.tanh %470 : vector<32x128xf32>
    %472 = arith.truncf %471 : vector<32x128xf32> to vector<32x128xbf16>
    %cst_146 = arith.constant dense<0.000000e+00> : vector<32x128xf32>
    %473 = tpu.matmul %472, %1, %cst_146 {dimension_numbers = #tpu.dot_dimension_numbers<[1], [0], [0], [1], [0, 0, 1, 1], [], []>} : vector<32x128xbf16>, vector<128x128xbf16>, vector<32x128xf32> -> vector<32x128xf32>
    %474 = arith.addf %473, %7 : vector<32x128xf32>
    %475 = arith.addf %464, %474 : vector<32x128xf32>
    %cst_147 = arith.constant 0.010416667 : f32
    %476 = vector.broadcast %cst_147 : f32 to vector<32x128xf32>
    %477 = arith.mulf %476, %475 : vector<32x128xf32>
    %478 = arith.addf %431, %477 : vector<32x128xf32>
    %c10_i32 = arith.constant 10 : i32
    %479 = arith.truncf %478 : vector<32x128xf32> to vector<32x128xbf16>
    %cst_148 = arith.constant dense<0.000000e+00> : vector<32x128xf32>
    %480 = tpu.matmul %479, %0, %cst_148 {dimension_numbers = #tpu.dot_dimension_numbers<[1], [0], [0], [1], [0, 0, 1, 1], [], []>} : vector<32x128xbf16>, vector<128x128xbf16>, vector<32x128xf32> -> vector<32x128xf32>
    %481 = arith.addf %480, %4 : vector<32x128xf32>
    %482 = math.tanh %481 : vector<32x128xf32>
    %483 = arith.truncf %482 : vector<32x128xf32> to vector<32x128xbf16>
    %cst_149 = arith.constant dense<0.000000e+00> : vector<32x128xf32>
    %484 = tpu.matmul %483, %1, %cst_149 {dimension_numbers = #tpu.dot_dimension_numbers<[1], [0], [0], [1], [0, 0, 1, 1], [], []>} : vector<32x128xbf16>, vector<128x128xbf16>, vector<32x128xf32> -> vector<32x128xf32>
    %485 = arith.addf %484, %7 : vector<32x128xf32>
    %cst_150 = arith.constant 3.125000e-02 : f32
    %486 = vector.broadcast %cst_150 : f32 to vector<32x128xf32>
    %487 = arith.mulf %486, %485 : vector<32x128xf32>
    %488 = arith.addf %478, %487 : vector<32x128xf32>
    %489 = arith.truncf %488 : vector<32x128xf32> to vector<32x128xbf16>
    %cst_151 = arith.constant dense<0.000000e+00> : vector<32x128xf32>
    %490 = tpu.matmul %489, %0, %cst_151 {dimension_numbers = #tpu.dot_dimension_numbers<[1], [0], [0], [1], [0, 0, 1, 1], [], []>} : vector<32x128xbf16>, vector<128x128xbf16>, vector<32x128xf32> -> vector<32x128xf32>
    %491 = arith.addf %490, %4 : vector<32x128xf32>
    %492 = math.tanh %491 : vector<32x128xf32>
    %493 = arith.truncf %492 : vector<32x128xf32> to vector<32x128xbf16>
    %cst_152 = arith.constant dense<0.000000e+00> : vector<32x128xf32>
    %494 = tpu.matmul %493, %1, %cst_152 {dimension_numbers = #tpu.dot_dimension_numbers<[1], [0], [0], [1], [0, 0, 1, 1], [], []>} : vector<32x128xbf16>, vector<128x128xbf16>, vector<32x128xf32> -> vector<32x128xf32>
    %495 = arith.addf %494, %7 : vector<32x128xf32>
    %cst_153 = arith.constant 2.000000e+00 : f32
    %496 = vector.broadcast %cst_153 : f32 to vector<32x128xf32>
    %497 = arith.mulf %496, %495 : vector<32x128xf32>
    %498 = arith.addf %485, %497 : vector<32x128xf32>
    %cst_154 = arith.constant 3.125000e-02 : f32
    %499 = vector.broadcast %cst_154 : f32 to vector<32x128xf32>
    %500 = arith.mulf %499, %495 : vector<32x128xf32>
    %501 = arith.addf %478, %500 : vector<32x128xf32>
    %502 = arith.truncf %501 : vector<32x128xf32> to vector<32x128xbf16>
    %cst_155 = arith.constant dense<0.000000e+00> : vector<32x128xf32>
    %503 = tpu.matmul %502, %0, %cst_155 {dimension_numbers = #tpu.dot_dimension_numbers<[1], [0], [0], [1], [0, 0, 1, 1], [], []>} : vector<32x128xbf16>, vector<128x128xbf16>, vector<32x128xf32> -> vector<32x128xf32>
    %504 = arith.addf %503, %4 : vector<32x128xf32>
    %505 = math.tanh %504 : vector<32x128xf32>
    %506 = arith.truncf %505 : vector<32x128xf32> to vector<32x128xbf16>
    %cst_156 = arith.constant dense<0.000000e+00> : vector<32x128xf32>
    %507 = tpu.matmul %506, %1, %cst_156 {dimension_numbers = #tpu.dot_dimension_numbers<[1], [0], [0], [1], [0, 0, 1, 1], [], []>} : vector<32x128xbf16>, vector<128x128xbf16>, vector<32x128xf32> -> vector<32x128xf32>
    %508 = arith.addf %507, %7 : vector<32x128xf32>
    %cst_157 = arith.constant 2.000000e+00 : f32
    %509 = vector.broadcast %cst_157 : f32 to vector<32x128xf32>
    %510 = arith.mulf %509, %508 : vector<32x128xf32>
    %511 = arith.addf %498, %510 : vector<32x128xf32>
    %cst_158 = arith.constant 6.250000e-02 : f32
    %512 = vector.broadcast %cst_158 : f32 to vector<32x128xf32>
    %513 = arith.mulf %512, %508 : vector<32x128xf32>
    %514 = arith.addf %478, %513 : vector<32x128xf32>
    %515 = arith.truncf %514 : vector<32x128xf32> to vector<32x128xbf16>
    %cst_159 = arith.constant dense<0.000000e+00> : vector<32x128xf32>
    %516 = tpu.matmul %515, %0, %cst_159 {dimension_numbers = #tpu.dot_dimension_numbers<[1], [0], [0], [1], [0, 0, 1, 1], [], []>} : vector<32x128xbf16>, vector<128x128xbf16>, vector<32x128xf32> -> vector<32x128xf32>
    %517 = arith.addf %516, %4 : vector<32x128xf32>
    %518 = math.tanh %517 : vector<32x128xf32>
    %519 = arith.truncf %518 : vector<32x128xf32> to vector<32x128xbf16>
    %cst_160 = arith.constant dense<0.000000e+00> : vector<32x128xf32>
    %520 = tpu.matmul %519, %1, %cst_160 {dimension_numbers = #tpu.dot_dimension_numbers<[1], [0], [0], [1], [0, 0, 1, 1], [], []>} : vector<32x128xbf16>, vector<128x128xbf16>, vector<32x128xf32> -> vector<32x128xf32>
    %521 = arith.addf %520, %7 : vector<32x128xf32>
    %522 = arith.addf %511, %521 : vector<32x128xf32>
    %cst_161 = arith.constant 0.010416667 : f32
    %523 = vector.broadcast %cst_161 : f32 to vector<32x128xf32>
    %524 = arith.mulf %523, %522 : vector<32x128xf32>
    %525 = arith.addf %478, %524 : vector<32x128xf32>
    %c11_i32 = arith.constant 11 : i32
    %526 = arith.truncf %525 : vector<32x128xf32> to vector<32x128xbf16>
    %cst_162 = arith.constant dense<0.000000e+00> : vector<32x128xf32>
    %527 = tpu.matmul %526, %0, %cst_162 {dimension_numbers = #tpu.dot_dimension_numbers<[1], [0], [0], [1], [0, 0, 1, 1], [], []>} : vector<32x128xbf16>, vector<128x128xbf16>, vector<32x128xf32> -> vector<32x128xf32>
    %528 = arith.addf %527, %4 : vector<32x128xf32>
    %529 = math.tanh %528 : vector<32x128xf32>
    %530 = arith.truncf %529 : vector<32x128xf32> to vector<32x128xbf16>
    %cst_163 = arith.constant dense<0.000000e+00> : vector<32x128xf32>
    %531 = tpu.matmul %530, %1, %cst_163 {dimension_numbers = #tpu.dot_dimension_numbers<[1], [0], [0], [1], [0, 0, 1, 1], [], []>} : vector<32x128xbf16>, vector<128x128xbf16>, vector<32x128xf32> -> vector<32x128xf32>
    %532 = arith.addf %531, %7 : vector<32x128xf32>
    %cst_164 = arith.constant 3.125000e-02 : f32
    %533 = vector.broadcast %cst_164 : f32 to vector<32x128xf32>
    %534 = arith.mulf %533, %532 : vector<32x128xf32>
    %535 = arith.addf %525, %534 : vector<32x128xf32>
    %536 = arith.truncf %535 : vector<32x128xf32> to vector<32x128xbf16>
    %cst_165 = arith.constant dense<0.000000e+00> : vector<32x128xf32>
    %537 = tpu.matmul %536, %0, %cst_165 {dimension_numbers = #tpu.dot_dimension_numbers<[1], [0], [0], [1], [0, 0, 1, 1], [], []>} : vector<32x128xbf16>, vector<128x128xbf16>, vector<32x128xf32> -> vector<32x128xf32>
    %538 = arith.addf %537, %4 : vector<32x128xf32>
    %539 = math.tanh %538 : vector<32x128xf32>
    %540 = arith.truncf %539 : vector<32x128xf32> to vector<32x128xbf16>
    %cst_166 = arith.constant dense<0.000000e+00> : vector<32x128xf32>
    %541 = tpu.matmul %540, %1, %cst_166 {dimension_numbers = #tpu.dot_dimension_numbers<[1], [0], [0], [1], [0, 0, 1, 1], [], []>} : vector<32x128xbf16>, vector<128x128xbf16>, vector<32x128xf32> -> vector<32x128xf32>
    %542 = arith.addf %541, %7 : vector<32x128xf32>
    %cst_167 = arith.constant 2.000000e+00 : f32
    %543 = vector.broadcast %cst_167 : f32 to vector<32x128xf32>
    %544 = arith.mulf %543, %542 : vector<32x128xf32>
    %545 = arith.addf %532, %544 : vector<32x128xf32>
    %cst_168 = arith.constant 3.125000e-02 : f32
    %546 = vector.broadcast %cst_168 : f32 to vector<32x128xf32>
    %547 = arith.mulf %546, %542 : vector<32x128xf32>
    %548 = arith.addf %525, %547 : vector<32x128xf32>
    %549 = arith.truncf %548 : vector<32x128xf32> to vector<32x128xbf16>
    %cst_169 = arith.constant dense<0.000000e+00> : vector<32x128xf32>
    %550 = tpu.matmul %549, %0, %cst_169 {dimension_numbers = #tpu.dot_dimension_numbers<[1], [0], [0], [1], [0, 0, 1, 1], [], []>} : vector<32x128xbf16>, vector<128x128xbf16>, vector<32x128xf32> -> vector<32x128xf32>
    %551 = arith.addf %550, %4 : vector<32x128xf32>
    %552 = math.tanh %551 : vector<32x128xf32>
    %553 = arith.truncf %552 : vector<32x128xf32> to vector<32x128xbf16>
    %cst_170 = arith.constant dense<0.000000e+00> : vector<32x128xf32>
    %554 = tpu.matmul %553, %1, %cst_170 {dimension_numbers = #tpu.dot_dimension_numbers<[1], [0], [0], [1], [0, 0, 1, 1], [], []>} : vector<32x128xbf16>, vector<128x128xbf16>, vector<32x128xf32> -> vector<32x128xf32>
    %555 = arith.addf %554, %7 : vector<32x128xf32>
    %cst_171 = arith.constant 2.000000e+00 : f32
    %556 = vector.broadcast %cst_171 : f32 to vector<32x128xf32>
    %557 = arith.mulf %556, %555 : vector<32x128xf32>
    %558 = arith.addf %545, %557 : vector<32x128xf32>
    %cst_172 = arith.constant 6.250000e-02 : f32
    %559 = vector.broadcast %cst_172 : f32 to vector<32x128xf32>
    %560 = arith.mulf %559, %555 : vector<32x128xf32>
    %561 = arith.addf %525, %560 : vector<32x128xf32>
    %562 = arith.truncf %561 : vector<32x128xf32> to vector<32x128xbf16>
    %cst_173 = arith.constant dense<0.000000e+00> : vector<32x128xf32>
    %563 = tpu.matmul %562, %0, %cst_173 {dimension_numbers = #tpu.dot_dimension_numbers<[1], [0], [0], [1], [0, 0, 1, 1], [], []>} : vector<32x128xbf16>, vector<128x128xbf16>, vector<32x128xf32> -> vector<32x128xf32>
    %564 = arith.addf %563, %4 : vector<32x128xf32>
    %565 = math.tanh %564 : vector<32x128xf32>
    %566 = arith.truncf %565 : vector<32x128xf32> to vector<32x128xbf16>
    %cst_174 = arith.constant dense<0.000000e+00> : vector<32x128xf32>
    %567 = tpu.matmul %566, %1, %cst_174 {dimension_numbers = #tpu.dot_dimension_numbers<[1], [0], [0], [1], [0, 0, 1, 1], [], []>} : vector<32x128xbf16>, vector<128x128xbf16>, vector<32x128xf32> -> vector<32x128xf32>
    %568 = arith.addf %567, %7 : vector<32x128xf32>
    %569 = arith.addf %558, %568 : vector<32x128xf32>
    %cst_175 = arith.constant 0.010416667 : f32
    %570 = vector.broadcast %cst_175 : f32 to vector<32x128xf32>
    %571 = arith.mulf %570, %569 : vector<32x128xf32>
    %572 = arith.addf %525, %571 : vector<32x128xf32>
    %c12_i32 = arith.constant 12 : i32
    %573 = arith.truncf %572 : vector<32x128xf32> to vector<32x128xbf16>
    %cst_176 = arith.constant dense<0.000000e+00> : vector<32x128xf32>
    %574 = tpu.matmul %573, %0, %cst_176 {dimension_numbers = #tpu.dot_dimension_numbers<[1], [0], [0], [1], [0, 0, 1, 1], [], []>} : vector<32x128xbf16>, vector<128x128xbf16>, vector<32x128xf32> -> vector<32x128xf32>
    %575 = arith.addf %574, %4 : vector<32x128xf32>
    %576 = math.tanh %575 : vector<32x128xf32>
    %577 = arith.truncf %576 : vector<32x128xf32> to vector<32x128xbf16>
    %cst_177 = arith.constant dense<0.000000e+00> : vector<32x128xf32>
    %578 = tpu.matmul %577, %1, %cst_177 {dimension_numbers = #tpu.dot_dimension_numbers<[1], [0], [0], [1], [0, 0, 1, 1], [], []>} : vector<32x128xbf16>, vector<128x128xbf16>, vector<32x128xf32> -> vector<32x128xf32>
    %579 = arith.addf %578, %7 : vector<32x128xf32>
    %cst_178 = arith.constant 3.125000e-02 : f32
    %580 = vector.broadcast %cst_178 : f32 to vector<32x128xf32>
    %581 = arith.mulf %580, %579 : vector<32x128xf32>
    %582 = arith.addf %572, %581 : vector<32x128xf32>
    %583 = arith.truncf %582 : vector<32x128xf32> to vector<32x128xbf16>
    %cst_179 = arith.constant dense<0.000000e+00> : vector<32x128xf32>
    %584 = tpu.matmul %583, %0, %cst_179 {dimension_numbers = #tpu.dot_dimension_numbers<[1], [0], [0], [1], [0, 0, 1, 1], [], []>} : vector<32x128xbf16>, vector<128x128xbf16>, vector<32x128xf32> -> vector<32x128xf32>
    %585 = arith.addf %584, %4 : vector<32x128xf32>
    %586 = math.tanh %585 : vector<32x128xf32>
    %587 = arith.truncf %586 : vector<32x128xf32> to vector<32x128xbf16>
    %cst_180 = arith.constant dense<0.000000e+00> : vector<32x128xf32>
    %588 = tpu.matmul %587, %1, %cst_180 {dimension_numbers = #tpu.dot_dimension_numbers<[1], [0], [0], [1], [0, 0, 1, 1], [], []>} : vector<32x128xbf16>, vector<128x128xbf16>, vector<32x128xf32> -> vector<32x128xf32>
    %589 = arith.addf %588, %7 : vector<32x128xf32>
    %cst_181 = arith.constant 2.000000e+00 : f32
    %590 = vector.broadcast %cst_181 : f32 to vector<32x128xf32>
    %591 = arith.mulf %590, %589 : vector<32x128xf32>
    %592 = arith.addf %579, %591 : vector<32x128xf32>
    %cst_182 = arith.constant 3.125000e-02 : f32
    %593 = vector.broadcast %cst_182 : f32 to vector<32x128xf32>
    %594 = arith.mulf %593, %589 : vector<32x128xf32>
    %595 = arith.addf %572, %594 : vector<32x128xf32>
    %596 = arith.truncf %595 : vector<32x128xf32> to vector<32x128xbf16>
    %cst_183 = arith.constant dense<0.000000e+00> : vector<32x128xf32>
    %597 = tpu.matmul %596, %0, %cst_183 {dimension_numbers = #tpu.dot_dimension_numbers<[1], [0], [0], [1], [0, 0, 1, 1], [], []>} : vector<32x128xbf16>, vector<128x128xbf16>, vector<32x128xf32> -> vector<32x128xf32>
    %598 = arith.addf %597, %4 : vector<32x128xf32>
    %599 = math.tanh %598 : vector<32x128xf32>
    %600 = arith.truncf %599 : vector<32x128xf32> to vector<32x128xbf16>
    %cst_184 = arith.constant dense<0.000000e+00> : vector<32x128xf32>
    %601 = tpu.matmul %600, %1, %cst_184 {dimension_numbers = #tpu.dot_dimension_numbers<[1], [0], [0], [1], [0, 0, 1, 1], [], []>} : vector<32x128xbf16>, vector<128x128xbf16>, vector<32x128xf32> -> vector<32x128xf32>
    %602 = arith.addf %601, %7 : vector<32x128xf32>
    %cst_185 = arith.constant 2.000000e+00 : f32
    %603 = vector.broadcast %cst_185 : f32 to vector<32x128xf32>
    %604 = arith.mulf %603, %602 : vector<32x128xf32>
    %605 = arith.addf %592, %604 : vector<32x128xf32>
    %cst_186 = arith.constant 6.250000e-02 : f32
    %606 = vector.broadcast %cst_186 : f32 to vector<32x128xf32>
    %607 = arith.mulf %606, %602 : vector<32x128xf32>
    %608 = arith.addf %572, %607 : vector<32x128xf32>
    %609 = arith.truncf %608 : vector<32x128xf32> to vector<32x128xbf16>
    %cst_187 = arith.constant dense<0.000000e+00> : vector<32x128xf32>
    %610 = tpu.matmul %609, %0, %cst_187 {dimension_numbers = #tpu.dot_dimension_numbers<[1], [0], [0], [1], [0, 0, 1, 1], [], []>} : vector<32x128xbf16>, vector<128x128xbf16>, vector<32x128xf32> -> vector<32x128xf32>
    %611 = arith.addf %610, %4 : vector<32x128xf32>
    %612 = math.tanh %611 : vector<32x128xf32>
    %613 = arith.truncf %612 : vector<32x128xf32> to vector<32x128xbf16>
    %cst_188 = arith.constant dense<0.000000e+00> : vector<32x128xf32>
    %614 = tpu.matmul %613, %1, %cst_188 {dimension_numbers = #tpu.dot_dimension_numbers<[1], [0], [0], [1], [0, 0, 1, 1], [], []>} : vector<32x128xbf16>, vector<128x128xbf16>, vector<32x128xf32> -> vector<32x128xf32>
    %615 = arith.addf %614, %7 : vector<32x128xf32>
    %616 = arith.addf %605, %615 : vector<32x128xf32>
    %cst_189 = arith.constant 0.010416667 : f32
    %617 = vector.broadcast %cst_189 : f32 to vector<32x128xf32>
    %618 = arith.mulf %617, %616 : vector<32x128xf32>
    %619 = arith.addf %572, %618 : vector<32x128xf32>
    %c13_i32 = arith.constant 13 : i32
    %620 = arith.truncf %619 : vector<32x128xf32> to vector<32x128xbf16>
    %cst_190 = arith.constant dense<0.000000e+00> : vector<32x128xf32>
    %621 = tpu.matmul %620, %0, %cst_190 {dimension_numbers = #tpu.dot_dimension_numbers<[1], [0], [0], [1], [0, 0, 1, 1], [], []>} : vector<32x128xbf16>, vector<128x128xbf16>, vector<32x128xf32> -> vector<32x128xf32>
    %622 = arith.addf %621, %4 : vector<32x128xf32>
    %623 = math.tanh %622 : vector<32x128xf32>
    %624 = arith.truncf %623 : vector<32x128xf32> to vector<32x128xbf16>
    %cst_191 = arith.constant dense<0.000000e+00> : vector<32x128xf32>
    %625 = tpu.matmul %624, %1, %cst_191 {dimension_numbers = #tpu.dot_dimension_numbers<[1], [0], [0], [1], [0, 0, 1, 1], [], []>} : vector<32x128xbf16>, vector<128x128xbf16>, vector<32x128xf32> -> vector<32x128xf32>
    %626 = arith.addf %625, %7 : vector<32x128xf32>
    %cst_192 = arith.constant 3.125000e-02 : f32
    %627 = vector.broadcast %cst_192 : f32 to vector<32x128xf32>
    %628 = arith.mulf %627, %626 : vector<32x128xf32>
    %629 = arith.addf %619, %628 : vector<32x128xf32>
    %630 = arith.truncf %629 : vector<32x128xf32> to vector<32x128xbf16>
    %cst_193 = arith.constant dense<0.000000e+00> : vector<32x128xf32>
    %631 = tpu.matmul %630, %0, %cst_193 {dimension_numbers = #tpu.dot_dimension_numbers<[1], [0], [0], [1], [0, 0, 1, 1], [], []>} : vector<32x128xbf16>, vector<128x128xbf16>, vector<32x128xf32> -> vector<32x128xf32>
    %632 = arith.addf %631, %4 : vector<32x128xf32>
    %633 = math.tanh %632 : vector<32x128xf32>
    %634 = arith.truncf %633 : vector<32x128xf32> to vector<32x128xbf16>
    %cst_194 = arith.constant dense<0.000000e+00> : vector<32x128xf32>
    %635 = tpu.matmul %634, %1, %cst_194 {dimension_numbers = #tpu.dot_dimension_numbers<[1], [0], [0], [1], [0, 0, 1, 1], [], []>} : vector<32x128xbf16>, vector<128x128xbf16>, vector<32x128xf32> -> vector<32x128xf32>
    %636 = arith.addf %635, %7 : vector<32x128xf32>
    %cst_195 = arith.constant 2.000000e+00 : f32
    %637 = vector.broadcast %cst_195 : f32 to vector<32x128xf32>
    %638 = arith.mulf %637, %636 : vector<32x128xf32>
    %639 = arith.addf %626, %638 : vector<32x128xf32>
    %cst_196 = arith.constant 3.125000e-02 : f32
    %640 = vector.broadcast %cst_196 : f32 to vector<32x128xf32>
    %641 = arith.mulf %640, %636 : vector<32x128xf32>
    %642 = arith.addf %619, %641 : vector<32x128xf32>
    %643 = arith.truncf %642 : vector<32x128xf32> to vector<32x128xbf16>
    %cst_197 = arith.constant dense<0.000000e+00> : vector<32x128xf32>
    %644 = tpu.matmul %643, %0, %cst_197 {dimension_numbers = #tpu.dot_dimension_numbers<[1], [0], [0], [1], [0, 0, 1, 1], [], []>} : vector<32x128xbf16>, vector<128x128xbf16>, vector<32x128xf32> -> vector<32x128xf32>
    %645 = arith.addf %644, %4 : vector<32x128xf32>
    %646 = math.tanh %645 : vector<32x128xf32>
    %647 = arith.truncf %646 : vector<32x128xf32> to vector<32x128xbf16>
    %cst_198 = arith.constant dense<0.000000e+00> : vector<32x128xf32>
    %648 = tpu.matmul %647, %1, %cst_198 {dimension_numbers = #tpu.dot_dimension_numbers<[1], [0], [0], [1], [0, 0, 1, 1], [], []>} : vector<32x128xbf16>, vector<128x128xbf16>, vector<32x128xf32> -> vector<32x128xf32>
    %649 = arith.addf %648, %7 : vector<32x128xf32>
    %cst_199 = arith.constant 2.000000e+00 : f32
    %650 = vector.broadcast %cst_199 : f32 to vector<32x128xf32>
    %651 = arith.mulf %650, %649 : vector<32x128xf32>
    %652 = arith.addf %639, %651 : vector<32x128xf32>
    %cst_200 = arith.constant 6.250000e-02 : f32
    %653 = vector.broadcast %cst_200 : f32 to vector<32x128xf32>
    %654 = arith.mulf %653, %649 : vector<32x128xf32>
    %655 = arith.addf %619, %654 : vector<32x128xf32>
    %656 = arith.truncf %655 : vector<32x128xf32> to vector<32x128xbf16>
    %cst_201 = arith.constant dense<0.000000e+00> : vector<32x128xf32>
    %657 = tpu.matmul %656, %0, %cst_201 {dimension_numbers = #tpu.dot_dimension_numbers<[1], [0], [0], [1], [0, 0, 1, 1], [], []>} : vector<32x128xbf16>, vector<128x128xbf16>, vector<32x128xf32> -> vector<32x128xf32>
    %658 = arith.addf %657, %4 : vector<32x128xf32>
    %659 = math.tanh %658 : vector<32x128xf32>
    %660 = arith.truncf %659 : vector<32x128xf32> to vector<32x128xbf16>
    %cst_202 = arith.constant dense<0.000000e+00> : vector<32x128xf32>
    %661 = tpu.matmul %660, %1, %cst_202 {dimension_numbers = #tpu.dot_dimension_numbers<[1], [0], [0], [1], [0, 0, 1, 1], [], []>} : vector<32x128xbf16>, vector<128x128xbf16>, vector<32x128xf32> -> vector<32x128xf32>
    %662 = arith.addf %661, %7 : vector<32x128xf32>
    %663 = arith.addf %652, %662 : vector<32x128xf32>
    %cst_203 = arith.constant 0.010416667 : f32
    %664 = vector.broadcast %cst_203 : f32 to vector<32x128xf32>
    %665 = arith.mulf %664, %663 : vector<32x128xf32>
    %666 = arith.addf %619, %665 : vector<32x128xf32>
    %c14_i32 = arith.constant 14 : i32
    %667 = arith.truncf %666 : vector<32x128xf32> to vector<32x128xbf16>
    %cst_204 = arith.constant dense<0.000000e+00> : vector<32x128xf32>
    %668 = tpu.matmul %667, %0, %cst_204 {dimension_numbers = #tpu.dot_dimension_numbers<[1], [0], [0], [1], [0, 0, 1, 1], [], []>} : vector<32x128xbf16>, vector<128x128xbf16>, vector<32x128xf32> -> vector<32x128xf32>
    %669 = arith.addf %668, %4 : vector<32x128xf32>
    %670 = math.tanh %669 : vector<32x128xf32>
    %671 = arith.truncf %670 : vector<32x128xf32> to vector<32x128xbf16>
    %cst_205 = arith.constant dense<0.000000e+00> : vector<32x128xf32>
    %672 = tpu.matmul %671, %1, %cst_205 {dimension_numbers = #tpu.dot_dimension_numbers<[1], [0], [0], [1], [0, 0, 1, 1], [], []>} : vector<32x128xbf16>, vector<128x128xbf16>, vector<32x128xf32> -> vector<32x128xf32>
    %673 = arith.addf %672, %7 : vector<32x128xf32>
    %cst_206 = arith.constant 3.125000e-02 : f32
    %674 = vector.broadcast %cst_206 : f32 to vector<32x128xf32>
    %675 = arith.mulf %674, %673 : vector<32x128xf32>
    %676 = arith.addf %666, %675 : vector<32x128xf32>
    %677 = arith.truncf %676 : vector<32x128xf32> to vector<32x128xbf16>
    %cst_207 = arith.constant dense<0.000000e+00> : vector<32x128xf32>
    %678 = tpu.matmul %677, %0, %cst_207 {dimension_numbers = #tpu.dot_dimension_numbers<[1], [0], [0], [1], [0, 0, 1, 1], [], []>} : vector<32x128xbf16>, vector<128x128xbf16>, vector<32x128xf32> -> vector<32x128xf32>
    %679 = arith.addf %678, %4 : vector<32x128xf32>
    %680 = math.tanh %679 : vector<32x128xf32>
    %681 = arith.truncf %680 : vector<32x128xf32> to vector<32x128xbf16>
    %cst_208 = arith.constant dense<0.000000e+00> : vector<32x128xf32>
    %682 = tpu.matmul %681, %1, %cst_208 {dimension_numbers = #tpu.dot_dimension_numbers<[1], [0], [0], [1], [0, 0, 1, 1], [], []>} : vector<32x128xbf16>, vector<128x128xbf16>, vector<32x128xf32> -> vector<32x128xf32>
    %683 = arith.addf %682, %7 : vector<32x128xf32>
    %cst_209 = arith.constant 2.000000e+00 : f32
    %684 = vector.broadcast %cst_209 : f32 to vector<32x128xf32>
    %685 = arith.mulf %684, %683 : vector<32x128xf32>
    %686 = arith.addf %673, %685 : vector<32x128xf32>
    %cst_210 = arith.constant 3.125000e-02 : f32
    %687 = vector.broadcast %cst_210 : f32 to vector<32x128xf32>
    %688 = arith.mulf %687, %683 : vector<32x128xf32>
    %689 = arith.addf %666, %688 : vector<32x128xf32>
    %690 = arith.truncf %689 : vector<32x128xf32> to vector<32x128xbf16>
    %cst_211 = arith.constant dense<0.000000e+00> : vector<32x128xf32>
    %691 = tpu.matmul %690, %0, %cst_211 {dimension_numbers = #tpu.dot_dimension_numbers<[1], [0], [0], [1], [0, 0, 1, 1], [], []>} : vector<32x128xbf16>, vector<128x128xbf16>, vector<32x128xf32> -> vector<32x128xf32>
    %692 = arith.addf %691, %4 : vector<32x128xf32>
    %693 = math.tanh %692 : vector<32x128xf32>
    %694 = arith.truncf %693 : vector<32x128xf32> to vector<32x128xbf16>
    %cst_212 = arith.constant dense<0.000000e+00> : vector<32x128xf32>
    %695 = tpu.matmul %694, %1, %cst_212 {dimension_numbers = #tpu.dot_dimension_numbers<[1], [0], [0], [1], [0, 0, 1, 1], [], []>} : vector<32x128xbf16>, vector<128x128xbf16>, vector<32x128xf32> -> vector<32x128xf32>
    %696 = arith.addf %695, %7 : vector<32x128xf32>
    %cst_213 = arith.constant 2.000000e+00 : f32
    %697 = vector.broadcast %cst_213 : f32 to vector<32x128xf32>
    %698 = arith.mulf %697, %696 : vector<32x128xf32>
    %699 = arith.addf %686, %698 : vector<32x128xf32>
    %cst_214 = arith.constant 6.250000e-02 : f32
    %700 = vector.broadcast %cst_214 : f32 to vector<32x128xf32>
    %701 = arith.mulf %700, %696 : vector<32x128xf32>
    %702 = arith.addf %666, %701 : vector<32x128xf32>
    %703 = arith.truncf %702 : vector<32x128xf32> to vector<32x128xbf16>
    %cst_215 = arith.constant dense<0.000000e+00> : vector<32x128xf32>
    %704 = tpu.matmul %703, %0, %cst_215 {dimension_numbers = #tpu.dot_dimension_numbers<[1], [0], [0], [1], [0, 0, 1, 1], [], []>} : vector<32x128xbf16>, vector<128x128xbf16>, vector<32x128xf32> -> vector<32x128xf32>
    %705 = arith.addf %704, %4 : vector<32x128xf32>
    %706 = math.tanh %705 : vector<32x128xf32>
    %707 = arith.truncf %706 : vector<32x128xf32> to vector<32x128xbf16>
    %cst_216 = arith.constant dense<0.000000e+00> : vector<32x128xf32>
    %708 = tpu.matmul %707, %1, %cst_216 {dimension_numbers = #tpu.dot_dimension_numbers<[1], [0], [0], [1], [0, 0, 1, 1], [], []>} : vector<32x128xbf16>, vector<128x128xbf16>, vector<32x128xf32> -> vector<32x128xf32>
    %709 = arith.addf %708, %7 : vector<32x128xf32>
    %710 = arith.addf %699, %709 : vector<32x128xf32>
    %cst_217 = arith.constant 0.010416667 : f32
    %711 = vector.broadcast %cst_217 : f32 to vector<32x128xf32>
    %712 = arith.mulf %711, %710 : vector<32x128xf32>
    %713 = arith.addf %666, %712 : vector<32x128xf32>
    %c15_i32 = arith.constant 15 : i32
    %714 = arith.truncf %713 : vector<32x128xf32> to vector<32x128xbf16>
    %cst_218 = arith.constant dense<0.000000e+00> : vector<32x128xf32>
    %715 = tpu.matmul %714, %0, %cst_218 {dimension_numbers = #tpu.dot_dimension_numbers<[1], [0], [0], [1], [0, 0, 1, 1], [], []>} : vector<32x128xbf16>, vector<128x128xbf16>, vector<32x128xf32> -> vector<32x128xf32>
    %716 = arith.addf %715, %4 : vector<32x128xf32>
    %717 = math.tanh %716 : vector<32x128xf32>
    %718 = arith.truncf %717 : vector<32x128xf32> to vector<32x128xbf16>
    %cst_219 = arith.constant dense<0.000000e+00> : vector<32x128xf32>
    %719 = tpu.matmul %718, %1, %cst_219 {dimension_numbers = #tpu.dot_dimension_numbers<[1], [0], [0], [1], [0, 0, 1, 1], [], []>} : vector<32x128xbf16>, vector<128x128xbf16>, vector<32x128xf32> -> vector<32x128xf32>
    %720 = arith.addf %719, %7 : vector<32x128xf32>
    %cst_220 = arith.constant 3.125000e-02 : f32
    %721 = vector.broadcast %cst_220 : f32 to vector<32x128xf32>
    %722 = arith.mulf %721, %720 : vector<32x128xf32>
    %723 = arith.addf %713, %722 : vector<32x128xf32>
    %724 = arith.truncf %723 : vector<32x128xf32> to vector<32x128xbf16>
    %cst_221 = arith.constant dense<0.000000e+00> : vector<32x128xf32>
    %725 = tpu.matmul %724, %0, %cst_221 {dimension_numbers = #tpu.dot_dimension_numbers<[1], [0], [0], [1], [0, 0, 1, 1], [], []>} : vector<32x128xbf16>, vector<128x128xbf16>, vector<32x128xf32> -> vector<32x128xf32>
    %726 = arith.addf %725, %4 : vector<32x128xf32>
    %727 = math.tanh %726 : vector<32x128xf32>
    %728 = arith.truncf %727 : vector<32x128xf32> to vector<32x128xbf16>
    %cst_222 = arith.constant dense<0.000000e+00> : vector<32x128xf32>
    %729 = tpu.matmul %728, %1, %cst_222 {dimension_numbers = #tpu.dot_dimension_numbers<[1], [0], [0], [1], [0, 0, 1, 1], [], []>} : vector<32x128xbf16>, vector<128x128xbf16>, vector<32x128xf32> -> vector<32x128xf32>
    %730 = arith.addf %729, %7 : vector<32x128xf32>
    %cst_223 = arith.constant 2.000000e+00 : f32
    %731 = vector.broadcast %cst_223 : f32 to vector<32x128xf32>
    %732 = arith.mulf %731, %730 : vector<32x128xf32>
    %733 = arith.addf %720, %732 : vector<32x128xf32>
    %cst_224 = arith.constant 3.125000e-02 : f32
    %734 = vector.broadcast %cst_224 : f32 to vector<32x128xf32>
    %735 = arith.mulf %734, %730 : vector<32x128xf32>
    %736 = arith.addf %713, %735 : vector<32x128xf32>
    %737 = arith.truncf %736 : vector<32x128xf32> to vector<32x128xbf16>
    %cst_225 = arith.constant dense<0.000000e+00> : vector<32x128xf32>
    %738 = tpu.matmul %737, %0, %cst_225 {dimension_numbers = #tpu.dot_dimension_numbers<[1], [0], [0], [1], [0, 0, 1, 1], [], []>} : vector<32x128xbf16>, vector<128x128xbf16>, vector<32x128xf32> -> vector<32x128xf32>
    %739 = arith.addf %738, %4 : vector<32x128xf32>
    %740 = math.tanh %739 : vector<32x128xf32>
    %741 = arith.truncf %740 : vector<32x128xf32> to vector<32x128xbf16>
    %cst_226 = arith.constant dense<0.000000e+00> : vector<32x128xf32>
    %742 = tpu.matmul %741, %1, %cst_226 {dimension_numbers = #tpu.dot_dimension_numbers<[1], [0], [0], [1], [0, 0, 1, 1], [], []>} : vector<32x128xbf16>, vector<128x128xbf16>, vector<32x128xf32> -> vector<32x128xf32>
    %743 = arith.addf %742, %7 : vector<32x128xf32>
    %cst_227 = arith.constant 2.000000e+00 : f32
    %744 = vector.broadcast %cst_227 : f32 to vector<32x128xf32>
    %745 = arith.mulf %744, %743 : vector<32x128xf32>
    %746 = arith.addf %733, %745 : vector<32x128xf32>
    %cst_228 = arith.constant 6.250000e-02 : f32
    %747 = vector.broadcast %cst_228 : f32 to vector<32x128xf32>
    %748 = arith.mulf %747, %743 : vector<32x128xf32>
    %749 = arith.addf %713, %748 : vector<32x128xf32>
    %750 = arith.truncf %749 : vector<32x128xf32> to vector<32x128xbf16>
    %cst_229 = arith.constant dense<0.000000e+00> : vector<32x128xf32>
    %751 = tpu.matmul %750, %0, %cst_229 {dimension_numbers = #tpu.dot_dimension_numbers<[1], [0], [0], [1], [0, 0, 1, 1], [], []>} : vector<32x128xbf16>, vector<128x128xbf16>, vector<32x128xf32> -> vector<32x128xf32>
    %752 = arith.addf %751, %4 : vector<32x128xf32>
    %753 = math.tanh %752 : vector<32x128xf32>
    %754 = arith.truncf %753 : vector<32x128xf32> to vector<32x128xbf16>
    %cst_230 = arith.constant dense<0.000000e+00> : vector<32x128xf32>
    %755 = tpu.matmul %754, %1, %cst_230 {dimension_numbers = #tpu.dot_dimension_numbers<[1], [0], [0], [1], [0, 0, 1, 1], [], []>} : vector<32x128xbf16>, vector<128x128xbf16>, vector<32x128xf32> -> vector<32x128xf32>
    %756 = arith.addf %755, %7 : vector<32x128xf32>
    %757 = arith.addf %746, %756 : vector<32x128xf32>
    %cst_231 = arith.constant 0.010416667 : f32
    %758 = vector.broadcast %cst_231 : f32 to vector<32x128xf32>
    %759 = arith.mulf %758, %757 : vector<32x128xf32>
    %760 = arith.addf %713, %759 : vector<32x128xf32>
    %c0_232 = arith.constant 0 : index
    %c0_233 = arith.constant 0 : index
    %761 = vector.load %arg6[%c0_232, %c0_233] : memref<32x128xf32, #tpu.memory_space<vmem>>, vector<32x128xf32>
    tpu.vector_store %arg6[%c0_232, %c0_233], %760 {strides = array<i32>} : memref<32x128xf32, #tpu.memory_space<vmem>>, vector<32x128xf32>,
    return
  }
  func.func @transform_0(%arg0: i32) -> (i32, i32) {
    %c0_i32 = arith.constant 0 : i32
    %c0_i32_0 = arith.constant 0 : i32
    return %arg0, %c0_i32 : i32, i32
  }
  func.func @transform_1(%arg0: i32) -> (i32, i32) {
    %c0_i32 = arith.constant 0 : i32
    %c0_i32_0 = arith.constant 0 : i32
    %c0_i32_1 = arith.constant 0 : i32
    return %c0_i32, %c0_i32_0 : i32, i32
  }
  func.func @transform_2(%arg0: i32) -> (i32, i32) {
    %c0_i32 = arith.constant 0 : i32
    %c0_i32_0 = arith.constant 0 : i32
    %c0_i32_1 = arith.constant 0 : i32
    return %c0_i32, %c0_i32_0 : i32, i32
  }
  func.func @transform_3(%arg0: i32) -> (i32, i32) {
    %c0_i32 = arith.constant 0 : i32
    %c0_i32_0 = arith.constant 0 : i32
    %c0_i32_1 = arith.constant 0 : i32
    return %c0_i32, %c0_i32_0 : i32, i32
  }
  func.func @transform_4(%arg0: i32) -> (i32, i32) {
    %c0_i32 = arith.constant 0 : i32
    %c0_i32_0 = arith.constant 0 : i32
    %c0_i32_1 = arith.constant 0 : i32
    return %c0_i32, %c0_i32_0 : i32, i32
  }
  func.func @transform_5(%arg0: i32) -> (i32, i32) {
    %c0_i32 = arith.constant 0 : i32
    %c0_i32_0 = arith.constant 0 : i32
    return %arg0, %c0_i32 : i32, i32
  }
}

</mosaic_0001>

<bundles_post_ra>
// kernel: tpu_custom_call.1
= control target key start
LH: loop header
LB: loop body
LE: loop exit
PB: predicated region body
PF: predicated region fallthrough
CT: control target
= control target key end

     0   :  { %10 = vsyncpa [#allocation3], 0  ;;  %s17230_s0 = inlined_call_operand.hbm [shape: f32[64,128], index: 0, kind: input, shape index: {}]   ;;  %s17231_s1 = inlined_call_operand.hbm [shape: bf16[128,128], index: 1, kind: input, shape index: {}]   ;;  %s17232_s2 = inlined_call_operand.vmem [shape: f32[1,128], index: 2, kind: input, shape index: {}]   ;;  %s17233_s3 = inlined_call_operand.hbm [shape: bf16[128,128], index: 3, kind: input, shape index: {}]   ;;  %s17234_s4 = inlined_call_operand.vmem [shape: f32[1,128], index: 4, kind: input, shape index: {}]   ;;  %s17235_s5 = inlined_call_operand.hbm [shape: f32[64,128], index: 5, kind: output, shape index: {}]  }
   0x1   :  { %12 = vsyncpa [#allocation3 + $0x1], 0 }
   0x2   :  { %13 = vsyncpa [#allocation6], 0 }
   0x3   :  { %14 = vsyncpa [#allocation4], 0 }
   0x4   :  { %16 = vsyncpa [#allocation4 + $0x1], 0  ;;  %s12972_s18 = smov 0   ;;  %s12974_s19 = smov 0  }
   0x5   :  { %s12976_s20 = smov 0   ;;  %s12978_s21 = smov 0  }
   0x6 LB: > { %s12993_s22 = sadd.s32 4294967295, %s12930_s21   ;;  %s8147_s23 = sadd.s32 4294967294, %s12930_s21   ;;  %s12930_s21 = sphi %s12978_s21, %s17257_s21   ;;  %s12926_s20 = sphi %s12976_s20, %s17256_s20   ;;  %s12922_s19 = sphi %s12974_s19, %s17255_s19   ;;  %s12918_s18 = sphi %s12972_s18, %s17254_s18  }
   0x7   : > { %p42_p0 = scmp.ne.s32.totalorder %s12922_s19, %s12918_s18  ;;  %p17236_p1 = scmp.eq.s32.totalorder %s12993_s22, 0 }
   0x8   : > { %p156_p3 = scmp.eq.s32.totalorder %s8147_s23, 1  ;;  %p8148_p5 = scmp.ge.s32.totalorder %s12930_s21, 1 }
   0x9   : > { %p13002_p4 = por %p17236_p1, %p42_p0  ;;  %p163_p7 = scmp.lt.s32.totalorder %s12930_s21, 3 }
   0xa   : > { %p13007_p6 = por %p156_p3, %p42_p0  ;;  %s12932_s27 = smov [#allocation5]  }
   0xb   : > { %s17240_s24 = scalar_select %p13002_p4, 1, 0 }
   0xc   : > { %s17241_s25 = scalar_select %p13007_p6, 1, 0 }
   0xd   : > { %p13012_p8 = pnand %p8148_p5, %p163_p7  ;;  %s175_s28 = sshll.u32 %s12932_s27, 4  ;;  %s176_s28 = int_to_ptr.vmem [resolvable:$true] %s175_s28 }
   0xe   : > { %s12933_s30 = smov [#allocation7]   ;;  %s12793_s7 = scalar_lea.vmem %s176_s28, 1024 }
   0xf   : > { %s17242_s26 = scalar_select %p13012_p8, 1, 0 }
  0x10   : > { %p12037_p9 = pneg %p13012_p8  ;;  %s191_s6 = sshll.u32 %s12933_s30, 4  ;;  %s192_s6 = int_to_ptr.vmem [resolvable:$true] %s191_s6 }
  0x11   : > { %p12794_p13 = scmp.ne.s32.totalorder %s176_s28, %s12793_s7  ;;  %p12801_p5 = scmp.lt.s32.totalorder %s176_s28, %s176_s28 }
  0x12   : > { %p13021_p11 = pnand %p12037_p9, %p17236_p1  ;;  %p12802_p7 = scmp.lt.s32.totalorder %s12793_s7, %s12793_s7 }
  0x14   : > { %p12784_p12 = pneg %p13021_p11  ;;  %p12803_p10 = por %p12802_p7, %p12801_p5 }
  0x16   : > { %p12796_p0 = pnand %p12794_p13, %p12784_p12 }
  0x18   : > { %p12797_p3 = pneg %p12796_p0 }
  0x1a   : > { %p12804_p9 = pnand %p12803_p10, %p12797_p3 }
  0x1c   : > { %12807 = shalt.err (!%p12804_p9)
}
  0x1d   : > { %s12934_s8 = smov 64   ;;  %s12935_s9 = smov 4  }
  0x1e   : > { %12040 = dma.hbm_to_vmem [thread:$0]  (!%p13021_p11), %s17231_s1, 1024, %s176_s28, [#allocation6], %s12934_s8, %s12934_s8, %s12935_s9  }
  0x1f   : > { %s12819_s12 = scalar_lea.vmem %s192_s6, 1024  ;;  %p12827_p2 = scmp.lt.s32.totalorder %s192_s6, %s192_s6 }
  0x20   : > { %p12820_p1 = scmp.ne.s32.totalorder %s192_s6, %s12819_s12  ;;  %p12828_p6 = scmp.lt.s32.totalorder %s12819_s12, %s12819_s12 }
  0x22   : > { %p12822_p13 = pnand %p12820_p1, %p12784_p12  ;;  %p12829_p5 = por %p12828_p6, %p12827_p2 }
  0x24   : > { %p12823_p0 = pneg %p12822_p13 }
  0x26   : > { %p12830_p10 = pnand %p12829_p5, %p12823_p0 }
  0x28   : > { %12833 = shalt.err (!%p12830_p10)
}
  0x29   : > { %12043 = dma.hbm_to_vmem [thread:$0]  (!%p13021_p11), %s17233_s3, 1024, %s192_s6, [#allocation6], %s12934_s8, %s12934_s8, %s12935_s9  }
  0x2a   : > { %s13044_s15 = sadd.s32 1, %s12930_s21   ;;  %s29_s16 = sadd.s32 1, %s12926_s20 }
  0x2b   : > { %s26_s17 = ssub.s32 %s12930_s21, %s13044_s15  ;;  %p36_p1 = scmp.ne.s32.totalorder %s12926_s20, %s12922_s19 }
  0x2c   : > { %p27_p2 = scmp.eq.s32.totalorder %s26_s17, 0  ;;  %p37_p6 = scmp.eq.s32.totalorder %s12930_s21, 0 }
  0x2d   : > { %p17244_p12 = scmp.eq.s32.totalorder %s12993_s22, 1  ;;  %p12054_p7 = scmp.lt.s32.totalorder %s12930_s21, 2 }
  0x2e   : > { %s13060_s27 = scalar_select %p27_p2, %s12926_s20, %s29_s16  }
  0x2f   : > { %p13054_p3 = por %p17244_p12, %p36_p1  ;;  %p38_p9 = por %p37_p6, %p36_p1 }
  0x30   : > { %s208_s28 = sand.u32 1, %s12926_s20   ;;  %s8183_s30 = sshll.u32 %s12930_s21, 9 }
  0x31   : > { %s17245_s23 = scalar_select %p13054_p3, 1, 0 }
  0x32   : > { %s8152_s29 = sshll.u32 %s208_s28, 5  ;;  %s13067_s8 = scalar_lea.hbm %s17230_s0, %s8183_s30 }
  0x33   : > { %s212_s9 = scalar_lea.vmem [#allocation2], %s8152_s29  ;;  %p13071_p11 = pnand %p12054_p7, %p38_p9 }
  0x34   : > { %s219_s10 = sshll.u32 %s212_s9, 4  ;;  %s13075_s12 = scalar_lea.sflag [#allocation3], %s208_s28  ;;  %s13069_s10 = int_to_ptr.vmem [resolvable:$true] %s219_s10 }
  0x35   : > { %s12834_s13 = scalar_lea.hbm %s13067_s8, 512  ;;  %p12836_p0 = pneg %p13071_p11 }
  0x36   : > { %p12835_p13 = scmp.ne.s32.totalorder %s13067_s8, %s12834_s13  ;;  %s12839_s17 = scalar_lea.hbm %s17230_s0, 1024 }
  0x37   : > { %p12840_p1 = scmp.lt.s32.totalorder %s13067_s8, %s17230_s0  ;;  %p12841_p2 = scmp.lt.s32.totalorder %s12839_s17, %s12834_s13 }
  0x38   : > { %p12837_p5 = pnand %p12836_p0, %p12835_p13 }
  0x39   : > { %p12842_p6 = por %p12841_p2, %p12840_p1 }
  0x3a   : > { %p12838_p10 = pneg %p12837_p5 }
  0x3c   : > { %p12843_p12 = pnand %p12842_p6, %p12838_p10 }
  0x3e   : > { %12846 = shalt.err (!%p12843_p12)
}
  0x3f   : > { %s12847_s28 = scalar_lea.vmem %s13069_s10, 512  ;;  %s12936_s6 = smov [#allocation2]  }
  0x40   : > { %p12848_p7 = scmp.ne.s32.totalorder %s13069_s10, %s12847_s28  ;;  %s12852_s7 = sshll.u32 %s12936_s6, 4  ;;  %s12853_s7 = int_to_ptr.vmem [resolvable:$false] %s12852_s7 }
  0x41   : > { %s12854_s9 = scalar_lea.vmem %s12853_s7, 1024  ;;  %p12855_p5 = scmp.lt.s32.totalorder %s13069_s10, %s12853_s7 }
  0x42   : > { %p12850_p9 = pnand %p12848_p7, %p12836_p0  ;;  %p12856_p3 = scmp.lt.s32.totalorder %s12854_s9, %s12847_s28 }
  0x44   : > { %p12851_p13 = pneg %p12850_p9  ;;  %p12857_p4 = por %p12856_p3, %p12855_p5 }
  0x46   : > { %p12858_p8 = pnand %p12857_p4, %p12851_p13 }
  0x48   : > { %12861 = shalt.err (!%p12858_p8)
}
  0x49   : > { %s12937_s13 = smov 128   ;;  %s12938_s14 = smov 8  }
  0x4a   : > { %12047 = dma.hbm_to_vmem [thread:$0]  (!%p13071_p11), %s13067_s8, 512, %s13069_s10, %s13075_s12, %s12937_s13, %s12937_s13, %s12938_s14  }
  0x4b   : > { %p17247_p0 = scmp.ne.s32.totalorder %s17242_s26, 0 }
  0x4c   : > { %s13099_s16 = sand.u32 (!%p17247_p0), 1, %s12922_s19   ;;  %p17248_p4 = scmp.ne.s32.totalorder (!%p17247_p0), %s17240_s24, 0 }
  0x4d   : > { %231 = sbr.rel (%p17247_p0) target bundleno = 27426 (0x6b22), region = 40  ;;  %s8156_s17 = sshll.u32 (!%p17247_p0), %s13099_s16, 5 }
  0x4e   : > { %s234_s29 = scalar_lea.sflag (!%p17247_p0), [#allocation3], %s13099_s16  ;;  %s13105_s30 = scalar_lea.vmem (!%p17247_p0), [#allocation2], %s8156_s17 }
  0x52   : > { %12905 = dma.done.wait (%p17248_p4), %s234_s29, 512  }
  0x53   : > { %12907 = vsyncadd (%p17248_p4), %s234_s29, 4294966784  ;;  %p17249_p8 = scmp.eq.s32.totalorder %s12993_s22, 0 }
  0x55   : > { %12909 = dma.done.wait (%p17249_p8), [#allocation6], 2048   ;;  %p17250_p3 = pmov %p17249_p8 }
  0x56   : > { %v13115_v0 = vld [vmem:[#allocation5 + $0x30] sm:$0xff]   ;;  %v13117_v1 = vld [vmem:[#allocation5 + $0x38] sm:$0xff]   ;;  %v13124_v3 = vld [vmem:[%s13105_s30] sm:$0xff]  ;;  %s271_s29 = scalar_lea.vmem [#allocation8], %s8156_s17  ;;  %s8184_s24 = sshll.u32 %s12993_s22, 9 }
  0x57   : > { %12911 = vsyncadd (%p17250_p3), [#allocation6], 4294965248  ;;  %9465 = vmatprep.subr.bf16.mxu0 %v13117_v1  ;;  %v13120_v2 = vld [vmem:[#allocation7 + $0x38] sm:$0xff]   ;;  %v13126_v4 = vld [vmem:[#allocation5 + $0x28] sm:$0xff]   ;;  %s17186_s17 = scalar_lea.hbm %s17235_s5, %s8184_s24  ;;  %s8042_s10 = scalar_lea.sflag [#allocation4], %s13099_s16 }
  0x58   : > { %9466 = vmatpush3.bf16.msra.mxu0 %v13117_v1  ;;  %v13128_v5 = vld [vmem:[#allocation7 + $0x30] sm:$0xff]   ;;  %v13132_v6 = vld [vmem:[%s13105_s30 + $0x8] sm:$0xff]  ;;  %9485 = vmatprep.subr.bf16.mxu1 %v13120_v2  ;;  %v13141_v9 = vld [vmem:[#allocation5 + $0x20] sm:$0xff]   ;;  %p17251_p10 = scmp.ne.s32.totalorder %s17245_s23, 0  ;;  %s12939_s11 = smov [#allocation8]  }
  0x59   : > { %9467 = vmatprep.subr.bf16.mxu0 %v13115_v0  ;;  %v325_v7 = vpack.c.bf16 %v13132_v6, %v13124_v3  ;;  %9486 = vmatpush3.bf16.msra.mxu1 %v13120_v2  ;;  %v13138_v8 = vld [vmem:[#allocation7 + $0x28] sm:$0xff]   ;;  %v13146_v10 = vld [vmem:[#allocation7 + $0x20] sm:$0xff]   ;;  %v13150_v11 = vld [vmem:[#allocation5 + $0x18] sm:$0xff]   ;;  %s12866_s12 = sshll.u32 %s12939_s11, 4  ;;  %s12867_s12 = int_to_ptr.vmem [resolvable:$false] %s12866_s12 }
  0x5a   : > { %9487 = vmatprep.subr.bf16.mxu1 %v13128_v5  ;;  %v13154_v12 = vld [vmem:[#allocation7 + $0x18] sm:$0xff]   ;;  %v13158_v13 = vld [vmem:[#allocation5 + $0x10] sm:$0xff]   ;;  %v13166_v15 = vld [vmem:[#allocation5 + $0x8] sm:$0xff]   ;;  %s12868_s28 = scalar_lea.vmem %s12867_s12, 1024 }
  0x5b   : > { %9481 = vmatprep.mubr.bf16.mxu0 %v325_v7  ;;  %v13162_v14 = vld [vmem:[#allocation7 + $0x10] sm:$0xff]   ;;  %v13170_v16 = vld [vmem:[#allocation7 + $0x8] sm:$0xff]   ;;  %v13174_v17 = vld [vmem:[#allocation5] sm:$0xff]  }
  0x5c   : > { %9468 = vmatpush3.bf16.msra.mxu0 %v13115_v0  ;;  %v13178_v18 = vld [vmem:[#allocation7] sm:$0xff]   ;;  %v13182_v19 = vld [vmem:[%s13105_s30 + $0x10] sm:$0xff]  ;;  %v13185_v20 = vld [vmem:[%s13105_s30 + $0x18] sm:$0xff]  ;;  %s8055_s30 = sshll.u32 %s271_s29, 4  ;;  %s17180_s30 = int_to_ptr.vmem [resolvable:$true] %s8055_s30 }
  0x5d   : > { %9469 = vmatprep.subr.bf16.mxu0 %v13126_v4  ;;  %9488 = vmatpush3.bf16.msra.mxu1 %v13128_v5  ;;  %v326_v21 = vpack.c.bf16 %v13185_v20, %v13182_v19  ;;  %v13216_v23 = vld [vmem:[%s17232_s2] ss:$0 sm:$0xff]  ;;  %s12862_s22 = scalar_lea.vmem %s17180_s30, 512  ;;  %p12869_p6 = scmp.lt.s32.totalorder %s17180_s30, %s12867_s12 }
  0x5e   : > { %9489 = vmatprep.subr.bf16.mxu1 %v13138_v8  ;;  %v13241_v38 = vld [vmem:[%s17234_s4] ss:$0 sm:$0xff]  ;;  %p12863_p11 = scmp.ne.s32.totalorder %s17180_s30, %s12862_s22  ;;  %p12870_p12 = scmp.lt.s32.totalorder %s12868_s28, %s12862_s22 }
  0x60   : > { %9470 = vmatpush3.bf16.msra.mxu0 %v13126_v4  ;;  %p12864_p1 = pnand %p12863_p11, %p17251_p10  ;;  %p12871_p7 = por %p12870_p12, %p12869_p6 }
  0x61   : > { %9471 = vmatprep.subr.bf16.mxu0 %v13141_v9  ;;  %9490 = vmatpush3.bf16.msra.mxu1 %v13138_v8 }
  0x62   : > { %9491 = vmatprep.subr.bf16.mxu1 %v13146_v10  ;;  %p12865_p2 = pneg %p12864_p1 }
  0x64   : > { %9472 = vmatpush3.bf16.msra.mxu0 %v13141_v9  ;;  %p12872_p9 = pnand %p12871_p7, %p12865_p2 }
  0x65   : > { %9473 = vmatprep.subr.bf16.mxu0 %v13150_v11  ;;  %9492 = vmatpush3.bf16.msra.mxu1 %v13146_v10 }
  0x66   : > { %9493 = vmatprep.subr.bf16.mxu1 %v13154_v12 }
  0x68   : > { %9474 = vmatpush3.bf16.msra.mxu0 %v13150_v11 }
  0x69   : > { %9475 = vmatprep.subr.bf16.mxu0 %v13158_v13  ;;  %9494 = vmatpush3.bf16.msra.mxu1 %v13154_v12 }
  0x6a   : > { %9495 = vmatprep.subr.bf16.mxu1 %v13162_v14 }
  0x6c   : > { %9476 = vmatpush3.bf16.msra.mxu0 %v13158_v13 }
  0x6d   : > { %9477 = vmatprep.subr.bf16.mxu0 %v13166_v15  ;;  %9496 = vmatpush3.bf16.msra.mxu1 %v13162_v14 }
  0x6e   : > { %9497 = vmatprep.subr.bf16.mxu1 %v13170_v16 }
  0x70   : > { %9478 = vmatpush3.bf16.msra.mxu0 %v13166_v15 }
  0x71   : > { %9479 = vmatprep.subr.bf16.mxu0 %v13174_v17  ;;  %9498 = vmatpush3.bf16.msra.mxu1 %v13170_v16 }
  0x72   : > { %9499 = vmatprep.subr.bf16.mxu1 %v13178_v18 }
  0x74   : > { %9480 = vmatpush3.bf16.msra.mxu0 %v13174_v17 }
  0x75   : > { %9505 = vmatprep.subr.bf16.mxu0 %v13117_v1  ;;  %9500 = vmatpush3.bf16.msra.mxu1 %v13178_v18 }
  0x76   : > { %9525 = vmatprep.subr.bf16.mxu1 %v13120_v2 }
  0x77   : > { %9482 = vmatmul.mubr.bf16.vlgmr.msra.gmra.mxu0 %v326_v21 }
  0x78   : > { %9506 = vmatpush3.bf16.msra.mxu0 %v13117_v1 }
  0x79   : > { %9507 = vmatprep.subr.bf16.mxu0 %v13115_v0 }
  0x7c   : > { %9508 = vmatpush3.bf16.msra.mxu0 %v13115_v0 }
  0x7d   : > { %9509 = vmatprep.subr.bf16.mxu0 %v13126_v4 }
  0x80   : > { %9510 = vmatpush3.bf16.msra.mxu0 %v13126_v4 }
  0x81   : > { %9511 = vmatprep.subr.bf16.mxu0 %v13141_v9 }
  0x84   : > { %9512 = vmatpush3.bf16.msra.mxu0 %v13141_v9 }
  0x85   : > { %9513 = vmatprep.subr.bf16.mxu0 %v13150_v11 }
  0x88   : > { %9514 = vmatpush3.bf16.msra.mxu0 %v13150_v11 }
  0x89   : > { %9515 = vmatprep.subr.bf16.mxu0 %v13158_v13 }
  0x8c   : > { %9516 = vmatpush3.bf16.msra.mxu0 %v13158_v13 }
  0x8d   : > { %9517 = vmatprep.subr.bf16.mxu0 %v13166_v15 }
  0x90   : > { %9518 = vmatpush3.bf16.msra.mxu0 %v13166_v15 }
  0x91   : > { %9519 = vmatprep.subr.bf16.mxu0 %v13174_v17 }
  0x94   : > { %9520 = vmatpush3.bf16.msra.mxu0 %v13174_v17 }
  0x95   : > { %9545 = vmatprep.subr.bf16.mxu0 %v13117_v1 }
 0x137   : > { %v9483_v22 = vpop.f32.mrf.mxu0 }
 0x138   : > { %v418_v28 = vadd.f32 %v9483_v22, %v13216_v23 }
 0x139   : > { %v409_v24 = vpop.f32.mrf.mxu0 }
 0x13a   : > { %v410_v25 = vadd.f32 %v13216_v23, %v409_v24 }
 0x13b   : > { %v9484_v26 = vpop.f32.mrf.mxu0 }
 0x13c   : > { %v421_v27 = vadd.f32 %v9484_v26, %v13216_v23  ;;  %12114 = vtanh.f32 %v410_v25 }
 0x13d   : > { %v412_v29 = vpop.f32.mrf.mxu0 }
 0x13e   : > { %v413_v30 = vadd.f32 %v13216_v23, %v412_v29  ;;  %12116 = vtanh.f32 %v421_v27 }
 0x140   : > { %12118 = vtanh.f32 %v413_v30 }
 0x141   : > { %12120 = vtanh.f32 %v418_v28 }
 0x149   : > { %v12115_v31 = vpop.eup %12114 }
 0x14b   : > { %v12117_v32 = vpop.eup %12116 }
 0x14d   : > { %v12119_v33 = vpop.eup %12118 }
 0x14e   : > { %v12121_v34 = vpop.eup %12120  ;;  %v428_v35 = vpack.c.bf16 %v12119_v33, %v12115_v31 }
 0x14f   : > { %v429_v36 = vpack.c.bf16 %v12117_v32, %v12121_v34 }
 0x150   : > { %9501 = vmatprep.mubr.bf16.mxu1 %v428_v35 }
 0x151   : > { %9502 = vmatmul.mubr.bf16.vlgmr.msra.gmra.mxu1 %v429_v36 }
 0x152   : > { %9526 = vmatpush3.bf16.msra.mxu1 %v13120_v2 }
 0x153   : > { %9527 = vmatprep.subr.bf16.mxu1 %v13128_v5 }
 0x156   : > { %9528 = vmatpush3.bf16.msra.mxu1 %v13128_v5 }
 0x157   : > { %9529 = vmatprep.subr.bf16.mxu1 %v13138_v8 }
 0x15a   : > { %9530 = vmatpush3.bf16.msra.mxu1 %v13138_v8 }
 0x15b   : > { %9531 = vmatprep.subr.bf16.mxu1 %v13146_v10 }
 0x15e   : > { %9532 = vmatpush3.bf16.msra.mxu1 %v13146_v10 }
 0x15f   : > { %9533 = vmatprep.subr.bf16.mxu1 %v13154_v12 }
 0x162   : > { %9534 = vmatpush3.bf16.msra.mxu1 %v13154_v12 }
 0x163   : > { %9535 = vmatprep.subr.bf16.mxu1 %v13162_v14 }
 0x166   : > { %9536 = vmatpush3.bf16.msra.mxu1 %v13162_v14 }
 0x167   : > { %9537 = vmatprep.subr.bf16.mxu1 %v13170_v16 }
 0x16a   : > { %9538 = vmatpush3.bf16.msra.mxu1 %v13170_v16 }
 0x16b   : > { %9539 = vmatprep.subr.bf16.mxu1 %v13178_v18 }
 0x16e   : > { %9540 = vmatpush3.bf16.msra.mxu1 %v13178_v18 }
 0x16f   : > { %9565 = vmatprep.subr.bf16.mxu1 %v13120_v2 }
 0x211   : > { %v9503_v37 = vpop.f32.mrf.mxu1 }
 0x212   : > { %v13247_v41 = vadd.f32 %v9503_v37, %v13241_v38 }
 0x213   : > { %v512_v39 = vpop.f32.mrf.mxu1 }
 0x214   : > { %v13244_v40 = vadd.f32 %v13241_v38, %v512_v39  ;;  %v529_v48 = vmul.f32 0.03125, %v13247_v41 }
 0x215   : > { %v9504_v42 = vpop.f32.mrf.mxu1 }
 0x216   : > { %v13250_v43 = vadd.f32 %v9504_v42, %v13241_v38  ;;  %v527_v45 = vmul.f32 0.03125, %v13244_v40  ;;  %v533_v53 = vadd.f32 %v529_v48, %v13182_v19 }
 0x217   : > { %v515_v44 = vpop.f32.mrf.mxu1 }
 0x218   : > { %v530_v46 = vmul.f32 0.03125, %v13250_v43  ;;  %v13255_v47 = vadd.f32 %v13241_v38, %v515_v44  ;;  %v531_v51 = vadd.f32 %v527_v45, %v13124_v3 }
 0x21a   : > { %v528_v49 = vmul.f32 0.03125, %v13255_v47  ;;  %v534_v50 = vadd.f32 %v530_v46, %v13185_v20 }
 0x21c   : > { %v532_v52 = vadd.f32 %v528_v49, %v13132_v6  ;;  %v536_v55 = vpack.c.bf16 %v534_v50, %v533_v53 }
 0x21e   : > { %v535_v54 = vpack.c.bf16 %v532_v52, %v531_v51 }
 0x220   : > { %9521 = vmatprep.mubr.bf16.mxu0 %v535_v54 }
 0x221   : > { %9522 = vmatmul.mubr.bf16.vlgmr.msra.gmra.mxu0 %v536_v55 }
 0x222   : > { %9546 = vmatpush3.bf16.msra.mxu0 %v13117_v1 }
 0x223   : > { %9547 = vmatprep.subr.bf16.mxu0 %v13115_v0 }
 0x226   : > { %9548 = vmatpush3.bf16.msra.mxu0 %v13115_v0 }
 0x227   : > { %9549 = vmatprep.subr.bf16.mxu0 %v13126_v4 }
 0x22a   : > { %9550 = vmatpush3.bf16.msra.mxu0 %v13126_v4 }
 0x22b   : > { %9551 = vmatprep.subr.bf16.mxu0 %v13141_v9 }
 0x22e   : > { %9552 = vmatpush3.bf16.msra.mxu0 %v13141_v9 }
 0x22f   : > { %9553 = vmatprep.subr.bf16.mxu0 %v13150_v11 }
 0x232   : > { %9554 = vmatpush3.bf16.msra.mxu0 %v13150_v11 }
 0x233   : > { %9555 = vmatprep.subr.bf16.mxu0 %v13158_v13 }
 0x236   : > { %9556 = vmatpush3.bf16.msra.mxu0 %v13158_v13 }
 0x237   : > { %9557 = vmatprep.subr.bf16.mxu0 %v13166_v15 }
 0x23a   : > { %9558 = vmatpush3.bf16.msra.mxu0 %v13166_v15 }
 0x23b   : > { %9559 = vmatprep.subr.bf16.mxu0 %v13174_v17 }
 0x23e   : > { %9560 = vmatpush3.bf16.msra.mxu0 %v13174_v17 }
 0x23f   : > { %9585 = vmatprep.subr.bf16.mxu0 %v13117_v1 }
 0x2e1   : > { %v9523_v56 = vpop.f32.mrf.mxu0 }
 0x2e2   : > { %v580_v61 = vadd.f32 %v9523_v56, %v13216_v23 }
 0x2e3   : > { %v571_v57 = vpop.f32.mrf.mxu0 }
 0x2e4   : > { %v572_v58 = vadd.f32 %v13216_v23, %v571_v57 }
 0x2e5   : > { %v9524_v59 = vpop.f32.mrf.mxu0 }
 0x2e6   : > { %v583_v60 = vadd.f32 %v9524_v59, %v13216_v23  ;;  %12122 = vtanh.f32 %v572_v58 }
 0x2e7   : > { %v574_v62 = vpop.f32.mrf.mxu0 }
 0x2e8   : > { %v575_v63 = vadd.f32 %v13216_v23, %v574_v62  ;;  %12124 = vtanh.f32 %v583_v60 }
 0x2ea   : > { %12126 = vtanh.f32 %v575_v63 }
 0x2eb   : > { %12128 = vtanh.f32 %v580_v61 }
 0x2f3   : > { %v12123_v7 = vpop.eup %12122 }
 0x2f5   : > { %v12125_v21 = vpop.eup %12124 }
 0x2f7   : > { %v12127_v22 = vpop.eup %12126 }
 0x2f8   : > { %v12129_v24 = vpop.eup %12128  ;;  %v590_v25 = vpack.c.bf16 %v12127_v22, %v12123_v7 }
 0x2f9   : > { %v591_v26 = vpack.c.bf16 %v12125_v21, %v12129_v24 }
 0x2fa   : > { %9541 = vmatprep.mubr.bf16.mxu1 %v590_v25 }
 0x2fb   : > { %9542 = vmatmul.mubr.bf16.vlgmr.msra.gmra.mxu1 %v591_v26 }
 0x2fc   : > { %9566 = vmatpush3.bf16.msra.mxu1 %v13120_v2 }
 0x2fd   : > { %9567 = vmatprep.subr.bf16.mxu1 %v13128_v5 }
 0x300   : > { %9568 = vmatpush3.bf16.msra.mxu1 %v13128_v5 }
 0x301   : > { %9569 = vmatprep.subr.bf16.mxu1 %v13138_v8 }
 0x304   : > { %9570 = vmatpush3.bf16.msra.mxu1 %v13138_v8 }
 0x305   : > { %9571 = vmatprep.subr.bf16.mxu1 %v13146_v10 }
 0x308   : > { %9572 = vmatpush3.bf16.msra.mxu1 %v13146_v10 }
 0x309   : > { %9573 = vmatprep.subr.bf16.mxu1 %v13154_v12 }
 0x30c   : > { %9574 = vmatpush3.bf16.msra.mxu1 %v13154_v12 }
 0x30d   : > { %9575 = vmatprep.subr.bf16.mxu1 %v13162_v14 }
 0x310   : > { %9576 = vmatpush3.bf16.msra.mxu1 %v13162_v14 }
 0x311   : > { %9577 = vmatprep.subr.bf16.mxu1 %v13170_v16 }
 0x314   : > { %9578 = vmatpush3.bf16.msra.mxu1 %v13170_v16 }
 0x315   : > { %9579 = vmatprep.subr.bf16.mxu1 %v13178_v18 }
 0x318   : > { %9580 = vmatpush3.bf16.msra.mxu1 %v13178_v18 }
 0x319   : > { %9605 = vmatprep.subr.bf16.mxu1 %v13120_v2 }
 0x3bb   : > { %v9543_v27 = vpop.f32.mrf.mxu1 }
 0x3bc   : > { %v13303_v30 = vadd.f32 %v9543_v27, %v13241_v38 }
 0x3bd   : > { %v626_v28 = vpop.f32.mrf.mxu1 }
 0x3be   : > { %v13300_v29 = vadd.f32 %v13241_v38, %v626_v28  ;;  %v651_v36 = vmul.f32 0.03125, %v13303_v30  ;;  %v643_v7 = vmul.f32 2.0, %v13303_v30 }
 0x3bf   : > { %v9544_v31 = vpop.f32.mrf.mxu1 }
 0x3c0   : > { %v13306_v32 = vadd.f32 %v9544_v31, %v13241_v38  ;;  %v649_v34 = vmul.f32 0.03125, %v13300_v29  ;;  %v655_v46 = vadd.f32 %v651_v36, %v13182_v19  ;;  %v641_v24 = vmul.f32 2.0, %v13300_v29 }
 0x3c1   : > { %v629_v33 = vpop.f32.mrf.mxu1  ;;  %v647_v31 = vadd.f32 %v643_v7, %v13247_v41 }
 0x3c2   : > { %v13310_v35 = vadd.f32 %v13241_v38, %v629_v33  ;;  %v652_v37 = vmul.f32 0.03125, %v13306_v32  ;;  %v653_v44 = vadd.f32 %v649_v34, %v13124_v3  ;;  %v644_v25 = vmul.f32 2.0, %v13306_v32 }
 0x3c3   : > { %v645_v30 = vadd.f32 %v641_v24, %v13244_v40 }
 0x3c4   : > { %v650_v39 = vmul.f32 0.03125, %v13310_v35  ;;  %v656_v42 = vadd.f32 %v652_v37, %v13185_v20  ;;  %v642_v34 = vmul.f32 2.0, %v13310_v35 }
 0x3c6   : > { %v654_v45 = vadd.f32 %v650_v39, %v13132_v6  ;;  %v658_v49 = vpack.c.bf16 %v656_v42, %v655_v46  ;;  %v648_v39 = vadd.f32 %v644_v25, %v13250_v43  ;;  %v646_v35 = vadd.f32 %v642_v34, %v13255_v47 }
 0x3c8   : > { %v657_v48 = vpack.c.bf16 %v654_v45, %v653_v44 }
 0x3ca   : > { %9561 = vmatprep.mubr.bf16.mxu0 %v657_v48 }
 0x3cb   : > { %9562 = vmatmul.mubr.bf16.vlgmr.msra.gmra.mxu0 %v658_v49 }
 0x3cc   : > { %9586 = vmatpush3.bf16.msra.mxu0 %v13117_v1 }
 0x3cd   : > { %9587 = vmatprep.subr.bf16.mxu0 %v13115_v0 }
 0x3d0   : > { %9588 = vmatpush3.bf16.msra.mxu0 %v13115_v0 }
 0x3d1   : > { %9589 = vmatprep.subr.bf16.mxu0 %v13126_v4 }
 0x3d4   : > { %9590 = vmatpush3.bf16.msra.mxu0 %v13126_v4 }
 0x3d5   : > { %9591 = vmatprep.subr.bf16.mxu0 %v13141_v9 }
 0x3d8   : > { %9592 = vmatpush3.bf16.msra.mxu0 %v13141_v9 }
 0x3d9   : > { %9593 = vmatprep.subr.bf16.mxu0 %v13150_v11 }
 0x3dc   : > { %9594 = vmatpush3.bf16.msra.mxu0 %v13150_v11 }
 0x3dd   : > { %9595 = vmatprep.subr.bf16.mxu0 %v13158_v13 }
 0x3e0   : > { %9596 = vmatpush3.bf16.msra.mxu0 %v13158_v13 }
 0x3e1   : > { %9597 = vmatprep.subr.bf16.mxu0 %v13166_v15 }
 0x3e4   : > { %9598 = vmatpush3.bf16.msra.mxu0 %v13166_v15 }
 0x3e5   : > { %9599 = vmatprep.subr.bf16.mxu0 %v13174_v17 }
 0x3e8   : > { %9600 = vmatpush3.bf16.msra.mxu0 %v13174_v17 }
 0x3e9   : > { %9625 = vmatprep.subr.bf16.mxu0 %v13117_v1 }
 0x48b   : > { %v9563_v50 = vpop.f32.mrf.mxu0 }
 0x48c   : > { %v702_v55 = vadd.f32 %v9563_v50, %v13216_v23 }
 0x48d   : > { %v693_v51 = vpop.f32.mrf.mxu0 }
 0x48e   : > { %v694_v52 = vadd.f32 %v13216_v23, %v693_v51 }
 0x48f   : > { %v9564_v53 = vpop.f32.mrf.mxu0 }
 0x490   : > { %v705_v54 = vadd.f32 %v9564_v53, %v13216_v23  ;;  %12130 = vtanh.f32 %v694_v52 }
 0x491   : > { %v696_v56 = vpop.f32.mrf.mxu0 }
 0x492   : > { %v697_v57 = vadd.f32 %v13216_v23, %v696_v56  ;;  %12132 = vtanh.f32 %v705_v54 }
 0x494   : > { %12134 = vtanh.f32 %v697_v57 }
 0x495   : > { %12136 = vtanh.f32 %v702_v55 }
 0x49d   : > { %v12131_v58 = vpop.eup %12130 }
 0x49f   : > { %v12133_v59 = vpop.eup %12132 }
 0x4a1   : > { %v12135_v60 = vpop.eup %12134 }
 0x4a2   : > { %v12137_v61 = vpop.eup %12136  ;;  %v712_v62 = vpack.c.bf16 %v12135_v60, %v12131_v58 }
 0x4a3   : > { %v713_v63 = vpack.c.bf16 %v12133_v59, %v12137_v61 }
 0x4a4   : > { %9581 = vmatprep.mubr.bf16.mxu1 %v712_v62 }
 0x4a5   : > { %9582 = vmatmul.mubr.bf16.vlgmr.msra.gmra.mxu1 %v713_v63 }
 0x4a6   : > { %9606 = vmatpush3.bf16.msra.mxu1 %v13120_v2 }
 0x4a7   : > { %9607 = vmatprep.subr.bf16.mxu1 %v13128_v5 }
 0x4aa   : > { %9608 = vmatpush3.bf16.msra.mxu1 %v13128_v5 }
 0x4ab   : > { %9609 = vmatprep.subr.bf16.mxu1 %v13138_v8 }
 0x4ae   : > { %9610 = vmatpush3.bf16.msra.mxu1 %v13138_v8 }
 0x4af   : > { %9611 = vmatprep.subr.bf16.mxu1 %v13146_v10 }
 0x4b2   : > { %9612 = vmatpush3.bf16.msra.mxu1 %v13146_v10 }
 0x4b3   : > { %9613 = vmatprep.subr.bf16.mxu1 %v13154_v12 }
 0x4b6   : > { %9614 = vmatpush3.bf16.msra.mxu1 %v13154_v12 }
 0x4b7   : > { %9615 = vmatprep.subr.bf16.mxu1 %v13162_v14 }
 0x4ba   : > { %9616 = vmatpush3.bf16.msra.mxu1 %v13162_v14 }
 0x4bb   : > { %9617 = vmatprep.subr.bf16.mxu1 %v13170_v16 }
 0x4be   : > { %9618 = vmatpush3.bf16.msra.mxu1 %v13170_v16 }
 0x4bf   : > { %9619 = vmatprep.subr.bf16.mxu1 %v13178_v18 }
 0x4c2   : > { %9620 = vmatpush3.bf16.msra.mxu1 %v13178_v18 }
 0x4c3   : > { %9645 = vmatprep.subr.bf16.mxu1 %v13120_v2 }
 0x565   : > { %v9583_v21 = vpop.f32.mrf.mxu1 }
 0x566   : > { %v757_v22 = vadd.f32 %v9583_v21, %v13241_v38 }
 0x567   : > { %v748_v26 = vpop.f32.mrf.mxu1 }
 0x568   : > { %v765_v27 = vmul.f32 2.0, %v757_v22  ;;  %v749_v28 = vadd.f32 %v13241_v38, %v748_v26  ;;  %v773_v48 = vmul.f32 0.0625, %v757_v22 }
 0x569   : > { %v9584_v33 = vpop.f32.mrf.mxu1 }
 0x56a   : > { %v763_v36 = vmul.f32 2.0, %v749_v28  ;;  %v760_v37 = vadd.f32 %v9584_v33, %v13241_v38  ;;  %v13365_v29 = vadd.f32 %v765_v27, %v647_v31  ;;  %v771_v32 = vmul.f32 0.0625, %v749_v28 }
 0x56b   : > { %v751_v42 = vpop.f32.mrf.mxu1  ;;  %v777_v54 = vadd.f32 %v773_v48, %v13182_v19 }
 0x56c   : > { %v766_v44 = vmul.f32 2.0, %v760_v37  ;;  %v774_v45 = vmul.f32 0.0625, %v760_v37  ;;  %v752_v46 = vadd.f32 %v13241_v38, %v751_v42  ;;  %v13368_v41 = vadd.f32 %v763_v36, %v645_v30 }
 0x56d   : > { %v775_v43 = vadd.f32 %v771_v32, %v13124_v3 }
 0x56e   : > { %v764_v49 = vmul.f32 2.0, %v752_v46  ;;  %v772_v50 = vmul.f32 0.0625, %v752_v46  ;;  %v13371_v51 = vadd.f32 %v766_v44, %v648_v39  ;;  %v778_v40 = vadd.f32 %v774_v45, %v13185_v20 }
 0x570   : > { %v776_v52 = vadd.f32 %v772_v50, %v13132_v6  ;;  %v13376_v53 = vadd.f32 %v764_v49, %v646_v35  ;;  %v780_v56 = vpack.c.bf16 %v778_v40, %v777_v54 }
 0x572   : > { %v779_v55 = vpack.c.bf16 %v776_v52, %v775_v43 }
 0x574   : > { %9601 = vmatprep.mubr.bf16.mxu0 %v779_v55 }
 0x575   : > { %9602 = vmatmul.mubr.bf16.vlgmr.msra.gmra.mxu0 %v780_v56 }
 0x576   : > { %9626 = vmatpush3.bf16.msra.mxu0 %v13117_v1 }
 0x577   : > { %9627 = vmatprep.subr.bf16.mxu0 %v13115_v0 }
 0x57a   : > { %9628 = vmatpush3.bf16.msra.mxu0 %v13115_v0 }
 0x57b   : > { %9629 = vmatprep.subr.bf16.mxu0 %v13126_v4 }
 0x57e   : > { %9630 = vmatpush3.bf16.msra.mxu0 %v13126_v4 }
 0x57f   : > { %9631 = vmatprep.subr.bf16.mxu0 %v13141_v9 }
 0x582   : > { %9632 = vmatpush3.bf16.msra.mxu0 %v13141_v9 }
 0x583   : > { %9633 = vmatprep.subr.bf16.mxu0 %v13150_v11 }
 0x586   : > { %9634 = vmatpush3.bf16.msra.mxu0 %v13150_v11 }
 0x587   : > { %9635 = vmatprep.subr.bf16.mxu0 %v13158_v13 }
 0x58a   : > { %9636 = vmatpush3.bf16.msra.mxu0 %v13158_v13 }
 0x58b   : > { %9637 = vmatprep.subr.bf16.mxu0 %v13166_v15 }
 0x58e   : > { %9638 = vmatpush3.bf16.msra.mxu0 %v13166_v15 }
 0x58f   : > { %9639 = vmatprep.subr.bf16.mxu0 %v13174_v17 }
 0x592   : > { %9640 = vmatpush3.bf16.msra.mxu0 %v13174_v17 }
 0x593   : > { %9665 = vmatprep.subr.bf16.mxu0 %v13117_v1 }
 0x635   : > { %v9603_v47 = vpop.f32.mrf.mxu0 }
 0x636   : > { %v824_v61 = vadd.f32 %v9603_v47, %v13216_v23 }
 0x637   : > { %v815_v57 = vpop.f32.mrf.mxu0 }
 0x638   : > { %v816_v58 = vadd.f32 %v13216_v23, %v815_v57 }
 0x639   : > { %v9604_v59 = vpop.f32.mrf.mxu0 }
 0x63a   : > { %v827_v60 = vadd.f32 %v9604_v59, %v13216_v23  ;;  %12138 = vtanh.f32 %v816_v58 }
 0x63b   : > { %v818_v62 = vpop.f32.mrf.mxu0 }
 0x63c   : > { %v819_v63 = vadd.f32 %v13216_v23, %v818_v62  ;;  %12140 = vtanh.f32 %v827_v60 }
 0x63e   : > { %12142 = vtanh.f32 %v819_v63 }
 0x63f   : > { %12144 = vtanh.f32 %v824_v61 }
 0x647   : > { %v12139_v7 = vpop.eup %12138 }
 0x649   : > { %v12141_v21 = vpop.eup %12140 }
 0x64b   : > { %v12143_v22 = vpop.eup %12142 }
 0x64c   : > { %v12145_v24 = vpop.eup %12144  ;;  %v834_v25 = vpack.c.bf16 %v12143_v22, %v12139_v7 }
 0x64d   : > { %v835_v26 = vpack.c.bf16 %v12141_v21, %v12145_v24 }
 0x64e   : > { %9621 = vmatprep.mubr.bf16.mxu1 %v834_v25 }
 0x64f   : > { %9622 = vmatmul.mubr.bf16.vlgmr.msra.gmra.mxu1 %v835_v26 }
 0x650   : > { %9646 = vmatpush3.bf16.msra.mxu1 %v13120_v2 }
 0x651   : > { %9647 = vmatprep.subr.bf16.mxu1 %v13128_v5 }
 0x654   : > { %9648 = vmatpush3.bf16.msra.mxu1 %v13128_v5 }
 0x655   : > { %9649 = vmatprep.subr.bf16.mxu1 %v13138_v8 }
 0x658   : > { %9650 = vmatpush3.bf16.msra.mxu1 %v13138_v8 }
 0x659   : > { %9651 = vmatprep.subr.bf16.mxu1 %v13146_v10 }
 0x65c   : > { %9652 = vmatpush3.bf16.msra.mxu1 %v13146_v10 }
 0x65d   : > { %9653 = vmatprep.subr.bf16.mxu1 %v13154_v12 }
 0x660   : > { %9654 = vmatpush3.bf16.msra.mxu1 %v13154_v12 }
 0x661   : > { %9655 = vmatprep.subr.bf16.mxu1 %v13162_v14 }
 0x664   : > { %9656 = vmatpush3.bf16.msra.mxu1 %v13162_v14 }
 0x665   : > { %9657 = vmatprep.subr.bf16.mxu1 %v13170_v16 }
 0x668   : > { %9658 = vmatpush3.bf16.msra.mxu1 %v13170_v16 }
 0x669   : > { %9659 = vmatprep.subr.bf16.mxu1 %v13178_v18 }
 0x66c   : > { %9660 = vmatpush3.bf16.msra.mxu1 %v13178_v18 }
 0x66d   : > { %9685 = vmatprep.subr.bf16.mxu1 %v13120_v2 }
 0x70f   : > { %v9623_v27 = vpop.f32.mrf.mxu1 }
 0x710   : > { %v879_v28 = vadd.f32 %v9623_v27, %v13241_v38 }
 0x711   : > { %v870_v31 = vpop.f32.mrf.mxu1 }
 0x712   : > { %v871_v33 = vadd.f32 %v13241_v38, %v870_v31  ;;  %v887_v30 = vadd.f32 %v879_v28, %v13365_v29 }
 0x713   : > { %v9624_v34 = vpop.f32.mrf.mxu1 }
 0x714   : > { %v885_v36 = vadd.f32 %v871_v33, %v13368_v41  ;;  %v882_v37 = vadd.f32 %v9624_v34, %v13241_v38  ;;  %v891_v48 = vmul.f32 0.010416667, %v887_v30 }
 0x715   : > { %v873_v39 = vpop.f32.mrf.mxu1 }
 0x716   : > { %v888_v42 = vadd.f32 %v882_v37, %v13371_v51  ;;  %v874_v32 = vadd.f32 %v13241_v38, %v873_v39  ;;  %v889_v44 = vmul.f32 0.010416667, %v885_v36  ;;  %v13433_v29 = vadd.f32 %v891_v48, %v13182_v19 }
 0x718   : > { %v892_v45 = vmul.f32 0.010416667, %v888_v42  ;;  %v886_v46 = vadd.f32 %v874_v32, %v13376_v53  ;;  %v13427_v41 = vadd.f32 %v889_v44, %v13124_v3 }
 0x71a   : > { %v890_v35 = vmul.f32 0.010416667, %v886_v46  ;;  %v13424_v49 = vadd.f32 %v892_v45, %v13185_v20 }
 0x71c   : > { %v13430_v50 = vadd.f32 %v890_v35, %v13132_v6  ;;  %v898_v40 = vpack.c.bf16 %v13424_v49, %v13433_v29 }
 0x71e   : > { %v897_v51 = vpack.c.bf16 %v13430_v50, %v13427_v41 }
 0x720   : > { %9641 = vmatprep.mubr.bf16.mxu0 %v897_v51 }
 0x721   : > { %9642 = vmatmul.mubr.bf16.vlgmr.msra.gmra.mxu0 %v898_v40 }
 0x722   : > { %9666 = vmatpush3.bf16.msra.mxu0 %v13117_v1 }
 0x723   : > { %9667 = vmatprep.subr.bf16.mxu0 %v13115_v0 }
 0x726   : > { %9668 = vmatpush3.bf16.msra.mxu0 %v13115_v0 }
 0x727   : > { %9669 = vmatprep.subr.bf16.mxu0 %v13126_v4 }
 0x72a   : > { %9670 = vmatpush3.bf16.msra.mxu0 %v13126_v4 }
 0x72b   : > { %9671 = vmatprep.subr.bf16.mxu0 %v13141_v9 }
 0x72e   : > { %9672 = vmatpush3.bf16.msra.mxu0 %v13141_v9 }
 0x72f   : > { %9673 = vmatprep.subr.bf16.mxu0 %v13150_v11 }
 0x732   : > { %9674 = vmatpush3.bf16.msra.mxu0 %v13150_v11 }
 0x733   : > { %9675 = vmatprep.subr.bf16.mxu0 %v13158_v13 }
 0x736   : > { %9676 = vmatpush3.bf16.msra.mxu0 %v13158_v13 }
 0x737   : > { %9677 = vmatprep.subr.bf16.mxu0 %v13166_v15 }
 0x73a   : > { %9678 = vmatpush3.bf16.msra.mxu0 %v13166_v15 }
 0x73b   : > { %9679 = vmatprep.subr.bf16.mxu0 %v13174_v17 }
 0x73e   : > { %9680 = vmatpush3.bf16.msra.mxu0 %v13174_v17 }
 0x73f   : > { %9705 = vmatprep.subr.bf16.mxu0 %v13117_v1 }
 0x7e1   : > { %v9643_v3 = vpop.f32.mrf.mxu0 }
 0x7e2   : > { %v942_v52 = vadd.f32 %v9643_v3, %v13216_v23 }
 0x7e3   : > { %v933_v6 = vpop.f32.mrf.mxu0 }
 0x7e4   : > { %v934_v19 = vadd.f32 %v13216_v23, %v933_v6 }
 0x7e5   : > { %v9644_v20 = vpop.f32.mrf.mxu0 }
 0x7e6   : > { %v945_v43 = vadd.f32 %v9644_v20, %v13216_v23  ;;  %12146 = vtanh.f32 %v934_v19 }
 0x7e7   : > { %v936_v53 = vpop.f32.mrf.mxu0 }
 0x7e8   : > { %v937_v54 = vadd.f32 %v13216_v23, %v936_v53  ;;  %12148 = vtanh.f32 %v945_v43 }
 0x7ea   : > { %12150 = vtanh.f32 %v937_v54 }
 0x7eb   : > { %12152 = vtanh.f32 %v942_v52 }
 0x7f3   : > { %v12147_v55 = vpop.eup %12146 }
 0x7f5   : > { %v12149_v56 = vpop.eup %12148 }
 0x7f7   : > { %v12151_v47 = vpop.eup %12150 }
 0x7f8   : > { %v12153_v57 = vpop.eup %12152  ;;  %v952_v58 = vpack.c.bf16 %v12151_v47, %v12147_v55 }
 0x7f9   : > { %v953_v59 = vpack.c.bf16 %v12149_v56, %v12153_v57 }
 0x7fa   : > { %9661 = vmatprep.mubr.bf16.mxu1 %v952_v58 }
 0x7fb   : > { %9662 = vmatmul.mubr.bf16.vlgmr.msra.gmra.mxu1 %v953_v59  ;;  %v13552_v59 = vld [vmem:[#allocation5 + $0x30] sm:$0xff]  }
 0x7fc   : > { %9686 = vmatpush3.bf16.msra.mxu1 %v13120_v2 }
 0x7fd   : > { %9687 = vmatprep.subr.bf16.mxu1 %v13128_v5 }
 0x800   : > { %9688 = vmatpush3.bf16.msra.mxu1 %v13128_v5 }
 0x801   : > { %9689 = vmatprep.subr.bf16.mxu1 %v13138_v8 }
 0x804   : > { %9690 = vmatpush3.bf16.msra.mxu1 %v13138_v8 }
 0x805   : > { %9691 = vmatprep.subr.bf16.mxu1 %v13146_v10 }
 0x808   : > { %9692 = vmatpush3.bf16.msra.mxu1 %v13146_v10 }
 0x809   : > { %9693 = vmatprep.subr.bf16.mxu1 %v13154_v12 }
 0x80c   : > { %9694 = vmatpush3.bf16.msra.mxu1 %v13154_v12 }
 0x80d   : > { %9695 = vmatprep.subr.bf16.mxu1 %v13162_v14 }
 0x810   : > { %9696 = vmatpush3.bf16.msra.mxu1 %v13162_v14 }
 0x811   : > { %9697 = vmatprep.subr.bf16.mxu1 %v13170_v16 }
 0x814   : > { %9698 = vmatpush3.bf16.msra.mxu1 %v13170_v16 }
 0x815   : > { %9699 = vmatprep.subr.bf16.mxu1 %v13178_v18 }
 0x818   : > { %9700 = vmatpush3.bf16.msra.mxu1 %v13178_v18 }
 0x819   : > { %9725 = vmatprep.subr.bf16.mxu1 %v13120_v2 }
 0x8bb   : > { %v9663_v60 = vpop.f32.mrf.mxu1 }
 0x8bc   : > { %v13479_v63 = vadd.f32 %v9663_v60, %v13241_v38 }
 0x8bd   : > { %v988_v61 = vpop.f32.mrf.mxu1 }
 0x8be   : > { %v13476_v62 = vadd.f32 %v13241_v38, %v988_v61  ;;  %v1005_v27 = vmul.f32 0.03125, %v13479_v63 }
 0x8bf   : > { %v9664_v7 = vpop.f32.mrf.mxu1 }
 0x8c0   : > { %v13482_v21 = vadd.f32 %v9664_v7, %v13241_v38  ;;  %v1003_v24 = vmul.f32 0.03125, %v13476_v62  ;;  %v1009_v36 = vadd.f32 %v1005_v27, %v13433_v29 }
 0x8c1   : > { %v991_v22 = vpop.f32.mrf.mxu1 }
 0x8c2   : > { %v1006_v25 = vmul.f32 0.03125, %v13482_v21  ;;  %v13487_v26 = vadd.f32 %v13241_v38, %v991_v22  ;;  %v1007_v33 = vadd.f32 %v1003_v24, %v13427_v41 }
 0x8c4   : > { %v1004_v28 = vmul.f32 0.03125, %v13487_v26  ;;  %v1010_v31 = vadd.f32 %v1006_v25, %v13424_v49 }
 0x8c6   : > { %v1008_v34 = vadd.f32 %v1004_v28, %v13430_v50  ;;  %v1012_v30 = vpack.c.bf16 %v1010_v31, %v1009_v36  ;;  %v13575_v31 = vld [vmem:[#allocation7 + $0x38] sm:$0xff]  }
 0x8c7   : > { %v13590_v36 = vld [vmem:[#allocation7 + $0x18] sm:$0xff]  }
 0x8c8   : > { %v1011_v37 = vpack.c.bf16 %v1008_v34, %v1007_v33  ;;  %v13578_v33 = vld [vmem:[#allocation7 + $0x30] sm:$0xff]   ;;  %v13586_v34 = vld [vmem:[#allocation7 + $0x20] sm:$0xff]  }
 0x8ca   : > { %9681 = vmatprep.mubr.bf16.mxu0 %v1011_v37  ;;  %v13594_v37 = vld [vmem:[#allocation7 + $0x10] sm:$0xff]  }
 0x8cb   : > { %9682 = vmatmul.mubr.bf16.vlgmr.msra.gmra.mxu0 %v1012_v30  ;;  %v13598_v30 = vld [vmem:[#allocation7 + $0x8] sm:$0xff]  }
 0x8cc   : > { %9706 = vmatpush3.bf16.msra.mxu0 %v13117_v1 }
 0x8cd   : > { %9707 = vmatprep.subr.bf16.mxu0 %v13115_v0 }
 0x8d0   : > { %9708 = vmatpush3.bf16.msra.mxu0 %v13115_v0 }
 0x8d1   : > { %9709 = vmatprep.subr.bf16.mxu0 %v13126_v4 }
 0x8d4   : > { %9710 = vmatpush3.bf16.msra.mxu0 %v13126_v4 }
 0x8d5   : > { %9711 = vmatprep.subr.bf16.mxu0 %v13141_v9 }
 0x8d8   : > { %9712 = vmatpush3.bf16.msra.mxu0 %v13141_v9 }
 0x8d9   : > { %9713 = vmatprep.subr.bf16.mxu0 %v13150_v11 }
 0x8dc   : > { %9714 = vmatpush3.bf16.msra.mxu0 %v13150_v11 }
 0x8dd   : > { %9715 = vmatprep.subr.bf16.mxu0 %v13158_v13 }
 0x8e0   : > { %9716 = vmatpush3.bf16.msra.mxu0 %v13158_v13 }
 0x8e1   : > { %9717 = vmatprep.subr.bf16.mxu0 %v13166_v15 }
 0x8e4   : > { %9718 = vmatpush3.bf16.msra.mxu0 %v13166_v15 }
 0x8e5   : > { %9719 = vmatprep.subr.bf16.mxu0 %v13174_v17 }
 0x8e8   : > { %9720 = vmatpush3.bf16.msra.mxu0 %v13174_v17 }
 0x8e9   : > { %9745 = vmatprep.subr.bf16.mxu0 %v13117_v1 }
 0x98b   : > { %v9683_v0 = vpop.f32.mrf.mxu0 }
 0x98c   : > { %v1056_v45 = vadd.f32 %v9683_v0, %v13216_v23  ;;  %v13602_v0 = vld [vmem:[#allocation7] sm:$0xff]  }
 0x98d   : > { %v1047_v39 = vpop.f32.mrf.mxu0 }
 0x98e   : > { %v1048_v42 = vadd.f32 %v13216_v23, %v1047_v39 }
 0x98f   : > { %v9684_v32 = vpop.f32.mrf.mxu0 }
 0x990   : > { %v1059_v44 = vadd.f32 %v9684_v32, %v13216_v23  ;;  %12154 = vtanh.f32 %v1048_v42 }
 0x991   : > { %v1050_v46 = vpop.f32.mrf.mxu0 }
 0x992   : > { %v1051_v48 = vadd.f32 %v13216_v23, %v1050_v46  ;;  %12156 = vtanh.f32 %v1059_v44 }
 0x994   : > { %12158 = vtanh.f32 %v1051_v48 }
 0x995   : > { %12160 = vtanh.f32 %v1056_v45 }
 0x99d   : > { %v12155_v35 = vpop.eup %12154 }
 0x99f   : > { %v12157_v51 = vpop.eup %12156 }
 0x9a1   : > { %v12159_v40 = vpop.eup %12158 }
 0x9a2   : > { %v12161_v3 = vpop.eup %12160  ;;  %v1066_v6 = vpack.c.bf16 %v12159_v40, %v12155_v35 }
 0x9a3   : > { %v1067_v19 = vpack.c.bf16 %v12157_v51, %v12161_v3 }
 0x9a4   : > { %9701 = vmatprep.mubr.bf16.mxu1 %v1066_v6 }
 0x9a5   : > { %9702 = vmatmul.mubr.bf16.vlgmr.msra.gmra.mxu1 %v1067_v19 }
 0x9a6   : > { %9726 = vmatpush3.bf16.msra.mxu1 %v13120_v2 }
 0x9a7   : > { %9727 = vmatprep.subr.bf16.mxu1 %v13128_v5 }
 0x9aa   : > { %9728 = vmatpush3.bf16.msra.mxu1 %v13128_v5 }
 0x9ab   : > { %9729 = vmatprep.subr.bf16.mxu1 %v13138_v8 }
 0x9ae   : > { %9730 = vmatpush3.bf16.msra.mxu1 %v13138_v8 }
 0x9af   : > { %9731 = vmatprep.subr.bf16.mxu1 %v13146_v10 }
 0x9b2   : > { %9732 = vmatpush3.bf16.msra.mxu1 %v13146_v10 }
 0x9b3   : > { %9733 = vmatprep.subr.bf16.mxu1 %v13154_v12 }
 0x9b6   : > { %9734 = vmatpush3.bf16.msra.mxu1 %v13154_v12 }
 0x9b7   : > { %9735 = vmatprep.subr.bf16.mxu1 %v13162_v14 }
 0x9ba   : > { %9736 = vmatpush3.bf16.msra.mxu1 %v13162_v14 }
 0x9bb   : > { %9737 = vmatprep.subr.bf16.mxu1 %v13170_v16 }
 0x9be   : > { %9738 = vmatpush3.bf16.msra.mxu1 %v13170_v16 }
 0x9bf   : > { %9739 = vmatprep.subr.bf16.mxu1 %v13178_v18 }
 0x9c2   : > { %9740 = vmatpush3.bf16.msra.mxu1 %v13178_v18 }
 0x9c3   : > { %9765 = vmatprep.subr.bf16.mxu1 %v13120_v2 }
 0xa65   : > { %v9703_v5 = vpop.f32.mrf.mxu1 }
 0xa66   : > { %v13535_v12 = vadd.f32 %v9703_v5, %v13241_v38 }
 0xa67   : > { %v1102_v8 = vpop.f32.mrf.mxu1 }
 0xa68   : > { %v13532_v10 = vadd.f32 %v13241_v38, %v1102_v8  ;;  %v1127_v2 = vmul.f32 0.03125, %v13535_v12  ;;  %v1119_v39 = vmul.f32 2.0, %v13535_v12 }
 0xa69   : > { %v9704_v20 = vpop.f32.mrf.mxu1 }
 0xa6a   : > { %v13538_v14 = vadd.f32 %v9704_v20, %v13241_v38  ;;  %v1125_v16 = vmul.f32 0.03125, %v13532_v10  ;;  %v1131_v47 = vadd.f32 %v1127_v2, %v13433_v29  ;;  %v1117_v44 = vmul.f32 2.0, %v13532_v10 }
 0xa6b   : > { %v1105_v43 = vpop.f32.mrf.mxu1  ;;  %v1123_v51 = vadd.f32 %v1119_v39, %v13479_v63 }
 0xa6c   : > { %v13542_v52 = vadd.f32 %v13241_v38, %v1105_v43  ;;  %v1128_v18 = vmul.f32 0.03125, %v13538_v14  ;;  %v1129_v55 = vadd.f32 %v1125_v16, %v13427_v41  ;;  %v1120_v45 = vmul.f32 2.0, %v13538_v14 }
 0xa6d   : > { %v1121_v5 = vadd.f32 %v1117_v44, %v13476_v62 }
 0xa6e   : > { %v1126_v53 = vmul.f32 0.03125, %v13542_v52  ;;  %v1132_v54 = vadd.f32 %v1128_v18, %v13424_v49  ;;  %v1118_v3 = vmul.f32 2.0, %v13542_v52  ;;  %v1124_v8 = vadd.f32 %v1120_v45, %v13482_v21 }
 0xa70   : > { %v1130_v56 = vadd.f32 %v1126_v53, %v13430_v50  ;;  %v1134_v58 = vpack.c.bf16 %v1132_v54, %v1131_v47  ;;  %v1122_v52 = vadd.f32 %v1118_v3, %v13487_v26  ;;  %v13634_v26 = vld [vmem:[#allocation5 + $0x28] sm:$0xff]  }
 0xa72   : > { %v1133_v57 = vpack.c.bf16 %v1130_v56, %v1129_v55 }
 0xa74   : > { %9721 = vmatprep.mubr.bf16.mxu0 %v1133_v57 }
 0xa75   : > { %9722 = vmatmul.mubr.bf16.vlgmr.msra.gmra.mxu0 %v1134_v58  ;;  %v13638_v58 = vld [vmem:[#allocation5 + $0x20] sm:$0xff]  }
 0xa76   : > { %9746 = vmatpush3.bf16.msra.mxu0 %v13117_v1  ;;  %v13568_v1 = vld [vmem:[#allocation5 + $0x38] sm:$0xff]  }
 0xa77   : > { %9747 = vmatprep.subr.bf16.mxu0 %v13552_v59 }
 0xa7a   : > { %9748 = vmatpush3.bf16.msra.mxu0 %v13552_v59 }
 0xa7b   : > { %9749 = vmatprep.subr.bf16.mxu0 %v13126_v4 }
 0xa7e   : > { %9750 = vmatpush3.bf16.msra.mxu0 %v13126_v4 }
 0xa7f   : > { %9751 = vmatprep.subr.bf16.mxu0 %v13141_v9 }
 0xa82   : > { %9752 = vmatpush3.bf16.msra.mxu0 %v13141_v9 }
 0xa83   : > { %9753 = vmatprep.subr.bf16.mxu0 %v13150_v11 }
 0xa86   : > { %9754 = vmatpush3.bf16.msra.mxu0 %v13150_v11 }
 0xa87   : > { %9755 = vmatprep.subr.bf16.mxu0 %v13158_v13 }
 0xa8a   : > { %9756 = vmatpush3.bf16.msra.mxu0 %v13158_v13 }
 0xa8b   : > { %9757 = vmatprep.subr.bf16.mxu0 %v13166_v15 }
 0xa8e   : > { %9758 = vmatpush3.bf16.msra.mxu0 %v13166_v15 }
 0xa8f   : > { %9759 = vmatprep.subr.bf16.mxu0 %v13174_v17 }
 0xa92   : > { %9760 = vmatpush3.bf16.msra.mxu0 %v13174_v17 }
 0xa93   : > { %9785 = vmatprep.subr.bf16.mxu0 %v13568_v1 }
 0xb35   : > { %v9723_v4 = vpop.f32.mrf.mxu0 }
 0xb36   : > { %v1178_v13 = vadd.f32 %v9723_v4, %v13216_v23  ;;  %v13642_v4 = vld [vmem:[#allocation5 + $0x18] sm:$0xff]  }
 0xb37   : > { %v1169_v9 = vpop.f32.mrf.mxu0 }
 0xb38   : > { %v1170_v11 = vadd.f32 %v13216_v23, %v1169_v9  ;;  %v13646_v9 = vld [vmem:[#allocation5 + $0x10] sm:$0xff]  }
 0xb39   : > { %v9724_v60 = vpop.f32.mrf.mxu0 }
 0xb3a   : > { %v1181_v61 = vadd.f32 %v9724_v60, %v13216_v23  ;;  %12162 = vtanh.f32 %v1170_v11  ;;  %v13650_v11 = vld [vmem:[#allocation5 + $0x8] sm:$0xff]   ;;  %v13654_v60 = vld [vmem:[#allocation5] sm:$0xff]  }
 0xb3b   : > { %v1172_v7 = vpop.f32.mrf.mxu0 }
 0xb3c   : > { %v1173_v15 = vadd.f32 %v13216_v23, %v1172_v7  ;;  %12164 = vtanh.f32 %v1181_v61  ;;  %v13582_v23 = vld [vmem:[#allocation7 + $0x28] sm:$0xff]   ;;  %v13662_v7 = vld [vmem:[%s17232_s2] ss:$0 sm:$0xff] }
 0xb3e   : > { %12166 = vtanh.f32 %v1173_v15 }
 0xb3f   : > { %12168 = vtanh.f32 %v1178_v13 }
 0xb47   : > { %v12163_v17 = vpop.eup %12162 }
 0xb49   : > { %v12165_v22 = vpop.eup %12164 }
 0xb4b   : > { %v12167_v24 = vpop.eup %12166 }
 0xb4c   : > { %v12169_v25 = vpop.eup %12168  ;;  %v1188_v27 = vpack.c.bf16 %v12167_v24, %v12163_v17 }
 0xb4d   : > { %v1189_v28 = vpack.c.bf16 %v12165_v22, %v12169_v25 }
 0xb4e   : > { %9741 = vmatprep.mubr.bf16.mxu1 %v1188_v27 }
 0xb4f   : > { %9742 = vmatmul.mubr.bf16.vlgmr.msra.gmra.mxu1 %v1189_v28 }
 0xb50   : > { %9766 = vmatpush3.bf16.msra.mxu1 %v13575_v31 }
 0xb51   : > { %9767 = vmatprep.subr.bf16.mxu1 %v13578_v33 }
 0xb54   : > { %9768 = vmatpush3.bf16.msra.mxu1 %v13578_v33 }
 0xb55   : > { %9769 = vmatprep.subr.bf16.mxu1 %v13582_v23 }
 0xb58   : > { %9770 = vmatpush3.bf16.msra.mxu1 %v13582_v23 }
 0xb59   : > { %9771 = vmatprep.subr.bf16.mxu1 %v13586_v34 }
 0xb5c   : > { %9772 = vmatpush3.bf16.msra.mxu1 %v13586_v34 }
 0xb5d   : > { %9773 = vmatprep.subr.bf16.mxu1 %v13590_v36 }
 0xb60   : > { %9774 = vmatpush3.bf16.msra.mxu1 %v13590_v36 }
 0xb61   : > { %9775 = vmatprep.subr.bf16.mxu1 %v13594_v37 }
 0xb64   : > { %9776 = vmatpush3.bf16.msra.mxu1 %v13594_v37 }
 0xb65   : > { %9777 = vmatprep.subr.bf16.mxu1 %v13598_v30 }
 0xb68   : > { %9778 = vmatpush3.bf16.msra.mxu1 %v13598_v30 }
 0xb69   : > { %9779 = vmatprep.subr.bf16.mxu1 %v13602_v0 }
 0xb6c   : > { %9780 = vmatpush3.bf16.msra.mxu1 %v13602_v0 }
 0xb6d   : > { %9805 = vmatprep.subr.bf16.mxu1 %v13575_v31 }
 0xc0f   : > { %v9743_v42 = vpop.f32.mrf.mxu1 }
 0xc10   : > { %v1233_v32 = vadd.f32 %v9743_v42, %v13241_v38 }
 0xc11   : > { %v1224_v46 = vpop.f32.mrf.mxu1 }
 0xc12   : > { %v1241_v48 = vmul.f32 2.0, %v1233_v32  ;;  %v1225_v35 = vadd.f32 %v13241_v38, %v1224_v46  ;;  %v1249_v2 = vmul.f32 0.0625, %v1233_v32 }
 0xc13   : > { %v9744_v40 = vpop.f32.mrf.mxu1 }
 0xc14   : > { %v1239_v6 = vmul.f32 2.0, %v1225_v35  ;;  %v1236_v19 = vadd.f32 %v9744_v40, %v13241_v38  ;;  %v13617_v10 = vadd.f32 %v1241_v48, %v1123_v51  ;;  %v1247_v20 = vmul.f32 0.0625, %v1225_v35  ;;  %v13687_v48 = vld [vmem:[%s17234_s4] ss:$0 sm:$0xff] }
 0xc15   : > { %v1227_v12 = vpop.f32.mrf.mxu1  ;;  %v1253_v47 = vadd.f32 %v1249_v2, %v13433_v29 }
 0xc16   : > { %v1242_v14 = vmul.f32 2.0, %v1236_v19  ;;  %v1250_v43 = vmul.f32 0.0625, %v1236_v19  ;;  %v1228_v16 = vadd.f32 %v13241_v38, %v1227_v12  ;;  %v13620_v63 = vadd.f32 %v1239_v6, %v1121_v5 }
 0xc17   : > { %v1251_v21 = vadd.f32 %v1247_v20, %v13427_v41 }
 0xc18   : > { %v1240_v18 = vmul.f32 2.0, %v1228_v16  ;;  %v1248_v53 = vmul.f32 0.0625, %v1228_v16  ;;  %v13623_v54 = vadd.f32 %v1242_v14, %v1124_v8  ;;  %v1254_v62 = vadd.f32 %v1250_v43, %v13424_v49 }
 0xc1a   : > { %v1252_v55 = vadd.f32 %v1248_v53, %v13430_v50  ;;  %v13628_v56 = vadd.f32 %v1240_v18, %v1122_v52  ;;  %v1256_v57 = vpack.c.bf16 %v1254_v62, %v1253_v47 }
 0xc1c   : > { %v1255_v38 = vpack.c.bf16 %v1252_v55, %v1251_v21 }
 0xc1e   : > { %9761 = vmatprep.mubr.bf16.mxu0 %v1255_v38 }
 0xc1f   : > { %9762 = vmatmul.mubr.bf16.vlgmr.msra.gmra.mxu0 %v1256_v57 }
 0xc20   : > { %9786 = vmatpush3.bf16.msra.mxu0 %v13568_v1 }
 0xc21   : > { %9787 = vmatprep.subr.bf16.mxu0 %v13552_v59 }
 0xc24   : > { %9788 = vmatpush3.bf16.msra.mxu0 %v13552_v59 }
 0xc25   : > { %9789 = vmatprep.subr.bf16.mxu0 %v13634_v26 }
 0xc28   : > { %9790 = vmatpush3.bf16.msra.mxu0 %v13634_v26 }
 0xc29   : > { %9791 = vmatprep.subr.bf16.mxu0 %v13638_v58 }
 0xc2c   : > { %9792 = vmatpush3.bf16.msra.mxu0 %v13638_v58 }
 0xc2d   : > { %9793 = vmatprep.subr.bf16.mxu0 %v13642_v4 }
 0xc30   : > { %9794 = vmatpush3.bf16.msra.mxu0 %v13642_v4 }
 0xc31   : > { %9795 = vmatprep.subr.bf16.mxu0 %v13646_v9 }
 0xc34   : > { %9796 = vmatpush3.bf16.msra.mxu0 %v13646_v9 }
 0xc35   : > { %9797 = vmatprep.subr.bf16.mxu0 %v13650_v11 }
 0xc38   : > { %9798 = vmatpush3.bf16.msra.mxu0 %v13650_v11 }
 0xc39   : > { %9799 = vmatprep.subr.bf16.mxu0 %v13654_v60 }
 0xc3c   : > { %9800 = vmatpush3.bf16.msra.mxu0 %v13654_v60 }
 0xc3d   : > { %9825 = vmatprep.subr.bf16.mxu0 %v13568_v1 }
 0xcdf   : > { %v9763_v61 = vpop.f32.mrf.mxu0 }
 0xce0   : > { %v1300_v24 = vadd.f32 %v13662_v7, %v9763_v61 }
 0xce1   : > { %v1291_v13 = vpop.f32.mrf.mxu0 }
 0xce2   : > { %v1292_v15 = vadd.f32 %v13662_v7, %v1291_v13 }
 0xce3   : > { %v9764_v17 = vpop.f32.mrf.mxu0 }
 0xce4   : > { %v1303_v22 = vadd.f32 %v13662_v7, %v9764_v17  ;;  %12170 = vtanh.f32 %v1292_v15 }
 0xce5   : > { %v1294_v25 = vpop.f32.mrf.mxu0 }
 0xce6   : > { %v1295_v27 = vadd.f32 %v13662_v7, %v1294_v25  ;;  %12172 = vtanh.f32 %v1303_v22 }
 0xce8   : > { %12174 = vtanh.f32 %v1295_v27 }
 0xce9   : > { %12176 = vtanh.f32 %v1300_v24 }
 0xcf1   : > { %v12171_v28 = vpop.eup %12170 }
 0xcf3   : > { %v12173_v39 = vpop.eup %12172 }
 0xcf5   : > { %v12175_v42 = vpop.eup %12174 }
 0xcf6   : > { %v12177_v32 = vpop.eup %12176  ;;  %v1310_v44 = vpack.c.bf16 %v12175_v42, %v12171_v28 }
 0xcf7   : > { %v1311_v45 = vpack.c.bf16 %v12173_v39, %v12177_v32 }
 0xcf8   : > { %9781 = vmatprep.mubr.bf16.mxu1 %v1310_v44 }
 0xcf9   : > { %9782 = vmatmul.mubr.bf16.vlgmr.msra.gmra.mxu1 %v1311_v45 }
 0xcfa   : > { %9806 = vmatpush3.bf16.msra.mxu1 %v13575_v31 }
 0xcfb   : > { %9807 = vmatprep.subr.bf16.mxu1 %v13578_v33 }
 0xcfe   : > { %9808 = vmatpush3.bf16.msra.mxu1 %v13578_v33 }
 0xcff   : > { %9809 = vmatprep.subr.bf16.mxu1 %v13582_v23 }
 0xd02   : > { %9810 = vmatpush3.bf16.msra.mxu1 %v13582_v23 }
 0xd03   : > { %9811 = vmatprep.subr.bf16.mxu1 %v13586_v34 }
 0xd06   : > { %9812 = vmatpush3.bf16.msra.mxu1 %v13586_v34 }
 0xd07   : > { %9813 = vmatprep.subr.bf16.mxu1 %v13590_v36 }
 0xd0a   : > { %9814 = vmatpush3.bf16.msra.mxu1 %v13590_v36 }
 0xd0b   : > { %9815 = vmatprep.subr.bf16.mxu1 %v13594_v37 }
 0xd0e   : > { %9816 = vmatpush3.bf16.msra.mxu1 %v13594_v37 }
 0xd0f   : > { %9817 = vmatprep.subr.bf16.mxu1 %v13598_v30 }
 0xd12   : > { %9818 = vmatpush3.bf16.msra.mxu1 %v13598_v30 }
 0xd13   : > { %9819 = vmatprep.subr.bf16.mxu1 %v13602_v0 }
 0xd16   : > { %9820 = vmatpush3.bf16.msra.mxu1 %v13602_v0 }
 0xd17   : > { %9845 = vmatprep.subr.bf16.mxu1 %v13575_v31 }
 0xdb9   : > { %v9783_v46 = vpop.f32.mrf.mxu1 }
 0xdba   : > { %v1355_v35 = vadd.f32 %v13687_v48, %v9783_v46 }
 0xdbb   : > { %v1346_v51 = vpop.f32.mrf.mxu1 }
 0xdbc   : > { %v1347_v40 = vadd.f32 %v13687_v48, %v1346_v51  ;;  %v1363_v5 = vadd.f32 %v1355_v35, %v13617_v10 }
 0xdbd   : > { %v9784_v3 = vpop.f32.mrf.mxu1 }
 0xdbe   : > { %v1361_v6 = vadd.f32 %v1347_v40, %v13620_v63  ;;  %v1358_v19 = vadd.f32 %v13687_v48, %v9784_v3  ;;  %v1367_v2 = vmul.f32 0.010416667, %v1363_v5 }
 0xdbf   : > { %v1349_v8 = vpop.f32.mrf.mxu1 }
 0xdc0   : > { %v1364_v12 = vadd.f32 %v1358_v19, %v13623_v54  ;;  %v1350_v20 = vadd.f32 %v13687_v48, %v1349_v8  ;;  %v1365_v14 = vmul.f32 0.010416667, %v1361_v6  ;;  %v13707_v10 = vadd.f32 %v1367_v2, %v13433_v29 }
 0xdc2   : > { %v1368_v43 = vmul.f32 0.010416667, %v1364_v12  ;;  %v1362_v16 = vadd.f32 %v1350_v20, %v13628_v56  ;;  %v13701_v63 = vadd.f32 %v1365_v14, %v13427_v41 }
 0xdc4   : > { %v1366_v52 = vmul.f32 0.010416667, %v1362_v16  ;;  %v13698_v18 = vadd.f32 %v1368_v43, %v13424_v49 }
 0xdc6   : > { %v13704_v53 = vadd.f32 %v1366_v52, %v13430_v50  ;;  %v1374_v62 = vpack.c.bf16 %v13698_v18, %v13707_v10 }
 0xdc8   : > { %v1373_v54 = vpack.c.bf16 %v13704_v53, %v13701_v63 }
 0xdca   : > { %9801 = vmatprep.mubr.bf16.mxu0 %v1373_v54 }
 0xdcb   : > { %9802 = vmatmul.mubr.bf16.vlgmr.msra.gmra.mxu0 %v1374_v62 }
 0xdcc   : > { %9826 = vmatpush3.bf16.msra.mxu0 %v13568_v1 }
 0xdcd   : > { %9827 = vmatprep.subr.bf16.mxu0 %v13552_v59 }
 0xdd0   : > { %9828 = vmatpush3.bf16.msra.mxu0 %v13552_v59 }
 0xdd1   : > { %9829 = vmatprep.subr.bf16.mxu0 %v13634_v26 }
 0xdd4   : > { %9830 = vmatpush3.bf16.msra.mxu0 %v13634_v26 }
 0xdd5   : > { %9831 = vmatprep.subr.bf16.mxu0 %v13638_v58 }
 0xdd8   : > { %9832 = vmatpush3.bf16.msra.mxu0 %v13638_v58 }
 0xdd9   : > { %9833 = vmatprep.subr.bf16.mxu0 %v13642_v4 }
 0xddc   : > { %9834 = vmatpush3.bf16.msra.mxu0 %v13642_v4 }
 0xddd   : > { %9835 = vmatprep.subr.bf16.mxu0 %v13646_v9 }
 0xde0   : > { %9836 = vmatpush3.bf16.msra.mxu0 %v13646_v9 }
 0xde1   : > { %9837 = vmatprep.subr.bf16.mxu0 %v13650_v11 }
 0xde4   : > { %9838 = vmatpush3.bf16.msra.mxu0 %v13650_v11 }
 0xde5   : > { %9839 = vmatprep.subr.bf16.mxu0 %v13654_v60 }
 0xde8   : > { %9840 = vmatpush3.bf16.msra.mxu0 %v13654_v60 }
 0xde9   : > { %9865 = vmatprep.subr.bf16.mxu0 %v13568_v1 }
 0xe8b   : > { %v9803_v49 = vpop.f32.mrf.mxu0 }
 0xe8c   : > { %v1418_v55 = vadd.f32 %v13662_v7, %v9803_v49 }
 0xe8d   : > { %v1409_v41 = vpop.f32.mrf.mxu0 }
 0xe8e   : > { %v1410_v50 = vadd.f32 %v13662_v7, %v1409_v41 }
 0xe8f   : > { %v9804_v29 = vpop.f32.mrf.mxu0 }
 0xe90   : > { %v1421_v21 = vadd.f32 %v13662_v7, %v9804_v29  ;;  %12178 = vtanh.f32 %v1410_v50 }
 0xe91   : > { %v1412_v56 = vpop.f32.mrf.mxu0 }
 0xe92   : > { %v1413_v47 = vadd.f32 %v13662_v7, %v1412_v56  ;;  %12180 = vtanh.f32 %v1421_v21 }
 0xe94   : > { %12182 = vtanh.f32 %v1413_v47 }
 0xe95   : > { %12184 = vtanh.f32 %v1418_v55 }
 0xe9d   : > { %v12179_v38 = vpop.eup %12178 }
 0xe9f   : > { %v12181_v57 = vpop.eup %12180 }
 0xea1   : > { %v12183_v61 = vpop.eup %12182 }
 0xea2   : > { %v12185_v13 = vpop.eup %12184  ;;  %v1428_v15 = vpack.c.bf16 %v12183_v61, %v12179_v38 }
 0xea3   : > { %v1429_v17 = vpack.c.bf16 %v12181_v57, %v12185_v13 }
 0xea4   : > { %9821 = vmatprep.mubr.bf16.mxu1 %v1428_v15 }
 0xea5   : > { %9822 = vmatmul.mubr.bf16.vlgmr.msra.gmra.mxu1 %v1429_v17 }
 0xea6   : > { %9846 = vmatpush3.bf16.msra.mxu1 %v13575_v31 }
 0xea7   : > { %9847 = vmatprep.subr.bf16.mxu1 %v13578_v33 }
 0xeaa   : > { %9848 = vmatpush3.bf16.msra.mxu1 %v13578_v33 }
 0xeab   : > { %9849 = vmatprep.subr.bf16.mxu1 %v13582_v23 }
 0xeae   : > { %9850 = vmatpush3.bf16.msra.mxu1 %v13582_v23 }
 0xeaf   : > { %9851 = vmatprep.subr.bf16.mxu1 %v13586_v34 }
 0xeb2   : > { %9852 = vmatpush3.bf16.msra.mxu1 %v13586_v34 }
 0xeb3   : > { %9853 = vmatprep.subr.bf16.mxu1 %v13590_v36 }
 0xeb6   : > { %9854 = vmatpush3.bf16.msra.mxu1 %v13590_v36 }
 0xeb7   : > { %9855 = vmatprep.subr.bf16.mxu1 %v13594_v37 }
 0xeba   : > { %9856 = vmatpush3.bf16.msra.mxu1 %v13594_v37 }
 0xebb   : > { %9857 = vmatprep.subr.bf16.mxu1 %v13598_v30 }
 0xebe   : > { %9858 = vmatpush3.bf16.msra.mxu1 %v13598_v30 }
 0xebf   : > { %9859 = vmatprep.subr.bf16.mxu1 %v13602_v0 }
 0xec2   : > { %9860 = vmatpush3.bf16.msra.mxu1 %v13602_v0 }
 0xec3   : > { %9885 = vmatprep.subr.bf16.mxu1 %v13575_v31 }
 0xf65   : > { %v9823_v22 = vpop.f32.mrf.mxu1 }
 0xf66   : > { %v13753_v27 = vadd.f32 %v13687_v48, %v9823_v22 }
 0xf67   : > { %v1464_v24 = vpop.f32.mrf.mxu1 }
 0xf68   : > { %v13750_v25 = vadd.f32 %v13687_v48, %v1464_v24  ;;  %v1481_v46 = vmul.f32 0.03125, %v13753_v27 }
 0xf69   : > { %v9824_v28 = vpop.f32.mrf.mxu1 }
 0xf6a   : > { %v13756_v39 = vadd.f32 %v13687_v48, %v9824_v28  ;;  %v1479_v32 = vmul.f32 0.03125, %v13750_v25  ;;  %v1485_v6 = vadd.f32 %v1481_v46, %v13707_v10 }
 0xf6b   : > { %v1467_v42 = vpop.f32.mrf.mxu1 }
 0xf6c   : > { %v1482_v44 = vmul.f32 0.03125, %v13756_v39  ;;  %v13761_v45 = vadd.f32 %v13687_v48, %v1467_v42  ;;  %v1483_v40 = vadd.f32 %v1479_v32, %v13701_v63 }
 0xf6e   : > { %v1480_v35 = vmul.f32 0.03125, %v13761_v45  ;;  %v1486_v51 = vadd.f32 %v1482_v44, %v13698_v18 }
 0xf70   : > { %v1484_v3 = vadd.f32 %v1480_v35, %v13704_v53  ;;  %v1488_v5 = vpack.c.bf16 %v1486_v51, %v1485_v6 }
 0xf72   : > { %v1487_v19 = vpack.c.bf16 %v1484_v3, %v1483_v40 }
 0xf74   : > { %9841 = vmatprep.mubr.bf16.mxu0 %v1487_v19 }
 0xf75   : > { %9842 = vmatmul.mubr.bf16.vlgmr.msra.gmra.mxu0 %v1488_v5 }
 0xf76   : > { %9866 = vmatpush3.bf16.msra.mxu0 %v13568_v1 }
 0xf77   : > { %9867 = vmatprep.subr.bf16.mxu0 %v13552_v59 }
 0xf7a   : > { %9868 = vmatpush3.bf16.msra.mxu0 %v13552_v59 }
 0xf7b   : > { %9869 = vmatprep.subr.bf16.mxu0 %v13634_v26 }
 0xf7e   : > { %9870 = vmatpush3.bf16.msra.mxu0 %v13634_v26 }
 0xf7f   : > { %9871 = vmatprep.subr.bf16.mxu0 %v13638_v58 }
 0xf82   : > { %9872 = vmatpush3.bf16.msra.mxu0 %v13638_v58 }
 0xf83   : > { %9873 = vmatprep.subr.bf16.mxu0 %v13642_v4 }
 0xf86   : > { %9874 = vmatpush3.bf16.msra.mxu0 %v13642_v4 }
 0xf87   : > { %9875 = vmatprep.subr.bf16.mxu0 %v13646_v9 }
 0xf8a   : > { %9876 = vmatpush3.bf16.msra.mxu0 %v13646_v9 }
 0xf8b   : > { %9877 = vmatprep.subr.bf16.mxu0 %v13650_v11 }
 0xf8e   : > { %9878 = vmatpush3.bf16.msra.mxu0 %v13650_v11 }
 0xf8f   : > { %9879 = vmatprep.subr.bf16.mxu0 %v13654_v60 }
 0xf92   : > { %9880 = vmatpush3.bf16.msra.mxu0 %v13654_v60 }
 0xf93   : > { %9905 = vmatprep.subr.bf16.mxu0 %v13568_v1 }
0x1035   : > { %v9843_v8 = vpop.f32.mrf.mxu0 }
0x1036   : > { %v1532_v16 = vadd.f32 %v13662_v7, %v9843_v8 }
0x1037   : > { %v1523_v12 = vpop.f32.mrf.mxu0 }
0x1038   : > { %v1524_v20 = vadd.f32 %v13662_v7, %v1523_v12 }
0x1039   : > { %v9844_v14 = vpop.f32.mrf.mxu0 }
0x103a   : > { %v1535_v43 = vadd.f32 %v13662_v7, %v9844_v14  ;;  %12186 = vtanh.f32 %v1524_v20 }
0x103b   : > { %v1526_v2 = vpop.f32.mrf.mxu0 }
0x103c   : > { %v1527_v52 = vadd.f32 %v13662_v7, %v1526_v2  ;;  %12188 = vtanh.f32 %v1535_v43 }
0x103e   : > { %12190 = vtanh.f32 %v1527_v52 }
0x103f   : > { %12192 = vtanh.f32 %v1532_v16 }
0x1047   : > { %v12187_v54 = vpop.eup %12186 }
0x1049   : > { %v12189_v62 = vpop.eup %12188 }
0x104b   : > { %v12191_v49 = vpop.eup %12190 }
0x104c   : > { %v12193_v41 = vpop.eup %12192  ;;  %v1542_v50 = vpack.c.bf16 %v12191_v49, %v12187_v54 }
0x104d   : > { %v1543_v29 = vpack.c.bf16 %v12189_v62, %v12193_v41 }
0x104e   : > { %9861 = vmatprep.mubr.bf16.mxu1 %v1542_v50 }
0x104f   : > { %9862 = vmatmul.mubr.bf16.vlgmr.msra.gmra.mxu1 %v1543_v29 }
0x1050   : > { %9886 = vmatpush3.bf16.msra.mxu1 %v13575_v31 }
0x1051   : > { %9887 = vmatprep.subr.bf16.mxu1 %v13578_v33 }
0x1054   : > { %9888 = vmatpush3.bf16.msra.mxu1 %v13578_v33 }
0x1055   : > { %9889 = vmatprep.subr.bf16.mxu1 %v13582_v23 }
0x1058   : > { %9890 = vmatpush3.bf16.msra.mxu1 %v13582_v23 }
0x1059   : > { %9891 = vmatprep.subr.bf16.mxu1 %v13586_v34 }
0x105c   : > { %9892 = vmatpush3.bf16.msra.mxu1 %v13586_v34 }
0x105d   : > { %9893 = vmatprep.subr.bf16.mxu1 %v13590_v36 }
0x1060   : > { %9894 = vmatpush3.bf16.msra.mxu1 %v13590_v36 }
0x1061   : > { %9895 = vmatprep.subr.bf16.mxu1 %v13594_v37 }
0x1064   : > { %9896 = vmatpush3.bf16.msra.mxu1 %v13594_v37 }
0x1065   : > { %9897 = vmatprep.subr.bf16.mxu1 %v13598_v30 }
0x1068   : > { %9898 = vmatpush3.bf16.msra.mxu1 %v13598_v30 }
0x1069   : > { %9899 = vmatprep.subr.bf16.mxu1 %v13602_v0 }
0x106c   : > { %9900 = vmatpush3.bf16.msra.mxu1 %v13602_v0 }
0x106d   : > { %9925 = vmatprep.subr.bf16.mxu1 %v13575_v31 }
0x110f   : > { %v9863_v21 = vpop.f32.mrf.mxu1 }
0x1110   : > { %v13809_v47 = vadd.f32 %v13687_v48, %v9863_v21 }
0x1111   : > { %v1578_v55 = vpop.f32.mrf.mxu1 }
0x1112   : > { %v13806_v56 = vadd.f32 %v13687_v48, %v1578_v55  ;;  %v1603_v17 = vmul.f32 0.03125, %v13809_v47  ;;  %v1595_v54 = vmul.f32 2.0, %v13809_v47 }
0x1113   : > { %v9864_v38 = vpop.f32.mrf.mxu1 }
0x1114   : > { %v13812_v57 = vadd.f32 %v13687_v48, %v9864_v38  ;;  %v1601_v13 = vmul.f32 0.03125, %v13806_v56  ;;  %v1607_v44 = vadd.f32 %v1603_v17, %v13707_v10  ;;  %v1593_v41 = vmul.f32 2.0, %v13806_v56 }
0x1115   : > { %v1581_v61 = vpop.f32.mrf.mxu1  ;;  %v1599_v38 = vadd.f32 %v1595_v54, %v13753_v27 }
0x1116   : > { %v13816_v15 = vadd.f32 %v13687_v48, %v1581_v61  ;;  %v1604_v22 = vmul.f32 0.03125, %v13812_v57  ;;  %v1605_v42 = vadd.f32 %v1601_v13, %v13701_v63  ;;  %v1596_v50 = vmul.f32 2.0, %v13812_v57 }
0x1117   : > { %v1597_v47 = vadd.f32 %v1593_v41, %v13750_v25 }
0x1118   : > { %v1602_v24 = vmul.f32 0.03125, %v13816_v15  ;;  %v1608_v28 = vadd.f32 %v1604_v22, %v13698_v18  ;;  %v1594_v13 = vmul.f32 2.0, %v13816_v15 }
0x111a   : > { %v1606_v32 = vadd.f32 %v1602_v24, %v13704_v53  ;;  %v1610_v35 = vpack.c.bf16 %v1608_v28, %v1607_v44  ;;  %v1600_v24 = vadd.f32 %v1596_v50, %v13756_v39  ;;  %v1598_v15 = vadd.f32 %v1594_v13, %v13761_v45 }
0x111c   : > { %v1609_v46 = vpack.c.bf16 %v1606_v32, %v1605_v42 }
0x111e   : > { %9881 = vmatprep.mubr.bf16.mxu0 %v1609_v46 }
0x111f   : > { %9882 = vmatmul.mubr.bf16.vlgmr.msra.gmra.mxu0 %v1610_v35 }
0x1120   : > { %9906 = vmatpush3.bf16.msra.mxu0 %v13568_v1 }
0x1121   : > { %9907 = vmatprep.subr.bf16.mxu0 %v13552_v59 }
0x1124   : > { %9908 = vmatpush3.bf16.msra.mxu0 %v13552_v59 }
0x1125   : > { %9909 = vmatprep.subr.bf16.mxu0 %v13634_v26 }
0x1128   : > { %9910 = vmatpush3.bf16.msra.mxu0 %v13634_v26 }
0x1129   : > { %9911 = vmatprep.subr.bf16.mxu0 %v13638_v58 }
0x112c   : > { %9912 = vmatpush3.bf16.msra.mxu0 %v13638_v58 }
0x112d   : > { %9913 = vmatprep.subr.bf16.mxu0 %v13642_v4 }
0x1130   : > { %9914 = vmatpush3.bf16.msra.mxu0 %v13642_v4 }
0x1131   : > { %9915 = vmatprep.subr.bf16.mxu0 %v13646_v9 }
0x1134   : > { %9916 = vmatpush3.bf16.msra.mxu0 %v13646_v9 }
0x1135   : > { %9917 = vmatprep.subr.bf16.mxu0 %v13650_v11 }
0x1138   : > { %9918 = vmatpush3.bf16.msra.mxu0 %v13650_v11 }
0x1139   : > { %9919 = vmatprep.subr.bf16.mxu0 %v13654_v60 }
0x113c   : > { %9920 = vmatpush3.bf16.msra.mxu0 %v13654_v60 }
0x113d   : > { %9945 = vmatprep.subr.bf16.mxu0 %v13568_v1 }
0x11df   : > { %v9883_v51 = vpop.f32.mrf.mxu0 }
0x11e0   : > { %v1654_v5 = vadd.f32 %v13662_v7, %v9883_v51 }
0x11e1   : > { %v1645_v40 = vpop.f32.mrf.mxu0 }
0x11e2   : > { %v1646_v3 = vadd.f32 %v13662_v7, %v1645_v40 }
0x11e3   : > { %v9884_v6 = vpop.f32.mrf.mxu0 }
0x11e4   : > { %v1657_v19 = vadd.f32 %v13662_v7, %v9884_v6  ;;  %12194 = vtanh.f32 %v1646_v3 }
0x11e5   : > { %v1648_v8 = vpop.f32.mrf.mxu0 }
0x11e6   : > { %v1649_v12 = vadd.f32 %v13662_v7, %v1648_v8  ;;  %12196 = vtanh.f32 %v1657_v19 }
0x11e8   : > { %12198 = vtanh.f32 %v1649_v12 }
0x11e9   : > { %12200 = vtanh.f32 %v1654_v5 }
0x11f1   : > { %v12195_v20 = vpop.eup %12194 }
0x11f3   : > { %v12197_v14 = vpop.eup %12196 }
0x11f5   : > { %v12199_v43 = vpop.eup %12198 }
0x11f6   : > { %v12201_v16 = vpop.eup %12200  ;;  %v1664_v2 = vpack.c.bf16 %v12199_v43, %v12195_v20 }
0x11f7   : > { %v1665_v52 = vpack.c.bf16 %v12197_v14, %v12201_v16 }
0x11f8   : > { %9901 = vmatprep.mubr.bf16.mxu1 %v1664_v2 }
0x11f9   : > { %9902 = vmatmul.mubr.bf16.vlgmr.msra.gmra.mxu1 %v1665_v52 }
0x11fa   : > { %9926 = vmatpush3.bf16.msra.mxu1 %v13575_v31 }
0x11fb   : > { %9927 = vmatprep.subr.bf16.mxu1 %v13578_v33 }
0x11fe   : > { %9928 = vmatpush3.bf16.msra.mxu1 %v13578_v33 }
0x11ff   : > { %9929 = vmatprep.subr.bf16.mxu1 %v13582_v23 }
0x1202   : > { %9930 = vmatpush3.bf16.msra.mxu1 %v13582_v23 }
0x1203   : > { %9931 = vmatprep.subr.bf16.mxu1 %v13586_v34 }
0x1206   : > { %9932 = vmatpush3.bf16.msra.mxu1 %v13586_v34 }
0x1207   : > { %9933 = vmatprep.subr.bf16.mxu1 %v13590_v36 }
0x120a   : > { %9934 = vmatpush3.bf16.msra.mxu1 %v13590_v36 }
0x120b   : > { %9935 = vmatprep.subr.bf16.mxu1 %v13594_v37 }
0x120e   : > { %9936 = vmatpush3.bf16.msra.mxu1 %v13594_v37 }
0x120f   : > { %9937 = vmatprep.subr.bf16.mxu1 %v13598_v30 }
0x1212   : > { %9938 = vmatpush3.bf16.msra.mxu1 %v13598_v30 }
0x1213   : > { %9939 = vmatprep.subr.bf16.mxu1 %v13602_v0 }
0x1216   : > { %9940 = vmatpush3.bf16.msra.mxu1 %v13602_v0 }
0x1217   : > { %9965 = vmatprep.subr.bf16.mxu1 %v13575_v31 }
0x12b9   : > { %v9903_v62 = vpop.f32.mrf.mxu1 }
0x12ba   : > { %v1709_v49 = vadd.f32 %v13687_v48, %v9903_v62 }
0x12bb   : > { %v1700_v29 = vpop.f32.mrf.mxu1 }
0x12bc   : > { %v1717_v21 = vmul.f32 2.0, %v1709_v49  ;;  %v1701_v55 = vadd.f32 %v13687_v48, %v1700_v29  ;;  %v1725_v46 = vmul.f32 0.0625, %v1709_v49 }
0x12bd   : > { %v9904_v61 = vpop.f32.mrf.mxu1 }
0x12be   : > { %v1715_v17 = vmul.f32 2.0, %v1701_v55  ;;  %v1712_v22 = vadd.f32 %v13687_v48, %v9904_v61  ;;  %v13871_v56 = vadd.f32 %v1717_v21, %v1599_v38  ;;  %v1723_v57 = vmul.f32 0.0625, %v1701_v55 }
0x12bf   : > { %v1703_v28 = vpop.f32.mrf.mxu1  ;;  %v1729_v19 = vadd.f32 %v1725_v46, %v13707_v10 }
0x12c0   : > { %v1718_v42 = vmul.f32 2.0, %v1712_v22  ;;  %v1726_v32 = vmul.f32 0.0625, %v1712_v22  ;;  %v1704_v44 = vadd.f32 %v13687_v48, %v1703_v28  ;;  %v13874_v27 = vadd.f32 %v1715_v17, %v1597_v47 }
0x12c1   : > { %v1727_v39 = vadd.f32 %v1723_v57, %v13701_v63 }
0x12c2   : > { %v1716_v35 = vmul.f32 2.0, %v1704_v44  ;;  %v1724_v51 = vmul.f32 0.0625, %v1704_v44  ;;  %v13877_v40 = vadd.f32 %v1718_v42, %v1600_v24  ;;  %v1730_v25 = vadd.f32 %v1726_v32, %v13698_v18 }
0x12c4   : > { %v1728_v3 = vadd.f32 %v1724_v51, %v13704_v53  ;;  %v13882_v6 = vadd.f32 %v1716_v35, %v1598_v15  ;;  %v1732_v8 = vpack.c.bf16 %v1730_v25, %v1729_v19 }
0x12c6   : > { %v1731_v5 = vpack.c.bf16 %v1728_v3, %v1727_v39 }
0x12c8   : > { %9921 = vmatprep.mubr.bf16.mxu0 %v1731_v5 }
0x12c9   : > { %9922 = vmatmul.mubr.bf16.vlgmr.msra.gmra.mxu0 %v1732_v8 }
0x12ca   : > { %9946 = vmatpush3.bf16.msra.mxu0 %v13568_v1 }
0x12cb   : > { %9947 = vmatprep.subr.bf16.mxu0 %v13552_v59 }
0x12ce   : > { %9948 = vmatpush3.bf16.msra.mxu0 %v13552_v59 }
0x12cf   : > { %9949 = vmatprep.subr.bf16.mxu0 %v13634_v26 }
0x12d2   : > { %9950 = vmatpush3.bf16.msra.mxu0 %v13634_v26 }
0x12d3   : > { %9951 = vmatprep.subr.bf16.mxu0 %v13638_v58 }
0x12d6   : > { %9952 = vmatpush3.bf16.msra.mxu0 %v13638_v58 }
0x12d7   : > { %9953 = vmatprep.subr.bf16.mxu0 %v13642_v4 }
0x12da   : > { %9954 = vmatpush3.bf16.msra.mxu0 %v13642_v4 }
0x12db   : > { %9955 = vmatprep.subr.bf16.mxu0 %v13646_v9 }
0x12de   : > { %9956 = vmatpush3.bf16.msra.mxu0 %v13646_v9 }
0x12df   : > { %9957 = vmatprep.subr.bf16.mxu0 %v13650_v11 }
0x12e2   : > { %9958 = vmatpush3.bf16.msra.mxu0 %v13650_v11 }
0x12e3   : > { %9959 = vmatprep.subr.bf16.mxu0 %v13654_v60 }
0x12e6   : > { %9960 = vmatpush3.bf16.msra.mxu0 %v13654_v60 }
0x12e7   : > { %9985 = vmatprep.subr.bf16.mxu0 %v13568_v1 }
0x1389   : > { %v9923_v45 = vpop.f32.mrf.mxu0 }
0x138a   : > { %v1776_v16 = vadd.f32 %v13662_v7, %v9923_v45 }
0x138b   : > { %v1767_v12 = vpop.f32.mrf.mxu0 }
0x138c   : > { %v1768_v20 = vadd.f32 %v13662_v7, %v1767_v12 }
0x138d   : > { %v9924_v14 = vpop.f32.mrf.mxu0 }
0x138e   : > { %v1779_v43 = vadd.f32 %v13662_v7, %v9924_v14  ;;  %12202 = vtanh.f32 %v1768_v20 }
0x138f   : > { %v1770_v2 = vpop.f32.mrf.mxu0 }
0x1390   : > { %v1771_v52 = vadd.f32 %v13662_v7, %v1770_v2  ;;  %12204 = vtanh.f32 %v1779_v43 }
0x1392   : > { %12206 = vtanh.f32 %v1771_v52 }
0x1393   : > { %12208 = vtanh.f32 %v1776_v16 }
0x139b   : > { %v12203_v54 = vpop.eup %12202 }
0x139d   : > { %v12205_v62 = vpop.eup %12204 }
0x139f   : > { %v12207_v49 = vpop.eup %12206 }
0x13a0   : > { %v12209_v41 = vpop.eup %12208  ;;  %v1786_v50 = vpack.c.bf16 %v12207_v49, %v12203_v54 }
0x13a1   : > { %v1787_v29 = vpack.c.bf16 %v12205_v62, %v12209_v41 }
0x13a2   : > { %9941 = vmatprep.mubr.bf16.mxu1 %v1786_v50  ;;  %v14001_v50 = vld [vmem:[#allocation5 + $0x38] sm:$0xff]  }
0x13a3   : > { %9942 = vmatmul.mubr.bf16.vlgmr.msra.gmra.mxu1 %v1787_v29  ;;  %v14004_v29 = vld [vmem:[#allocation5 + $0x30] sm:$0xff]  }
0x13a4   : > { %9966 = vmatpush3.bf16.msra.mxu1 %v13575_v31 }
0x13a5   : > { %9967 = vmatprep.subr.bf16.mxu1 %v13578_v33 }
0x13a8   : > { %9968 = vmatpush3.bf16.msra.mxu1 %v13578_v33 }
0x13a9   : > { %9969 = vmatprep.subr.bf16.mxu1 %v13582_v23 }
0x13ac   : > { %9970 = vmatpush3.bf16.msra.mxu1 %v13582_v23 }
0x13ad   : > { %9971 = vmatprep.subr.bf16.mxu1 %v13586_v34 }
0x13b0   : > { %9972 = vmatpush3.bf16.msra.mxu1 %v13586_v34 }
0x13b1   : > { %9973 = vmatprep.subr.bf16.mxu1 %v13590_v36 }
0x13b4   : > { %9974 = vmatpush3.bf16.msra.mxu1 %v13590_v36 }
0x13b5   : > { %9975 = vmatprep.subr.bf16.mxu1 %v13594_v37 }
0x13b8   : > { %9976 = vmatpush3.bf16.msra.mxu1 %v13594_v37 }
0x13b9   : > { %9977 = vmatprep.subr.bf16.mxu1 %v13598_v30 }
0x13bc   : > { %9978 = vmatpush3.bf16.msra.mxu1 %v13598_v30 }
0x13bd   : > { %9979 = vmatprep.subr.bf16.mxu1 %v13602_v0 }
0x13c0   : > { %9980 = vmatpush3.bf16.msra.mxu1 %v13602_v0 }
0x13c1   : > { %10005 = vmatprep.subr.bf16.mxu1 %v13575_v31 }
0x1463   : > { %v9943_v21 = vpop.f32.mrf.mxu1 }
0x1464   : > { %v1831_v55 = vadd.f32 %v13687_v48, %v9943_v21 }
0x1465   : > { %v1822_v38 = vpop.f32.mrf.mxu1 }
0x1466   : > { %v1823_v61 = vadd.f32 %v13687_v48, %v1822_v38  ;;  %v1839_v47 = vadd.f32 %v1831_v55, %v13871_v56 }
0x1467   : > { %v9944_v13 = vpop.f32.mrf.mxu1 }
0x1468   : > { %v1837_v17 = vadd.f32 %v1823_v61, %v13874_v27  ;;  %v1834_v22 = vadd.f32 %v13687_v48, %v9944_v13  ;;  %v1843_v46 = vmul.f32 0.010416667, %v1839_v47 }
0x1469   : > { %v1825_v24 = vpop.f32.mrf.mxu1 }
0x146a   : > { %v1840_v28 = vadd.f32 %v1834_v22, %v13877_v40  ;;  %v1826_v57 = vadd.f32 %v13687_v48, %v1825_v24  ;;  %v1841_v42 = vmul.f32 0.010416667, %v1837_v17  ;;  %v13939_v56 = vadd.f32 %v1843_v46, %v13707_v10  ;;  %v14025_v24 = vld [vmem:[#allocation7 + $0x38] sm:$0xff]   ;;  %v14052_v46 = vld [vmem:[#allocation7] sm:$0xff]  }
0x146c   : > { %v1844_v32 = vmul.f32 0.010416667, %v1840_v28  ;;  %v1838_v44 = vadd.f32 %v1826_v57, %v13882_v6  ;;  %v13933_v27 = vadd.f32 %v1841_v42, %v13701_v63  ;;  %v14028_v28 = vld [vmem:[#allocation7 + $0x30] sm:$0xff]   ;;  %v14036_v57 = vld [vmem:[#allocation7 + $0x20] sm:$0xff]   ;;  %v14040_v42 = vld [vmem:[#allocation7 + $0x18] sm:$0xff]  }
0x146e   : > { %v1842_v15 = vmul.f32 0.010416667, %v1838_v44  ;;  %v13930_v35 = vadd.f32 %v1844_v32, %v13698_v18  ;;  %v14044_v32 = vld [vmem:[#allocation7 + $0x10] sm:$0xff]   ;;  %v14048_v44 = vld [vmem:[#allocation7 + $0x8] sm:$0xff]  }
0x1470   : > { %v13936_v51 = vadd.f32 %v1842_v15, %v13704_v53  ;;  %v1850_v25 = vpack.c.bf16 %v13930_v35, %v13939_v56 }
0x1472   : > { %v1849_v40 = vpack.c.bf16 %v13936_v51, %v13933_v27 }
0x1474   : > { %9961 = vmatprep.mubr.bf16.mxu0 %v1849_v40 }
0x1475   : > { %9962 = vmatmul.mubr.bf16.vlgmr.msra.gmra.mxu0 %v1850_v25 }
0x1476   : > { %9986 = vmatpush3.bf16.msra.mxu0 %v13568_v1 }
0x1477   : > { %9987 = vmatprep.subr.bf16.mxu0 %v13552_v59 }
0x147a   : > { %9988 = vmatpush3.bf16.msra.mxu0 %v13552_v59 }
0x147b   : > { %9989 = vmatprep.subr.bf16.mxu0 %v13634_v26 }
0x147e   : > { %9990 = vmatpush3.bf16.msra.mxu0 %v13634_v26 }
0x147f   : > { %9991 = vmatprep.subr.bf16.mxu0 %v13638_v58 }
0x1482   : > { %9992 = vmatpush3.bf16.msra.mxu0 %v13638_v58 }
0x1483   : > { %9993 = vmatprep.subr.bf16.mxu0 %v13642_v4 }
0x1486   : > { %9994 = vmatpush3.bf16.msra.mxu0 %v13642_v4 }
0x1487   : > { %9995 = vmatprep.subr.bf16.mxu0 %v13646_v9 }
0x148a   : > { %9996 = vmatpush3.bf16.msra.mxu0 %v13646_v9 }
0x148b   : > { %9997 = vmatprep.subr.bf16.mxu0 %v13650_v11 }
0x148e   : > { %9998 = vmatpush3.bf16.msra.mxu0 %v13650_v11 }
0x148f   : > { %9999 = vmatprep.subr.bf16.mxu0 %v13654_v60 }
0x1492   : > { %10000 = vmatpush3.bf16.msra.mxu0 %v13654_v60 }
0x1493   : > { %10025 = vmatprep.subr.bf16.mxu0 %v13568_v1 }
0x1535   : > { %v9963_v59 = vpop.f32.mrf.mxu0 }
0x1536   : > { %v1894_v39 = vadd.f32 %v13662_v7, %v9963_v59 }
0x1537   : > { %v1885_v18 = vpop.f32.mrf.mxu0 }
0x1538   : > { %v1886_v63 = vadd.f32 %v13662_v7, %v1885_v18 }
0x1539   : > { %v9964_v53 = vpop.f32.mrf.mxu0 }
0x153a   : > { %v1897_v10 = vadd.f32 %v13662_v7, %v9964_v53  ;;  %12210 = vtanh.f32 %v1886_v63 }
0x153b   : > { %v1888_v3 = vpop.f32.mrf.mxu0 }
0x153c   : > { %v1889_v6 = vadd.f32 %v13662_v7, %v1888_v3  ;;  %12212 = vtanh.f32 %v1897_v10 }
0x153e   : > { %12214 = vtanh.f32 %v1889_v6 }
0x153f   : > { %12216 = vtanh.f32 %v1894_v39 }
0x1547   : > { %v12211_v19 = vpop.eup %12210 }
0x1549   : > { %v12213_v5 = vpop.eup %12212 }
0x154b   : > { %v12215_v8 = vpop.eup %12214 }
0x154c   : > { %v12217_v1 = vpop.eup %12216  ;;  %v1904_v45 = vpack.c.bf16 %v12215_v8, %v12211_v19 }
0x154d   : > { %v1905_v12 = vpack.c.bf16 %v12213_v5, %v12217_v1 }
0x154e   : > { %9981 = vmatprep.mubr.bf16.mxu1 %v1904_v45 }
0x154f   : > { %9982 = vmatmul.mubr.bf16.vlgmr.msra.gmra.mxu1 %v1905_v12 }
0x1550   : > { %10006 = vmatpush3.bf16.msra.mxu1 %v13575_v31 }
0x1551   : > { %10007 = vmatprep.subr.bf16.mxu1 %v13578_v33 }
0x1554   : > { %10008 = vmatpush3.bf16.msra.mxu1 %v13578_v33 }
0x1555   : > { %10009 = vmatprep.subr.bf16.mxu1 %v13582_v23 }
0x1558   : > { %10010 = vmatpush3.bf16.msra.mxu1 %v13582_v23 }
0x1559   : > { %10011 = vmatprep.subr.bf16.mxu1 %v13586_v34 }
0x155c   : > { %10012 = vmatpush3.bf16.msra.mxu1 %v13586_v34 }
0x155d   : > { %10013 = vmatprep.subr.bf16.mxu1 %v13590_v36 }
0x1560   : > { %10014 = vmatpush3.bf16.msra.mxu1 %v13590_v36 }
0x1561   : > { %10015 = vmatprep.subr.bf16.mxu1 %v13594_v37 }
0x1564   : > { %10016 = vmatpush3.bf16.msra.mxu1 %v13594_v37 }
0x1565   : > { %10017 = vmatprep.subr.bf16.mxu1 %v13598_v30 }
0x1568   : > { %10018 = vmatpush3.bf16.msra.mxu1 %v13598_v30 }
0x1569   : > { %10019 = vmatprep.subr.bf16.mxu1 %v13602_v0 }
0x156c   : > { %10020 = vmatpush3.bf16.msra.mxu1 %v13602_v0 }
0x156d   : > { %10045 = vmatprep.subr.bf16.mxu1 %v13575_v31 }
0x160f   : > { %v9983_v33 = vpop.f32.mrf.mxu1 }
0x1610   : > { %v13985_v36 = vadd.f32 %v13687_v48, %v9983_v33 }
0x1611   : > { %v1940_v23 = vpop.f32.mrf.mxu1 }
0x1612   : > { %v13982_v34 = vadd.f32 %v13687_v48, %v1940_v23  ;;  %v1957_v31 = vmul.f32 0.03125, %v13985_v36  ;;  %v14084_v23 = vld [vmem:[#allocation5 + $0x20] sm:$0xff]  }
0x1613   : > { %v9984_v20 = vpop.f32.mrf.mxu1 }
0x1614   : > { %v13988_v37 = vadd.f32 %v13687_v48, %v9984_v20  ;;  %v1955_v30 = vmul.f32 0.03125, %v13982_v34  ;;  %v1961_v62 = vadd.f32 %v1957_v31, %v13939_v56  ;;  %v14088_v20 = vld [vmem:[#allocation5 + $0x18] sm:$0xff]  }
0x1615   : > { %v1943_v14 = vpop.f32.mrf.mxu1 }
0x1616   : > { %v1958_v43 = vmul.f32 0.03125, %v13988_v37  ;;  %v13993_v0 = vadd.f32 %v13687_v48, %v1943_v14  ;;  %v1959_v52 = vadd.f32 %v1955_v30, %v13933_v27  ;;  %v14092_v14 = vld [vmem:[#allocation5 + $0x10] sm:$0xff]   ;;  %v14096_v30 = vld [vmem:[#allocation5 + $0x8] sm:$0xff]  }
0x1618   : > { %v1956_v16 = vmul.f32 0.03125, %v13993_v0  ;;  %v1962_v2 = vadd.f32 %v1958_v43, %v13930_v35  ;;  %v14100_v43 = vld [vmem:[#allocation5] sm:$0xff]  }
0x161a   : > { %v1960_v54 = vadd.f32 %v1956_v16, %v13936_v51  ;;  %v1964_v41 = vpack.c.bf16 %v1962_v2, %v1961_v62  ;;  %v14108_v2 = vld [vmem:[%s17232_s2] ss:$0 sm:$0xff] }
0x161c   : > { %v1963_v49 = vpack.c.bf16 %v1960_v54, %v1959_v52 }
0x161e   : > { %10001 = vmatprep.mubr.bf16.mxu0 %v1963_v49 }
0x161f   : > { %10002 = vmatmul.mubr.bf16.vlgmr.msra.gmra.mxu0 %v1964_v41 }
0x1620   : > { %10026 = vmatpush3.bf16.msra.mxu0 %v14001_v50 }
0x1621   : > { %10027 = vmatprep.subr.bf16.mxu0 %v14004_v29 }
0x1624   : > { %10028 = vmatpush3.bf16.msra.mxu0 %v14004_v29 }
0x1625   : > { %10029 = vmatprep.subr.bf16.mxu0 %v13634_v26 }
0x1628   : > { %10030 = vmatpush3.bf16.msra.mxu0 %v13634_v26 }
0x1629   : > { %10031 = vmatprep.subr.bf16.mxu0 %v13638_v58 }
0x162c   : > { %10032 = vmatpush3.bf16.msra.mxu0 %v13638_v58 }
0x162d   : > { %10033 = vmatprep.subr.bf16.mxu0 %v13642_v4 }
0x1630   : > { %10034 = vmatpush3.bf16.msra.mxu0 %v13642_v4 }
0x1631   : > { %10035 = vmatprep.subr.bf16.mxu0 %v13646_v9 }
0x1634   : > { %10036 = vmatpush3.bf16.msra.mxu0 %v13646_v9 }
0x1635   : > { %10037 = vmatprep.subr.bf16.mxu0 %v13650_v11 }
0x1638   : > { %10038 = vmatpush3.bf16.msra.mxu0 %v13650_v11 }
0x1639   : > { %10039 = vmatprep.subr.bf16.mxu0 %v13654_v60 }
0x163c   : > { %10040 = vmatpush3.bf16.msra.mxu0 %v13654_v60 }
0x163d   : > { %10065 = vmatprep.subr.bf16.mxu0 %v14001_v50 }
0x16df   : > { %v10003_v26 = vpop.f32.mrf.mxu0 }
0x16e0   : > { %v2008_v38 = vadd.f32 %v13662_v7, %v10003_v26 }
0x16e1   : > { %v1999_v58 = vpop.f32.mrf.mxu0 }
0x16e2   : > { %v2000_v21 = vadd.f32 %v13662_v7, %v1999_v58 }
0x16e3   : > { %v10004_v55 = vpop.f32.mrf.mxu0 }
0x16e4   : > { %v2011_v4 = vadd.f32 %v13662_v7, %v10004_v55  ;;  %12218 = vtanh.f32 %v2000_v21 }
0x16e5   : > { %v2002_v9 = vpop.f32.mrf.mxu0 }
0x16e6   : > { %v2003_v61 = vadd.f32 %v13662_v7, %v2002_v9  ;;  %12220 = vtanh.f32 %v2011_v4  ;;  %v14032_v7 = vld [vmem:[#allocation7 + $0x28] sm:$0xff]  }
0x16e8   : > { %12222 = vtanh.f32 %v2003_v61 }
0x16e9   : > { %12224 = vtanh.f32 %v2008_v38 }
0x16f1   : > { %v12219_v11 = vpop.eup %12218 }
0x16f3   : > { %v12221_v60 = vpop.eup %12220 }
0x16f5   : > { %v12223_v13 = vpop.eup %12222 }
0x16f6   : > { %v12225_v17 = vpop.eup %12224  ;;  %v2018_v22 = vpack.c.bf16 %v12223_v13, %v12219_v11 }
0x16f7   : > { %v2019_v47 = vpack.c.bf16 %v12221_v60, %v12225_v17  ;;  %v14134_v60 = vld [vmem:[%s17234_s4] ss:$0 sm:$0xff] }
0x16f8   : > { %10021 = vmatprep.mubr.bf16.mxu1 %v2018_v22 }
0x16f9   : > { %10022 = vmatmul.mubr.bf16.vlgmr.msra.gmra.mxu1 %v2019_v47 }
0x16fa   : > { %10046 = vmatpush3.bf16.msra.mxu1 %v14025_v24 }
0x16fb   : > { %10047 = vmatprep.subr.bf16.mxu1 %v14028_v28 }
0x16fe   : > { %10048 = vmatpush3.bf16.msra.mxu1 %v14028_v28 }
0x16ff   : > { %10049 = vmatprep.subr.bf16.mxu1 %v14032_v7 }
0x1702   : > { %10050 = vmatpush3.bf16.msra.mxu1 %v14032_v7 }
0x1703   : > { %10051 = vmatprep.subr.bf16.mxu1 %v14036_v57 }
0x1706   : > { %10052 = vmatpush3.bf16.msra.mxu1 %v14036_v57 }
0x1707   : > { %10053 = vmatprep.subr.bf16.mxu1 %v14040_v42 }
0x170a   : > { %10054 = vmatpush3.bf16.msra.mxu1 %v14040_v42 }
0x170b   : > { %10055 = vmatprep.subr.bf16.mxu1 %v14044_v32 }
0x170e   : > { %10056 = vmatpush3.bf16.msra.mxu1 %v14044_v32 }
0x170f   : > { %10057 = vmatprep.subr.bf16.mxu1 %v14048_v44 }
0x1712   : > { %10058 = vmatpush3.bf16.msra.mxu1 %v14048_v44 }
0x1713   : > { %10059 = vmatprep.subr.bf16.mxu1 %v14052_v46 }
0x1716   : > { %10060 = vmatpush3.bf16.msra.mxu1 %v14052_v46 }
0x1717   : > { %10085 = vmatprep.subr.bf16.mxu1 %v14025_v24 }
0x17b9   : > { %v10023_v15 = vpop.f32.mrf.mxu1 }
0x17ba   : > { %v14061_v59 = vadd.f32 %v13687_v48, %v10023_v15 }
0x17bb   : > { %v2054_v40 = vpop.f32.mrf.mxu1 }
0x17bc   : > { %v14058_v25 = vadd.f32 %v13687_v48, %v2054_v40  ;;  %v2079_v3 = vmul.f32 0.03125, %v14061_v59  ;;  %v2071_v61 = vmul.f32 2.0, %v14061_v59 }
0x17bd   : > { %v10024_v18 = vpop.f32.mrf.mxu1 }
0x17be   : > { %v14064_v63 = vadd.f32 %v13687_v48, %v10024_v18  ;;  %v2077_v10 = vmul.f32 0.03125, %v14058_v25  ;;  %v2083_v45 = vadd.f32 %v2079_v3, %v13939_v56  ;;  %v2069_v17 = vmul.f32 2.0, %v14058_v25 }
0x17bf   : > { %v2057_v53 = vpop.f32.mrf.mxu1  ;;  %v2075_v18 = vadd.f32 %v2071_v61, %v13985_v36 }
0x17c0   : > { %v14068_v39 = vadd.f32 %v13687_v48, %v2057_v53  ;;  %v2080_v6 = vmul.f32 0.03125, %v14064_v63  ;;  %v2081_v8 = vadd.f32 %v2077_v10, %v13933_v27  ;;  %v14080_v48 = vld [vmem:[#allocation5 + $0x28] sm:$0xff]   ;;  %v2072_v22 = vmul.f32 2.0, %v14064_v63 }
0x17c2   : > { %v2078_v19 = vmul.f32 0.03125, %v14068_v39  ;;  %v2084_v5 = vadd.f32 %v2080_v6, %v13930_v35  ;;  %v2070_v59 = vmul.f32 2.0, %v14068_v39  ;;  %v2073_v6 = vadd.f32 %v2069_v17, %v13982_v34 }
0x17c4   : > { %v2082_v1 = vadd.f32 %v2078_v19, %v13936_v51  ;;  %v2086_v33 = vpack.c.bf16 %v2084_v5, %v2083_v45  ;;  %v2076_v19 = vadd.f32 %v2072_v22, %v13988_v37  ;;  %v2074_v39 = vadd.f32 %v2070_v59, %v13993_v0 }
0x17c6   : > { %v2085_v12 = vpack.c.bf16 %v2082_v1, %v2081_v8 }
0x17c8   : > { %10041 = vmatprep.mubr.bf16.mxu0 %v2085_v12 }
0x17c9   : > { %10042 = vmatmul.mubr.bf16.vlgmr.msra.gmra.mxu0 %v2086_v33 }
0x17ca   : > { %10066 = vmatpush3.bf16.msra.mxu0 %v14001_v50 }
0x17cb   : > { %10067 = vmatprep.subr.bf16.mxu0 %v14004_v29 }
0x17ce   : > { %10068 = vmatpush3.bf16.msra.mxu0 %v14004_v29 }
0x17cf   : > { %10069 = vmatprep.subr.bf16.mxu0 %v14080_v48 }
0x17d2   : > { %10070 = vmatpush3.bf16.msra.mxu0 %v14080_v48 }
0x17d3   : > { %10071 = vmatprep.subr.bf16.mxu0 %v14084_v23 }
0x17d6   : > { %10072 = vmatpush3.bf16.msra.mxu0 %v14084_v23 }
0x17d7   : > { %10073 = vmatprep.subr.bf16.mxu0 %v14088_v20 }
0x17da   : > { %10074 = vmatpush3.bf16.msra.mxu0 %v14088_v20 }
0x17db   : > { %10075 = vmatprep.subr.bf16.mxu0 %v14092_v14 }
0x17de   : > { %10076 = vmatpush3.bf16.msra.mxu0 %v14092_v14 }
0x17df   : > { %10077 = vmatprep.subr.bf16.mxu0 %v14096_v30 }
0x17e2   : > { %10078 = vmatpush3.bf16.msra.mxu0 %v14096_v30 }
0x17e3   : > { %10079 = vmatprep.subr.bf16.mxu0 %v14100_v43 }
0x17e6   : > { %10080 = vmatpush3.bf16.msra.mxu0 %v14100_v43 }
0x17e7   : > { %10105 = vmatprep.subr.bf16.mxu0 %v14001_v50 }
0x1889   : > { %v10043_v31 = vpop.f32.mrf.mxu0 }
0x188a   : > { %v2130_v49 = vadd.f32 %v14108_v2, %v10043_v31 }
0x188b   : > { %v2121_v16 = vpop.f32.mrf.mxu0 }
0x188c   : > { %v2122_v52 = vadd.f32 %v14108_v2, %v2121_v16 }
0x188d   : > { %v10044_v54 = vpop.f32.mrf.mxu0 }
0x188e   : > { %v2133_v62 = vadd.f32 %v14108_v2, %v10044_v54  ;;  %12226 = vtanh.f32 %v2122_v52 }
0x188f   : > { %v2124_v41 = vpop.f32.mrf.mxu0 }
0x1890   : > { %v2125_v26 = vadd.f32 %v14108_v2, %v2124_v41  ;;  %12228 = vtanh.f32 %v2133_v62 }
0x1892   : > { %12230 = vtanh.f32 %v2125_v26 }
0x1893   : > { %12232 = vtanh.f32 %v2130_v49 }
0x189b   : > { %v12227_v58 = vpop.eup %12226 }
0x189d   : > { %v12229_v21 = vpop.eup %12228 }
0x189f   : > { %v12231_v55 = vpop.eup %12230 }
0x18a0   : > { %v12233_v4 = vpop.eup %12232  ;;  %v2140_v38 = vpack.c.bf16 %v12231_v55, %v12227_v58 }
0x18a1   : > { %v2141_v9 = vpack.c.bf16 %v12229_v21, %v12233_v4 }
0x18a2   : > { %10061 = vmatprep.mubr.bf16.mxu1 %v2140_v38 }
0x18a3   : > { %10062 = vmatmul.mubr.bf16.vlgmr.msra.gmra.mxu1 %v2141_v9 }
0x18a4   : > { %10086 = vmatpush3.bf16.msra.mxu1 %v14025_v24 }
0x18a5   : > { %10087 = vmatprep.subr.bf16.mxu1 %v14028_v28 }
0x18a8   : > { %10088 = vmatpush3.bf16.msra.mxu1 %v14028_v28 }
0x18a9   : > { %10089 = vmatprep.subr.bf16.mxu1 %v14032_v7 }
0x18ac   : > { %10090 = vmatpush3.bf16.msra.mxu1 %v14032_v7 }
0x18ad   : > { %10091 = vmatprep.subr.bf16.mxu1 %v14036_v57 }
0x18b0   : > { %10092 = vmatpush3.bf16.msra.mxu1 %v14036_v57 }
0x18b1   : > { %10093 = vmatprep.subr.bf16.mxu1 %v14040_v42 }
0x18b4   : > { %10094 = vmatpush3.bf16.msra.mxu1 %v14040_v42 }
0x18b5   : > { %10095 = vmatprep.subr.bf16.mxu1 %v14044_v32 }
0x18b8   : > { %10096 = vmatpush3.bf16.msra.mxu1 %v14044_v32 }
0x18b9   : > { %10097 = vmatprep.subr.bf16.mxu1 %v14048_v44 }
0x18bc   : > { %10098 = vmatpush3.bf16.msra.mxu1 %v14048_v44 }
0x18bd   : > { %10099 = vmatprep.subr.bf16.mxu1 %v14052_v46 }
0x18c0   : > { %10100 = vmatpush3.bf16.msra.mxu1 %v14052_v46 }
0x18c1   : > { %10125 = vmatprep.subr.bf16.mxu1 %v14025_v24 }
0x1963   : > { %v10063_v11 = vpop.f32.mrf.mxu1 }
0x1964   : > { %v2185_v13 = vadd.f32 %v14134_v60, %v10063_v11 }
0x1965   : > { %v2176_v47 = vpop.f32.mrf.mxu1 }
0x1966   : > { %v2193_v15 = vmul.f32 2.0, %v2185_v13  ;;  %v2177_v40 = vadd.f32 %v14134_v60, %v2176_v47  ;;  %v2201_v12 = vmul.f32 0.0625, %v2185_v13 }
0x1967   : > { %v10064_v53 = vpop.f32.mrf.mxu1 }
0x1968   : > { %v2191_v10 = vmul.f32 2.0, %v2177_v40  ;;  %v2188_v3 = vadd.f32 %v14134_v60, %v10064_v53  ;;  %v14145_v25 = vadd.f32 %v2193_v15, %v2075_v18  ;;  %v2199_v63 = vmul.f32 0.0625, %v2177_v40 }
0x1969   : > { %v2179_v5 = vpop.f32.mrf.mxu1  ;;  %v2205_v62 = vadd.f32 %v2201_v12, %v13939_v56 }
0x196a   : > { %v2194_v8 = vmul.f32 2.0, %v2188_v3  ;;  %v2202_v1 = vmul.f32 0.0625, %v2188_v3  ;;  %v2180_v45 = vadd.f32 %v14134_v60, %v2179_v5  ;;  %v14148_v36 = vadd.f32 %v2191_v10, %v2073_v6 }
0x196b   : > { %v2203_v37 = vadd.f32 %v2199_v63, %v13933_v27 }
0x196c   : > { %v2192_v33 = vmul.f32 2.0, %v2180_v45  ;;  %v2200_v31 = vmul.f32 0.0625, %v2180_v45  ;;  %v14151_v16 = vadd.f32 %v2194_v8, %v2076_v19  ;;  %v2206_v34 = vadd.f32 %v2202_v1, %v13930_v35 }
0x196e   : > { %v2204_v52 = vadd.f32 %v2200_v31, %v13936_v51  ;;  %v14156_v54 = vadd.f32 %v2192_v33, %v2074_v39  ;;  %v2208_v41 = vpack.c.bf16 %v2206_v34, %v2205_v62 }
0x1970   : > { %v2207_v49 = vpack.c.bf16 %v2204_v52, %v2203_v37 }
0x1972   : > { %10081 = vmatprep.mubr.bf16.mxu0 %v2207_v49 }
0x1973   : > { %10082 = vmatmul.mubr.bf16.vlgmr.msra.gmra.mxu0 %v2208_v41 }
0x1974   : > { %10106 = vmatpush3.bf16.msra.mxu0 %v14001_v50 }
0x1975   : > { %10107 = vmatprep.subr.bf16.mxu0 %v14004_v29 }
0x1978   : > { %10108 = vmatpush3.bf16.msra.mxu0 %v14004_v29 }
0x1979   : > { %10109 = vmatprep.subr.bf16.mxu0 %v14080_v48 }
0x197c   : > { %10110 = vmatpush3.bf16.msra.mxu0 %v14080_v48 }
0x197d   : > { %10111 = vmatprep.subr.bf16.mxu0 %v14084_v23 }
0x1980   : > { %10112 = vmatpush3.bf16.msra.mxu0 %v14084_v23 }
0x1981   : > { %10113 = vmatprep.subr.bf16.mxu0 %v14088_v20 }
0x1984   : > { %10114 = vmatpush3.bf16.msra.mxu0 %v14088_v20 }
0x1985   : > { %10115 = vmatprep.subr.bf16.mxu0 %v14092_v14 }
0x1988   : > { %10116 = vmatpush3.bf16.msra.mxu0 %v14092_v14 }
0x1989   : > { %10117 = vmatprep.subr.bf16.mxu0 %v14096_v30 }
0x198c   : > { %10118 = vmatpush3.bf16.msra.mxu0 %v14096_v30 }
0x198d   : > { %10119 = vmatprep.subr.bf16.mxu0 %v14100_v43 }
0x1990   : > { %10120 = vmatpush3.bf16.msra.mxu0 %v14100_v43 }
0x1991   : > { %10145 = vmatprep.subr.bf16.mxu0 %v14001_v50 }
0x1a33   : > { %v10083_v0 = vpop.f32.mrf.mxu0 }
0x1a34   : > { %v2252_v4 = vadd.f32 %v14108_v2, %v10083_v0 }
0x1a35   : > { %v2243_v26 = vpop.f32.mrf.mxu0 }
0x1a36   : > { %v2244_v58 = vadd.f32 %v14108_v2, %v2243_v26 }
0x1a37   : > { %v10084_v21 = vpop.f32.mrf.mxu0 }
0x1a38   : > { %v2255_v55 = vadd.f32 %v14108_v2, %v10084_v21  ;;  %12234 = vtanh.f32 %v2244_v58 }
0x1a39   : > { %v2246_v38 = vpop.f32.mrf.mxu0 }
0x1a3a   : > { %v2247_v9 = vadd.f32 %v14108_v2, %v2246_v38  ;;  %12236 = vtanh.f32 %v2255_v55 }
0x1a3c   : > { %12238 = vtanh.f32 %v2247_v9 }
0x1a3d   : > { %12240 = vtanh.f32 %v2252_v4 }
0x1a45   : > { %v12235_v61 = vpop.eup %12234 }
0x1a47   : > { %v12237_v11 = vpop.eup %12236 }
0x1a49   : > { %v12239_v13 = vpop.eup %12238 }
0x1a4a   : > { %v12241_v17 = vpop.eup %12240  ;;  %v2262_v22 = vpack.c.bf16 %v12239_v13, %v12235_v61 }
0x1a4b   : > { %v2263_v47 = vpack.c.bf16 %v12237_v11, %v12241_v17 }
0x1a4c   : > { %10101 = vmatprep.mubr.bf16.mxu1 %v2262_v22 }
0x1a4d   : > { %10102 = vmatmul.mubr.bf16.vlgmr.msra.gmra.mxu1 %v2263_v47 }
0x1a4e   : > { %10126 = vmatpush3.bf16.msra.mxu1 %v14025_v24 }
0x1a4f   : > { %10127 = vmatprep.subr.bf16.mxu1 %v14028_v28 }
0x1a52   : > { %10128 = vmatpush3.bf16.msra.mxu1 %v14028_v28 }
0x1a53   : > { %10129 = vmatprep.subr.bf16.mxu1 %v14032_v7 }
0x1a56   : > { %10130 = vmatpush3.bf16.msra.mxu1 %v14032_v7 }
0x1a57   : > { %10131 = vmatprep.subr.bf16.mxu1 %v14036_v57 }
0x1a5a   : > { %10132 = vmatpush3.bf16.msra.mxu1 %v14036_v57 }
0x1a5b   : > { %10133 = vmatprep.subr.bf16.mxu1 %v14040_v42 }
0x1a5e   : > { %10134 = vmatpush3.bf16.msra.mxu1 %v14040_v42 }
0x1a5f   : > { %10135 = vmatprep.subr.bf16.mxu1 %v14044_v32 }
0x1a62   : > { %10136 = vmatpush3.bf16.msra.mxu1 %v14044_v32 }
0x1a63   : > { %10137 = vmatprep.subr.bf16.mxu1 %v14048_v44 }
0x1a66   : > { %10138 = vmatpush3.bf16.msra.mxu1 %v14048_v44 }
0x1a67   : > { %10139 = vmatprep.subr.bf16.mxu1 %v14052_v46 }
0x1a6a   : > { %10140 = vmatpush3.bf16.msra.mxu1 %v14052_v46 }
0x1a6b   : > { %10165 = vmatprep.subr.bf16.mxu1 %v14025_v24 }
0x1b0d   : > { %v10103_v15 = vpop.f32.mrf.mxu1 }
0x1b0e   : > { %v2307_v40 = vadd.f32 %v14134_v60, %v10103_v15 }
0x1b0f   : > { %v2298_v18 = vpop.f32.mrf.mxu1 }
0x1b10   : > { %v2299_v53 = vadd.f32 %v14134_v60, %v2298_v18  ;;  %v2315_v6 = vadd.f32 %v2307_v40, %v14145_v25 }
0x1b11   : > { %v10104_v59 = vpop.f32.mrf.mxu1 }
0x1b12   : > { %v2313_v10 = vadd.f32 %v2299_v53, %v14148_v36  ;;  %v2310_v3 = vadd.f32 %v14134_v60, %v10104_v59  ;;  %v2319_v12 = vmul.f32 0.010416667, %v2315_v6 }
0x1b13   : > { %v2301_v19 = vpop.f32.mrf.mxu1 }
0x1b14   : > { %v2316_v5 = vadd.f32 %v2310_v3, %v14151_v16  ;;  %v2302_v63 = vadd.f32 %v14134_v60, %v2301_v19  ;;  %v2317_v8 = vmul.f32 0.010416667, %v2313_v10  ;;  %v14213_v25 = vadd.f32 %v2319_v12, %v13939_v56 }
0x1b16   : > { %v2320_v1 = vmul.f32 0.010416667, %v2316_v5  ;;  %v2314_v45 = vadd.f32 %v2302_v63, %v14156_v54  ;;  %v14207_v36 = vadd.f32 %v2317_v8, %v13933_v27 }
0x1b18   : > { %v2318_v39 = vmul.f32 0.010416667, %v2314_v45  ;;  %v14204_v33 = vadd.f32 %v2320_v1, %v13930_v35 }
0x1b1a   : > { %v14210_v31 = vadd.f32 %v2318_v39, %v13936_v51  ;;  %v2326_v34 = vpack.c.bf16 %v14204_v33, %v14213_v25 }
0x1b1c   : > { %v2325_v16 = vpack.c.bf16 %v14210_v31, %v14207_v36 }
0x1b1e   : > { %10121 = vmatprep.mubr.bf16.mxu0 %v2325_v16 }
0x1b1f   : > { %10122 = vmatmul.mubr.bf16.vlgmr.msra.gmra.mxu0 %v2326_v34 }
0x1b20   : > { %10146 = vmatpush3.bf16.msra.mxu0 %v14001_v50 }
0x1b21   : > { %10147 = vmatprep.subr.bf16.mxu0 %v14004_v29 }
0x1b24   : > { %10148 = vmatpush3.bf16.msra.mxu0 %v14004_v29 }
0x1b25   : > { %10149 = vmatprep.subr.bf16.mxu0 %v14080_v48 }
0x1b28   : > { %10150 = vmatpush3.bf16.msra.mxu0 %v14080_v48 }
0x1b29   : > { %10151 = vmatprep.subr.bf16.mxu0 %v14084_v23 }
0x1b2c   : > { %10152 = vmatpush3.bf16.msra.mxu0 %v14084_v23 }
0x1b2d   : > { %10153 = vmatprep.subr.bf16.mxu0 %v14088_v20 }
0x1b30   : > { %10154 = vmatpush3.bf16.msra.mxu0 %v14088_v20 }
0x1b31   : > { %10155 = vmatprep.subr.bf16.mxu0 %v14092_v14 }
0x1b34   : > { %10156 = vmatpush3.bf16.msra.mxu0 %v14092_v14 }
0x1b35   : > { %10157 = vmatprep.subr.bf16.mxu0 %v14096_v30 }
0x1b38   : > { %10158 = vmatpush3.bf16.msra.mxu0 %v14096_v30 }
0x1b39   : > { %10159 = vmatprep.subr.bf16.mxu0 %v14100_v43 }
0x1b3c   : > { %10160 = vmatpush3.bf16.msra.mxu0 %v14100_v43 }
0x1b3d   : > { %10185 = vmatprep.subr.bf16.mxu0 %v14001_v50 }
0x1bdf   : > { %v10123_v35 = vpop.f32.mrf.mxu0 }
0x1be0   : > { %v2370_v52 = vadd.f32 %v14108_v2, %v10123_v35 }
0x1be1   : > { %v2361_v27 = vpop.f32.mrf.mxu0 }
0x1be2   : > { %v2362_v51 = vadd.f32 %v14108_v2, %v2361_v27 }
0x1be3   : > { %v10124_v56 = vpop.f32.mrf.mxu0 }
0x1be4   : > { %v2373_v37 = vadd.f32 %v14108_v2, %v10124_v56  ;;  %12242 = vtanh.f32 %v2362_v51 }
0x1be5   : > { %v2364_v54 = vpop.f32.mrf.mxu0 }
0x1be6   : > { %v2365_v62 = vadd.f32 %v14108_v2, %v2364_v54  ;;  %12244 = vtanh.f32 %v2373_v37 }
0x1be8   : > { %12246 = vtanh.f32 %v2365_v62 }
0x1be9   : > { %12248 = vtanh.f32 %v2370_v52 }
0x1bf1   : > { %v12243_v49 = vpop.eup %12242 }
0x1bf3   : > { %v12245_v41 = vpop.eup %12244 }
0x1bf5   : > { %v12247_v0 = vpop.eup %12246 }
0x1bf6   : > { %v12249_v26 = vpop.eup %12248  ;;  %v2380_v58 = vpack.c.bf16 %v12247_v0, %v12243_v49 }
0x1bf7   : > { %v2381_v21 = vpack.c.bf16 %v12245_v41, %v12249_v26 }
0x1bf8   : > { %10141 = vmatprep.mubr.bf16.mxu1 %v2380_v58 }
0x1bf9   : > { %10142 = vmatmul.mubr.bf16.vlgmr.msra.gmra.mxu1 %v2381_v21 }
0x1bfa   : > { %10166 = vmatpush3.bf16.msra.mxu1 %v14025_v24 }
0x1bfb   : > { %10167 = vmatprep.subr.bf16.mxu1 %v14028_v28 }
0x1bfe   : > { %10168 = vmatpush3.bf16.msra.mxu1 %v14028_v28 }
0x1bff   : > { %10169 = vmatprep.subr.bf16.mxu1 %v14032_v7 }
0x1c02   : > { %10170 = vmatpush3.bf16.msra.mxu1 %v14032_v7 }
0x1c03   : > { %10171 = vmatprep.subr.bf16.mxu1 %v14036_v57 }
0x1c06   : > { %10172 = vmatpush3.bf16.msra.mxu1 %v14036_v57 }
0x1c07   : > { %10173 = vmatprep.subr.bf16.mxu1 %v14040_v42 }
0x1c0a   : > { %10174 = vmatpush3.bf16.msra.mxu1 %v14040_v42 }
0x1c0b   : > { %10175 = vmatprep.subr.bf16.mxu1 %v14044_v32 }
0x1c0e   : > { %10176 = vmatpush3.bf16.msra.mxu1 %v14044_v32 }
0x1c0f   : > { %10177 = vmatprep.subr.bf16.mxu1 %v14048_v44 }
0x1c12   : > { %10178 = vmatpush3.bf16.msra.mxu1 %v14048_v44 }
0x1c13   : > { %10179 = vmatprep.subr.bf16.mxu1 %v14052_v46 }
0x1c16   : > { %10180 = vmatpush3.bf16.msra.mxu1 %v14052_v46 }
0x1c17   : > { %10205 = vmatprep.subr.bf16.mxu1 %v14025_v24 }
0x1cb9   : > { %v10143_v55 = vpop.f32.mrf.mxu1 }
0x1cba   : > { %v14259_v9 = vadd.f32 %v14134_v60, %v10143_v55 }
0x1cbb   : > { %v2416_v4 = vpop.f32.mrf.mxu1 }
0x1cbc   : > { %v14256_v38 = vadd.f32 %v14134_v60, %v2416_v4  ;;  %v2433_v15 = vmul.f32 0.03125, %v14259_v9 }
0x1cbd   : > { %v10144_v61 = vpop.f32.mrf.mxu1 }
0x1cbe   : > { %v14262_v11 = vadd.f32 %v14134_v60, %v10144_v61  ;;  %v2431_v17 = vmul.f32 0.03125, %v14256_v38  ;;  %v2437_v10 = vadd.f32 %v2433_v15, %v14213_v25 }
0x1cbf   : > { %v2419_v13 = vpop.f32.mrf.mxu1 }
0x1cc0   : > { %v2434_v22 = vmul.f32 0.03125, %v14262_v11  ;;  %v14267_v47 = vadd.f32 %v14134_v60, %v2419_v13  ;;  %v2435_v53 = vadd.f32 %v2431_v17, %v14207_v36 }
0x1cc2   : > { %v2432_v40 = vmul.f32 0.03125, %v14267_v47  ;;  %v2438_v18 = vadd.f32 %v2434_v22, %v14204_v33 }
0x1cc4   : > { %v2436_v59 = vadd.f32 %v2432_v40, %v14210_v31  ;;  %v2440_v6 = vpack.c.bf16 %v2438_v18, %v2437_v10 }
0x1cc6   : > { %v2439_v3 = vpack.c.bf16 %v2436_v59, %v2435_v53 }
0x1cc8   : > { %10161 = vmatprep.mubr.bf16.mxu0 %v2439_v3 }
0x1cc9   : > { %10162 = vmatmul.mubr.bf16.vlgmr.msra.gmra.mxu0 %v2440_v6 }
0x1cca   : > { %10186 = vmatpush3.bf16.msra.mxu0 %v14001_v50 }
0x1ccb   : > { %10187 = vmatprep.subr.bf16.mxu0 %v14004_v29 }
0x1cce   : > { %10188 = vmatpush3.bf16.msra.mxu0 %v14004_v29 }
0x1ccf   : > { %10189 = vmatprep.subr.bf16.mxu0 %v14080_v48 }
0x1cd2   : > { %10190 = vmatpush3.bf16.msra.mxu0 %v14080_v48 }
0x1cd3   : > { %10191 = vmatprep.subr.bf16.mxu0 %v14084_v23 }
0x1cd6   : > { %10192 = vmatpush3.bf16.msra.mxu0 %v14084_v23 }
0x1cd7   : > { %10193 = vmatprep.subr.bf16.mxu0 %v14088_v20 }
0x1cda   : > { %10194 = vmatpush3.bf16.msra.mxu0 %v14088_v20 }
0x1cdb   : > { %10195 = vmatprep.subr.bf16.mxu0 %v14092_v14 }
0x1cde   : > { %10196 = vmatpush3.bf16.msra.mxu0 %v14092_v14 }
0x1cdf   : > { %10197 = vmatprep.subr.bf16.mxu0 %v14096_v30 }
0x1ce2   : > { %10198 = vmatpush3.bf16.msra.mxu0 %v14096_v30 }
0x1ce3   : > { %10199 = vmatprep.subr.bf16.mxu0 %v14100_v43 }
0x1ce6   : > { %10200 = vmatpush3.bf16.msra.mxu0 %v14100_v43 }
0x1ce7   : > { %10225 = vmatprep.subr.bf16.mxu0 %v14001_v50 }
0x1d89   : > { %v10163_v19 = vpop.f32.mrf.mxu0 }
0x1d8a   : > { %v2484_v45 = vadd.f32 %v14108_v2, %v10163_v19 }
0x1d8b   : > { %v2475_v5 = vpop.f32.mrf.mxu0 }
0x1d8c   : > { %v2476_v63 = vadd.f32 %v14108_v2, %v2475_v5 }
0x1d8d   : > { %v10164_v8 = vpop.f32.mrf.mxu0 }
0x1d8e   : > { %v2487_v1 = vadd.f32 %v14108_v2, %v10164_v8  ;;  %12250 = vtanh.f32 %v2476_v63 }
0x1d8f   : > { %v2478_v12 = vpop.f32.mrf.mxu0 }
0x1d90   : > { %v2479_v39 = vadd.f32 %v14108_v2, %v2478_v12  ;;  %12252 = vtanh.f32 %v2487_v1 }
0x1d92   : > { %12254 = vtanh.f32 %v2479_v39 }
0x1d93   : > { %12256 = vtanh.f32 %v2484_v45 }
0x1d9b   : > { %v12251_v16 = vpop.eup %12250 }
0x1d9d   : > { %v12253_v34 = vpop.eup %12252 }
0x1d9f   : > { %v12255_v35 = vpop.eup %12254 }
0x1da0   : > { %v12257_v27 = vpop.eup %12256  ;;  %v2494_v51 = vpack.c.bf16 %v12255_v35, %v12251_v16 }
0x1da1   : > { %v2495_v56 = vpack.c.bf16 %v12253_v34, %v12257_v27 }
0x1da2   : > { %10181 = vmatprep.mubr.bf16.mxu1 %v2494_v51 }
0x1da3   : > { %10182 = vmatmul.mubr.bf16.vlgmr.msra.gmra.mxu1 %v2495_v56 }
0x1da4   : > { %10206 = vmatpush3.bf16.msra.mxu1 %v14025_v24 }
0x1da5   : > { %10207 = vmatprep.subr.bf16.mxu1 %v14028_v28 }
0x1da8   : > { %10208 = vmatpush3.bf16.msra.mxu1 %v14028_v28 }
0x1da9   : > { %10209 = vmatprep.subr.bf16.mxu1 %v14032_v7 }
0x1dac   : > { %10210 = vmatpush3.bf16.msra.mxu1 %v14032_v7 }
0x1dad   : > { %10211 = vmatprep.subr.bf16.mxu1 %v14036_v57 }
0x1db0   : > { %10212 = vmatpush3.bf16.msra.mxu1 %v14036_v57 }
0x1db1   : > { %10213 = vmatprep.subr.bf16.mxu1 %v14040_v42 }
0x1db4   : > { %10214 = vmatpush3.bf16.msra.mxu1 %v14040_v42 }
0x1db5   : > { %10215 = vmatprep.subr.bf16.mxu1 %v14044_v32 }
0x1db8   : > { %10216 = vmatpush3.bf16.msra.mxu1 %v14044_v32 }
0x1db9   : > { %10217 = vmatprep.subr.bf16.mxu1 %v14048_v44 }
0x1dbc   : > { %10218 = vmatpush3.bf16.msra.mxu1 %v14048_v44 }
0x1dbd   : > { %10219 = vmatprep.subr.bf16.mxu1 %v14052_v46 }
0x1dc0   : > { %10220 = vmatpush3.bf16.msra.mxu1 %v14052_v46 }
0x1dc1   : > { %10245 = vmatprep.subr.bf16.mxu1 %v14025_v24 }
0x1e63   : > { %v10183_v37 = vpop.f32.mrf.mxu1 }
0x1e64   : > { %v14315_v62 = vadd.f32 %v14134_v60, %v10183_v37 }
0x1e65   : > { %v2530_v52 = vpop.f32.mrf.mxu1 }
0x1e66   : > { %v14312_v54 = vadd.f32 %v14134_v60, %v2530_v52  ;;  %v2555_v21 = vmul.f32 0.03125, %v14315_v62  ;;  %v2547_v16 = vmul.f32 2.0, %v14315_v62 }
0x1e67   : > { %v10184_v49 = vpop.f32.mrf.mxu1 }
0x1e68   : > { %v14318_v41 = vadd.f32 %v14134_v60, %v10184_v49  ;;  %v2553_v26 = vmul.f32 0.03125, %v14312_v54  ;;  %v2559_v22 = vadd.f32 %v2555_v21, %v14213_v25  ;;  %v2545_v27 = vmul.f32 2.0, %v14312_v54 }
0x1e69   : > { %v2533_v0 = vpop.f32.mrf.mxu1  ;;  %v2551_v49 = vadd.f32 %v2547_v16, %v14259_v9 }
0x1e6a   : > { %v14322_v58 = vadd.f32 %v14134_v60, %v2533_v0  ;;  %v2556_v55 = vmul.f32 0.03125, %v14318_v41  ;;  %v2557_v13 = vadd.f32 %v2553_v26, %v14207_v36  ;;  %v2548_v51 = vmul.f32 2.0, %v14318_v41 }
0x1e6b   : > { %v2549_v62 = vadd.f32 %v2545_v27, %v14256_v38 }
0x1e6c   : > { %v2554_v4 = vmul.f32 0.03125, %v14322_v58  ;;  %v2560_v61 = vadd.f32 %v2556_v55, %v14204_v33  ;;  %v2546_v26 = vmul.f32 2.0, %v14322_v58 }
0x1e6e   : > { %v2558_v17 = vadd.f32 %v2554_v4, %v14210_v31  ;;  %v2562_v40 = vpack.c.bf16 %v2560_v61, %v2559_v22  ;;  %v2552_v4 = vadd.f32 %v2548_v51, %v14262_v11  ;;  %v2550_v58 = vadd.f32 %v2546_v26, %v14267_v47 }
0x1e70   : > { %v2561_v15 = vpack.c.bf16 %v2558_v17, %v2557_v13 }
0x1e72   : > { %10201 = vmatprep.mubr.bf16.mxu0 %v2561_v15 }
0x1e73   : > { %10202 = vmatmul.mubr.bf16.vlgmr.msra.gmra.mxu0 %v2562_v40 }
0x1e74   : > { %10226 = vmatpush3.bf16.msra.mxu0 %v14001_v50 }
0x1e75   : > { %10227 = vmatprep.subr.bf16.mxu0 %v14004_v29 }
0x1e78   : > { %10228 = vmatpush3.bf16.msra.mxu0 %v14004_v29 }
0x1e79   : > { %10229 = vmatprep.subr.bf16.mxu0 %v14080_v48 }
0x1e7c   : > { %10230 = vmatpush3.bf16.msra.mxu0 %v14080_v48 }
0x1e7d   : > { %10231 = vmatprep.subr.bf16.mxu0 %v14084_v23 }
0x1e80   : > { %10232 = vmatpush3.bf16.msra.mxu0 %v14084_v23 }
0x1e81   : > { %10233 = vmatprep.subr.bf16.mxu0 %v14088_v20 }
0x1e84   : > { %10234 = vmatpush3.bf16.msra.mxu0 %v14088_v20 }
0x1e85   : > { %10235 = vmatprep.subr.bf16.mxu0 %v14092_v14 }
0x1e88   : > { %10236 = vmatpush3.bf16.msra.mxu0 %v14092_v14 }
0x1e89   : > { %10237 = vmatprep.subr.bf16.mxu0 %v14096_v30 }
0x1e8c   : > { %10238 = vmatpush3.bf16.msra.mxu0 %v14096_v30 }
0x1e8d   : > { %10239 = vmatprep.subr.bf16.mxu0 %v14100_v43 }
0x1e90   : > { %10240 = vmatpush3.bf16.msra.mxu0 %v14100_v43 }
0x1e91   : > { %10265 = vmatprep.subr.bf16.mxu0 %v14001_v50 }
0x1f33   : > { %v10203_v18 = vpop.f32.mrf.mxu0 }
0x1f34   : > { %v2606_v6 = vadd.f32 %v14108_v2, %v10203_v18 }
0x1f35   : > { %v2597_v53 = vpop.f32.mrf.mxu0 }
0x1f36   : > { %v2598_v59 = vadd.f32 %v14108_v2, %v2597_v53 }
0x1f37   : > { %v10204_v10 = vpop.f32.mrf.mxu0 }
0x1f38   : > { %v2609_v3 = vadd.f32 %v14108_v2, %v10204_v10  ;;  %12258 = vtanh.f32 %v2598_v59 }
0x1f39   : > { %v2600_v19 = vpop.f32.mrf.mxu0 }
0x1f3a   : > { %v2601_v5 = vadd.f32 %v14108_v2, %v2600_v19  ;;  %12260 = vtanh.f32 %v2609_v3 }
0x1f3c   : > { %12262 = vtanh.f32 %v2601_v5 }
0x1f3d   : > { %12264 = vtanh.f32 %v2606_v6 }
0x1f45   : > { %v12259_v63 = vpop.eup %12258 }
0x1f47   : > { %v12261_v8 = vpop.eup %12260 }
0x1f49   : > { %v12263_v1 = vpop.eup %12262 }
0x1f4a   : > { %v12265_v45 = vpop.eup %12264  ;;  %v2616_v12 = vpack.c.bf16 %v12263_v1, %v12259_v63 }
0x1f4b   : > { %v2617_v39 = vpack.c.bf16 %v12261_v8, %v12265_v45 }
0x1f4c   : > { %10221 = vmatprep.mubr.bf16.mxu1 %v2616_v12 }
0x1f4d   : > { %10222 = vmatmul.mubr.bf16.vlgmr.msra.gmra.mxu1 %v2617_v39 }
0x1f4e   : > { %10246 = vmatpush3.bf16.msra.mxu1 %v14025_v24 }
0x1f4f   : > { %10247 = vmatprep.subr.bf16.mxu1 %v14028_v28 }
0x1f52   : > { %10248 = vmatpush3.bf16.msra.mxu1 %v14028_v28 }
0x1f53   : > { %10249 = vmatprep.subr.bf16.mxu1 %v14032_v7 }
0x1f56   : > { %10250 = vmatpush3.bf16.msra.mxu1 %v14032_v7 }
0x1f57   : > { %10251 = vmatprep.subr.bf16.mxu1 %v14036_v57 }
0x1f5a   : > { %10252 = vmatpush3.bf16.msra.mxu1 %v14036_v57 }
0x1f5b   : > { %10253 = vmatprep.subr.bf16.mxu1 %v14040_v42 }
0x1f5e   : > { %10254 = vmatpush3.bf16.msra.mxu1 %v14040_v42 }
0x1f5f   : > { %10255 = vmatprep.subr.bf16.mxu1 %v14044_v32 }
0x1f62   : > { %10256 = vmatpush3.bf16.msra.mxu1 %v14044_v32 }
0x1f63   : > { %10257 = vmatprep.subr.bf16.mxu1 %v14048_v44 }
0x1f66   : > { %10258 = vmatpush3.bf16.msra.mxu1 %v14048_v44 }
0x1f67   : > { %10259 = vmatprep.subr.bf16.mxu1 %v14052_v46 }
0x1f6a   : > { %10260 = vmatpush3.bf16.msra.mxu1 %v14052_v46 }
0x1f6b   : > { %10285 = vmatprep.subr.bf16.mxu1 %v14025_v24 }
0x200d   : > { %v10223_v34 = vpop.f32.mrf.mxu1 }
0x200e   : > { %v2661_v35 = vadd.f32 %v14134_v60, %v10223_v34 }
0x200f   : > { %v2652_v56 = vpop.f32.mrf.mxu1 }
0x2010   : > { %v2669_v37 = vmul.f32 2.0, %v2661_v35  ;;  %v2653_v52 = vadd.f32 %v14134_v60, %v2652_v56  ;;  %v2677_v15 = vmul.f32 0.0625, %v2661_v35 }
0x2011   : > { %v10224_v0 = vpop.f32.mrf.mxu1 }
0x2012   : > { %v2667_v21 = vmul.f32 2.0, %v2653_v52  ;;  %v2664_v55 = vadd.f32 %v14134_v60, %v10224_v0  ;;  %v14377_v54 = vadd.f32 %v2669_v37, %v2551_v49  ;;  %v2675_v41 = vmul.f32 0.0625, %v2653_v52 }
0x2013   : > { %v2655_v61 = vpop.f32.mrf.mxu1  ;;  %v2681_v3 = vadd.f32 %v2677_v15, %v14213_v25 }
0x2014   : > { %v2670_v13 = vmul.f32 2.0, %v2664_v55  ;;  %v2678_v17 = vmul.f32 0.0625, %v2664_v55  ;;  %v2656_v22 = vadd.f32 %v14134_v60, %v2655_v61  ;;  %v14380_v9 = vadd.f32 %v2667_v21, %v2549_v62 }
0x2015   : > { %v2679_v11 = vadd.f32 %v2675_v41, %v14207_v36 }
0x2016   : > { %v2668_v40 = vmul.f32 2.0, %v2656_v22  ;;  %v2676_v18 = vmul.f32 0.0625, %v2656_v22  ;;  %v14383_v53 = vadd.f32 %v2670_v13, %v2552_v4  ;;  %v2682_v38 = vadd.f32 %v2678_v17, %v14204_v33  ;;  %v14451_v13 = vld [vmem:[#allocation5 + $0x38] sm:$0xff]  }
0x2018   : > { %v2680_v59 = vadd.f32 %v2676_v18, %v14210_v31  ;;  %v14388_v10 = vadd.f32 %v2668_v40, %v2550_v58  ;;  %v2684_v19 = vpack.c.bf16 %v2682_v38, %v2681_v3  ;;  %v14475_v40 = vld [vmem:[#allocation7 + $0x38] sm:$0xff]   ;;  %v14478_v18 = vld [vmem:[#allocation7 + $0x30] sm:$0xff]  }
0x2019   : > { %v14490_v38 = vld [vmem:[#allocation7 + $0x18] sm:$0xff]  }
0x201a   : > { %v2683_v6 = vpack.c.bf16 %v2680_v59, %v2679_v11  ;;  %v14494_v11 = vld [vmem:[#allocation7 + $0x10] sm:$0xff]   ;;  %v14498_v59 = vld [vmem:[#allocation7 + $0x8] sm:$0xff]  }
0x201c   : > { %10241 = vmatprep.mubr.bf16.mxu0 %v2683_v6 }
0x201d   : > { %10242 = vmatmul.mubr.bf16.vlgmr.msra.gmra.mxu0 %v2684_v19 }
0x201e   : > { %10266 = vmatpush3.bf16.msra.mxu0 %v14001_v50 }
0x201f   : > { %10267 = vmatprep.subr.bf16.mxu0 %v14004_v29 }
0x2022   : > { %10268 = vmatpush3.bf16.msra.mxu0 %v14004_v29 }
0x2023   : > { %10269 = vmatprep.subr.bf16.mxu0 %v14080_v48 }
0x2026   : > { %10270 = vmatpush3.bf16.msra.mxu0 %v14080_v48 }
0x2027   : > { %10271 = vmatprep.subr.bf16.mxu0 %v14084_v23 }
0x202a   : > { %10272 = vmatpush3.bf16.msra.mxu0 %v14084_v23 }
0x202b   : > { %10273 = vmatprep.subr.bf16.mxu0 %v14088_v20 }
0x202e   : > { %10274 = vmatpush3.bf16.msra.mxu0 %v14088_v20 }
0x202f   : > { %10275 = vmatprep.subr.bf16.mxu0 %v14092_v14 }
0x2032   : > { %10276 = vmatpush3.bf16.msra.mxu0 %v14092_v14 }
0x2033   : > { %10277 = vmatprep.subr.bf16.mxu0 %v14096_v30 }
0x2036   : > { %10278 = vmatpush3.bf16.msra.mxu0 %v14096_v30 }
0x2037   : > { %10279 = vmatprep.subr.bf16.mxu0 %v14100_v43 }
0x203a   : > { %10280 = vmatpush3.bf16.msra.mxu0 %v14100_v43 }
0x203b   : > { %10305 = vmatprep.subr.bf16.mxu0 %v14001_v50 }
0x20dd   : > { %v10243_v29 = vpop.f32.mrf.mxu0 }
0x20de   : > { %v2728_v1 = vadd.f32 %v14108_v2, %v10243_v29 }
0x20df   : > { %v2719_v47 = vpop.f32.mrf.mxu0 }
0x20e0   : > { %v2720_v5 = vadd.f32 %v14108_v2, %v2719_v47 }
0x20e1   : > { %v10244_v63 = vpop.f32.mrf.mxu0 }
0x20e2   : > { %v2731_v8 = vadd.f32 %v14108_v2, %v10244_v63  ;;  %12266 = vtanh.f32 %v2720_v5 }
0x20e3   : > { %v2722_v45 = vpop.f32.mrf.mxu0 }
0x20e4   : > { %v2723_v12 = vadd.f32 %v14108_v2, %v2722_v45  ;;  %12268 = vtanh.f32 %v2731_v8 }
0x20e6   : > { %12270 = vtanh.f32 %v2723_v12 }
0x20e7   : > { %12272 = vtanh.f32 %v2728_v1 }
0x20ef   : > { %v12267_v39 = vpop.eup %12266 }
0x20f1   : > { %v12269_v16 = vpop.eup %12268 }
0x20f3   : > { %v12271_v34 = vpop.eup %12270 }
0x20f4   : > { %v12273_v50 = vpop.eup %12272  ;;  %v2738_v35 = vpack.c.bf16 %v12271_v34, %v12267_v39 }
0x20f5   : > { %v2739_v27 = vpack.c.bf16 %v12269_v16, %v12273_v50 }
0x20f6   : > { %10261 = vmatprep.mubr.bf16.mxu1 %v2738_v35 }
0x20f7   : > { %10262 = vmatmul.mubr.bf16.vlgmr.msra.gmra.mxu1 %v2739_v27 }
0x20f8   : > { %10286 = vmatpush3.bf16.msra.mxu1 %v14025_v24 }
0x20f9   : > { %10287 = vmatprep.subr.bf16.mxu1 %v14028_v28 }
0x20fc   : > { %10288 = vmatpush3.bf16.msra.mxu1 %v14028_v28 }
0x20fd   : > { %10289 = vmatprep.subr.bf16.mxu1 %v14032_v7 }
0x2100   : > { %10290 = vmatpush3.bf16.msra.mxu1 %v14032_v7 }
0x2101   : > { %10291 = vmatprep.subr.bf16.mxu1 %v14036_v57 }
0x2104   : > { %10292 = vmatpush3.bf16.msra.mxu1 %v14036_v57 }
0x2105   : > { %10293 = vmatprep.subr.bf16.mxu1 %v14040_v42 }
0x2108   : > { %10294 = vmatpush3.bf16.msra.mxu1 %v14040_v42 }
0x2109   : > { %10295 = vmatprep.subr.bf16.mxu1 %v14044_v32 }
0x210c   : > { %10296 = vmatpush3.bf16.msra.mxu1 %v14044_v32 }
0x210d   : > { %10297 = vmatprep.subr.bf16.mxu1 %v14048_v44 }
0x2110   : > { %10298 = vmatpush3.bf16.msra.mxu1 %v14048_v44 }
0x2111   : > { %10299 = vmatprep.subr.bf16.mxu1 %v14052_v46 }
0x2114   : > { %10300 = vmatpush3.bf16.msra.mxu1 %v14052_v46 }
0x2115   : > { %10325 = vmatprep.subr.bf16.mxu1 %v14025_v24 }
0x21b7   : > { %v10263_v28 = vpop.f32.mrf.mxu1 }
0x21b8   : > { %v2783_v7 = vadd.f32 %v14134_v60, %v10263_v28 }
0x21b9   : > { %v2774_v57 = vpop.f32.mrf.mxu1 }
0x21ba   : > { %v2775_v42 = vadd.f32 %v14134_v60, %v2774_v57  ;;  %v2791_v37 = vadd.f32 %v2783_v7, %v14377_v54  ;;  %v14534_v7 = vld [vmem:[#allocation5 + $0x20] sm:$0xff]   ;;  %v14538_v57 = vld [vmem:[#allocation5 + $0x18] sm:$0xff]  }
0x21bb   : > { %v10264_v51 = vpop.f32.mrf.mxu1 }
0x21bc   : > { %v2789_v56 = vadd.f32 %v2775_v42, %v14380_v9  ;;  %v2786_v32 = vadd.f32 %v14134_v60, %v10264_v51  ;;  %v2795_v26 = vmul.f32 0.010416667, %v2791_v37  ;;  %v14542_v42 = vld [vmem:[#allocation5 + $0x10] sm:$0xff]   ;;  %v14546_v51 = vld [vmem:[#allocation5 + $0x8] sm:$0xff]  }
0x21bd   : > { %v2777_v44 = vpop.f32.mrf.mxu1 }
0x21be   : > { %v2792_v52 = vadd.f32 %v2786_v32, %v14383_v53  ;;  %v2778_v46 = vadd.f32 %v14134_v60, %v2777_v44  ;;  %v2793_v49 = vmul.f32 0.010416667, %v2789_v56  ;;  %v14445_v61 = vadd.f32 %v2795_v26, %v14213_v25  ;;  %v14486_v53 = vld [vmem:[#allocation7 + $0x20] sm:$0xff]  }
0x21bf   : > { %v14550_v56 = vld [vmem:[#allocation5] sm:$0xff]  }
0x21c0   : > { %v2796_v24 = vmul.f32 0.010416667, %v2792_v52  ;;  %v2790_v0 = vadd.f32 %v2778_v46, %v14388_v10  ;;  %v14439_v62 = vadd.f32 %v2793_v49, %v14207_v36  ;;  %v14502_v10 = vld [vmem:[#allocation7] sm:$0xff]  }
0x21c1   : > { %v14558_v44 = vld [vmem:[%s17232_s2] ss:$0 sm:$0xff] }
0x21c2   : > { %v2794_v21 = vmul.f32 0.010416667, %v2790_v0  ;;  %v14436_v55 = vadd.f32 %v2796_v24, %v14204_v33  ;;  %v14454_v33 = vld [vmem:[#allocation5 + $0x30] sm:$0xff]  }
0x21c4   : > { %v14442_v4 = vadd.f32 %v2794_v21, %v14210_v31  ;;  %v2802_v41 = vpack.c.bf16 %v14436_v55, %v14445_v61 }
0x21c6   : > { %v2801_v54 = vpack.c.bf16 %v14442_v4, %v14439_v62 }
0x21c8   : > { %10281 = vmatprep.mubr.bf16.mxu0 %v2801_v54 }
0x21c9   : > { %10282 = vmatmul.mubr.bf16.vlgmr.msra.gmra.mxu0 %v2802_v41 }
0x21ca   : > { %10306 = vmatpush3.bf16.msra.mxu0 %v14451_v13 }
0x21cb   : > { %10307 = vmatprep.subr.bf16.mxu0 %v14454_v33 }
0x21ce   : > { %10308 = vmatpush3.bf16.msra.mxu0 %v14454_v33 }
0x21cf   : > { %10309 = vmatprep.subr.bf16.mxu0 %v14080_v48 }
0x21d2   : > { %10310 = vmatpush3.bf16.msra.mxu0 %v14080_v48 }
0x21d3   : > { %10311 = vmatprep.subr.bf16.mxu0 %v14084_v23 }
0x21d6   : > { %10312 = vmatpush3.bf16.msra.mxu0 %v14084_v23 }
0x21d7   : > { %10313 = vmatprep.subr.bf16.mxu0 %v14088_v20 }
0x21da   : > { %10314 = vmatpush3.bf16.msra.mxu0 %v14088_v20 }
0x21db   : > { %10315 = vmatprep.subr.bf16.mxu0 %v14092_v14 }
0x21de   : > { %10316 = vmatpush3.bf16.msra.mxu0 %v14092_v14 }
0x21df   : > { %10317 = vmatprep.subr.bf16.mxu0 %v14096_v30 }
0x21e2   : > { %10318 = vmatpush3.bf16.msra.mxu0 %v14096_v30 }
0x21e3   : > { %10319 = vmatprep.subr.bf16.mxu0 %v14100_v43 }
0x21e6   : > { %10320 = vmatpush3.bf16.msra.mxu0 %v14100_v43 }
0x21e7   : > { %10345 = vmatprep.subr.bf16.mxu0 %v14451_v13 }
0x2289   : > { %v10283_v48 = vpop.f32.mrf.mxu0 }
0x228a   : > { %v2846_v25 = vadd.f32 %v14108_v2, %v10283_v48 }
0x228b   : > { %v2837_v23 = vpop.f32.mrf.mxu0 }
0x228c   : > { %v2838_v36 = vadd.f32 %v14108_v2, %v2837_v23 }
0x228d   : > { %v10284_v31 = vpop.f32.mrf.mxu0 }
0x228e   : > { %v2849_v20 = vadd.f32 %v14108_v2, %v10284_v31  ;;  %12274 = vtanh.f32 %v2838_v36 }
0x228f   : > { %v2840_v14 = vpop.f32.mrf.mxu0 }
0x2290   : > { %v2841_v17 = vadd.f32 %v14108_v2, %v2840_v14  ;;  %12276 = vtanh.f32 %v2849_v20  ;;  %v14482_v2 = vld [vmem:[#allocation7 + $0x28] sm:$0xff]  }
0x2292   : > { %12278 = vtanh.f32 %v2841_v17 }
0x2293   : > { %12280 = vtanh.f32 %v2846_v25  ;;  %v14583_v25 = vld [vmem:[%s17234_s4] ss:$0 sm:$0xff] }
0x229b   : > { %v12275_v30 = vpop.eup %12274 }
0x229d   : > { %v12277_v43 = vpop.eup %12276 }
0x229f   : > { %v12279_v22 = vpop.eup %12278 }
0x22a0   : > { %v12281_v15 = vpop.eup %12280  ;;  %v2856_v9 = vpack.c.bf16 %v12279_v22, %v12275_v30 }
0x22a1   : > { %v2857_v58 = vpack.c.bf16 %v12277_v43, %v12281_v15 }
0x22a2   : > { %10301 = vmatprep.mubr.bf16.mxu1 %v2856_v9 }
0x22a3   : > { %10302 = vmatmul.mubr.bf16.vlgmr.msra.gmra.mxu1 %v2857_v58 }
0x22a4   : > { %10326 = vmatpush3.bf16.msra.mxu1 %v14475_v40 }
0x22a5   : > { %10327 = vmatprep.subr.bf16.mxu1 %v14478_v18 }
0x22a8   : > { %10328 = vmatpush3.bf16.msra.mxu1 %v14478_v18 }
0x22a9   : > { %10329 = vmatprep.subr.bf16.mxu1 %v14482_v2 }
0x22ac   : > { %10330 = vmatpush3.bf16.msra.mxu1 %v14482_v2 }
0x22ad   : > { %10331 = vmatprep.subr.bf16.mxu1 %v14486_v53 }
0x22b0   : > { %10332 = vmatpush3.bf16.msra.mxu1 %v14486_v53 }
0x22b1   : > { %10333 = vmatprep.subr.bf16.mxu1 %v14490_v38 }
0x22b4   : > { %10334 = vmatpush3.bf16.msra.mxu1 %v14490_v38 }
0x22b5   : > { %10335 = vmatprep.subr.bf16.mxu1 %v14494_v11 }
0x22b8   : > { %10336 = vmatpush3.bf16.msra.mxu1 %v14494_v11 }
0x22b9   : > { %10337 = vmatprep.subr.bf16.mxu1 %v14498_v59 }
0x22bc   : > { %10338 = vmatpush3.bf16.msra.mxu1 %v14498_v59 }
0x22bd   : > { %10339 = vmatprep.subr.bf16.mxu1 %v14502_v10 }
0x22c0   : > { %10340 = vmatpush3.bf16.msra.mxu1 %v14502_v10 }
0x22c1   : > { %10365 = vmatprep.subr.bf16.mxu1 %v14475_v40 }
0x2363   : > { %v10303_v3 = vpop.f32.mrf.mxu1 }
0x2364   : > { %v14511_v29 = vadd.f32 %v14134_v60, %v10303_v3 }
0x2365   : > { %v2892_v6 = vpop.f32.mrf.mxu1 }
0x2366   : > { %v14508_v19 = vadd.f32 %v14134_v60, %v2892_v6  ;;  %v2909_v12 = vmul.f32 0.03125, %v14511_v29 }
0x2367   : > { %v10304_v47 = vpop.f32.mrf.mxu1 }
0x2368   : > { %v14514_v5 = vadd.f32 %v14134_v60, %v10304_v47  ;;  %v2907_v8 = vmul.f32 0.03125, %v14508_v19  ;;  %v2913_v35 = vadd.f32 %v2909_v12, %v14445_v61 }
0x2369   : > { %v2895_v63 = vpop.f32.mrf.mxu1 }
0x236a   : > { %v2910_v1 = vmul.f32 0.03125, %v14514_v5  ;;  %v14519_v45 = vadd.f32 %v14134_v60, %v2895_v63  ;;  %v2911_v34 = vadd.f32 %v2907_v8, %v14439_v62  ;;  %v14530_v60 = vld [vmem:[#allocation5 + $0x28] sm:$0xff]  }
0x236c   : > { %v2908_v39 = vmul.f32 0.03125, %v14519_v45  ;;  %v2914_v16 = vadd.f32 %v2910_v1, %v14436_v55 }
0x236e   : > { %v2912_v50 = vadd.f32 %v2908_v39, %v14442_v4  ;;  %v2916_v28 = vpack.c.bf16 %v2914_v16, %v2913_v35 }
0x2370   : > { %v2915_v27 = vpack.c.bf16 %v2912_v50, %v2911_v34 }
0x2372   : > { %10321 = vmatprep.mubr.bf16.mxu0 %v2915_v27 }
0x2373   : > { %10322 = vmatmul.mubr.bf16.vlgmr.msra.gmra.mxu0 %v2916_v28 }
0x2374   : > { %10346 = vmatpush3.bf16.msra.mxu0 %v14451_v13 }
0x2375   : > { %10347 = vmatprep.subr.bf16.mxu0 %v14454_v33 }
0x2378   : > { %10348 = vmatpush3.bf16.msra.mxu0 %v14454_v33 }
0x2379   : > { %10349 = vmatprep.subr.bf16.mxu0 %v14530_v60 }
0x237c   : > { %10350 = vmatpush3.bf16.msra.mxu0 %v14530_v60 }
0x237d   : > { %10351 = vmatprep.subr.bf16.mxu0 %v14534_v7 }
0x2380   : > { %10352 = vmatpush3.bf16.msra.mxu0 %v14534_v7 }
0x2381   : > { %10353 = vmatprep.subr.bf16.mxu0 %v14538_v57 }
0x2384   : > { %10354 = vmatpush3.bf16.msra.mxu0 %v14538_v57 }
0x2385   : > { %10355 = vmatprep.subr.bf16.mxu0 %v14542_v42 }
0x2388   : > { %10356 = vmatpush3.bf16.msra.mxu0 %v14542_v42 }
0x2389   : > { %10357 = vmatprep.subr.bf16.mxu0 %v14546_v51 }
0x238c   : > { %10358 = vmatpush3.bf16.msra.mxu0 %v14546_v51 }
0x238d   : > { %10359 = vmatprep.subr.bf16.mxu0 %v14550_v56 }
0x2390   : > { %10360 = vmatpush3.bf16.msra.mxu0 %v14550_v56 }
0x2391   : > { %10385 = vmatprep.subr.bf16.mxu0 %v14451_v13 }
0x2433   : > { %v10323_v32 = vpop.f32.mrf.mxu0 }
0x2434   : > { %v2960_v24 = vadd.f32 %v14558_v44, %v10323_v32 }
0x2435   : > { %v2951_v37 = vpop.f32.mrf.mxu0 }
0x2436   : > { %v2952_v52 = vadd.f32 %v14558_v44, %v2951_v37 }
0x2437   : > { %v10324_v46 = vpop.f32.mrf.mxu0 }
0x2438   : > { %v2963_v49 = vadd.f32 %v14558_v44, %v10324_v46  ;;  %12282 = vtanh.f32 %v2952_v52 }
0x2439   : > { %v2954_v0 = vpop.f32.mrf.mxu0 }
0x243a   : > { %v2955_v26 = vadd.f32 %v14558_v44, %v2954_v0  ;;  %12284 = vtanh.f32 %v2963_v49 }
0x243c   : > { %12286 = vtanh.f32 %v2955_v26 }
0x243d   : > { %12288 = vtanh.f32 %v2960_v24 }
0x2445   : > { %v12283_v21 = vpop.eup %12282 }
0x2447   : > { %v12285_v54 = vpop.eup %12284 }
0x2449   : > { %v12287_v41 = vpop.eup %12286 }
0x244a   : > { %v12289_v48 = vpop.eup %12288  ;;  %v2970_v23 = vpack.c.bf16 %v12287_v41, %v12283_v21 }
0x244b   : > { %v2971_v36 = vpack.c.bf16 %v12285_v54, %v12289_v48 }
0x244c   : > { %10341 = vmatprep.mubr.bf16.mxu1 %v2970_v23 }
0x244d   : > { %10342 = vmatmul.mubr.bf16.vlgmr.msra.gmra.mxu1 %v2971_v36 }
0x244e   : > { %10366 = vmatpush3.bf16.msra.mxu1 %v14475_v40 }
0x244f   : > { %10367 = vmatprep.subr.bf16.mxu1 %v14478_v18 }
0x2452   : > { %10368 = vmatpush3.bf16.msra.mxu1 %v14478_v18 }
0x2453   : > { %10369 = vmatprep.subr.bf16.mxu1 %v14482_v2 }
0x2456   : > { %10370 = vmatpush3.bf16.msra.mxu1 %v14482_v2 }
0x2457   : > { %10371 = vmatprep.subr.bf16.mxu1 %v14486_v53 }
0x245a   : > { %10372 = vmatpush3.bf16.msra.mxu1 %v14486_v53 }
0x245b   : > { %10373 = vmatprep.subr.bf16.mxu1 %v14490_v38 }
0x245e   : > { %10374 = vmatpush3.bf16.msra.mxu1 %v14490_v38 }
0x245f   : > { %10375 = vmatprep.subr.bf16.mxu1 %v14494_v11 }
0x2462   : > { %10376 = vmatpush3.bf16.msra.mxu1 %v14494_v11 }
0x2463   : > { %10377 = vmatprep.subr.bf16.mxu1 %v14498_v59 }
0x2466   : > { %10378 = vmatpush3.bf16.msra.mxu1 %v14498_v59 }
0x2467   : > { %10379 = vmatprep.subr.bf16.mxu1 %v14502_v10 }
0x246a   : > { %10380 = vmatpush3.bf16.msra.mxu1 %v14502_v10 }
0x246b   : > { %10405 = vmatprep.subr.bf16.mxu1 %v14475_v40 }
0x250d   : > { %v10343_v31 = vpop.f32.mrf.mxu1 }
0x250e   : > { %v14589_v17 = vadd.f32 %v14583_v25, %v10343_v31 }
0x250f   : > { %v3006_v20 = vpop.f32.mrf.mxu1 }
0x2510   : > { %v14586_v14 = vadd.f32 %v14583_v25, %v3006_v20  ;;  %v3031_v58 = vmul.f32 0.03125, %v14589_v17  ;;  %v3023_v21 = vmul.f32 2.0, %v14589_v17 }
0x2511   : > { %v10344_v30 = vpop.f32.mrf.mxu1 }
0x2512   : > { %v14592_v43 = vadd.f32 %v14583_v25, %v10344_v30  ;;  %v3029_v15 = vmul.f32 0.03125, %v14586_v14  ;;  %v3035_v1 = vadd.f32 %v3031_v58, %v14445_v61  ;;  %v3021_v48 = vmul.f32 2.0, %v14586_v14 }
0x2513   : > { %v3009_v22 = vpop.f32.mrf.mxu1  ;;  %v3027_v30 = vadd.f32 %v3023_v21, %v14511_v29 }
0x2514   : > { %v14596_v9 = vadd.f32 %v14583_v25, %v3009_v22  ;;  %v3032_v3 = vmul.f32 0.03125, %v14592_v43  ;;  %v3033_v63 = vadd.f32 %v3029_v15, %v14439_v62  ;;  %v3024_v23 = vmul.f32 2.0, %v14592_v43 }
0x2515   : > { %v3025_v17 = vadd.f32 %v3021_v48, %v14508_v19 }
0x2516   : > { %v3030_v6 = vmul.f32 0.03125, %v14596_v9  ;;  %v3036_v47 = vadd.f32 %v3032_v3, %v14436_v55  ;;  %v3022_v15 = vmul.f32 2.0, %v14596_v9 }
0x2518   : > { %v3034_v8 = vadd.f32 %v3030_v6, %v14442_v4  ;;  %v3038_v39 = vpack.c.bf16 %v3036_v47, %v3035_v1  ;;  %v3028_v6 = vadd.f32 %v3024_v23, %v14514_v5  ;;  %v3026_v9 = vadd.f32 %v3022_v15, %v14519_v45 }
0x251a   : > { %v3037_v12 = vpack.c.bf16 %v3034_v8, %v3033_v63 }
0x251c   : > { %10361 = vmatprep.mubr.bf16.mxu0 %v3037_v12 }
0x251d   : > { %10362 = vmatmul.mubr.bf16.vlgmr.msra.gmra.mxu0 %v3038_v39 }
0x251e   : > { %10386 = vmatpush3.bf16.msra.mxu0 %v14451_v13 }
0x251f   : > { %10387 = vmatprep.subr.bf16.mxu0 %v14454_v33 }
0x2522   : > { %10388 = vmatpush3.bf16.msra.mxu0 %v14454_v33 }
0x2523   : > { %10389 = vmatprep.subr.bf16.mxu0 %v14530_v60 }
0x2526   : > { %10390 = vmatpush3.bf16.msra.mxu0 %v14530_v60 }
0x2527   : > { %10391 = vmatprep.subr.bf16.mxu0 %v14534_v7 }
0x252a   : > { %10392 = vmatpush3.bf16.msra.mxu0 %v14534_v7 }
0x252b   : > { %10393 = vmatprep.subr.bf16.mxu0 %v14538_v57 }
0x252e   : > { %10394 = vmatpush3.bf16.msra.mxu0 %v14538_v57 }
0x252f   : > { %10395 = vmatprep.subr.bf16.mxu0 %v14542_v42 }
0x2532   : > { %10396 = vmatpush3.bf16.msra.mxu0 %v14542_v42 }
0x2533   : > { %10397 = vmatprep.subr.bf16.mxu0 %v14546_v51 }
0x2536   : > { %10398 = vmatpush3.bf16.msra.mxu0 %v14546_v51 }
0x2537   : > { %10399 = vmatprep.subr.bf16.mxu0 %v14550_v56 }
0x253a   : > { %10400 = vmatpush3.bf16.msra.mxu0 %v14550_v56 }
0x253b   : > { %10425 = vmatprep.subr.bf16.mxu0 %v14451_v13 }
0x25dd   : > { %v10363_v16 = vpop.f32.mrf.mxu0 }
0x25de   : > { %v3082_v28 = vadd.f32 %v14558_v44, %v10363_v16 }
0x25df   : > { %v3073_v34 = vpop.f32.mrf.mxu0 }
0x25e0   : > { %v3074_v50 = vadd.f32 %v14558_v44, %v3073_v34 }
0x25e1   : > { %v10364_v35 = vpop.f32.mrf.mxu0 }
0x25e2   : > { %v3085_v27 = vadd.f32 %v14558_v44, %v10364_v35  ;;  %12290 = vtanh.f32 %v3074_v50 }
0x25e3   : > { %v3076_v32 = vpop.f32.mrf.mxu0 }
0x25e4   : > { %v3077_v37 = vadd.f32 %v14558_v44, %v3076_v32  ;;  %12292 = vtanh.f32 %v3085_v27 }
0x25e6   : > { %12294 = vtanh.f32 %v3077_v37 }
0x25e7   : > { %12296 = vtanh.f32 %v3082_v28 }
0x25ef   : > { %v12291_v52 = vpop.eup %12290 }
0x25f1   : > { %v12293_v46 = vpop.eup %12292 }
0x25f3   : > { %v12295_v49 = vpop.eup %12294 }
0x25f4   : > { %v12297_v24 = vpop.eup %12296  ;;  %v3092_v0 = vpack.c.bf16 %v12295_v49, %v12291_v52 }
0x25f5   : > { %v3093_v26 = vpack.c.bf16 %v12293_v46, %v12297_v24 }
0x25f6   : > { %10381 = vmatprep.mubr.bf16.mxu1 %v3092_v0 }
0x25f7   : > { %10382 = vmatmul.mubr.bf16.vlgmr.msra.gmra.mxu1 %v3093_v26 }
0x25f8   : > { %10406 = vmatpush3.bf16.msra.mxu1 %v14475_v40 }
0x25f9   : > { %10407 = vmatprep.subr.bf16.mxu1 %v14478_v18 }
0x25fc   : > { %10408 = vmatpush3.bf16.msra.mxu1 %v14478_v18 }
0x25fd   : > { %10409 = vmatprep.subr.bf16.mxu1 %v14482_v2 }
0x2600   : > { %10410 = vmatpush3.bf16.msra.mxu1 %v14482_v2 }
0x2601   : > { %10411 = vmatprep.subr.bf16.mxu1 %v14486_v53 }
0x2604   : > { %10412 = vmatpush3.bf16.msra.mxu1 %v14486_v53 }
0x2605   : > { %10413 = vmatprep.subr.bf16.mxu1 %v14490_v38 }
0x2608   : > { %10414 = vmatpush3.bf16.msra.mxu1 %v14490_v38 }
0x2609   : > { %10415 = vmatprep.subr.bf16.mxu1 %v14494_v11 }
0x260c   : > { %10416 = vmatpush3.bf16.msra.mxu1 %v14494_v11 }
0x260d   : > { %10417 = vmatprep.subr.bf16.mxu1 %v14498_v59 }
0x2610   : > { %10418 = vmatpush3.bf16.msra.mxu1 %v14498_v59 }
0x2611   : > { %10419 = vmatprep.subr.bf16.mxu1 %v14502_v10 }
0x2614   : > { %10420 = vmatpush3.bf16.msra.mxu1 %v14502_v10 }
0x2615   : > { %10445 = vmatprep.subr.bf16.mxu1 %v14475_v40 }
0x26b7   : > { %v10383_v54 = vpop.f32.mrf.mxu1 }
0x26b8   : > { %v3137_v41 = vadd.f32 %v14583_v25, %v10383_v54 }
0x26b9   : > { %v3128_v36 = vpop.f32.mrf.mxu1 }
0x26ba   : > { %v3145_v31 = vmul.f32 2.0, %v3137_v41  ;;  %v3129_v20 = vadd.f32 %v14583_v25, %v3128_v36  ;;  %v3153_v12 = vmul.f32 0.0625, %v3137_v41 }
0x26bb   : > { %v10384_v22 = vpop.f32.mrf.mxu1 }
0x26bc   : > { %v3143_v58 = vmul.f32 2.0, %v3129_v20  ;;  %v3140_v3 = vadd.f32 %v14583_v25, %v10384_v22  ;;  %v14651_v14 = vadd.f32 %v3145_v31, %v3027_v30  ;;  %v3151_v43 = vmul.f32 0.0625, %v3129_v20 }
0x26bd   : > { %v3131_v47 = vpop.f32.mrf.mxu1  ;;  %v3157_v27 = vadd.f32 %v3153_v12, %v14445_v61 }
0x26be   : > { %v3146_v63 = vmul.f32 2.0, %v3140_v3  ;;  %v3154_v8 = vmul.f32 0.0625, %v3140_v3  ;;  %v3132_v1 = vadd.f32 %v14583_v25, %v3131_v47  ;;  %v14654_v29 = vadd.f32 %v3143_v58, %v3025_v17 }
0x26bf   : > { %v3155_v5 = vadd.f32 %v3151_v43, %v14439_v62 }
0x26c0   : > { %v3144_v39 = vmul.f32 2.0, %v3132_v1  ;;  %v3152_v16 = vmul.f32 0.0625, %v3132_v1  ;;  %v14657_v34 = vadd.f32 %v3146_v63, %v3028_v6  ;;  %v3158_v19 = vadd.f32 %v3154_v8, %v14436_v55 }
0x26c2   : > { %v3156_v50 = vadd.f32 %v3152_v16, %v14442_v4  ;;  %v14662_v35 = vadd.f32 %v3144_v39, %v3026_v9  ;;  %v3160_v32 = vpack.c.bf16 %v3158_v19, %v3157_v27 }
0x26c4   : > { %v3159_v28 = vpack.c.bf16 %v3156_v50, %v3155_v5 }
0x26c6   : > { %10401 = vmatprep.mubr.bf16.mxu0 %v3159_v28 }
0x26c7   : > { %10402 = vmatmul.mubr.bf16.vlgmr.msra.gmra.mxu0 %v3160_v32 }
0x26c8   : > { %10426 = vmatpush3.bf16.msra.mxu0 %v14451_v13 }
0x26c9   : > { %10427 = vmatprep.subr.bf16.mxu0 %v14454_v33 }
0x26cc   : > { %10428 = vmatpush3.bf16.msra.mxu0 %v14454_v33 }
0x26cd   : > { %10429 = vmatprep.subr.bf16.mxu0 %v14530_v60 }
0x26d0   : > { %10430 = vmatpush3.bf16.msra.mxu0 %v14530_v60 }
0x26d1   : > { %10431 = vmatprep.subr.bf16.mxu0 %v14534_v7 }
0x26d4   : > { %10432 = vmatpush3.bf16.msra.mxu0 %v14534_v7 }
0x26d5   : > { %10433 = vmatprep.subr.bf16.mxu0 %v14538_v57 }
0x26d8   : > { %10434 = vmatpush3.bf16.msra.mxu0 %v14538_v57 }
0x26d9   : > { %10435 = vmatprep.subr.bf16.mxu0 %v14542_v42 }
0x26dc   : > { %10436 = vmatpush3.bf16.msra.mxu0 %v14542_v42 }
0x26dd   : > { %10437 = vmatprep.subr.bf16.mxu0 %v14546_v51 }
0x26e0   : > { %10438 = vmatpush3.bf16.msra.mxu0 %v14546_v51 }
0x26e1   : > { %10439 = vmatprep.subr.bf16.mxu0 %v14550_v56 }
0x26e4   : > { %10440 = vmatpush3.bf16.msra.mxu0 %v14550_v56 }
0x26e5   : > { %10465 = vmatprep.subr.bf16.mxu0 %v14451_v13 }
0x2787   : > { %v10403_v45 = vpop.f32.mrf.mxu0 }
0x2788   : > { %v3204_v24 = vadd.f32 %v14558_v44, %v10403_v45 }
0x2789   : > { %v3195_v37 = vpop.f32.mrf.mxu0 }
0x278a   : > { %v3196_v52 = vadd.f32 %v14558_v44, %v3195_v37 }
0x278b   : > { %v10404_v46 = vpop.f32.mrf.mxu0 }
0x278c   : > { %v3207_v49 = vadd.f32 %v14558_v44, %v10404_v46  ;;  %12298 = vtanh.f32 %v3196_v52 }
0x278d   : > { %v3198_v0 = vpop.f32.mrf.mxu0 }
0x278e   : > { %v3199_v26 = vadd.f32 %v14558_v44, %v3198_v0  ;;  %12300 = vtanh.f32 %v3207_v49 }
0x2790   : > { %12302 = vtanh.f32 %v3199_v26 }
0x2791   : > { %12304 = vtanh.f32 %v3204_v24 }
0x2799   : > { %v12299_v21 = vpop.eup %12298 }
0x279b   : > { %v12301_v54 = vpop.eup %12300 }
0x279d   : > { %v12303_v41 = vpop.eup %12302 }
0x279e   : > { %v12305_v48 = vpop.eup %12304  ;;  %v3214_v23 = vpack.c.bf16 %v12303_v41, %v12299_v21 }
0x279f   : > { %v3215_v36 = vpack.c.bf16 %v12301_v54, %v12305_v48 }
0x27a0   : > { %10421 = vmatprep.mubr.bf16.mxu1 %v3214_v23 }
0x27a1   : > { %10422 = vmatmul.mubr.bf16.vlgmr.msra.gmra.mxu1 %v3215_v36 }
0x27a2   : > { %10446 = vmatpush3.bf16.msra.mxu1 %v14475_v40 }
0x27a3   : > { %10447 = vmatprep.subr.bf16.mxu1 %v14478_v18 }
0x27a6   : > { %10448 = vmatpush3.bf16.msra.mxu1 %v14478_v18 }
0x27a7   : > { %10449 = vmatprep.subr.bf16.mxu1 %v14482_v2 }
0x27aa   : > { %10450 = vmatpush3.bf16.msra.mxu1 %v14482_v2 }
0x27ab   : > { %10451 = vmatprep.subr.bf16.mxu1 %v14486_v53 }
0x27ae   : > { %10452 = vmatpush3.bf16.msra.mxu1 %v14486_v53 }
0x27af   : > { %10453 = vmatprep.subr.bf16.mxu1 %v14490_v38 }
0x27b2   : > { %10454 = vmatpush3.bf16.msra.mxu1 %v14490_v38 }
0x27b3   : > { %10455 = vmatprep.subr.bf16.mxu1 %v14494_v11 }
0x27b6   : > { %10456 = vmatpush3.bf16.msra.mxu1 %v14494_v11 }
0x27b7   : > { %10457 = vmatprep.subr.bf16.mxu1 %v14498_v59 }
0x27ba   : > { %10458 = vmatpush3.bf16.msra.mxu1 %v14498_v59 }
0x27bb   : > { %10459 = vmatprep.subr.bf16.mxu1 %v14502_v10 }
0x27be   : > { %10460 = vmatpush3.bf16.msra.mxu1 %v14502_v10 }
0x27bf   : > { %10485 = vmatprep.subr.bf16.mxu1 %v14475_v40 }
0x2861   : > { %v10423_v31 = vpop.f32.mrf.mxu1 }
0x2862   : > { %v3259_v20 = vadd.f32 %v14583_v25, %v10423_v31 }
0x2863   : > { %v3250_v30 = vpop.f32.mrf.mxu1 }
0x2864   : > { %v3251_v22 = vadd.f32 %v14583_v25, %v3250_v30  ;;  %v3267_v17 = vadd.f32 %v3259_v20, %v14651_v14 }
0x2865   : > { %v10424_v15 = vpop.f32.mrf.mxu1 }
0x2866   : > { %v3265_v58 = vadd.f32 %v3251_v22, %v14654_v29  ;;  %v3262_v3 = vadd.f32 %v14583_v25, %v10424_v15  ;;  %v3271_v12 = vmul.f32 0.010416667, %v3267_v17 }
0x2867   : > { %v3253_v6 = vpop.f32.mrf.mxu1 }
0x2868   : > { %v3268_v47 = vadd.f32 %v3262_v3, %v14657_v34  ;;  %v3254_v43 = vadd.f32 %v14583_v25, %v3253_v6  ;;  %v3269_v63 = vmul.f32 0.010416667, %v3265_v58  ;;  %v14719_v14 = vadd.f32 %v3271_v12, %v14445_v61 }
0x286a   : > { %v3272_v8 = vmul.f32 0.010416667, %v3268_v47  ;;  %v3266_v1 = vadd.f32 %v3254_v43, %v14662_v35  ;;  %v14713_v29 = vadd.f32 %v3269_v63, %v14439_v62 }
0x286c   : > { %v3270_v9 = vmul.f32 0.010416667, %v3266_v1  ;;  %v14710_v39 = vadd.f32 %v3272_v8, %v14436_v55 }
0x286e   : > { %v14716_v16 = vadd.f32 %v3270_v9, %v14442_v4  ;;  %v3278_v19 = vpack.c.bf16 %v14710_v39, %v14719_v14 }
0x2870   : > { %v3277_v34 = vpack.c.bf16 %v14716_v16, %v14713_v29 }
0x2872   : > { %10441 = vmatprep.mubr.bf16.mxu0 %v3277_v34 }
0x2873   : > { %10442 = vmatmul.mubr.bf16.vlgmr.msra.gmra.mxu0 %v3278_v19 }
0x2874   : > { %10466 = vmatpush3.bf16.msra.mxu0 %v14451_v13 }
0x2875   : > { %10467 = vmatprep.subr.bf16.mxu0 %v14454_v33 }
0x2878   : > { %10468 = vmatpush3.bf16.msra.mxu0 %v14454_v33 }
0x2879   : > { %10469 = vmatprep.subr.bf16.mxu0 %v14530_v60 }
0x287c   : > { %10470 = vmatpush3.bf16.msra.mxu0 %v14530_v60 }
0x287d   : > { %10471 = vmatprep.subr.bf16.mxu0 %v14534_v7 }
0x2880   : > { %10472 = vmatpush3.bf16.msra.mxu0 %v14534_v7 }
0x2881   : > { %10473 = vmatprep.subr.bf16.mxu0 %v14538_v57 }
0x2884   : > { %10474 = vmatpush3.bf16.msra.mxu0 %v14538_v57 }
0x2885   : > { %10475 = vmatprep.subr.bf16.mxu0 %v14542_v42 }
0x2888   : > { %10476 = vmatpush3.bf16.msra.mxu0 %v14542_v42 }
0x2889   : > { %10477 = vmatprep.subr.bf16.mxu0 %v14546_v51 }
0x288c   : > { %10478 = vmatpush3.bf16.msra.mxu0 %v14546_v51 }
0x288d   : > { %10479 = vmatprep.subr.bf16.mxu0 %v14550_v56 }
0x2890   : > { %10480 = vmatpush3.bf16.msra.mxu0 %v14550_v56 }
0x2891   : > { %10505 = vmatprep.subr.bf16.mxu0 %v14451_v13 }
0x2933   : > { %v10443_v55 = vpop.f32.mrf.mxu0 }
0x2934   : > { %v3322_v50 = vadd.f32 %v14558_v44, %v10443_v55 }
0x2935   : > { %v3313_v62 = vpop.f32.mrf.mxu0 }
0x2936   : > { %v3314_v4 = vadd.f32 %v14558_v44, %v3313_v62 }
0x2937   : > { %v10444_v61 = vpop.f32.mrf.mxu0 }
0x2938   : > { %v3325_v5 = vadd.f32 %v14558_v44, %v10444_v61  ;;  %12306 = vtanh.f32 %v3314_v4 }
0x2939   : > { %v3316_v35 = vpop.f32.mrf.mxu0 }
0x293a   : > { %v3317_v27 = vadd.f32 %v14558_v44, %v3316_v35  ;;  %12308 = vtanh.f32 %v3325_v5 }
0x293c   : > { %12310 = vtanh.f32 %v3317_v27 }
0x293d   : > { %12312 = vtanh.f32 %v3322_v50 }
0x2945   : > { %v12307_v28 = vpop.eup %12306 }
0x2947   : > { %v12309_v32 = vpop.eup %12308 }
0x2949   : > { %v12311_v45 = vpop.eup %12310 }
0x294a   : > { %v12313_v37 = vpop.eup %12312  ;;  %v3332_v52 = vpack.c.bf16 %v12311_v45, %v12307_v28 }
0x294b   : > { %v3333_v46 = vpack.c.bf16 %v12309_v32, %v12313_v37 }
0x294c   : > { %10461 = vmatprep.mubr.bf16.mxu1 %v3332_v52 }
0x294d   : > { %10462 = vmatmul.mubr.bf16.vlgmr.msra.gmra.mxu1 %v3333_v46 }
0x294e   : > { %10486 = vmatpush3.bf16.msra.mxu1 %v14475_v40 }
0x294f   : > { %10487 = vmatprep.subr.bf16.mxu1 %v14478_v18 }
0x2952   : > { %10488 = vmatpush3.bf16.msra.mxu1 %v14478_v18 }
0x2953   : > { %10489 = vmatprep.subr.bf16.mxu1 %v14482_v2 }
0x2956   : > { %10490 = vmatpush3.bf16.msra.mxu1 %v14482_v2 }
0x2957   : > { %10491 = vmatprep.subr.bf16.mxu1 %v14486_v53 }
0x295a   : > { %10492 = vmatpush3.bf16.msra.mxu1 %v14486_v53 }
0x295b   : > { %10493 = vmatprep.subr.bf16.mxu1 %v14490_v38 }
0x295e   : > { %10494 = vmatpush3.bf16.msra.mxu1 %v14490_v38 }
0x295f   : > { %10495 = vmatprep.subr.bf16.mxu1 %v14494_v11 }
0x2962   : > { %10496 = vmatpush3.bf16.msra.mxu1 %v14494_v11 }
0x2963   : > { %10497 = vmatprep.subr.bf16.mxu1 %v14498_v59 }
0x2966   : > { %10498 = vmatpush3.bf16.msra.mxu1 %v14498_v59 }
0x2967   : > { %10499 = vmatprep.subr.bf16.mxu1 %v14502_v10 }
0x296a   : > { %10500 = vmatpush3.bf16.msra.mxu1 %v14502_v10 }
0x296b   : > { %10525 = vmatprep.subr.bf16.mxu1 %v14475_v40 }
0x2a0d   : > { %v10463_v49 = vpop.f32.mrf.mxu1 }
0x2a0e   : > { %v14765_v26 = vadd.f32 %v14583_v25, %v10463_v49 }
0x2a0f   : > { %v3368_v24 = vpop.f32.mrf.mxu1 }
0x2a10   : > { %v14762_v0 = vadd.f32 %v14583_v25, %v3368_v24  ;;  %v3385_v31 = vmul.f32 0.03125, %v14765_v26 }
0x2a11   : > { %v10464_v21 = vpop.f32.mrf.mxu1 }
0x2a12   : > { %v14768_v54 = vadd.f32 %v14583_v25, %v10464_v21  ;;  %v3383_v48 = vmul.f32 0.03125, %v14762_v0  ;;  %v3389_v58 = vadd.f32 %v3385_v31, %v14719_v14 }
0x2a13   : > { %v3371_v41 = vpop.f32.mrf.mxu1 }
0x2a14   : > { %v3386_v23 = vmul.f32 0.03125, %v14768_v54  ;;  %v14773_v36 = vadd.f32 %v14583_v25, %v3371_v41  ;;  %v3387_v22 = vadd.f32 %v3383_v48, %v14713_v29 }
0x2a16   : > { %v3384_v20 = vmul.f32 0.03125, %v14773_v36  ;;  %v3390_v30 = vadd.f32 %v3386_v23, %v14710_v39 }
0x2a18   : > { %v3388_v15 = vadd.f32 %v3384_v20, %v14716_v16  ;;  %v3392_v17 = vpack.c.bf16 %v3390_v30, %v3389_v58 }
0x2a1a   : > { %v3391_v3 = vpack.c.bf16 %v3388_v15, %v3387_v22 }
0x2a1c   : > { %10481 = vmatprep.mubr.bf16.mxu0 %v3391_v3 }
0x2a1d   : > { %10482 = vmatmul.mubr.bf16.vlgmr.msra.gmra.mxu0 %v3392_v17 }
0x2a1e   : > { %10506 = vmatpush3.bf16.msra.mxu0 %v14451_v13 }
0x2a1f   : > { %10507 = vmatprep.subr.bf16.mxu0 %v14454_v33 }
0x2a22   : > { %10508 = vmatpush3.bf16.msra.mxu0 %v14454_v33 }
0x2a23   : > { %10509 = vmatprep.subr.bf16.mxu0 %v14530_v60 }
0x2a26   : > { %10510 = vmatpush3.bf16.msra.mxu0 %v14530_v60 }
0x2a27   : > { %10511 = vmatprep.subr.bf16.mxu0 %v14534_v7 }
0x2a2a   : > { %10512 = vmatpush3.bf16.msra.mxu0 %v14534_v7 }
0x2a2b   : > { %10513 = vmatprep.subr.bf16.mxu0 %v14538_v57 }
0x2a2e   : > { %10514 = vmatpush3.bf16.msra.mxu0 %v14538_v57 }
0x2a2f   : > { %10515 = vmatprep.subr.bf16.mxu0 %v14542_v42 }
0x2a32   : > { %10516 = vmatpush3.bf16.msra.mxu0 %v14542_v42 }
0x2a33   : > { %10517 = vmatprep.subr.bf16.mxu0 %v14546_v51 }
0x2a36   : > { %10518 = vmatpush3.bf16.msra.mxu0 %v14546_v51 }
0x2a37   : > { %10519 = vmatprep.subr.bf16.mxu0 %v14550_v56 }
0x2a3a   : > { %10520 = vmatpush3.bf16.msra.mxu0 %v14550_v56 }
0x2a3b   : > { %10545 = vmatprep.subr.bf16.mxu0 %v14451_v13 }
0x2add   : > { %v10483_v6 = vpop.f32.mrf.mxu0 }
0x2ade   : > { %v3436_v1 = vadd.f32 %v14558_v44, %v10483_v6 }
0x2adf   : > { %v3427_v47 = vpop.f32.mrf.mxu0 }
0x2ae0   : > { %v3428_v43 = vadd.f32 %v14558_v44, %v3427_v47 }
0x2ae1   : > { %v10484_v63 = vpop.f32.mrf.mxu0 }
0x2ae2   : > { %v3439_v8 = vadd.f32 %v14558_v44, %v10484_v63  ;;  %12314 = vtanh.f32 %v3428_v43 }
0x2ae3   : > { %v3430_v12 = vpop.f32.mrf.mxu0 }
0x2ae4   : > { %v3431_v9 = vadd.f32 %v14558_v44, %v3430_v12  ;;  %12316 = vtanh.f32 %v3439_v8 }
0x2ae6   : > { %12318 = vtanh.f32 %v3431_v9 }
0x2ae7   : > { %12320 = vtanh.f32 %v3436_v1 }
0x2aef   : > { %v12315_v34 = vpop.eup %12314 }
0x2af1   : > { %v12317_v19 = vpop.eup %12316 }
0x2af3   : > { %v12319_v55 = vpop.eup %12318 }
0x2af4   : > { %v12321_v62 = vpop.eup %12320  ;;  %v3446_v4 = vpack.c.bf16 %v12319_v55, %v12315_v34 }
0x2af5   : > { %v3447_v61 = vpack.c.bf16 %v12317_v19, %v12321_v62 }
0x2af6   : > { %10501 = vmatprep.mubr.bf16.mxu1 %v3446_v4 }
0x2af7   : > { %10502 = vmatmul.mubr.bf16.vlgmr.msra.gmra.mxu1 %v3447_v61 }
0x2af8   : > { %10526 = vmatpush3.bf16.msra.mxu1 %v14475_v40 }
0x2af9   : > { %10527 = vmatprep.subr.bf16.mxu1 %v14478_v18 }
0x2afc   : > { %10528 = vmatpush3.bf16.msra.mxu1 %v14478_v18 }
0x2afd   : > { %10529 = vmatprep.subr.bf16.mxu1 %v14482_v2 }
0x2b00   : > { %10530 = vmatpush3.bf16.msra.mxu1 %v14482_v2 }
0x2b01   : > { %10531 = vmatprep.subr.bf16.mxu1 %v14486_v53 }
0x2b04   : > { %10532 = vmatpush3.bf16.msra.mxu1 %v14486_v53 }
0x2b05   : > { %10533 = vmatprep.subr.bf16.mxu1 %v14490_v38 }
0x2b08   : > { %10534 = vmatpush3.bf16.msra.mxu1 %v14490_v38 }
0x2b09   : > { %10535 = vmatprep.subr.bf16.mxu1 %v14494_v11 }
0x2b0c   : > { %10536 = vmatpush3.bf16.msra.mxu1 %v14494_v11 }
0x2b0d   : > { %10537 = vmatprep.subr.bf16.mxu1 %v14498_v59 }
0x2b10   : > { %10538 = vmatpush3.bf16.msra.mxu1 %v14498_v59 }
0x2b11   : > { %10539 = vmatprep.subr.bf16.mxu1 %v14502_v10 }
0x2b14   : > { %10540 = vmatpush3.bf16.msra.mxu1 %v14502_v10 }
0x2b15   : > { %10565 = vmatprep.subr.bf16.mxu1 %v14475_v40 }
0x2bb7   : > { %v10503_v5 = vpop.f32.mrf.mxu1 }
0x2bb8   : > { %v14821_v27 = vadd.f32 %v14583_v25, %v10503_v5 }
0x2bb9   : > { %v3482_v50 = vpop.f32.mrf.mxu1 }
0x2bba   : > { %v14818_v35 = vadd.f32 %v14583_v25, %v3482_v50  ;;  %v3507_v46 = vmul.f32 0.03125, %v14821_v27 }
0x2bbb   : > { %v10504_v28 = vpop.f32.mrf.mxu1 }
0x2bbc   : > { %v14824_v32 = vadd.f32 %v14583_v25, %v10504_v28  ;;  %v3505_v37 = vmul.f32 0.03125, %v14818_v35  ;;  %v3511_v23 = vadd.f32 %v3507_v46, %v14719_v14 }
0x2bbd   : > { %v3485_v45 = vpop.f32.mrf.mxu1 }
0x2bbe   : > { %v14828_v52 = vadd.f32 %v14583_v25, %v3485_v45  ;;  %v3508_v49 = vmul.f32 0.03125, %v14824_v32  ;;  %v3509_v41 = vadd.f32 %v3505_v37, %v14713_v29  ;;  %v3500_v12 = vmul.f32 2.0, %v14824_v32 }
0x2bc0   : > { %v3506_v24 = vmul.f32 0.03125, %v14828_v52  ;;  %v3512_v21 = vadd.f32 %v3508_v49, %v14710_v39  ;;  %v3504_v4 = vadd.f32 %v3500_v12, %v14768_v54 }
0x2bc2   : > { %v3510_v48 = vadd.f32 %v3506_v24, %v14716_v16  ;;  %v3514_v20 = vpack.c.bf16 %v3512_v21, %v3511_v23  ;;  %v14897_v23 = vld [vmem:[#allocation5 + $0x38] sm:$0xff]  }
0x2bc4   : > { %v3513_v31 = vpack.c.bf16 %v3510_v48, %v3509_v41 }
0x2bc6   : > { %10521 = vmatprep.mubr.bf16.mxu0 %v3513_v31 }
0x2bc7   : > { %10522 = vmatmul.mubr.bf16.vlgmr.msra.gmra.mxu0 %v3514_v20 }
0x2bc8   : > { %10546 = vmatpush3.bf16.msra.mxu0 %v14451_v13 }
0x2bc9   : > { %10547 = vmatprep.subr.bf16.mxu0 %v14454_v33 }
0x2bcc   : > { %10548 = vmatpush3.bf16.msra.mxu0 %v14454_v33 }
0x2bcd   : > { %10549 = vmatprep.subr.bf16.mxu0 %v14530_v60 }
0x2bd0   : > { %10550 = vmatpush3.bf16.msra.mxu0 %v14530_v60 }
0x2bd1   : > { %10551 = vmatprep.subr.bf16.mxu0 %v14534_v7 }
0x2bd4   : > { %10552 = vmatpush3.bf16.msra.mxu0 %v14534_v7 }
0x2bd5   : > { %10553 = vmatprep.subr.bf16.mxu0 %v14538_v57 }
0x2bd8   : > { %10554 = vmatpush3.bf16.msra.mxu0 %v14538_v57 }
0x2bd9   : > { %10555 = vmatprep.subr.bf16.mxu0 %v14542_v42 }
0x2bdc   : > { %10556 = vmatpush3.bf16.msra.mxu0 %v14542_v42 }
0x2bdd   : > { %10557 = vmatprep.subr.bf16.mxu0 %v14546_v51 }
0x2be0   : > { %10558 = vmatpush3.bf16.msra.mxu0 %v14546_v51 }
0x2be1   : > { %10559 = vmatprep.subr.bf16.mxu0 %v14550_v56 }
0x2be4   : > { %10560 = vmatpush3.bf16.msra.mxu0 %v14550_v56 }
0x2be5   : > { %10585 = vmatprep.subr.bf16.mxu0 %v14451_v13 }
0x2c87   : > { %v10523_v33 = vpop.f32.mrf.mxu0 }
0x2c88   : > { %v3558_v3 = vadd.f32 %v14558_v44, %v10523_v33 }
0x2c89   : > { %v3549_v30 = vpop.f32.mrf.mxu0 }
0x2c8a   : > { %v3550_v22 = vadd.f32 %v14558_v44, %v3549_v30 }
0x2c8b   : > { %v10524_v15 = vpop.f32.mrf.mxu0 }
0x2c8c   : > { %v3561_v58 = vadd.f32 %v14558_v44, %v10524_v15  ;;  %12322 = vtanh.f32 %v3550_v22 }
0x2c8d   : > { %v3552_v17 = vpop.f32.mrf.mxu0 }
0x2c8e   : > { %v3553_v6 = vadd.f32 %v14558_v44, %v3552_v17  ;;  %12324 = vtanh.f32 %v3561_v58  ;;  %v14921_v17 = vld [vmem:[#allocation7 + $0x38] sm:$0xff]  }
0x2c90   : > { %12326 = vtanh.f32 %v3553_v6  ;;  %v14924_v6 = vld [vmem:[#allocation7 + $0x30] sm:$0xff]  }
0x2c91   : > { %12328 = vtanh.f32 %v3558_v3 }
0x2c99   : > { %v12323_v47 = vpop.eup %12322 }
0x2c9b   : > { %v12325_v43 = vpop.eup %12324 }
0x2c9d   : > { %v12327_v63 = vpop.eup %12326 }
0x2c9e   : > { %v12329_v13 = vpop.eup %12328  ;;  %v3568_v8 = vpack.c.bf16 %v12327_v63, %v12323_v47  ;;  %v14932_v47 = vld [vmem:[#allocation7 + $0x20] sm:$0xff]   ;;  %v14940_v63 = vld [vmem:[#allocation7 + $0x10] sm:$0xff]  }
0x2c9f   : > { %v3569_v1 = vpack.c.bf16 %v12325_v43, %v12329_v13  ;;  %v14936_v43 = vld [vmem:[#allocation7 + $0x18] sm:$0xff]   ;;  %v14944_v13 = vld [vmem:[#allocation7 + $0x8] sm:$0xff]  }
0x2ca0   : > { %10541 = vmatprep.mubr.bf16.mxu1 %v3568_v8  ;;  %v14948_v8 = vld [vmem:[#allocation7] sm:$0xff]  }
0x2ca1   : > { %10542 = vmatmul.mubr.bf16.vlgmr.msra.gmra.mxu1 %v3569_v1 }
0x2ca2   : > { %10566 = vmatpush3.bf16.msra.mxu1 %v14475_v40 }
0x2ca3   : > { %10567 = vmatprep.subr.bf16.mxu1 %v14478_v18 }
0x2ca6   : > { %10568 = vmatpush3.bf16.msra.mxu1 %v14478_v18  ;;  %v3499_v18 = vmul.f32 2.0, %v14821_v27 }
0x2ca7   : > { %10569 = vmatprep.subr.bf16.mxu1 %v14482_v2 }
0x2caa   : > { %10570 = vmatpush3.bf16.msra.mxu1 %v14482_v2 }
0x2cab   : > { %10571 = vmatprep.subr.bf16.mxu1 %v14486_v53 }
0x2cae   : > { %10572 = vmatpush3.bf16.msra.mxu1 %v14486_v53 }
0x2caf   : > { %10573 = vmatprep.subr.bf16.mxu1 %v14490_v38 }
0x2cb2   : > { %10574 = vmatpush3.bf16.msra.mxu1 %v14490_v38  ;;  %v3497_v38 = vmul.f32 2.0, %v14818_v35 }
0x2cb3   : > { %10575 = vmatprep.subr.bf16.mxu1 %v14494_v11 }
0x2cb4   : > { %v3501_v62 = vadd.f32 %v3497_v38, %v14762_v0 }
0x2cb6   : > { %10576 = vmatpush3.bf16.msra.mxu1 %v14494_v11 }
0x2cb7   : > { %10577 = vmatprep.subr.bf16.mxu1 %v14498_v59 }
0x2cba   : > { %10578 = vmatpush3.bf16.msra.mxu1 %v14498_v59  ;;  %v3503_v59 = vadd.f32 %v3499_v18, %v14765_v26 }
0x2cbb   : > { %10579 = vmatprep.subr.bf16.mxu1 %v14502_v10 }
0x2cbe   : > { %10580 = vmatpush3.bf16.msra.mxu1 %v14502_v10  ;;  %v3498_v10 = vmul.f32 2.0, %v14828_v52 }
0x2cbf   : > { %10605 = vmatprep.subr.bf16.mxu1 %v14475_v40 }
0x2cc0   : > { %v3502_v45 = vadd.f32 %v3498_v10, %v14773_v36  ;;  %v14900_v36 = vld [vmem:[#allocation5 + $0x30] sm:$0xff]  }
0x2d61   : > { %v10543_v2 = vpop.f32.mrf.mxu1 }
0x2d62   : > { %v3613_v53 = vadd.f32 %v14583_v25, %v10543_v2 }
0x2d63   : > { %v3604_v11 = vpop.f32.mrf.mxu1 }
0x2d64   : > { %v3621_v9 = vmul.f32 2.0, %v3613_v53  ;;  %v3605_v34 = vadd.f32 %v14583_v25, %v3604_v11  ;;  %v3629_v32 = vmul.f32 0.0625, %v3613_v53 }
0x2d65   : > { %v10544_v19 = vpop.f32.mrf.mxu1 }
0x2d66   : > { %v3619_v55 = vmul.f32 2.0, %v3605_v34  ;;  %v3616_v40 = vadd.f32 %v14583_v25, %v10544_v19  ;;  %v14883_v5 = vadd.f32 %v3621_v9, %v3503_v59  ;;  %v3627_v50 = vmul.f32 0.0625, %v3605_v34 }
0x2d67   : > { %v3607_v61 = vpop.f32.mrf.mxu1  ;;  %v3633_v21 = vadd.f32 %v3629_v32, %v14719_v14  ;;  %v15000_v32 = vld [vmem:[#allocation5] sm:$0xff]  }
0x2d68   : > { %v3622_v35 = vmul.f32 2.0, %v3616_v40  ;;  %v3630_v27 = vmul.f32 0.0625, %v3616_v40  ;;  %v3608_v28 = vadd.f32 %v14583_v25, %v3607_v61  ;;  %v14886_v26 = vadd.f32 %v3619_v55, %v3501_v62 }
0x2d69   : > { %v3631_v54 = vadd.f32 %v3627_v50, %v14713_v29 }
0x2d6a   : > { %v3620_v37 = vmul.f32 2.0, %v3608_v28  ;;  %v3628_v52 = vmul.f32 0.0625, %v3608_v28  ;;  %v14889_v46 = vadd.f32 %v3622_v35, %v3504_v4  ;;  %v3634_v0 = vadd.f32 %v3630_v27, %v14710_v39  ;;  %v14996_v28 = vld [vmem:[#allocation5 + $0x8] sm:$0xff]  }
0x2d6c   : > { %v3632_v49 = vadd.f32 %v3628_v52, %v14716_v16  ;;  %v14894_v24 = vadd.f32 %v3620_v37, %v3502_v45  ;;  %v3636_v48 = vpack.c.bf16 %v3634_v0, %v3633_v21  ;;  %v15008_v37 = vld [vmem:[%s17232_s2] ss:$0 sm:$0xff] }
0x2d6e   : > { %v3635_v41 = vpack.c.bf16 %v3632_v49, %v3631_v54 }
0x2d70   : > { %10561 = vmatprep.mubr.bf16.mxu0 %v3635_v41 }
0x2d71   : > { %10562 = vmatmul.mubr.bf16.vlgmr.msra.gmra.mxu0 %v3636_v48 }
0x2d72   : > { %10586 = vmatpush3.bf16.msra.mxu0 %v14897_v23 }
0x2d73   : > { %10587 = vmatprep.subr.bf16.mxu0 %v14900_v36 }
0x2d76   : > { %10588 = vmatpush3.bf16.msra.mxu0 %v14900_v36 }
0x2d77   : > { %10589 = vmatprep.subr.bf16.mxu0 %v14530_v60 }
0x2d7a   : > { %10590 = vmatpush3.bf16.msra.mxu0 %v14530_v60 }
0x2d7b   : > { %10591 = vmatprep.subr.bf16.mxu0 %v14534_v7 }
0x2d7e   : > { %10592 = vmatpush3.bf16.msra.mxu0 %v14534_v7 }
0x2d7f   : > { %10593 = vmatprep.subr.bf16.mxu0 %v14538_v57 }
0x2d82   : > { %10594 = vmatpush3.bf16.msra.mxu0 %v14538_v57 }
0x2d83   : > { %10595 = vmatprep.subr.bf16.mxu0 %v14542_v42 }
0x2d86   : > { %10596 = vmatpush3.bf16.msra.mxu0 %v14542_v42 }
0x2d87   : > { %10597 = vmatprep.subr.bf16.mxu0 %v14546_v51 }
0x2d8a   : > { %10598 = vmatpush3.bf16.msra.mxu0 %v14546_v51 }
0x2d8b   : > { %10599 = vmatprep.subr.bf16.mxu0 %v14550_v56 }
0x2d8e   : > { %10600 = vmatpush3.bf16.msra.mxu0 %v14550_v56 }
0x2d8f   : > { %10625 = vmatprep.subr.bf16.mxu0 %v14897_v23 }
0x2e31   : > { %v10563_v60 = vpop.f32.mrf.mxu0 }
0x2e32   : > { %v3680_v33 = vadd.f32 %v14558_v44, %v10563_v60 }
0x2e33   : > { %v3671_v7 = vpop.f32.mrf.mxu0 }
0x2e34   : > { %v3672_v31 = vadd.f32 %v14558_v44, %v3671_v7 }
0x2e35   : > { %v10564_v20 = vpop.f32.mrf.mxu0 }
0x2e36   : > { %v3683_v57 = vadd.f32 %v14558_v44, %v10564_v20  ;;  %12330 = vtanh.f32 %v3672_v31 }
0x2e37   : > { %v3674_v42 = vpop.f32.mrf.mxu0 }
0x2e38   : > { %v3675_v30 = vadd.f32 %v14558_v44, %v3674_v42  ;;  %12332 = vtanh.f32 %v3683_v57  ;;  %v14928_v44 = vld [vmem:[#allocation7 + $0x28] sm:$0xff]  }
0x2e3a   : > { %12334 = vtanh.f32 %v3675_v30 }
0x2e3b   : > { %12336 = vtanh.f32 %v3680_v33  ;;  %v15033_v33 = vld [vmem:[%s17234_s4] ss:$0 sm:$0xff] }
0x2e43   : > { %v12331_v51 = vpop.eup %12330 }
0x2e45   : > { %v12333_v56 = vpop.eup %12332 }
0x2e47   : > { %v12335_v22 = vpop.eup %12334 }
0x2e48   : > { %v12337_v15 = vpop.eup %12336  ;;  %v3690_v58 = vpack.c.bf16 %v12335_v22, %v12331_v51 }
0x2e49   : > { %v3691_v3 = vpack.c.bf16 %v12333_v56, %v12337_v15 }
0x2e4a   : > { %10581 = vmatprep.mubr.bf16.mxu1 %v3690_v58 }
0x2e4b   : > { %10582 = vmatmul.mubr.bf16.vlgmr.msra.gmra.mxu1 %v3691_v3 }
0x2e4c   : > { %10606 = vmatpush3.bf16.msra.mxu1 %v14921_v17 }
0x2e4d   : > { %10607 = vmatprep.subr.bf16.mxu1 %v14924_v6 }
0x2e50   : > { %10608 = vmatpush3.bf16.msra.mxu1 %v14924_v6 }
0x2e51   : > { %10609 = vmatprep.subr.bf16.mxu1 %v14928_v44 }
0x2e54   : > { %10610 = vmatpush3.bf16.msra.mxu1 %v14928_v44 }
0x2e55   : > { %10611 = vmatprep.subr.bf16.mxu1 %v14932_v47 }
0x2e58   : > { %10612 = vmatpush3.bf16.msra.mxu1 %v14932_v47 }
0x2e59   : > { %10613 = vmatprep.subr.bf16.mxu1 %v14936_v43 }
0x2e5c   : > { %10614 = vmatpush3.bf16.msra.mxu1 %v14936_v43 }
0x2e5d   : > { %10615 = vmatprep.subr.bf16.mxu1 %v14940_v63 }
0x2e60   : > { %10616 = vmatpush3.bf16.msra.mxu1 %v14940_v63 }
0x2e61   : > { %10617 = vmatprep.subr.bf16.mxu1 %v14944_v13 }
0x2e64   : > { %10618 = vmatpush3.bf16.msra.mxu1 %v14944_v13 }
0x2e65   : > { %10619 = vmatprep.subr.bf16.mxu1 %v14948_v8 }
0x2e68   : > { %10620 = vmatpush3.bf16.msra.mxu1 %v14948_v8 }
0x2e69   : > { %10645 = vmatprep.subr.bf16.mxu1 %v14921_v17 }
0x2f0b   : > { %v10583_v1 = vpop.f32.mrf.mxu1 }
0x2f0c   : > { %v3735_v18 = vadd.f32 %v14583_v25, %v10583_v1 }
0x2f0d   : > { %v3726_v2 = vpop.f32.mrf.mxu1 }
0x2f0e   : > { %v3727_v53 = vadd.f32 %v14583_v25, %v3726_v2  ;;  %v3743_v9 = vadd.f32 %v3735_v18, %v14883_v5 }
0x2f0f   : > { %v10584_v38 = vpop.f32.mrf.mxu1 }
0x2f10   : > { %v3741_v12 = vadd.f32 %v3727_v53, %v14886_v26  ;;  %v3738_v11 = vadd.f32 %v14583_v25, %v10584_v38  ;;  %v3747_v62 = vmul.f32 0.010416667, %v3743_v9 }
0x2f11   : > { %v3729_v34 = vpop.f32.mrf.mxu1 }
0x2f12   : > { %v3744_v59 = vadd.f32 %v3738_v11, %v14889_v46  ;;  %v3730_v19 = vadd.f32 %v14583_v25, %v3729_v34  ;;  %v3745_v10 = vmul.f32 0.010416667, %v3741_v12  ;;  %v14971_v5 = vadd.f32 %v3747_v62, %v14719_v14  ;;  %v14992_v14 = vld [vmem:[#allocation5 + $0x10] sm:$0xff]  }
0x2f14   : > { %v3748_v55 = vmul.f32 0.010416667, %v3744_v59  ;;  %v3742_v40 = vadd.f32 %v3730_v19, %v14894_v24  ;;  %v14965_v50 = vadd.f32 %v3745_v10, %v14713_v29  ;;  %v14984_v29 = vld [vmem:[#allocation5 + $0x20] sm:$0xff]  }
0x2f16   : > { %v3746_v4 = vmul.f32 0.010416667, %v3742_v40  ;;  %v14962_v61 = vadd.f32 %v3748_v55, %v14710_v39  ;;  %v14980_v39 = vld [vmem:[#allocation5 + $0x28] sm:$0xff]  }
0x2f18   : > { %v14968_v35 = vadd.f32 %v3746_v4, %v14716_v16  ;;  %v3754_v27 = vpack.c.bf16 %v14962_v61, %v14971_v5  ;;  %v14988_v16 = vld [vmem:[#allocation5 + $0x18] sm:$0xff]  }
0x2f1a   : > { %v3753_v25 = vpack.c.bf16 %v14968_v35, %v14965_v50 }
0x2f1c   : > { %10601 = vmatprep.mubr.bf16.mxu0 %v3753_v25 }
0x2f1d   : > { %10602 = vmatmul.mubr.bf16.vlgmr.msra.gmra.mxu0 %v3754_v27 }
0x2f1e   : > { %10626 = vmatpush3.bf16.msra.mxu0 %v14897_v23 }
0x2f1f   : > { %10627 = vmatprep.subr.bf16.mxu0 %v14900_v36 }
0x2f22   : > { %10628 = vmatpush3.bf16.msra.mxu0 %v14900_v36 }
0x2f23   : > { %10629 = vmatprep.subr.bf16.mxu0 %v14980_v39 }
0x2f26   : > { %10630 = vmatpush3.bf16.msra.mxu0 %v14980_v39 }
0x2f27   : > { %10631 = vmatprep.subr.bf16.mxu0 %v14984_v29 }
0x2f2a   : > { %10632 = vmatpush3.bf16.msra.mxu0 %v14984_v29 }
0x2f2b   : > { %10633 = vmatprep.subr.bf16.mxu0 %v14988_v16 }
0x2f2e   : > { %10634 = vmatpush3.bf16.msra.mxu0 %v14988_v16 }
0x2f2f   : > { %10635 = vmatprep.subr.bf16.mxu0 %v14992_v14 }
0x2f32   : > { %10636 = vmatpush3.bf16.msra.mxu0 %v14992_v14 }
0x2f33   : > { %10637 = vmatprep.subr.bf16.mxu0 %v14996_v28 }
0x2f36   : > { %10638 = vmatpush3.bf16.msra.mxu0 %v14996_v28 }
0x2f37   : > { %10639 = vmatprep.subr.bf16.mxu0 %v15000_v32 }
0x2f3a   : > { %10640 = vmatpush3.bf16.msra.mxu0 %v15000_v32 }
0x2f3b   : > { %10665 = vmatprep.subr.bf16.mxu0 %v14897_v23 }
0x2fdd   : > { %v10603_v26 = vpop.f32.mrf.mxu0 }
0x2fde   : > { %v3798_v54 = vadd.f32 %v15008_v37, %v10603_v26 }
0x2fdf   : > { %v3789_v45 = vpop.f32.mrf.mxu0 }
0x2fe0   : > { %v3790_v52 = vadd.f32 %v15008_v37, %v3789_v45 }
0x2fe1   : > { %v10604_v46 = vpop.f32.mrf.mxu0 }
0x2fe2   : > { %v3801_v0 = vadd.f32 %v15008_v37, %v10604_v46  ;;  %12338 = vtanh.f32 %v3790_v52 }
0x2fe3   : > { %v3792_v49 = vpop.f32.mrf.mxu0 }
0x2fe4   : > { %v3793_v24 = vadd.f32 %v15008_v37, %v3792_v49  ;;  %12340 = vtanh.f32 %v3801_v0 }
0x2fe6   : > { %12342 = vtanh.f32 %v3793_v24 }
0x2fe7   : > { %12344 = vtanh.f32 %v3798_v54 }
0x2fef   : > { %v12339_v21 = vpop.eup %12338 }
0x2ff1   : > { %v12341_v41 = vpop.eup %12340 }
0x2ff3   : > { %v12343_v48 = vpop.eup %12342 }
0x2ff4   : > { %v12345_v60 = vpop.eup %12344  ;;  %v3808_v7 = vpack.c.bf16 %v12343_v48, %v12339_v21 }
0x2ff5   : > { %v3809_v31 = vpack.c.bf16 %v12341_v41, %v12345_v60 }
0x2ff6   : > { %10621 = vmatprep.mubr.bf16.mxu1 %v3808_v7 }
0x2ff7   : > { %10622 = vmatmul.mubr.bf16.vlgmr.msra.gmra.mxu1 %v3809_v31 }
0x2ff8   : > { %10646 = vmatpush3.bf16.msra.mxu1 %v14921_v17 }
0x2ff9   : > { %10647 = vmatprep.subr.bf16.mxu1 %v14924_v6 }
0x2ffc   : > { %10648 = vmatpush3.bf16.msra.mxu1 %v14924_v6 }
0x2ffd   : > { %10649 = vmatprep.subr.bf16.mxu1 %v14928_v44 }
0x3000   : > { %10650 = vmatpush3.bf16.msra.mxu1 %v14928_v44 }
0x3001   : > { %10651 = vmatprep.subr.bf16.mxu1 %v14932_v47 }
0x3004   : > { %10652 = vmatpush3.bf16.msra.mxu1 %v14932_v47 }
0x3005   : > { %10653 = vmatprep.subr.bf16.mxu1 %v14936_v43 }
0x3008   : > { %10654 = vmatpush3.bf16.msra.mxu1 %v14936_v43 }
0x3009   : > { %10655 = vmatprep.subr.bf16.mxu1 %v14940_v63 }
0x300c   : > { %10656 = vmatpush3.bf16.msra.mxu1 %v14940_v63 }
0x300d   : > { %10657 = vmatprep.subr.bf16.mxu1 %v14944_v13 }
0x3010   : > { %10658 = vmatpush3.bf16.msra.mxu1 %v14944_v13 }
0x3011   : > { %10659 = vmatprep.subr.bf16.mxu1 %v14948_v8 }
0x3014   : > { %10660 = vmatpush3.bf16.msra.mxu1 %v14948_v8 }
0x3015   : > { %10685 = vmatprep.subr.bf16.mxu1 %v14921_v17 }
0x30b7   : > { %v10623_v20 = vpop.f32.mrf.mxu1 }
0x30b8   : > { %v15039_v30 = vadd.f32 %v15033_v33, %v10623_v20 }
0x30b9   : > { %v3844_v57 = vpop.f32.mrf.mxu1 }
0x30ba   : > { %v15036_v42 = vadd.f32 %v15033_v33, %v3844_v57  ;;  %v3861_v1 = vmul.f32 0.03125, %v15039_v30 }
0x30bb   : > { %v10624_v51 = vpop.f32.mrf.mxu1 }
0x30bc   : > { %v15042_v56 = vadd.f32 %v15033_v33, %v10624_v51  ;;  %v3859_v15 = vmul.f32 0.03125, %v15036_v42  ;;  %v3865_v12 = vadd.f32 %v3861_v1, %v14971_v5 }
0x30bd   : > { %v3847_v22 = vpop.f32.mrf.mxu1 }
0x30be   : > { %v3862_v58 = vmul.f32 0.03125, %v15042_v56  ;;  %v15047_v3 = vadd.f32 %v15033_v33, %v3847_v22  ;;  %v3863_v53 = vadd.f32 %v3859_v15, %v14965_v50 }
0x30c0   : > { %v3860_v18 = vmul.f32 0.03125, %v15047_v3  ;;  %v3866_v2 = vadd.f32 %v3862_v58, %v14962_v61 }
0x30c2   : > { %v3864_v38 = vadd.f32 %v3860_v18, %v14968_v35  ;;  %v3868_v9 = vpack.c.bf16 %v3866_v2, %v3865_v12 }
0x30c4   : > { %v3867_v11 = vpack.c.bf16 %v3864_v38, %v3863_v53 }
0x30c6   : > { %10641 = vmatprep.mubr.bf16.mxu0 %v3867_v11 }
0x30c7   : > { %10642 = vmatmul.mubr.bf16.vlgmr.msra.gmra.mxu0 %v3868_v9 }
0x30c8   : > { %10666 = vmatpush3.bf16.msra.mxu0 %v14897_v23 }
0x30c9   : > { %10667 = vmatprep.subr.bf16.mxu0 %v14900_v36 }
0x30cc   : > { %10668 = vmatpush3.bf16.msra.mxu0 %v14900_v36 }
0x30cd   : > { %10669 = vmatprep.subr.bf16.mxu0 %v14980_v39 }
0x30d0   : > { %10670 = vmatpush3.bf16.msra.mxu0 %v14980_v39 }
0x30d1   : > { %10671 = vmatprep.subr.bf16.mxu0 %v14984_v29 }
0x30d4   : > { %10672 = vmatpush3.bf16.msra.mxu0 %v14984_v29 }
0x30d5   : > { %10673 = vmatprep.subr.bf16.mxu0 %v14988_v16 }
0x30d8   : > { %10674 = vmatpush3.bf16.msra.mxu0 %v14988_v16 }
0x30d9   : > { %10675 = vmatprep.subr.bf16.mxu0 %v14992_v14 }
0x30dc   : > { %10676 = vmatpush3.bf16.msra.mxu0 %v14992_v14 }
0x30dd   : > { %10677 = vmatprep.subr.bf16.mxu0 %v14996_v28 }
0x30e0   : > { %10678 = vmatpush3.bf16.msra.mxu0 %v14996_v28 }
0x30e1   : > { %10679 = vmatprep.subr.bf16.mxu0 %v15000_v32 }
0x30e4   : > { %10680 = vmatpush3.bf16.msra.mxu0 %v15000_v32 }
0x30e5   : > { %10705 = vmatprep.subr.bf16.mxu0 %v14897_v23 }
0x3187   : > { %v10643_v34 = vpop.f32.mrf.mxu0 }
0x3188   : > { %v3912_v40 = vadd.f32 %v15008_v37, %v10643_v34 }
0x3189   : > { %v3903_v59 = vpop.f32.mrf.mxu0 }
0x318a   : > { %v3904_v19 = vadd.f32 %v15008_v37, %v3903_v59 }
0x318b   : > { %v10644_v10 = vpop.f32.mrf.mxu0 }
0x318c   : > { %v3915_v55 = vadd.f32 %v15008_v37, %v10644_v10  ;;  %12346 = vtanh.f32 %v3904_v19 }
0x318d   : > { %v3906_v62 = vpop.f32.mrf.mxu0 }
0x318e   : > { %v3907_v4 = vadd.f32 %v15008_v37, %v3906_v62  ;;  %12348 = vtanh.f32 %v3915_v55 }
0x3190   : > { %12350 = vtanh.f32 %v3907_v4 }
0x3191   : > { %12352 = vtanh.f32 %v3912_v40 }
0x3199   : > { %v12347_v25 = vpop.eup %12346 }
0x319b   : > { %v12349_v27 = vpop.eup %12348 }
0x319d   : > { %v12351_v26 = vpop.eup %12350 }
0x319e   : > { %v12353_v45 = vpop.eup %12352  ;;  %v3922_v52 = vpack.c.bf16 %v12351_v26, %v12347_v25 }
0x319f   : > { %v3923_v46 = vpack.c.bf16 %v12349_v27, %v12353_v45 }
0x31a0   : > { %10661 = vmatprep.mubr.bf16.mxu1 %v3922_v52 }
0x31a1   : > { %10662 = vmatmul.mubr.bf16.vlgmr.msra.gmra.mxu1 %v3923_v46 }
0x31a2   : > { %10686 = vmatpush3.bf16.msra.mxu1 %v14921_v17 }
0x31a3   : > { %10687 = vmatprep.subr.bf16.mxu1 %v14924_v6 }
0x31a6   : > { %10688 = vmatpush3.bf16.msra.mxu1 %v14924_v6 }
0x31a7   : > { %10689 = vmatprep.subr.bf16.mxu1 %v14928_v44 }
0x31aa   : > { %10690 = vmatpush3.bf16.msra.mxu1 %v14928_v44 }
0x31ab   : > { %10691 = vmatprep.subr.bf16.mxu1 %v14932_v47 }
0x31ae   : > { %10692 = vmatpush3.bf16.msra.mxu1 %v14932_v47 }
0x31af   : > { %10693 = vmatprep.subr.bf16.mxu1 %v14936_v43 }
0x31b2   : > { %10694 = vmatpush3.bf16.msra.mxu1 %v14936_v43 }
0x31b3   : > { %10695 = vmatprep.subr.bf16.mxu1 %v14940_v63 }
0x31b6   : > { %10696 = vmatpush3.bf16.msra.mxu1 %v14940_v63 }
0x31b7   : > { %10697 = vmatprep.subr.bf16.mxu1 %v14944_v13 }
0x31ba   : > { %10698 = vmatpush3.bf16.msra.mxu1 %v14944_v13 }
0x31bb   : > { %10699 = vmatprep.subr.bf16.mxu1 %v14948_v8 }
0x31be   : > { %10700 = vmatpush3.bf16.msra.mxu1 %v14948_v8 }
0x31bf   : > { %10725 = vmatprep.subr.bf16.mxu1 %v14921_v17 }
0x3261   : > { %v10663_v0 = vpop.f32.mrf.mxu1 }
0x3262   : > { %v15095_v24 = vadd.f32 %v15033_v33, %v10663_v0 }
0x3263   : > { %v3958_v54 = vpop.f32.mrf.mxu1 }
0x3264   : > { %v15092_v49 = vadd.f32 %v15033_v33, %v3958_v54  ;;  %v3983_v31 = vmul.f32 0.03125, %v15095_v24  ;;  %v3975_v25 = vmul.f32 2.0, %v15095_v24 }
0x3265   : > { %v10664_v21 = vpop.f32.mrf.mxu1 }
0x3266   : > { %v15098_v41 = vadd.f32 %v15033_v33, %v10664_v21  ;;  %v3981_v60 = vmul.f32 0.03125, %v15092_v49  ;;  %v3987_v58 = vadd.f32 %v3983_v31, %v14971_v5  ;;  %v3973_v45 = vmul.f32 2.0, %v15092_v49 }
0x3267   : > { %v3961_v48 = vpop.f32.mrf.mxu1  ;;  %v3979_v21 = vadd.f32 %v3975_v25, %v15039_v30 }
0x3268   : > { %v15102_v7 = vadd.f32 %v15033_v33, %v3961_v48  ;;  %v3984_v20 = vmul.f32 0.03125, %v15098_v41  ;;  %v3985_v22 = vadd.f32 %v3981_v60, %v14965_v50  ;;  %v3976_v52 = vmul.f32 2.0, %v15098_v41 }
0x3269   : > { %v3977_v24 = vadd.f32 %v3973_v45, %v15036_v42 }
0x326a   : > { %v3982_v57 = vmul.f32 0.03125, %v15102_v7  ;;  %v3988_v51 = vadd.f32 %v3984_v20, %v14962_v61  ;;  %v3974_v60 = vmul.f32 2.0, %v15102_v7 }
0x326c   : > { %v3986_v15 = vadd.f32 %v3982_v57, %v14968_v35  ;;  %v3990_v18 = vpack.c.bf16 %v3988_v51, %v3987_v58  ;;  %v3980_v57 = vadd.f32 %v3976_v52, %v15042_v56  ;;  %v3978_v7 = vadd.f32 %v3974_v60, %v15047_v3 }
0x326e   : > { %v3989_v1 = vpack.c.bf16 %v3986_v15, %v3985_v22 }
0x3270   : > { %10681 = vmatprep.mubr.bf16.mxu0 %v3989_v1 }
0x3271   : > { %10682 = vmatmul.mubr.bf16.vlgmr.msra.gmra.mxu0 %v3990_v18 }
0x3272   : > { %10706 = vmatpush3.bf16.msra.mxu0 %v14897_v23 }
0x3273   : > { %10707 = vmatprep.subr.bf16.mxu0 %v14900_v36 }
0x3276   : > { %10708 = vmatpush3.bf16.msra.mxu0 %v14900_v36 }
0x3277   : > { %10709 = vmatprep.subr.bf16.mxu0 %v14980_v39 }
0x327a   : > { %10710 = vmatpush3.bf16.msra.mxu0 %v14980_v39 }
0x327b   : > { %10711 = vmatprep.subr.bf16.mxu0 %v14984_v29 }
0x327e   : > { %10712 = vmatpush3.bf16.msra.mxu0 %v14984_v29 }
0x327f   : > { %10713 = vmatprep.subr.bf16.mxu0 %v14988_v16 }
0x3282   : > { %10714 = vmatpush3.bf16.msra.mxu0 %v14988_v16 }
0x3283   : > { %10715 = vmatprep.subr.bf16.mxu0 %v14992_v14 }
0x3286   : > { %10716 = vmatpush3.bf16.msra.mxu0 %v14992_v14 }
0x3287   : > { %10717 = vmatprep.subr.bf16.mxu0 %v14996_v28 }
0x328a   : > { %10718 = vmatpush3.bf16.msra.mxu0 %v14996_v28 }
0x328b   : > { %10719 = vmatprep.subr.bf16.mxu0 %v15000_v32 }
0x328e   : > { %10720 = vmatpush3.bf16.msra.mxu0 %v15000_v32 }
0x328f   : > { %10745 = vmatprep.subr.bf16.mxu0 %v14897_v23 }
0x3331   : > { %v10683_v2 = vpop.f32.mrf.mxu0 }
0x3332   : > { %v4034_v9 = vadd.f32 %v15008_v37, %v10683_v2 }
0x3333   : > { %v4025_v53 = vpop.f32.mrf.mxu0 }
0x3334   : > { %v4026_v38 = vadd.f32 %v15008_v37, %v4025_v53 }
0x3335   : > { %v10684_v12 = vpop.f32.mrf.mxu0 }
0x3336   : > { %v4037_v11 = vadd.f32 %v15008_v37, %v10684_v12  ;;  %12354 = vtanh.f32 %v4026_v38 }
0x3337   : > { %v4028_v34 = vpop.f32.mrf.mxu0 }
0x3338   : > { %v4029_v59 = vadd.f32 %v15008_v37, %v4028_v34  ;;  %12356 = vtanh.f32 %v4037_v11 }
0x333a   : > { %12358 = vtanh.f32 %v4029_v59 }
0x333b   : > { %12360 = vtanh.f32 %v4034_v9 }
0x3343   : > { %v12355_v19 = vpop.eup %12354 }
0x3345   : > { %v12357_v10 = vpop.eup %12356 }
0x3347   : > { %v12359_v55 = vpop.eup %12358 }
0x3348   : > { %v12361_v40 = vpop.eup %12360  ;;  %v4044_v62 = vpack.c.bf16 %v12359_v55, %v12355_v19 }
0x3349   : > { %v4045_v4 = vpack.c.bf16 %v12357_v10, %v12361_v40 }
0x334a   : > { %10701 = vmatprep.mubr.bf16.mxu1 %v4044_v62 }
0x334b   : > { %10702 = vmatmul.mubr.bf16.vlgmr.msra.gmra.mxu1 %v4045_v4 }
0x334c   : > { %10726 = vmatpush3.bf16.msra.mxu1 %v14921_v17 }
0x334d   : > { %10727 = vmatprep.subr.bf16.mxu1 %v14924_v6 }
0x3350   : > { %10728 = vmatpush3.bf16.msra.mxu1 %v14924_v6 }
0x3351   : > { %10729 = vmatprep.subr.bf16.mxu1 %v14928_v44 }
0x3354   : > { %10730 = vmatpush3.bf16.msra.mxu1 %v14928_v44 }
0x3355   : > { %10731 = vmatprep.subr.bf16.mxu1 %v14932_v47 }
0x3358   : > { %10732 = vmatpush3.bf16.msra.mxu1 %v14932_v47 }
0x3359   : > { %10733 = vmatprep.subr.bf16.mxu1 %v14936_v43 }
0x335c   : > { %10734 = vmatpush3.bf16.msra.mxu1 %v14936_v43 }
0x335d   : > { %10735 = vmatprep.subr.bf16.mxu1 %v14940_v63 }
0x3360   : > { %10736 = vmatpush3.bf16.msra.mxu1 %v14940_v63 }
0x3361   : > { %10737 = vmatprep.subr.bf16.mxu1 %v14944_v13 }
0x3364   : > { %10738 = vmatpush3.bf16.msra.mxu1 %v14944_v13 }
0x3365   : > { %10739 = vmatprep.subr.bf16.mxu1 %v14948_v8 }
0x3368   : > { %10740 = vmatpush3.bf16.msra.mxu1 %v14948_v8 }
0x3369   : > { %10765 = vmatprep.subr.bf16.mxu1 %v14921_v17 }
0x340b   : > { %v10703_v27 = vpop.f32.mrf.mxu1 }
0x340c   : > { %v4089_v26 = vadd.f32 %v15033_v33, %v10703_v27 }
0x340d   : > { %v4080_v46 = vpop.f32.mrf.mxu1 }
0x340e   : > { %v4097_v0 = vmul.f32 2.0, %v4089_v26  ;;  %v4081_v54 = vadd.f32 %v15033_v33, %v4080_v46  ;;  %v4105_v1 = vmul.f32 0.0625, %v4089_v26 }
0x340f   : > { %v10704_v48 = vpop.f32.mrf.mxu1 }
0x3410   : > { %v4095_v31 = vmul.f32 2.0, %v4081_v54  ;;  %v4092_v20 = vadd.f32 %v15033_v33, %v10704_v48  ;;  %v15157_v49 = vadd.f32 %v4097_v0, %v3979_v21  ;;  %v4103_v41 = vmul.f32 0.0625, %v4081_v54 }
0x3411   : > { %v4083_v51 = vpop.f32.mrf.mxu1  ;;  %v4109_v11 = vadd.f32 %v4105_v1, %v14971_v5 }
0x3412   : > { %v4098_v22 = vmul.f32 2.0, %v4092_v20  ;;  %v4106_v15 = vmul.f32 0.0625, %v4092_v20  ;;  %v4084_v58 = vadd.f32 %v15033_v33, %v4083_v51  ;;  %v15160_v30 = vadd.f32 %v4095_v31, %v3977_v24 }
0x3413   : > { %v4107_v56 = vadd.f32 %v4103_v41, %v14965_v50 }
0x3414   : > { %v4096_v18 = vmul.f32 2.0, %v4084_v58  ;;  %v4104_v2 = vmul.f32 0.0625, %v4084_v58  ;;  %v15163_v53 = vadd.f32 %v4098_v22, %v3980_v57  ;;  %v4110_v42 = vadd.f32 %v4106_v15, %v14962_v61 }
0x3416   : > { %v4108_v38 = vadd.f32 %v4104_v2, %v14968_v35  ;;  %v15168_v12 = vadd.f32 %v4096_v18, %v3978_v7  ;;  %v4112_v34 = vpack.c.bf16 %v4110_v42, %v4109_v11 }
0x3418   : > { %v4111_v9 = vpack.c.bf16 %v4108_v38, %v4107_v56 }
0x341a   : > { %10721 = vmatprep.mubr.bf16.mxu0 %v4111_v9 }
0x341b   : > { %10722 = vmatmul.mubr.bf16.vlgmr.msra.gmra.mxu0 %v4112_v34 }
0x341c   : > { %10746 = vmatpush3.bf16.msra.mxu0 %v14897_v23 }
0x341d   : > { %10747 = vmatprep.subr.bf16.mxu0 %v14900_v36 }
0x3420   : > { %10748 = vmatpush3.bf16.msra.mxu0 %v14900_v36 }
0x3421   : > { %10749 = vmatprep.subr.bf16.mxu0 %v14980_v39 }
0x3424   : > { %10750 = vmatpush3.bf16.msra.mxu0 %v14980_v39 }
0x3425   : > { %10751 = vmatprep.subr.bf16.mxu0 %v14984_v29 }
0x3428   : > { %10752 = vmatpush3.bf16.msra.mxu0 %v14984_v29 }
0x3429   : > { %10753 = vmatprep.subr.bf16.mxu0 %v14988_v16 }
0x342c   : > { %10754 = vmatpush3.bf16.msra.mxu0 %v14988_v16 }
0x342d   : > { %10755 = vmatprep.subr.bf16.mxu0 %v14992_v14 }
0x3430   : > { %10756 = vmatpush3.bf16.msra.mxu0 %v14992_v14 }
0x3431   : > { %10757 = vmatprep.subr.bf16.mxu0 %v14996_v28 }
0x3434   : > { %10758 = vmatpush3.bf16.msra.mxu0 %v14996_v28 }
0x3435   : > { %10759 = vmatprep.subr.bf16.mxu0 %v15000_v32 }
0x3438   : > { %10760 = vmatpush3.bf16.msra.mxu0 %v15000_v32 }
0x3439   : > { %10785 = vmatprep.subr.bf16.mxu0 %v14897_v23 }
0x34db   : > { %v10723_v3 = vpop.f32.mrf.mxu0 }
0x34dc   : > { %v4156_v40 = vadd.f32 %v15008_v37, %v10723_v3 }
0x34dd   : > { %v4147_v59 = vpop.f32.mrf.mxu0 }
0x34de   : > { %v4148_v19 = vadd.f32 %v15008_v37, %v4147_v59 }
0x34df   : > { %v10724_v10 = vpop.f32.mrf.mxu0 }
0x34e0   : > { %v4159_v55 = vadd.f32 %v15008_v37, %v10724_v10  ;;  %12362 = vtanh.f32 %v4148_v19 }
0x34e1   : > { %v4150_v62 = vpop.f32.mrf.mxu0 }
0x34e2   : > { %v4151_v4 = vadd.f32 %v15008_v37, %v4150_v62  ;;  %12364 = vtanh.f32 %v4159_v55 }
0x34e4   : > { %12366 = vtanh.f32 %v4151_v4 }
0x34e5   : > { %12368 = vtanh.f32 %v4156_v40 }
0x34ed   : > { %v12363_v25 = vpop.eup %12362 }
0x34ef   : > { %v12365_v27 = vpop.eup %12364 }
0x34f1   : > { %v12367_v26 = vpop.eup %12366 }
0x34f2   : > { %v12369_v45 = vpop.eup %12368  ;;  %v4166_v52 = vpack.c.bf16 %v12367_v26, %v12363_v25 }
0x34f3   : > { %v4167_v46 = vpack.c.bf16 %v12365_v27, %v12369_v45 }
0x34f4   : > { %10741 = vmatprep.mubr.bf16.mxu1 %v4166_v52 }
0x34f5   : > { %10742 = vmatmul.mubr.bf16.vlgmr.msra.gmra.mxu1 %v4167_v46 }
0x34f6   : > { %10766 = vmatpush3.bf16.msra.mxu1 %v14921_v17 }
0x34f7   : > { %10767 = vmatprep.subr.bf16.mxu1 %v14924_v6 }
0x34fa   : > { %10768 = vmatpush3.bf16.msra.mxu1 %v14924_v6 }
0x34fb   : > { %10769 = vmatprep.subr.bf16.mxu1 %v14928_v44 }
0x34fe   : > { %10770 = vmatpush3.bf16.msra.mxu1 %v14928_v44 }
0x34ff   : > { %10771 = vmatprep.subr.bf16.mxu1 %v14932_v47 }
0x3502   : > { %10772 = vmatpush3.bf16.msra.mxu1 %v14932_v47 }
0x3503   : > { %10773 = vmatprep.subr.bf16.mxu1 %v14936_v43 }
0x3506   : > { %10774 = vmatpush3.bf16.msra.mxu1 %v14936_v43 }
0x3507   : > { %10775 = vmatprep.subr.bf16.mxu1 %v14940_v63 }
0x350a   : > { %10776 = vmatpush3.bf16.msra.mxu1 %v14940_v63 }
0x350b   : > { %10777 = vmatprep.subr.bf16.mxu1 %v14944_v13 }
0x350e   : > { %10778 = vmatpush3.bf16.msra.mxu1 %v14944_v13 }
0x350f   : > { %10779 = vmatprep.subr.bf16.mxu1 %v14948_v8 }
0x3512   : > { %10780 = vmatpush3.bf16.msra.mxu1 %v14948_v8 }
0x3513   : > { %10805 = vmatprep.subr.bf16.mxu1 %v14921_v17 }
0x35b5   : > { %v10743_v0 = vpop.f32.mrf.mxu1 }
0x35b6   : > { %v4211_v54 = vadd.f32 %v15033_v33, %v10743_v0 }
0x35b7   : > { %v4202_v21 = vpop.f32.mrf.mxu1 }
0x35b8   : > { %v4203_v48 = vadd.f32 %v15033_v33, %v4202_v21  ;;  %v4219_v24 = vadd.f32 %v4211_v54, %v15157_v49 }
0x35b9   : > { %v10744_v60 = vpop.f32.mrf.mxu1 }
0x35ba   : > { %v4217_v31 = vadd.f32 %v4203_v48, %v15160_v30  ;;  %v4214_v20 = vadd.f32 %v15033_v33, %v10744_v60  ;;  %v4223_v1 = vmul.f32 0.010416667, %v4219_v24 }
0x35bb   : > { %v4205_v57 = vpop.f32.mrf.mxu1 }
0x35bc   : > { %v4220_v51 = vadd.f32 %v4214_v20, %v15163_v53  ;;  %v4206_v41 = vadd.f32 %v15033_v33, %v4205_v57  ;;  %v4221_v22 = vmul.f32 0.010416667, %v4217_v31  ;;  %v15225_v49 = vadd.f32 %v4223_v1, %v14971_v5 }
0x35be   : > { %v4224_v15 = vmul.f32 0.010416667, %v4220_v51  ;;  %v4218_v58 = vadd.f32 %v4206_v41, %v15168_v12  ;;  %v15219_v30 = vadd.f32 %v4221_v22, %v14965_v50 }
0x35c0   : > { %v4222_v7 = vmul.f32 0.010416667, %v4218_v58  ;;  %v15216_v18 = vadd.f32 %v4224_v15, %v14962_v61 }
0x35c2   : > { %v15222_v2 = vadd.f32 %v4222_v7, %v14968_v35  ;;  %v4230_v42 = vpack.c.bf16 %v15216_v18, %v15225_v49 }
0x35c4   : > { %v4229_v53 = vpack.c.bf16 %v15222_v2, %v15219_v30 }
0x35c6   : > { %10761 = vmatprep.mubr.bf16.mxu0 %v4229_v53 }
0x35c7   : > { %10762 = vmatmul.mubr.bf16.vlgmr.msra.gmra.mxu0 %v4230_v42 }
0x35c8   : > { %10786 = vmatpush3.bf16.msra.mxu0 %v14897_v23 }
0x35c9   : > { %10787 = vmatprep.subr.bf16.mxu0 %v14900_v36 }
0x35cc   : > { %10788 = vmatpush3.bf16.msra.mxu0 %v14900_v36 }
0x35cd   : > { %10789 = vmatprep.subr.bf16.mxu0 %v14980_v39 }
0x35d0   : > { %10790 = vmatpush3.bf16.msra.mxu0 %v14980_v39 }
0x35d1   : > { %10791 = vmatprep.subr.bf16.mxu0 %v14984_v29 }
0x35d4   : > { %10792 = vmatpush3.bf16.msra.mxu0 %v14984_v29 }
0x35d5   : > { %10793 = vmatprep.subr.bf16.mxu0 %v14988_v16 }
0x35d8   : > { %10794 = vmatpush3.bf16.msra.mxu0 %v14988_v16 }
0x35d9   : > { %10795 = vmatprep.subr.bf16.mxu0 %v14992_v14 }
0x35dc   : > { %10796 = vmatpush3.bf16.msra.mxu0 %v14992_v14 }
0x35dd   : > { %10797 = vmatprep.subr.bf16.mxu0 %v14996_v28 }
0x35e0   : > { %10798 = vmatpush3.bf16.msra.mxu0 %v14996_v28 }
0x35e1   : > { %10799 = vmatprep.subr.bf16.mxu0 %v15000_v32 }
0x35e4   : > { %10800 = vmatpush3.bf16.msra.mxu0 %v15000_v32 }
0x35e5   : > { %10825 = vmatprep.subr.bf16.mxu0 %v14897_v23 }
0x3687   : > { %v10763_v61 = vpop.f32.mrf.mxu0 }
0x3688   : > { %v4274_v38 = vadd.f32 %v15008_v37, %v10763_v61 }
0x3689   : > { %v4265_v50 = vpop.f32.mrf.mxu0 }
0x368a   : > { %v4266_v35 = vadd.f32 %v15008_v37, %v4265_v50 }
0x368b   : > { %v10764_v5 = vpop.f32.mrf.mxu0 }
0x368c   : > { %v4277_v56 = vadd.f32 %v15008_v37, %v10764_v5  ;;  %12370 = vtanh.f32 %v4266_v35 }
0x368d   : > { %v4268_v12 = vpop.f32.mrf.mxu0 }
0x368e   : > { %v4269_v11 = vadd.f32 %v15008_v37, %v4268_v12  ;;  %12372 = vtanh.f32 %v4277_v56 }
0x3690   : > { %12374 = vtanh.f32 %v4269_v11 }
0x3691   : > { %12376 = vtanh.f32 %v4274_v38 }
0x3699   : > { %v12371_v9 = vpop.eup %12370 }
0x369b   : > { %v12373_v34 = vpop.eup %12372 }
0x369d   : > { %v12375_v3 = vpop.eup %12374 }
0x369e   : > { %v12377_v59 = vpop.eup %12376  ;;  %v4284_v19 = vpack.c.bf16 %v12375_v3, %v12371_v9 }
0x369f   : > { %v4285_v10 = vpack.c.bf16 %v12373_v34, %v12377_v59 }
0x36a0   : > { %10781 = vmatprep.mubr.bf16.mxu1 %v4284_v19  ;;  %v15343_v19 = vld [vmem:[#allocation5 + $0x38] sm:$0xff]  }
0x36a1   : > { %10782 = vmatmul.mubr.bf16.vlgmr.msra.gmra.mxu1 %v4285_v10  ;;  %v15346_v10 = vld [vmem:[#allocation5 + $0x30] sm:$0xff]  }
0x36a2   : > { %10806 = vmatpush3.bf16.msra.mxu1 %v14921_v17 }
0x36a3   : > { %10807 = vmatprep.subr.bf16.mxu1 %v14924_v6 }
0x36a6   : > { %10808 = vmatpush3.bf16.msra.mxu1 %v14924_v6 }
0x36a7   : > { %10809 = vmatprep.subr.bf16.mxu1 %v14928_v44 }
0x36aa   : > { %10810 = vmatpush3.bf16.msra.mxu1 %v14928_v44 }
0x36ab   : > { %10811 = vmatprep.subr.bf16.mxu1 %v14932_v47 }
0x36ae   : > { %10812 = vmatpush3.bf16.msra.mxu1 %v14932_v47 }
0x36af   : > { %10813 = vmatprep.subr.bf16.mxu1 %v14936_v43 }
0x36b2   : > { %10814 = vmatpush3.bf16.msra.mxu1 %v14936_v43 }
0x36b3   : > { %10815 = vmatprep.subr.bf16.mxu1 %v14940_v63 }
0x36b6   : > { %10816 = vmatpush3.bf16.msra.mxu1 %v14940_v63 }
0x36b7   : > { %10817 = vmatprep.subr.bf16.mxu1 %v14944_v13 }
0x36ba   : > { %10818 = vmatpush3.bf16.msra.mxu1 %v14944_v13 }
0x36bb   : > { %10819 = vmatprep.subr.bf16.mxu1 %v14948_v8 }
0x36be   : > { %10820 = vmatpush3.bf16.msra.mxu1 %v14948_v8 }
0x36bf   : > { %10845 = vmatprep.subr.bf16.mxu1 %v14921_v17 }
0x3761   : > { %v10783_v55 = vpop.f32.mrf.mxu1 }
0x3762   : > { %v15271_v4 = vadd.f32 %v15033_v33, %v10783_v55 }
0x3763   : > { %v4320_v40 = vpop.f32.mrf.mxu1 }
0x3764   : > { %v15268_v62 = vadd.f32 %v15033_v33, %v4320_v40  ;;  %v4337_v0 = vmul.f32 0.03125, %v15271_v4 }
0x3765   : > { %v10784_v25 = vpop.f32.mrf.mxu1 }
0x3766   : > { %v15274_v27 = vadd.f32 %v15033_v33, %v10784_v25  ;;  %v4335_v45 = vmul.f32 0.03125, %v15268_v62  ;;  %v4341_v31 = vadd.f32 %v4337_v0, %v15225_v49 }
0x3767   : > { %v4323_v26 = vpop.f32.mrf.mxu1 }
0x3768   : > { %v4338_v52 = vmul.f32 0.03125, %v15274_v27  ;;  %v15279_v46 = vadd.f32 %v15033_v33, %v4323_v26  ;;  %v4339_v48 = vadd.f32 %v4335_v45, %v15219_v30 }
0x376a   : > { %v4336_v54 = vmul.f32 0.03125, %v15279_v46  ;;  %v4342_v21 = vadd.f32 %v4338_v52, %v15216_v18 }
0x376c   : > { %v4340_v60 = vadd.f32 %v4336_v54, %v15222_v2  ;;  %v4344_v24 = vpack.c.bf16 %v4342_v21, %v4341_v31  ;;  %v15367_v21 = vld [vmem:[#allocation7 + $0x38] sm:$0xff]  }
0x376d   : > { %v15382_v31 = vld [vmem:[#allocation7 + $0x18] sm:$0xff]  }
0x376e   : > { %v4343_v20 = vpack.c.bf16 %v4340_v60, %v4339_v48  ;;  %v15370_v48 = vld [vmem:[#allocation7 + $0x30] sm:$0xff]   ;;  %v15378_v60 = vld [vmem:[#allocation7 + $0x20] sm:$0xff]  }
0x3770   : > { %10801 = vmatprep.mubr.bf16.mxu0 %v4343_v20  ;;  %v15386_v20 = vld [vmem:[#allocation7 + $0x10] sm:$0xff]  }
0x3771   : > { %10802 = vmatmul.mubr.bf16.vlgmr.msra.gmra.mxu0 %v4344_v24  ;;  %v15390_v24 = vld [vmem:[#allocation7 + $0x8] sm:$0xff]  }
0x3772   : > { %10826 = vmatpush3.bf16.msra.mxu0 %v14897_v23 }
0x3773   : > { %10827 = vmatprep.subr.bf16.mxu0 %v14900_v36 }
0x3776   : > { %10828 = vmatpush3.bf16.msra.mxu0 %v14900_v36 }
0x3777   : > { %10829 = vmatprep.subr.bf16.mxu0 %v14980_v39 }
0x377a   : > { %10830 = vmatpush3.bf16.msra.mxu0 %v14980_v39 }
0x377b   : > { %10831 = vmatprep.subr.bf16.mxu0 %v14984_v29 }
0x377e   : > { %10832 = vmatpush3.bf16.msra.mxu0 %v14984_v29 }
0x377f   : > { %10833 = vmatprep.subr.bf16.mxu0 %v14988_v16 }
0x3782   : > { %10834 = vmatpush3.bf16.msra.mxu0 %v14988_v16 }
0x3783   : > { %10835 = vmatprep.subr.bf16.mxu0 %v14992_v14 }
0x3786   : > { %10836 = vmatpush3.bf16.msra.mxu0 %v14992_v14 }
0x3787   : > { %10837 = vmatprep.subr.bf16.mxu0 %v14996_v28 }
0x378a   : > { %10838 = vmatpush3.bf16.msra.mxu0 %v14996_v28 }
0x378b   : > { %10839 = vmatprep.subr.bf16.mxu0 %v15000_v32 }
0x378e   : > { %10840 = vmatpush3.bf16.msra.mxu0 %v15000_v32 }
0x378f   : > { %10865 = vmatprep.subr.bf16.mxu0 %v14897_v23 }
0x3831   : > { %v10803_v36 = vpop.f32.mrf.mxu0 }
0x3832   : > { %v4388_v15 = vadd.f32 %v15008_v37, %v10803_v36  ;;  %v15394_v36 = vld [vmem:[#allocation7] sm:$0xff]  }
0x3833   : > { %v4379_v57 = vpop.f32.mrf.mxu0 }
0x3834   : > { %v4380_v51 = vadd.f32 %v15008_v37, %v4379_v57 }
0x3835   : > { %v10804_v41 = vpop.f32.mrf.mxu0 }
0x3836   : > { %v4391_v22 = vadd.f32 %v15008_v37, %v10804_v41  ;;  %12378 = vtanh.f32 %v4380_v51 }
0x3837   : > { %v4382_v58 = vpop.f32.mrf.mxu0 }
0x3838   : > { %v4383_v1 = vadd.f32 %v15008_v37, %v4382_v58  ;;  %12380 = vtanh.f32 %v4391_v22 }
0x383a   : > { %12382 = vtanh.f32 %v4383_v1 }
0x383b   : > { %12384 = vtanh.f32 %v4388_v15 }
0x3843   : > { %v12379_v7 = vpop.eup %12378 }
0x3845   : > { %v12381_v53 = vpop.eup %12380 }
0x3847   : > { %v12383_v42 = vpop.eup %12382 }
0x3848   : > { %v12385_v23 = vpop.eup %12384  ;;  %v4398_v61 = vpack.c.bf16 %v12383_v42, %v12379_v7 }
0x3849   : > { %v4399_v50 = vpack.c.bf16 %v12381_v53, %v12385_v23 }
0x384a   : > { %10821 = vmatprep.mubr.bf16.mxu1 %v4398_v61 }
0x384b   : > { %10822 = vmatmul.mubr.bf16.vlgmr.msra.gmra.mxu1 %v4399_v50 }
0x384c   : > { %10846 = vmatpush3.bf16.msra.mxu1 %v14921_v17 }
0x384d   : > { %10847 = vmatprep.subr.bf16.mxu1 %v14924_v6 }
0x3850   : > { %10848 = vmatpush3.bf16.msra.mxu1 %v14924_v6 }
0x3851   : > { %10849 = vmatprep.subr.bf16.mxu1 %v14928_v44 }
0x3854   : > { %10850 = vmatpush3.bf16.msra.mxu1 %v14928_v44 }
0x3855   : > { %10851 = vmatprep.subr.bf16.mxu1 %v14932_v47 }
0x3858   : > { %10852 = vmatpush3.bf16.msra.mxu1 %v14932_v47 }
0x3859   : > { %10853 = vmatprep.subr.bf16.mxu1 %v14936_v43 }
0x385c   : > { %10854 = vmatpush3.bf16.msra.mxu1 %v14936_v43 }
0x385d   : > { %10855 = vmatprep.subr.bf16.mxu1 %v14940_v63 }
0x3860   : > { %10856 = vmatpush3.bf16.msra.mxu1 %v14940_v63 }
0x3861   : > { %10857 = vmatprep.subr.bf16.mxu1 %v14944_v13 }
0x3864   : > { %10858 = vmatpush3.bf16.msra.mxu1 %v14944_v13 }
0x3865   : > { %10859 = vmatprep.subr.bf16.mxu1 %v14948_v8 }
0x3868   : > { %10860 = vmatpush3.bf16.msra.mxu1 %v14948_v8 }
0x3869   : > { %10885 = vmatprep.subr.bf16.mxu1 %v14921_v17 }
0x390b   : > { %v10823_v6 = vpop.f32.mrf.mxu1 }
0x390c   : > { %v15327_v43 = vadd.f32 %v15033_v33, %v10823_v6 }
0x390d   : > { %v4434_v44 = vpop.f32.mrf.mxu1 }
0x390e   : > { %v15324_v47 = vadd.f32 %v15033_v33, %v4434_v44  ;;  %v4459_v17 = vmul.f32 0.03125, %v15327_v43  ;;  %v4451_v57 = vmul.f32 2.0, %v15327_v43 }
0x390f   : > { %v10824_v35 = vpop.f32.mrf.mxu1 }
0x3910   : > { %v15330_v63 = vadd.f32 %v15033_v33, %v10824_v35  ;;  %v4457_v13 = vmul.f32 0.03125, %v15324_v47  ;;  %v4463_v34 = vadd.f32 %v4459_v17, %v15225_v49  ;;  %v4449_v22 = vmul.f32 2.0, %v15324_v47 }
0x3911   : > { %v4437_v5 = vpop.f32.mrf.mxu1  ;;  %v4455_v53 = vadd.f32 %v4451_v57, %v15271_v4 }
0x3912   : > { %v15334_v56 = vadd.f32 %v15033_v33, %v4437_v5  ;;  %v4460_v8 = vmul.f32 0.03125, %v15330_v63  ;;  %v4461_v11 = vadd.f32 %v4457_v13, %v15219_v30  ;;  %v4452_v15 = vmul.f32 2.0, %v15330_v63 }
0x3913   : > { %v4453_v6 = vadd.f32 %v4449_v22, %v15268_v62 }
0x3914   : > { %v4458_v38 = vmul.f32 0.03125, %v15334_v56  ;;  %v4464_v12 = vadd.f32 %v4460_v8, %v15216_v18  ;;  %v4450_v23 = vmul.f32 2.0, %v15334_v56  ;;  %v4456_v44 = vadd.f32 %v4452_v15, %v15274_v27 }
0x3916   : > { %v4462_v9 = vadd.f32 %v4458_v38, %v15222_v2  ;;  %v4466_v59 = vpack.c.bf16 %v4464_v12, %v4463_v34  ;;  %v4454_v56 = vadd.f32 %v4450_v23, %v15279_v46  ;;  %v15426_v46 = vld [vmem:[#allocation5 + $0x28] sm:$0xff]  }
0x3918   : > { %v4465_v3 = vpack.c.bf16 %v4462_v9, %v4461_v11 }
0x391a   : > { %10841 = vmatprep.mubr.bf16.mxu0 %v4465_v3 }
0x391b   : > { %10842 = vmatmul.mubr.bf16.vlgmr.msra.gmra.mxu0 %v4466_v59  ;;  %v15430_v59 = vld [vmem:[#allocation5 + $0x20] sm:$0xff]  }
0x391c   : > { %10866 = vmatpush3.bf16.msra.mxu0 %v15343_v19 }
0x391d   : > { %10867 = vmatprep.subr.bf16.mxu0 %v15346_v10 }
0x3920   : > { %10868 = vmatpush3.bf16.msra.mxu0 %v15346_v10 }
0x3921   : > { %10869 = vmatprep.subr.bf16.mxu0 %v14980_v39 }
0x3924   : > { %10870 = vmatpush3.bf16.msra.mxu0 %v14980_v39 }
0x3925   : > { %10871 = vmatprep.subr.bf16.mxu0 %v14984_v29 }
0x3928   : > { %10872 = vmatpush3.bf16.msra.mxu0 %v14984_v29 }
0x3929   : > { %10873 = vmatprep.subr.bf16.mxu0 %v14988_v16 }
0x392c   : > { %10874 = vmatpush3.bf16.msra.mxu0 %v14988_v16 }
0x392d   : > { %10875 = vmatprep.subr.bf16.mxu0 %v14992_v14 }
0x3930   : > { %10876 = vmatpush3.bf16.msra.mxu0 %v14992_v14 }
0x3931   : > { %10877 = vmatprep.subr.bf16.mxu0 %v14996_v28 }
0x3934   : > { %10878 = vmatpush3.bf16.msra.mxu0 %v14996_v28 }
0x3935   : > { %10879 = vmatprep.subr.bf16.mxu0 %v15000_v32 }
0x3938   : > { %10880 = vmatpush3.bf16.msra.mxu0 %v15000_v32 }
0x3939   : > { %10905 = vmatprep.subr.bf16.mxu0 %v15343_v19 }
0x39db   : > { %v10843_v39 = vpop.f32.mrf.mxu0 }
0x39dc   : > { %v4510_v25 = vadd.f32 %v15008_v37, %v10843_v39  ;;  %v15434_v39 = vld [vmem:[#allocation5 + $0x18] sm:$0xff]  }
0x39dd   : > { %v4501_v29 = vpop.f32.mrf.mxu0 }
0x39de   : > { %v4502_v55 = vadd.f32 %v15008_v37, %v4501_v29  ;;  %v15438_v29 = vld [vmem:[#allocation5 + $0x10] sm:$0xff]  }
0x39df   : > { %v10844_v40 = vpop.f32.mrf.mxu0 }
0x39e0   : > { %v4513_v16 = vadd.f32 %v15008_v37, %v10844_v40  ;;  %12386 = vtanh.f32 %v4502_v55  ;;  %v15442_v55 = vld [vmem:[#allocation5 + $0x8] sm:$0xff]   ;;  %v15446_v40 = vld [vmem:[#allocation5] sm:$0xff]  }
0x39e1   : > { %v4504_v14 = vpop.f32.mrf.mxu0 }
0x39e2   : > { %v4505_v26 = vadd.f32 %v15008_v37, %v4504_v14  ;;  %12388 = vtanh.f32 %v4513_v16  ;;  %v15374_v37 = vld [vmem:[#allocation7 + $0x28] sm:$0xff]   ;;  %v15454_v14 = vld [vmem:[%s17232_s2] ss:$0 sm:$0xff] }
0x39e4   : > { %12390 = vtanh.f32 %v4505_v26 }
0x39e5   : > { %12392 = vtanh.f32 %v4510_v25 }
0x39ed   : > { %v12387_v28 = vpop.eup %12386 }
0x39ef   : > { %v12389_v32 = vpop.eup %12388 }
0x39f1   : > { %v12391_v45 = vpop.eup %12390 }
0x39f2   : > { %v12393_v52 = vpop.eup %12392  ;;  %v4520_v0 = vpack.c.bf16 %v12391_v45, %v12387_v28 }
0x39f3   : > { %v4521_v54 = vpack.c.bf16 %v12389_v32, %v12393_v52 }
0x39f4   : > { %10861 = vmatprep.mubr.bf16.mxu1 %v4520_v0 }
0x39f5   : > { %10862 = vmatmul.mubr.bf16.vlgmr.msra.gmra.mxu1 %v4521_v54 }
0x39f6   : > { %10886 = vmatpush3.bf16.msra.mxu1 %v15367_v21 }
0x39f7   : > { %10887 = vmatprep.subr.bf16.mxu1 %v15370_v48 }
0x39fa   : > { %10888 = vmatpush3.bf16.msra.mxu1 %v15370_v48 }
0x39fb   : > { %10889 = vmatprep.subr.bf16.mxu1 %v15374_v37 }
0x39fe   : > { %10890 = vmatpush3.bf16.msra.mxu1 %v15374_v37 }
0x39ff   : > { %10891 = vmatprep.subr.bf16.mxu1 %v15378_v60 }
0x3a02   : > { %10892 = vmatpush3.bf16.msra.mxu1 %v15378_v60 }
0x3a03   : > { %10893 = vmatprep.subr.bf16.mxu1 %v15382_v31 }
0x3a06   : > { %10894 = vmatpush3.bf16.msra.mxu1 %v15382_v31 }
0x3a07   : > { %10895 = vmatprep.subr.bf16.mxu1 %v15386_v20 }
0x3a0a   : > { %10896 = vmatpush3.bf16.msra.mxu1 %v15386_v20 }
0x3a0b   : > { %10897 = vmatprep.subr.bf16.mxu1 %v15390_v24 }
0x3a0e   : > { %10898 = vmatpush3.bf16.msra.mxu1 %v15390_v24 }
0x3a0f   : > { %10899 = vmatprep.subr.bf16.mxu1 %v15394_v36 }
0x3a12   : > { %10900 = vmatpush3.bf16.msra.mxu1 %v15394_v36 }
0x3a13   : > { %10925 = vmatprep.subr.bf16.mxu1 %v15367_v21 }
0x3ab5   : > { %v10863_v51 = vpop.f32.mrf.mxu1 }
0x3ab6   : > { %v4565_v41 = vadd.f32 %v15033_v33, %v10863_v51 }
0x3ab7   : > { %v4556_v58 = vpop.f32.mrf.mxu1 }
0x3ab8   : > { %v4573_v1 = vmul.f32 2.0, %v4565_v41  ;;  %v4557_v7 = vadd.f32 %v15033_v33, %v4556_v58  ;;  %v4581_v17 = vmul.f32 0.0625, %v4565_v41 }
0x3ab9   : > { %v10864_v42 = vpop.f32.mrf.mxu1 }
0x3aba   : > { %v4571_v61 = vmul.f32 2.0, %v4557_v7  ;;  %v4568_v50 = vadd.f32 %v15033_v33, %v10864_v42  ;;  %v15409_v47 = vadd.f32 %v4573_v1, %v4455_v53  ;;  %v4579_v35 = vmul.f32 0.0625, %v4557_v7  ;;  %v15479_v1 = vld [vmem:[%s17234_s4] ss:$0 sm:$0xff] }
0x3abb   : > { %v4559_v43 = vpop.f32.mrf.mxu1  ;;  %v4585_v34 = vadd.f32 %v4581_v17, %v15225_v49 }
0x3abc   : > { %v4574_v63 = vmul.f32 2.0, %v4568_v50  ;;  %v4582_v5 = vmul.f32 0.0625, %v4568_v50  ;;  %v4560_v13 = vadd.f32 %v15033_v33, %v4559_v43  ;;  %v15412_v4 = vadd.f32 %v4571_v61, %v4453_v6 }
0x3abd   : > { %v4583_v27 = vadd.f32 %v4579_v35, %v15219_v30 }
0x3abe   : > { %v4572_v8 = vmul.f32 2.0, %v4560_v13  ;;  %v4580_v38 = vmul.f32 0.0625, %v4560_v13  ;;  %v15415_v12 = vadd.f32 %v4574_v63, %v4456_v44  ;;  %v4586_v62 = vadd.f32 %v4582_v5, %v15216_v18 }
0x3ac0   : > { %v4584_v11 = vadd.f32 %v4580_v38, %v15222_v2  ;;  %v15420_v9 = vadd.f32 %v4572_v8, %v4454_v56  ;;  %v4588_v3 = vpack.c.bf16 %v4586_v62, %v4585_v34 }
0x3ac2   : > { %v4587_v33 = vpack.c.bf16 %v4584_v11, %v4583_v27 }
0x3ac4   : > { %10881 = vmatprep.mubr.bf16.mxu0 %v4587_v33 }
0x3ac5   : > { %10882 = vmatmul.mubr.bf16.vlgmr.msra.gmra.mxu0 %v4588_v3 }
0x3ac6   : > { %10906 = vmatpush3.bf16.msra.mxu0 %v15343_v19 }
0x3ac7   : > { %10907 = vmatprep.subr.bf16.mxu0 %v15346_v10 }
0x3aca   : > { %10908 = vmatpush3.bf16.msra.mxu0 %v15346_v10 }
0x3acb   : > { %10909 = vmatprep.subr.bf16.mxu0 %v15426_v46 }
0x3ace   : > { %10910 = vmatpush3.bf16.msra.mxu0 %v15426_v46 }
0x3acf   : > { %10911 = vmatprep.subr.bf16.mxu0 %v15430_v59 }
0x3ad2   : > { %10912 = vmatpush3.bf16.msra.mxu0 %v15430_v59 }
0x3ad3   : > { %10913 = vmatprep.subr.bf16.mxu0 %v15434_v39 }
0x3ad6   : > { %10914 = vmatpush3.bf16.msra.mxu0 %v15434_v39 }
0x3ad7   : > { %10915 = vmatprep.subr.bf16.mxu0 %v15438_v29 }
0x3ada   : > { %10916 = vmatpush3.bf16.msra.mxu0 %v15438_v29 }
0x3adb   : > { %10917 = vmatprep.subr.bf16.mxu0 %v15442_v55 }
0x3ade   : > { %10918 = vmatpush3.bf16.msra.mxu0 %v15442_v55 }
0x3adf   : > { %10919 = vmatprep.subr.bf16.mxu0 %v15446_v40 }
0x3ae2   : > { %10920 = vmatpush3.bf16.msra.mxu0 %v15446_v40 }
0x3ae3   : > { %10945 = vmatprep.subr.bf16.mxu0 %v15343_v19 }
0x3b85   : > { %v10883_v16 = vpop.f32.mrf.mxu0 }
0x3b86   : > { %v4632_v45 = vadd.f32 %v15454_v14, %v10883_v16 }
0x3b87   : > { %v4623_v25 = vpop.f32.mrf.mxu0 }
0x3b88   : > { %v4624_v26 = vadd.f32 %v15454_v14, %v4623_v25 }
0x3b89   : > { %v10884_v28 = vpop.f32.mrf.mxu0 }
0x3b8a   : > { %v4635_v32 = vadd.f32 %v15454_v14, %v10884_v28  ;;  %12394 = vtanh.f32 %v4624_v26 }
0x3b8b   : > { %v4626_v52 = vpop.f32.mrf.mxu0 }
0x3b8c   : > { %v4627_v0 = vadd.f32 %v15454_v14, %v4626_v52  ;;  %12396 = vtanh.f32 %v4635_v32 }
0x3b8e   : > { %12398 = vtanh.f32 %v4627_v0 }
0x3b8f   : > { %12400 = vtanh.f32 %v4632_v45 }
0x3b97   : > { %v12395_v54 = vpop.eup %12394 }
0x3b99   : > { %v12397_v57 = vpop.eup %12396 }
0x3b9b   : > { %v12399_v51 = vpop.eup %12398 }
0x3b9c   : > { %v12401_v41 = vpop.eup %12400  ;;  %v4642_v22 = vpack.c.bf16 %v12399_v51, %v12395_v54 }
0x3b9d   : > { %v4643_v15 = vpack.c.bf16 %v12397_v57, %v12401_v41 }
0x3b9e   : > { %10901 = vmatprep.mubr.bf16.mxu1 %v4642_v22 }
0x3b9f   : > { %10902 = vmatmul.mubr.bf16.vlgmr.msra.gmra.mxu1 %v4643_v15 }
0x3ba0   : > { %10926 = vmatpush3.bf16.msra.mxu1 %v15367_v21 }
0x3ba1   : > { %10927 = vmatprep.subr.bf16.mxu1 %v15370_v48 }
0x3ba4   : > { %10928 = vmatpush3.bf16.msra.mxu1 %v15370_v48 }
0x3ba5   : > { %10929 = vmatprep.subr.bf16.mxu1 %v15374_v37 }
0x3ba8   : > { %10930 = vmatpush3.bf16.msra.mxu1 %v15374_v37 }
0x3ba9   : > { %10931 = vmatprep.subr.bf16.mxu1 %v15378_v60 }
0x3bac   : > { %10932 = vmatpush3.bf16.msra.mxu1 %v15378_v60 }
0x3bad   : > { %10933 = vmatprep.subr.bf16.mxu1 %v15382_v31 }
0x3bb0   : > { %10934 = vmatpush3.bf16.msra.mxu1 %v15382_v31 }
0x3bb1   : > { %10935 = vmatprep.subr.bf16.mxu1 %v15386_v20 }
0x3bb4   : > { %10936 = vmatpush3.bf16.msra.mxu1 %v15386_v20 }
0x3bb5   : > { %10937 = vmatprep.subr.bf16.mxu1 %v15390_v24 }
0x3bb8   : > { %10938 = vmatpush3.bf16.msra.mxu1 %v15390_v24 }
0x3bb9   : > { %10939 = vmatprep.subr.bf16.mxu1 %v15394_v36 }
0x3bbc   : > { %10940 = vmatpush3.bf16.msra.mxu1 %v15394_v36 }
0x3bbd   : > { %10965 = vmatprep.subr.bf16.mxu1 %v15367_v21 }
0x3c5f   : > { %v10903_v58 = vpop.f32.mrf.mxu1 }
0x3c60   : > { %v4687_v7 = vadd.f32 %v15479_v1, %v10903_v58 }
0x3c61   : > { %v4678_v53 = vpop.f32.mrf.mxu1 }
0x3c62   : > { %v4679_v42 = vadd.f32 %v15479_v1, %v4678_v53  ;;  %v4695_v6 = vadd.f32 %v4687_v7, %v15409_v47 }
0x3c63   : > { %v10904_v23 = vpop.f32.mrf.mxu1 }
0x3c64   : > { %v4693_v61 = vadd.f32 %v4679_v42, %v15412_v4  ;;  %v4690_v50 = vadd.f32 %v15479_v1, %v10904_v23  ;;  %v4699_v17 = vmul.f32 0.010416667, %v4695_v6 }
0x3c65   : > { %v4681_v44 = vpop.f32.mrf.mxu1 }
0x3c66   : > { %v4696_v43 = vadd.f32 %v4690_v50, %v15415_v12  ;;  %v4682_v35 = vadd.f32 %v15479_v1, %v4681_v44  ;;  %v4697_v63 = vmul.f32 0.010416667, %v4693_v61  ;;  %v15499_v47 = vadd.f32 %v4699_v17, %v15225_v49 }
0x3c68   : > { %v4700_v5 = vmul.f32 0.010416667, %v4696_v43  ;;  %v4694_v13 = vadd.f32 %v4682_v35, %v15420_v9  ;;  %v15493_v4 = vadd.f32 %v4697_v63, %v15219_v30 }
0x3c6a   : > { %v4698_v56 = vmul.f32 0.010416667, %v4694_v13  ;;  %v15490_v8 = vadd.f32 %v4700_v5, %v15216_v18 }
0x3c6c   : > { %v15496_v38 = vadd.f32 %v4698_v56, %v15222_v2  ;;  %v4706_v62 = vpack.c.bf16 %v15490_v8, %v15499_v47 }
0x3c6e   : > { %v4705_v12 = vpack.c.bf16 %v15496_v38, %v15493_v4 }
0x3c70   : > { %10921 = vmatprep.mubr.bf16.mxu0 %v4705_v12 }
0x3c71   : > { %10922 = vmatmul.mubr.bf16.vlgmr.msra.gmra.mxu0 %v4706_v62 }
0x3c72   : > { %10946 = vmatpush3.bf16.msra.mxu0 %v15343_v19 }
0x3c73   : > { %10947 = vmatprep.subr.bf16.mxu0 %v15346_v10 }
0x3c76   : > { %10948 = vmatpush3.bf16.msra.mxu0 %v15346_v10 }
0x3c77   : > { %10949 = vmatprep.subr.bf16.mxu0 %v15426_v46 }
0x3c7a   : > { %10950 = vmatpush3.bf16.msra.mxu0 %v15426_v46 }
0x3c7b   : > { %10951 = vmatprep.subr.bf16.mxu0 %v15430_v59 }
0x3c7e   : > { %10952 = vmatpush3.bf16.msra.mxu0 %v15430_v59 }
0x3c7f   : > { %10953 = vmatprep.subr.bf16.mxu0 %v15434_v39 }
0x3c82   : > { %10954 = vmatpush3.bf16.msra.mxu0 %v15434_v39 }
0x3c83   : > { %10955 = vmatprep.subr.bf16.mxu0 %v15438_v29 }
0x3c86   : > { %10956 = vmatpush3.bf16.msra.mxu0 %v15438_v29 }
0x3c87   : > { %10957 = vmatprep.subr.bf16.mxu0 %v15442_v55 }
0x3c8a   : > { %10958 = vmatpush3.bf16.msra.mxu0 %v15442_v55 }
0x3c8b   : > { %10959 = vmatprep.subr.bf16.mxu0 %v15446_v40 }
0x3c8e   : > { %10960 = vmatpush3.bf16.msra.mxu0 %v15446_v40 }
0x3c8f   : > { %10985 = vmatprep.subr.bf16.mxu0 %v15343_v19 }
0x3d31   : > { %v10923_v18 = vpop.f32.mrf.mxu0 }
0x3d32   : > { %v4750_v11 = vadd.f32 %v15454_v14, %v10923_v18 }
0x3d33   : > { %v4741_v30 = vpop.f32.mrf.mxu0 }
0x3d34   : > { %v4742_v2 = vadd.f32 %v15454_v14, %v4741_v30 }
0x3d35   : > { %v10924_v49 = vpop.f32.mrf.mxu0 }
0x3d36   : > { %v4753_v27 = vadd.f32 %v15454_v14, %v10924_v49  ;;  %12402 = vtanh.f32 %v4742_v2 }
0x3d37   : > { %v4744_v9 = vpop.f32.mrf.mxu0 }
0x3d38   : > { %v4745_v34 = vadd.f32 %v15454_v14, %v4744_v9  ;;  %12404 = vtanh.f32 %v4753_v27 }
0x3d3a   : > { %12406 = vtanh.f32 %v4745_v34 }
0x3d3b   : > { %12408 = vtanh.f32 %v4750_v11 }
0x3d43   : > { %v12403_v33 = vpop.eup %12402 }
0x3d45   : > { %v12405_v3 = vpop.eup %12404 }
0x3d47   : > { %v12407_v16 = vpop.eup %12406 }
0x3d48   : > { %v12409_v25 = vpop.eup %12408  ;;  %v4760_v26 = vpack.c.bf16 %v12407_v16, %v12403_v33 }
0x3d49   : > { %v4761_v28 = vpack.c.bf16 %v12405_v3, %v12409_v25 }
0x3d4a   : > { %10941 = vmatprep.mubr.bf16.mxu1 %v4760_v26 }
0x3d4b   : > { %10942 = vmatmul.mubr.bf16.vlgmr.msra.gmra.mxu1 %v4761_v28 }
0x3d4c   : > { %10966 = vmatpush3.bf16.msra.mxu1 %v15367_v21 }
0x3d4d   : > { %10967 = vmatprep.subr.bf16.mxu1 %v15370_v48 }
0x3d50   : > { %10968 = vmatpush3.bf16.msra.mxu1 %v15370_v48 }
0x3d51   : > { %10969 = vmatprep.subr.bf16.mxu1 %v15374_v37 }
0x3d54   : > { %10970 = vmatpush3.bf16.msra.mxu1 %v15374_v37 }
0x3d55   : > { %10971 = vmatprep.subr.bf16.mxu1 %v15378_v60 }
0x3d58   : > { %10972 = vmatpush3.bf16.msra.mxu1 %v15378_v60 }
0x3d59   : > { %10973 = vmatprep.subr.bf16.mxu1 %v15382_v31 }
0x3d5c   : > { %10974 = vmatpush3.bf16.msra.mxu1 %v15382_v31 }
0x3d5d   : > { %10975 = vmatprep.subr.bf16.mxu1 %v15386_v20 }
0x3d60   : > { %10976 = vmatpush3.bf16.msra.mxu1 %v15386_v20 }
0x3d61   : > { %10977 = vmatprep.subr.bf16.mxu1 %v15390_v24 }
0x3d64   : > { %10978 = vmatpush3.bf16.msra.mxu1 %v15390_v24 }
0x3d65   : > { %10979 = vmatprep.subr.bf16.mxu1 %v15394_v36 }
0x3d68   : > { %10980 = vmatpush3.bf16.msra.mxu1 %v15394_v36 }
0x3d69   : > { %11005 = vmatprep.subr.bf16.mxu1 %v15367_v21 }
0x3e0b   : > { %v10943_v32 = vpop.f32.mrf.mxu1 }
0x3e0c   : > { %v15545_v0 = vadd.f32 %v15479_v1, %v10943_v32 }
0x3e0d   : > { %v4796_v45 = vpop.f32.mrf.mxu1 }
0x3e0e   : > { %v15542_v52 = vadd.f32 %v15479_v1, %v4796_v45  ;;  %v4813_v58 = vmul.f32 0.03125, %v15545_v0 }
0x3e0f   : > { %v10944_v54 = vpop.f32.mrf.mxu1 }
0x3e10   : > { %v15548_v57 = vadd.f32 %v15479_v1, %v10944_v54  ;;  %v4811_v41 = vmul.f32 0.03125, %v15542_v52  ;;  %v4817_v61 = vadd.f32 %v4813_v58, %v15499_v47 }
0x3e11   : > { %v4799_v51 = vpop.f32.mrf.mxu1 }
0x3e12   : > { %v4814_v22 = vmul.f32 0.03125, %v15548_v57  ;;  %v15553_v15 = vadd.f32 %v15479_v1, %v4799_v51  ;;  %v4815_v42 = vadd.f32 %v4811_v41, %v15493_v4 }
0x3e14   : > { %v4812_v7 = vmul.f32 0.03125, %v15553_v15  ;;  %v4818_v53 = vadd.f32 %v4814_v22, %v15490_v8 }
0x3e16   : > { %v4816_v23 = vadd.f32 %v4812_v7, %v15496_v38  ;;  %v4820_v6 = vpack.c.bf16 %v4818_v53, %v4817_v61 }
0x3e18   : > { %v4819_v50 = vpack.c.bf16 %v4816_v23, %v4815_v42 }
0x3e1a   : > { %10961 = vmatprep.mubr.bf16.mxu0 %v4819_v50 }
0x3e1b   : > { %10962 = vmatmul.mubr.bf16.vlgmr.msra.gmra.mxu0 %v4820_v6 }
0x3e1c   : > { %10986 = vmatpush3.bf16.msra.mxu0 %v15343_v19 }
0x3e1d   : > { %10987 = vmatprep.subr.bf16.mxu0 %v15346_v10 }
0x3e20   : > { %10988 = vmatpush3.bf16.msra.mxu0 %v15346_v10 }
0x3e21   : > { %10989 = vmatprep.subr.bf16.mxu0 %v15426_v46 }
0x3e24   : > { %10990 = vmatpush3.bf16.msra.mxu0 %v15426_v46 }
0x3e25   : > { %10991 = vmatprep.subr.bf16.mxu0 %v15430_v59 }
0x3e28   : > { %10992 = vmatpush3.bf16.msra.mxu0 %v15430_v59 }
0x3e29   : > { %10993 = vmatprep.subr.bf16.mxu0 %v15434_v39 }
0x3e2c   : > { %10994 = vmatpush3.bf16.msra.mxu0 %v15434_v39 }
0x3e2d   : > { %10995 = vmatprep.subr.bf16.mxu0 %v15438_v29 }
0x3e30   : > { %10996 = vmatpush3.bf16.msra.mxu0 %v15438_v29 }
0x3e31   : > { %10997 = vmatprep.subr.bf16.mxu0 %v15442_v55 }
0x3e34   : > { %10998 = vmatpush3.bf16.msra.mxu0 %v15442_v55 }
0x3e35   : > { %10999 = vmatprep.subr.bf16.mxu0 %v15446_v40 }
0x3e38   : > { %11000 = vmatpush3.bf16.msra.mxu0 %v15446_v40 }
0x3e39   : > { %11025 = vmatprep.subr.bf16.mxu0 %v15343_v19 }
0x3edb   : > { %v10963_v44 = vpop.f32.mrf.mxu0 }
0x3edc   : > { %v4864_v13 = vadd.f32 %v15454_v14, %v10963_v44 }
0x3edd   : > { %v4855_v43 = vpop.f32.mrf.mxu0 }
0x3ede   : > { %v4856_v35 = vadd.f32 %v15454_v14, %v4855_v43 }
0x3edf   : > { %v10964_v63 = vpop.f32.mrf.mxu0 }
0x3ee0   : > { %v4867_v5 = vadd.f32 %v15454_v14, %v10964_v63  ;;  %12410 = vtanh.f32 %v4856_v35 }
0x3ee1   : > { %v4858_v17 = vpop.f32.mrf.mxu0 }
0x3ee2   : > { %v4859_v56 = vadd.f32 %v15454_v14, %v4858_v17  ;;  %12412 = vtanh.f32 %v4867_v5 }
0x3ee4   : > { %12414 = vtanh.f32 %v4859_v56 }
0x3ee5   : > { %12416 = vtanh.f32 %v4864_v13 }
0x3eed   : > { %v12411_v12 = vpop.eup %12410 }
0x3eef   : > { %v12413_v62 = vpop.eup %12412 }
0x3ef1   : > { %v12415_v18 = vpop.eup %12414 }
0x3ef2   : > { %v12417_v30 = vpop.eup %12416  ;;  %v4874_v2 = vpack.c.bf16 %v12415_v18, %v12411_v12 }
0x3ef3   : > { %v4875_v49 = vpack.c.bf16 %v12413_v62, %v12417_v30 }
0x3ef4   : > { %10981 = vmatprep.mubr.bf16.mxu1 %v4874_v2 }
0x3ef5   : > { %10982 = vmatmul.mubr.bf16.vlgmr.msra.gmra.mxu1 %v4875_v49 }
0x3ef6   : > { %11006 = vmatpush3.bf16.msra.mxu1 %v15367_v21 }
0x3ef7   : > { %11007 = vmatprep.subr.bf16.mxu1 %v15370_v48 }
0x3efa   : > { %11008 = vmatpush3.bf16.msra.mxu1 %v15370_v48 }
0x3efb   : > { %11009 = vmatprep.subr.bf16.mxu1 %v15374_v37 }
0x3efe   : > { %11010 = vmatpush3.bf16.msra.mxu1 %v15374_v37 }
0x3eff   : > { %11011 = vmatprep.subr.bf16.mxu1 %v15378_v60 }
0x3f02   : > { %11012 = vmatpush3.bf16.msra.mxu1 %v15378_v60 }
0x3f03   : > { %11013 = vmatprep.subr.bf16.mxu1 %v15382_v31 }
0x3f06   : > { %11014 = vmatpush3.bf16.msra.mxu1 %v15382_v31 }
0x3f07   : > { %11015 = vmatprep.subr.bf16.mxu1 %v15386_v20 }
0x3f0a   : > { %11016 = vmatpush3.bf16.msra.mxu1 %v15386_v20 }
0x3f0b   : > { %11017 = vmatprep.subr.bf16.mxu1 %v15390_v24 }
0x3f0e   : > { %11018 = vmatpush3.bf16.msra.mxu1 %v15390_v24 }
0x3f0f   : > { %11019 = vmatprep.subr.bf16.mxu1 %v15394_v36 }
0x3f12   : > { %11020 = vmatpush3.bf16.msra.mxu1 %v15394_v36 }
0x3f13   : > { %11045 = vmatprep.subr.bf16.mxu1 %v15367_v21 }
0x3fb5   : > { %v10983_v27 = vpop.f32.mrf.mxu1 }
0x3fb6   : > { %v15601_v34 = vadd.f32 %v15479_v1, %v10983_v27 }
0x3fb7   : > { %v4910_v11 = vpop.f32.mrf.mxu1 }
0x3fb8   : > { %v15598_v9 = vadd.f32 %v15479_v1, %v4910_v11  ;;  %v4935_v28 = vmul.f32 0.03125, %v15601_v34  ;;  %v4927_v12 = vmul.f32 2.0, %v15601_v34 }
0x3fb9   : > { %v10984_v33 = vpop.f32.mrf.mxu1 }
0x3fba   : > { %v15604_v3 = vadd.f32 %v15479_v1, %v10984_v33  ;;  %v4933_v25 = vmul.f32 0.03125, %v15598_v9  ;;  %v4939_v22 = vadd.f32 %v4935_v28, %v15499_v47  ;;  %v4925_v30 = vmul.f32 2.0, %v15598_v9 }
0x3fbb   : > { %v4913_v16 = vpop.f32.mrf.mxu1  ;;  %v4931_v33 = vadd.f32 %v4927_v12, %v15545_v0 }
0x3fbc   : > { %v15608_v26 = vadd.f32 %v15479_v1, %v4913_v16  ;;  %v4936_v32 = vmul.f32 0.03125, %v15604_v3  ;;  %v4937_v51 = vadd.f32 %v4933_v25, %v15493_v4  ;;  %v4928_v2 = vmul.f32 2.0, %v15604_v3 }
0x3fbd   : > { %v4929_v34 = vadd.f32 %v4925_v30, %v15542_v52 }
0x3fbe   : > { %v4934_v45 = vmul.f32 0.03125, %v15608_v26  ;;  %v4940_v54 = vadd.f32 %v4936_v32, %v15490_v8  ;;  %v4926_v25 = vmul.f32 2.0, %v15608_v26 }
0x3fc0   : > { %v4938_v41 = vadd.f32 %v4934_v45, %v15496_v38  ;;  %v4942_v7 = vpack.c.bf16 %v4940_v54, %v4939_v22  ;;  %v4932_v45 = vadd.f32 %v4928_v2, %v15548_v57  ;;  %v4930_v26 = vadd.f32 %v4926_v25, %v15553_v15 }
0x3fc2   : > { %v4941_v58 = vpack.c.bf16 %v4938_v41, %v4937_v51 }
0x3fc4   : > { %11001 = vmatprep.mubr.bf16.mxu0 %v4941_v58 }
0x3fc5   : > { %11002 = vmatmul.mubr.bf16.vlgmr.msra.gmra.mxu0 %v4942_v7 }
0x3fc6   : > { %11026 = vmatpush3.bf16.msra.mxu0 %v15343_v19 }
0x3fc7   : > { %11027 = vmatprep.subr.bf16.mxu0 %v15346_v10 }
0x3fca   : > { %11028 = vmatpush3.bf16.msra.mxu0 %v15346_v10 }
0x3fcb   : > { %11029 = vmatprep.subr.bf16.mxu0 %v15426_v46 }
0x3fce   : > { %11030 = vmatpush3.bf16.msra.mxu0 %v15426_v46 }
0x3fcf   : > { %11031 = vmatprep.subr.bf16.mxu0 %v15430_v59 }
0x3fd2   : > { %11032 = vmatpush3.bf16.msra.mxu0 %v15430_v59 }
0x3fd3   : > { %11033 = vmatprep.subr.bf16.mxu0 %v15434_v39 }
0x3fd6   : > { %11034 = vmatpush3.bf16.msra.mxu0 %v15434_v39 }
0x3fd7   : > { %11035 = vmatprep.subr.bf16.mxu0 %v15438_v29 }
0x3fda   : > { %11036 = vmatpush3.bf16.msra.mxu0 %v15438_v29 }
0x3fdb   : > { %11037 = vmatprep.subr.bf16.mxu0 %v15442_v55 }
0x3fde   : > { %11038 = vmatpush3.bf16.msra.mxu0 %v15442_v55 }
0x3fdf   : > { %11039 = vmatprep.subr.bf16.mxu0 %v15446_v40 }
0x3fe2   : > { %11040 = vmatpush3.bf16.msra.mxu0 %v15446_v40 }
0x3fe3   : > { %11065 = vmatprep.subr.bf16.mxu0 %v15343_v19 }
0x4085   : > { %v11003_v53 = vpop.f32.mrf.mxu0 }
0x4086   : > { %v4986_v6 = vadd.f32 %v15454_v14, %v11003_v53 }
0x4087   : > { %v4977_v42 = vpop.f32.mrf.mxu0 }
0x4088   : > { %v4978_v23 = vadd.f32 %v15454_v14, %v4977_v42 }
0x4089   : > { %v11004_v61 = vpop.f32.mrf.mxu0 }
0x408a   : > { %v4989_v50 = vadd.f32 %v15454_v14, %v11004_v61  ;;  %12418 = vtanh.f32 %v4978_v23 }
0x408b   : > { %v4980_v44 = vpop.f32.mrf.mxu0 }
0x408c   : > { %v4981_v43 = vadd.f32 %v15454_v14, %v4980_v44  ;;  %12420 = vtanh.f32 %v4989_v50 }
0x408e   : > { %12422 = vtanh.f32 %v4981_v43 }
0x408f   : > { %12424 = vtanh.f32 %v4986_v6 }
0x4097   : > { %v12419_v35 = vpop.eup %12418 }
0x4099   : > { %v12421_v63 = vpop.eup %12420 }
0x409b   : > { %v12423_v5 = vpop.eup %12422 }
0x409c   : > { %v12425_v13 = vpop.eup %12424  ;;  %v4996_v17 = vpack.c.bf16 %v12423_v5, %v12419_v35 }
0x409d   : > { %v4997_v56 = vpack.c.bf16 %v12421_v63, %v12425_v13 }
0x409e   : > { %11021 = vmatprep.mubr.bf16.mxu1 %v4996_v17 }
0x409f   : > { %11022 = vmatmul.mubr.bf16.vlgmr.msra.gmra.mxu1 %v4997_v56 }
0x40a0   : > { %11046 = vmatpush3.bf16.msra.mxu1 %v15367_v21 }
0x40a1   : > { %11047 = vmatprep.subr.bf16.mxu1 %v15370_v48 }
0x40a4   : > { %11048 = vmatpush3.bf16.msra.mxu1 %v15370_v48 }
0x40a5   : > { %11049 = vmatprep.subr.bf16.mxu1 %v15374_v37 }
0x40a8   : > { %11050 = vmatpush3.bf16.msra.mxu1 %v15374_v37 }
0x40a9   : > { %11051 = vmatprep.subr.bf16.mxu1 %v15378_v60 }
0x40ac   : > { %11052 = vmatpush3.bf16.msra.mxu1 %v15378_v60 }
0x40ad   : > { %11053 = vmatprep.subr.bf16.mxu1 %v15382_v31 }
0x40b0   : > { %11054 = vmatpush3.bf16.msra.mxu1 %v15382_v31 }
0x40b1   : > { %11055 = vmatprep.subr.bf16.mxu1 %v15386_v20 }
0x40b4   : > { %11056 = vmatpush3.bf16.msra.mxu1 %v15386_v20 }
0x40b5   : > { %11057 = vmatprep.subr.bf16.mxu1 %v15390_v24 }
0x40b8   : > { %11058 = vmatpush3.bf16.msra.mxu1 %v15390_v24 }
0x40b9   : > { %11059 = vmatprep.subr.bf16.mxu1 %v15394_v36 }
0x40bc   : > { %11060 = vmatpush3.bf16.msra.mxu1 %v15394_v36 }
0x40bd   : > { %11085 = vmatprep.subr.bf16.mxu1 %v15367_v21 }
0x415f   : > { %v11023_v62 = vpop.f32.mrf.mxu1 }
0x4160   : > { %v5041_v18 = vadd.f32 %v15479_v1, %v11023_v62 }
0x4161   : > { %v5032_v49 = vpop.f32.mrf.mxu1 }
0x4162   : > { %v5049_v27 = vmul.f32 2.0, %v5041_v18  ;;  %v5033_v11 = vadd.f32 %v15479_v1, %v5032_v49  ;;  %v5057_v58 = vmul.f32 0.0625, %v5041_v18 }
0x4163   : > { %v11024_v16 = vpop.f32.mrf.mxu1 }
0x4164   : > { %v5047_v28 = vmul.f32 2.0, %v5033_v11  ;;  %v5044_v32 = vadd.f32 %v15479_v1, %v11024_v16  ;;  %v15663_v9 = vadd.f32 %v5049_v27, %v4931_v33  ;;  %v5055_v3 = vmul.f32 0.0625, %v5033_v11 }
0x4165   : > { %v5035_v54 = vpop.f32.mrf.mxu1  ;;  %v5061_v50 = vadd.f32 %v5057_v58, %v15499_v47 }
0x4166   : > { %v5050_v51 = vmul.f32 2.0, %v5044_v32  ;;  %v5058_v41 = vmul.f32 0.0625, %v5044_v32  ;;  %v5036_v22 = vadd.f32 %v15479_v1, %v5035_v54  ;;  %v15666_v0 = vadd.f32 %v5047_v28, %v4929_v34 }
0x4167   : > { %v5059_v57 = vadd.f32 %v5055_v3, %v15493_v4 }
0x4168   : > { %v5048_v7 = vmul.f32 2.0, %v5036_v22  ;;  %v5056_v53 = vmul.f32 0.0625, %v5036_v22  ;;  %v15669_v42 = vadd.f32 %v5050_v51, %v4932_v45  ;;  %v5062_v52 = vadd.f32 %v5058_v41, %v15490_v8 }
0x416a   : > { %v5060_v23 = vadd.f32 %v5056_v53, %v15496_v38  ;;  %v15674_v61 = vadd.f32 %v5048_v7, %v4930_v26  ;;  %v5064_v44 = vpack.c.bf16 %v5062_v52, %v5061_v50 }
0x416c   : > { %v5063_v6 = vpack.c.bf16 %v5060_v23, %v5059_v57 }
0x416e   : > { %11041 = vmatprep.mubr.bf16.mxu0 %v5063_v6 }
0x416f   : > { %11042 = vmatmul.mubr.bf16.vlgmr.msra.gmra.mxu0 %v5064_v44 }
0x4170   : > { %11066 = vmatpush3.bf16.msra.mxu0 %v15343_v19 }
0x4171   : > { %11067 = vmatprep.subr.bf16.mxu0 %v15346_v10 }
0x4174   : > { %11068 = vmatpush3.bf16.msra.mxu0 %v15346_v10 }
0x4175   : > { %11069 = vmatprep.subr.bf16.mxu0 %v15426_v46 }
0x4178   : > { %11070 = vmatpush3.bf16.msra.mxu0 %v15426_v46 }
0x4179   : > { %11071 = vmatprep.subr.bf16.mxu0 %v15430_v59 }
0x417c   : > { %11072 = vmatpush3.bf16.msra.mxu0 %v15430_v59 }
0x417d   : > { %11073 = vmatprep.subr.bf16.mxu0 %v15434_v39 }
0x4180   : > { %11074 = vmatpush3.bf16.msra.mxu0 %v15434_v39 }
0x4181   : > { %11075 = vmatprep.subr.bf16.mxu0 %v15438_v29 }
0x4184   : > { %11076 = vmatpush3.bf16.msra.mxu0 %v15438_v29 }
0x4185   : > { %11077 = vmatprep.subr.bf16.mxu0 %v15442_v55 }
0x4188   : > { %11078 = vmatpush3.bf16.msra.mxu0 %v15442_v55 }
0x4189   : > { %11079 = vmatprep.subr.bf16.mxu0 %v15446_v40 }
0x418c   : > { %11080 = vmatpush3.bf16.msra.mxu0 %v15446_v40 }
0x418d   : > { %11105 = vmatprep.subr.bf16.mxu0 %v15343_v19 }
0x422f   : > { %v11043_v15 = vpop.f32.mrf.mxu0 }
0x4230   : > { %v5108_v13 = vadd.f32 %v15454_v14, %v11043_v15 }
0x4231   : > { %v5099_v43 = vpop.f32.mrf.mxu0 }
0x4232   : > { %v5100_v35 = vadd.f32 %v15454_v14, %v5099_v43 }
0x4233   : > { %v11044_v63 = vpop.f32.mrf.mxu0 }
0x4234   : > { %v5111_v5 = vadd.f32 %v15454_v14, %v11044_v63  ;;  %12426 = vtanh.f32 %v5100_v35 }
0x4235   : > { %v5102_v17 = vpop.f32.mrf.mxu0 }
0x4236   : > { %v5103_v56 = vadd.f32 %v15454_v14, %v5102_v17  ;;  %12428 = vtanh.f32 %v5111_v5 }
0x4238   : > { %12430 = vtanh.f32 %v5103_v56 }
0x4239   : > { %12432 = vtanh.f32 %v5108_v13 }
0x4241   : > { %v12427_v12 = vpop.eup %12426 }
0x4243   : > { %v12429_v62 = vpop.eup %12428 }
0x4245   : > { %v12431_v18 = vpop.eup %12430 }
0x4246   : > { %v12433_v30 = vpop.eup %12432  ;;  %v5118_v2 = vpack.c.bf16 %v12431_v18, %v12427_v12 }
0x4247   : > { %v5119_v49 = vpack.c.bf16 %v12429_v62, %v12433_v30 }
0x4248   : > { %11061 = vmatprep.mubr.bf16.mxu1 %v5118_v2  ;;  %v15793_v2 = vld [vmem:[#allocation5 + $0x38] sm:$0xff]  }
0x4249   : > { %11062 = vmatmul.mubr.bf16.vlgmr.msra.gmra.mxu1 %v5119_v49  ;;  %v15796_v49 = vld [vmem:[#allocation5 + $0x30] sm:$0xff]  }
0x424a   : > { %11086 = vmatpush3.bf16.msra.mxu1 %v15367_v21 }
0x424b   : > { %11087 = vmatprep.subr.bf16.mxu1 %v15370_v48 }
0x424e   : > { %11088 = vmatpush3.bf16.msra.mxu1 %v15370_v48 }
0x424f   : > { %11089 = vmatprep.subr.bf16.mxu1 %v15374_v37 }
0x4252   : > { %11090 = vmatpush3.bf16.msra.mxu1 %v15374_v37 }
0x4253   : > { %11091 = vmatprep.subr.bf16.mxu1 %v15378_v60 }
0x4256   : > { %11092 = vmatpush3.bf16.msra.mxu1 %v15378_v60 }
0x4257   : > { %11093 = vmatprep.subr.bf16.mxu1 %v15382_v31 }
0x425a   : > { %11094 = vmatpush3.bf16.msra.mxu1 %v15382_v31 }
0x425b   : > { %11095 = vmatprep.subr.bf16.mxu1 %v15386_v20 }
0x425e   : > { %11096 = vmatpush3.bf16.msra.mxu1 %v15386_v20 }
0x425f   : > { %11097 = vmatprep.subr.bf16.mxu1 %v15390_v24 }
0x4262   : > { %11098 = vmatpush3.bf16.msra.mxu1 %v15390_v24 }
0x4263   : > { %11099 = vmatprep.subr.bf16.mxu1 %v15394_v36 }
0x4266   : > { %11100 = vmatpush3.bf16.msra.mxu1 %v15394_v36 }
0x4267   : > { %11125 = vmatprep.subr.bf16.mxu1 %v15367_v21 }
0x4309   : > { %v11063_v27 = vpop.f32.mrf.mxu1 }
0x430a   : > { %v5163_v11 = vadd.f32 %v15479_v1, %v11063_v27 }
0x430b   : > { %v5154_v33 = vpop.f32.mrf.mxu1 }
0x430c   : > { %v5155_v16 = vadd.f32 %v15479_v1, %v5154_v33  ;;  %v5171_v34 = vadd.f32 %v5163_v11, %v15663_v9 }
0x430d   : > { %v11064_v25 = vpop.f32.mrf.mxu1 }
0x430e   : > { %v5169_v28 = vadd.f32 %v5155_v16, %v15666_v0  ;;  %v5166_v32 = vadd.f32 %v15479_v1, %v11064_v25  ;;  %v5175_v58 = vmul.f32 0.010416667, %v5171_v34 }
0x430f   : > { %v5157_v45 = vpop.f32.mrf.mxu1 }
0x4310   : > { %v5172_v54 = vadd.f32 %v5166_v32, %v15669_v42  ;;  %v5158_v3 = vadd.f32 %v15479_v1, %v5157_v45  ;;  %v5173_v51 = vmul.f32 0.010416667, %v5169_v28  ;;  %v15731_v9 = vadd.f32 %v5175_v58, %v15499_v47  ;;  %v15817_v45 = vld [vmem:[#allocation7 + $0x38] sm:$0xff]   ;;  %v15844_v58 = vld [vmem:[#allocation7] sm:$0xff]  }
0x4312   : > { %v5176_v41 = vmul.f32 0.010416667, %v5172_v54  ;;  %v5170_v22 = vadd.f32 %v5158_v3, %v15674_v61  ;;  %v15725_v0 = vadd.f32 %v5173_v51, %v15493_v4  ;;  %v15820_v54 = vld [vmem:[#allocation7 + $0x30] sm:$0xff]   ;;  %v15828_v3 = vld [vmem:[#allocation7 + $0x20] sm:$0xff]   ;;  %v15832_v51 = vld [vmem:[#allocation7 + $0x18] sm:$0xff]  }
0x4314   : > { %v5174_v26 = vmul.f32 0.010416667, %v5170_v22  ;;  %v15722_v7 = vadd.f32 %v5176_v41, %v15490_v8  ;;  %v15836_v41 = vld [vmem:[#allocation7 + $0x10] sm:$0xff]   ;;  %v15840_v22 = vld [vmem:[#allocation7 + $0x8] sm:$0xff]  }
0x4316   : > { %v15728_v53 = vadd.f32 %v5174_v26, %v15496_v38  ;;  %v5182_v52 = vpack.c.bf16 %v15722_v7, %v15731_v9 }
0x4318   : > { %v5181_v42 = vpack.c.bf16 %v15728_v53, %v15725_v0 }
0x431a   : > { %11081 = vmatprep.mubr.bf16.mxu0 %v5181_v42 }
0x431b   : > { %11082 = vmatmul.mubr.bf16.vlgmr.msra.gmra.mxu0 %v5182_v52 }
0x431c   : > { %11106 = vmatpush3.bf16.msra.mxu0 %v15343_v19 }
0x431d   : > { %11107 = vmatprep.subr.bf16.mxu0 %v15346_v10 }
0x4320   : > { %11108 = vmatpush3.bf16.msra.mxu0 %v15346_v10 }
0x4321   : > { %11109 = vmatprep.subr.bf16.mxu0 %v15426_v46 }
0x4324   : > { %11110 = vmatpush3.bf16.msra.mxu0 %v15426_v46 }
0x4325   : > { %11111 = vmatprep.subr.bf16.mxu0 %v15430_v59 }
0x4328   : > { %11112 = vmatpush3.bf16.msra.mxu0 %v15430_v59 }
0x4329   : > { %11113 = vmatprep.subr.bf16.mxu0 %v15434_v39 }
0x432c   : > { %11114 = vmatpush3.bf16.msra.mxu0 %v15434_v39 }
0x432d   : > { %11115 = vmatprep.subr.bf16.mxu0 %v15438_v29 }
0x4330   : > { %11116 = vmatpush3.bf16.msra.mxu0 %v15438_v29 }
0x4331   : > { %11117 = vmatprep.subr.bf16.mxu0 %v15442_v55 }
0x4334   : > { %11118 = vmatpush3.bf16.msra.mxu0 %v15442_v55 }
0x4335   : > { %11119 = vmatprep.subr.bf16.mxu0 %v15446_v40 }
0x4338   : > { %11120 = vmatpush3.bf16.msra.mxu0 %v15446_v40 }
0x4339   : > { %11145 = vmatprep.subr.bf16.mxu0 %v15343_v19 }
0x43db   : > { %v11083_v10 = vpop.f32.mrf.mxu0 }
0x43dc   : > { %v5226_v57 = vadd.f32 %v15454_v14, %v11083_v10 }
0x43dd   : > { %v5217_v8 = vpop.f32.mrf.mxu0 }
0x43de   : > { %v5218_v4 = vadd.f32 %v15454_v14, %v5217_v8 }
0x43df   : > { %v11084_v38 = vpop.f32.mrf.mxu0 }
0x43e0   : > { %v5229_v47 = vadd.f32 %v15454_v14, %v11084_v38  ;;  %12434 = vtanh.f32 %v5218_v4 }
0x43e1   : > { %v5220_v23 = vpop.f32.mrf.mxu0 }
0x43e2   : > { %v5221_v61 = vadd.f32 %v15454_v14, %v5220_v23  ;;  %12436 = vtanh.f32 %v5229_v47 }
0x43e4   : > { %12438 = vtanh.f32 %v5221_v61 }
0x43e5   : > { %12440 = vtanh.f32 %v5226_v57 }
0x43ed   : > { %v12435_v50 = vpop.eup %12434 }
0x43ef   : > { %v12437_v6 = vpop.eup %12436 }
0x43f1   : > { %v12439_v44 = vpop.eup %12438 }
0x43f2   : > { %v12441_v19 = vpop.eup %12440  ;;  %v5236_v15 = vpack.c.bf16 %v12439_v44, %v12435_v50 }
0x43f3   : > { %v5237_v43 = vpack.c.bf16 %v12437_v6, %v12441_v19 }
0x43f4   : > { %11101 = vmatprep.mubr.bf16.mxu1 %v5236_v15 }
0x43f5   : > { %11102 = vmatmul.mubr.bf16.vlgmr.msra.gmra.mxu1 %v5237_v43 }
0x43f6   : > { %11126 = vmatpush3.bf16.msra.mxu1 %v15367_v21 }
0x43f7   : > { %11127 = vmatprep.subr.bf16.mxu1 %v15370_v48 }
0x43fa   : > { %11128 = vmatpush3.bf16.msra.mxu1 %v15370_v48 }
0x43fb   : > { %11129 = vmatprep.subr.bf16.mxu1 %v15374_v37 }
0x43fe   : > { %11130 = vmatpush3.bf16.msra.mxu1 %v15374_v37 }
0x43ff   : > { %11131 = vmatprep.subr.bf16.mxu1 %v15378_v60 }
0x4402   : > { %11132 = vmatpush3.bf16.msra.mxu1 %v15378_v60 }
0x4403   : > { %11133 = vmatprep.subr.bf16.mxu1 %v15382_v31 }
0x4406   : > { %11134 = vmatpush3.bf16.msra.mxu1 %v15382_v31 }
0x4407   : > { %11135 = vmatprep.subr.bf16.mxu1 %v15386_v20 }
0x440a   : > { %11136 = vmatpush3.bf16.msra.mxu1 %v15386_v20 }
0x440b   : > { %11137 = vmatprep.subr.bf16.mxu1 %v15390_v24 }
0x440e   : > { %11138 = vmatpush3.bf16.msra.mxu1 %v15390_v24 }
0x440f   : > { %11139 = vmatprep.subr.bf16.mxu1 %v15394_v36 }
0x4412   : > { %11140 = vmatpush3.bf16.msra.mxu1 %v15394_v36 }
0x4413   : > { %11165 = vmatprep.subr.bf16.mxu1 %v15367_v21 }
0x44b5   : > { %v11103_v48 = vpop.f32.mrf.mxu1 }
0x44b6   : > { %v15777_v31 = vadd.f32 %v15479_v1, %v11103_v48 }
0x44b7   : > { %v5272_v37 = vpop.f32.mrf.mxu1 }
0x44b8   : > { %v15774_v60 = vadd.f32 %v15479_v1, %v5272_v37  ;;  %v5289_v21 = vmul.f32 0.03125, %v15777_v31  ;;  %v15876_v37 = vld [vmem:[#allocation5 + $0x20] sm:$0xff]  }
0x44b9   : > { %v11104_v35 = vpop.f32.mrf.mxu1 }
0x44ba   : > { %v15780_v20 = vadd.f32 %v15479_v1, %v11104_v35  ;;  %v5287_v24 = vmul.f32 0.03125, %v15774_v60  ;;  %v5293_v62 = vadd.f32 %v5289_v21, %v15731_v9  ;;  %v15880_v35 = vld [vmem:[#allocation5 + $0x18] sm:$0xff]  }
0x44bb   : > { %v5275_v63 = vpop.f32.mrf.mxu1 }
0x44bc   : > { %v5290_v5 = vmul.f32 0.03125, %v15780_v20  ;;  %v15785_v36 = vadd.f32 %v15479_v1, %v5275_v63  ;;  %v5291_v56 = vadd.f32 %v5287_v24, %v15725_v0  ;;  %v15884_v63 = vld [vmem:[#allocation5 + $0x10] sm:$0xff]   ;;  %v15888_v24 = vld [vmem:[#allocation5 + $0x8] sm:$0xff]  }
0x44be   : > { %v5288_v13 = vmul.f32 0.03125, %v15785_v36  ;;  %v5294_v17 = vadd.f32 %v5290_v5, %v15722_v7  ;;  %v15892_v5 = vld [vmem:[#allocation5] sm:$0xff]  }
0x44c0   : > { %v5292_v12 = vadd.f32 %v5288_v13, %v15728_v53  ;;  %v5296_v30 = vpack.c.bf16 %v5294_v17, %v5293_v62  ;;  %v15900_v17 = vld [vmem:[%s17232_s2] ss:$0 sm:$0xff] }
0x44c2   : > { %v5295_v18 = vpack.c.bf16 %v5292_v12, %v5291_v56 }
0x44c4   : > { %11121 = vmatprep.mubr.bf16.mxu0 %v5295_v18 }
0x44c5   : > { %11122 = vmatmul.mubr.bf16.vlgmr.msra.gmra.mxu0 %v5296_v30 }
0x44c6   : > { %11146 = vmatpush3.bf16.msra.mxu0 %v15793_v2 }
0x44c7   : > { %11147 = vmatprep.subr.bf16.mxu0 %v15796_v49 }
0x44ca   : > { %11148 = vmatpush3.bf16.msra.mxu0 %v15796_v49 }
0x44cb   : > { %11149 = vmatprep.subr.bf16.mxu0 %v15426_v46 }
0x44ce   : > { %11150 = vmatpush3.bf16.msra.mxu0 %v15426_v46 }
0x44cf   : > { %11151 = vmatprep.subr.bf16.mxu0 %v15430_v59 }
0x44d2   : > { %11152 = vmatpush3.bf16.msra.mxu0 %v15430_v59 }
0x44d3   : > { %11153 = vmatprep.subr.bf16.mxu0 %v15434_v39 }
0x44d6   : > { %11154 = vmatpush3.bf16.msra.mxu0 %v15434_v39 }
0x44d7   : > { %11155 = vmatprep.subr.bf16.mxu0 %v15438_v29 }
0x44da   : > { %11156 = vmatpush3.bf16.msra.mxu0 %v15438_v29 }
0x44db   : > { %11157 = vmatprep.subr.bf16.mxu0 %v15442_v55 }
0x44de   : > { %11158 = vmatpush3.bf16.msra.mxu0 %v15442_v55 }
0x44df   : > { %11159 = vmatprep.subr.bf16.mxu0 %v15446_v40 }
0x44e2   : > { %11160 = vmatpush3.bf16.msra.mxu0 %v15446_v40 }
0x44e3   : > { %11185 = vmatprep.subr.bf16.mxu0 %v15793_v2 }
0x4585   : > { %v11123_v46 = vpop.f32.mrf.mxu0 }
0x4586   : > { %v5340_v33 = vadd.f32 %v15454_v14, %v11123_v46 }
0x4587   : > { %v5331_v59 = vpop.f32.mrf.mxu0 }
0x4588   : > { %v5332_v27 = vadd.f32 %v15454_v14, %v5331_v59 }
0x4589   : > { %v11124_v11 = vpop.f32.mrf.mxu0 }
0x458a   : > { %v5343_v39 = vadd.f32 %v15454_v14, %v11124_v11  ;;  %12442 = vtanh.f32 %v5332_v27 }
0x458b   : > { %v5334_v29 = vpop.f32.mrf.mxu0 }
0x458c   : > { %v5335_v16 = vadd.f32 %v15454_v14, %v5334_v29  ;;  %12444 = vtanh.f32 %v5343_v39  ;;  %v15824_v14 = vld [vmem:[#allocation7 + $0x28] sm:$0xff]  }
0x458e   : > { %12446 = vtanh.f32 %v5335_v16 }
0x458f   : > { %12448 = vtanh.f32 %v5340_v33 }
0x4597   : > { %v12443_v55 = vpop.eup %12442 }
0x4599   : > { %v12445_v40 = vpop.eup %12444 }
0x459b   : > { %v12447_v25 = vpop.eup %12446 }
0x459c   : > { %v12449_v28 = vpop.eup %12448  ;;  %v5350_v32 = vpack.c.bf16 %v12447_v25, %v12443_v55 }
0x459d   : > { %v5351_v34 = vpack.c.bf16 %v12445_v40, %v12449_v28  ;;  %v15926_v40 = vld [vmem:[%s17234_s4] ss:$0 sm:$0xff] }
0x459e   : > { %11141 = vmatprep.mubr.bf16.mxu1 %v5350_v32 }
0x459f   : > { %11142 = vmatmul.mubr.bf16.vlgmr.msra.gmra.mxu1 %v5351_v34 }
0x45a0   : > { %11166 = vmatpush3.bf16.msra.mxu1 %v15817_v45 }
0x45a1   : > { %11167 = vmatprep.subr.bf16.mxu1 %v15820_v54 }
0x45a4   : > { %11168 = vmatpush3.bf16.msra.mxu1 %v15820_v54 }
0x45a5   : > { %11169 = vmatprep.subr.bf16.mxu1 %v15824_v14 }
0x45a8   : > { %11170 = vmatpush3.bf16.msra.mxu1 %v15824_v14 }
0x45a9   : > { %11171 = vmatprep.subr.bf16.mxu1 %v15828_v3 }
0x45ac   : > { %11172 = vmatpush3.bf16.msra.mxu1 %v15828_v3 }
0x45ad   : > { %11173 = vmatprep.subr.bf16.mxu1 %v15832_v51 }
0x45b0   : > { %11174 = vmatpush3.bf16.msra.mxu1 %v15832_v51 }
0x45b1   : > { %11175 = vmatprep.subr.bf16.mxu1 %v15836_v41 }
0x45b4   : > { %11176 = vmatpush3.bf16.msra.mxu1 %v15836_v41 }
0x45b5   : > { %11177 = vmatprep.subr.bf16.mxu1 %v15840_v22 }
0x45b8   : > { %11178 = vmatpush3.bf16.msra.mxu1 %v15840_v22 }
0x45b9   : > { %11179 = vmatprep.subr.bf16.mxu1 %v15844_v58 }
0x45bc   : > { %11180 = vmatpush3.bf16.msra.mxu1 %v15844_v58 }
0x45bd   : > { %11205 = vmatprep.subr.bf16.mxu1 %v15817_v45 }
0x465f   : > { %v11143_v26 = vpop.f32.mrf.mxu1 }
0x4660   : > { %v15853_v10 = vadd.f32 %v15479_v1, %v11143_v26 }
0x4661   : > { %v5386_v42 = vpop.f32.mrf.mxu1 }
0x4662   : > { %v15850_v52 = vadd.f32 %v15479_v1, %v5386_v42  ;;  %v5411_v23 = vmul.f32 0.03125, %v15853_v10  ;;  %v5403_v16 = vmul.f32 2.0, %v15853_v10 }
0x4663   : > { %v11144_v8 = vpop.f32.mrf.mxu1 }
0x4664   : > { %v15856_v4 = vadd.f32 %v15479_v1, %v11144_v8  ;;  %v5409_v47 = vmul.f32 0.03125, %v15850_v52  ;;  %v5415_v15 = vadd.f32 %v5411_v23, %v15731_v9  ;;  %v5401_v28 = vmul.f32 2.0, %v15850_v52 }
0x4665   : > { %v5389_v38 = vpop.f32.mrf.mxu1  ;;  %v5407_v8 = vadd.f32 %v5403_v16, %v15777_v31 }
0x4666   : > { %v15860_v57 = vadd.f32 %v15479_v1, %v5389_v38  ;;  %v5412_v61 = vmul.f32 0.03125, %v15856_v4  ;;  %v5413_v44 = vadd.f32 %v5409_v47, %v15725_v0  ;;  %v15872_v1 = vld [vmem:[#allocation5 + $0x28] sm:$0xff]   ;;  %v5404_v32 = vmul.f32 2.0, %v15856_v4 }
0x4668   : > { %v5410_v50 = vmul.f32 0.03125, %v15860_v57  ;;  %v5416_v6 = vadd.f32 %v5412_v61, %v15722_v7  ;;  %v5402_v10 = vmul.f32 2.0, %v15860_v57  ;;  %v5405_v61 = vadd.f32 %v5401_v28, %v15774_v60 }
0x466a   : > { %v5414_v19 = vadd.f32 %v5410_v50, %v15728_v53  ;;  %v5418_v48 = vpack.c.bf16 %v5416_v6, %v5415_v15  ;;  %v5408_v50 = vadd.f32 %v5404_v32, %v15780_v20  ;;  %v5406_v57 = vadd.f32 %v5402_v10, %v15785_v36 }
0x466c   : > { %v5417_v43 = vpack.c.bf16 %v5414_v19, %v5413_v44 }
0x466e   : > { %11161 = vmatprep.mubr.bf16.mxu0 %v5417_v43 }
0x466f   : > { %11162 = vmatmul.mubr.bf16.vlgmr.msra.gmra.mxu0 %v5418_v48 }
0x4670   : > { %11186 = vmatpush3.bf16.msra.mxu0 %v15793_v2 }
0x4671   : > { %11187 = vmatprep.subr.bf16.mxu0 %v15796_v49 }
0x4674   : > { %11188 = vmatpush3.bf16.msra.mxu0 %v15796_v49 }
0x4675   : > { %11189 = vmatprep.subr.bf16.mxu0 %v15872_v1 }
0x4678   : > { %11190 = vmatpush3.bf16.msra.mxu0 %v15872_v1 }
0x4679   : > { %11191 = vmatprep.subr.bf16.mxu0 %v15876_v37 }
0x467c   : > { %11192 = vmatpush3.bf16.msra.mxu0 %v15876_v37 }
0x467d   : > { %11193 = vmatprep.subr.bf16.mxu0 %v15880_v35 }
0x4680   : > { %11194 = vmatpush3.bf16.msra.mxu0 %v15880_v35 }
0x4681   : > { %11195 = vmatprep.subr.bf16.mxu0 %v15884_v63 }
0x4684   : > { %11196 = vmatpush3.bf16.msra.mxu0 %v15884_v63 }
0x4685   : > { %11197 = vmatprep.subr.bf16.mxu0 %v15888_v24 }
0x4688   : > { %11198 = vmatpush3.bf16.msra.mxu0 %v15888_v24 }
0x4689   : > { %11199 = vmatprep.subr.bf16.mxu0 %v15892_v5 }
0x468c   : > { %11200 = vmatpush3.bf16.msra.mxu0 %v15892_v5 }
0x468d   : > { %11225 = vmatprep.subr.bf16.mxu0 %v15793_v2 }
0x472f   : > { %v11163_v21 = vpop.f32.mrf.mxu0 }
0x4730   : > { %v5462_v18 = vadd.f32 %v15900_v17, %v11163_v21 }
0x4731   : > { %v5453_v13 = vpop.f32.mrf.mxu0 }
0x4732   : > { %v5454_v56 = vadd.f32 %v15900_v17, %v5453_v13 }
0x4733   : > { %v11164_v12 = vpop.f32.mrf.mxu0 }
0x4734   : > { %v5465_v62 = vadd.f32 %v15900_v17, %v11164_v12  ;;  %12450 = vtanh.f32 %v5454_v56 }
0x4735   : > { %v5456_v30 = vpop.f32.mrf.mxu0 }
0x4736   : > { %v5457_v46 = vadd.f32 %v15900_v17, %v5456_v30  ;;  %12452 = vtanh.f32 %v5465_v62 }
0x4738   : > { %12454 = vtanh.f32 %v5457_v46 }
0x4739   : > { %12456 = vtanh.f32 %v5462_v18 }
0x4741   : > { %v12451_v59 = vpop.eup %12450 }
0x4743   : > { %v12453_v27 = vpop.eup %12452 }
0x4745   : > { %v12455_v11 = vpop.eup %12454 }
0x4746   : > { %v12457_v39 = vpop.eup %12456  ;;  %v5472_v33 = vpack.c.bf16 %v12455_v11, %v12451_v59 }
0x4747   : > { %v5473_v29 = vpack.c.bf16 %v12453_v27, %v12457_v39 }
0x4748   : > { %11181 = vmatprep.mubr.bf16.mxu1 %v5472_v33 }
0x4749   : > { %11182 = vmatmul.mubr.bf16.vlgmr.msra.gmra.mxu1 %v5473_v29 }
0x474a   : > { %11206 = vmatpush3.bf16.msra.mxu1 %v15817_v45 }
0x474b   : > { %11207 = vmatprep.subr.bf16.mxu1 %v15820_v54 }
0x474e   : > { %11208 = vmatpush3.bf16.msra.mxu1 %v15820_v54 }
0x474f   : > { %11209 = vmatprep.subr.bf16.mxu1 %v15824_v14 }
0x4752   : > { %11210 = vmatpush3.bf16.msra.mxu1 %v15824_v14 }
0x4753   : > { %11211 = vmatprep.subr.bf16.mxu1 %v15828_v3 }
0x4756   : > { %11212 = vmatpush3.bf16.msra.mxu1 %v15828_v3 }
0x4757   : > { %11213 = vmatprep.subr.bf16.mxu1 %v15832_v51 }
0x475a   : > { %11214 = vmatpush3.bf16.msra.mxu1 %v15832_v51 }
0x475b   : > { %11215 = vmatprep.subr.bf16.mxu1 %v15836_v41 }
0x475e   : > { %11216 = vmatpush3.bf16.msra.mxu1 %v15836_v41 }
0x475f   : > { %11217 = vmatprep.subr.bf16.mxu1 %v15840_v22 }
0x4762   : > { %11218 = vmatpush3.bf16.msra.mxu1 %v15840_v22 }
0x4763   : > { %11219 = vmatprep.subr.bf16.mxu1 %v15844_v58 }
0x4766   : > { %11220 = vmatpush3.bf16.msra.mxu1 %v15844_v58 }
0x4767   : > { %11245 = vmatprep.subr.bf16.mxu1 %v15817_v45 }
0x4809   : > { %v11183_v55 = vpop.f32.mrf.mxu1 }
0x480a   : > { %v5517_v25 = vadd.f32 %v15926_v40, %v11183_v55 }
0x480b   : > { %v5508_v34 = vpop.f32.mrf.mxu1 }
0x480c   : > { %v5525_v26 = vmul.f32 2.0, %v5517_v25  ;;  %v5509_v42 = vadd.f32 %v15926_v40, %v5508_v34  ;;  %v5533_v43 = vmul.f32 0.0625, %v5517_v25 }
0x480d   : > { %v11184_v38 = vpop.f32.mrf.mxu1 }
0x480e   : > { %v5523_v47 = vmul.f32 2.0, %v5509_v42  ;;  %v5520_v23 = vadd.f32 %v15926_v40, %v11184_v38  ;;  %v15937_v52 = vadd.f32 %v5525_v26, %v5407_v8  ;;  %v5531_v4 = vmul.f32 0.0625, %v5509_v42 }
0x480f   : > { %v5511_v6 = vpop.f32.mrf.mxu1  ;;  %v5537_v62 = vadd.f32 %v5533_v43, %v15731_v9 }
0x4810   : > { %v5526_v44 = vmul.f32 2.0, %v5520_v23  ;;  %v5534_v19 = vmul.f32 0.0625, %v5520_v23  ;;  %v5512_v15 = vadd.f32 %v15926_v40, %v5511_v6  ;;  %v15940_v31 = vadd.f32 %v5523_v47, %v5405_v61 }
0x4811   : > { %v5535_v20 = vadd.f32 %v5531_v4, %v15725_v0 }
0x4812   : > { %v5524_v48 = vmul.f32 2.0, %v5512_v15  ;;  %v5532_v21 = vmul.f32 0.0625, %v5512_v15  ;;  %v15943_v13 = vadd.f32 %v5526_v44, %v5408_v50  ;;  %v5538_v60 = vadd.f32 %v5534_v19, %v15722_v7 }
0x4814   : > { %v5536_v56 = vadd.f32 %v5532_v21, %v15728_v53  ;;  %v15948_v12 = vadd.f32 %v5524_v48, %v5406_v57  ;;  %v5540_v30 = vpack.c.bf16 %v5538_v60, %v5537_v62 }
0x4816   : > { %v5539_v18 = vpack.c.bf16 %v5536_v56, %v5535_v20 }
0x4818   : > { %11201 = vmatprep.mubr.bf16.mxu0 %v5539_v18 }
0x4819   : > { %11202 = vmatmul.mubr.bf16.vlgmr.msra.gmra.mxu0 %v5540_v30 }
0x481a   : > { %11226 = vmatpush3.bf16.msra.mxu0 %v15793_v2 }
0x481b   : > { %11227 = vmatprep.subr.bf16.mxu0 %v15796_v49 }
0x481e   : > { %11228 = vmatpush3.bf16.msra.mxu0 %v15796_v49 }
0x481f   : > { %11229 = vmatprep.subr.bf16.mxu0 %v15872_v1 }
0x4822   : > { %11230 = vmatpush3.bf16.msra.mxu0 %v15872_v1 }
0x4823   : > { %11231 = vmatprep.subr.bf16.mxu0 %v15876_v37 }
0x4826   : > { %11232 = vmatpush3.bf16.msra.mxu0 %v15876_v37 }
0x4827   : > { %11233 = vmatprep.subr.bf16.mxu0 %v15880_v35 }
0x482a   : > { %11234 = vmatpush3.bf16.msra.mxu0 %v15880_v35 }
0x482b   : > { %11235 = vmatprep.subr.bf16.mxu0 %v15884_v63 }
0x482e   : > { %11236 = vmatpush3.bf16.msra.mxu0 %v15884_v63 }
0x482f   : > { %11237 = vmatprep.subr.bf16.mxu0 %v15888_v24 }
0x4832   : > { %11238 = vmatpush3.bf16.msra.mxu0 %v15888_v24 }
0x4833   : > { %11239 = vmatprep.subr.bf16.mxu0 %v15892_v5 }
0x4836   : > { %11240 = vmatpush3.bf16.msra.mxu0 %v15892_v5 }
0x4837   : > { %11265 = vmatprep.subr.bf16.mxu0 %v15793_v2 }
0x48d9   : > { %v11203_v36 = vpop.f32.mrf.mxu0 }
0x48da   : > { %v5584_v39 = vadd.f32 %v15900_v17, %v11203_v36 }
0x48db   : > { %v5575_v46 = vpop.f32.mrf.mxu0 }
0x48dc   : > { %v5576_v59 = vadd.f32 %v15900_v17, %v5575_v46 }
0x48dd   : > { %v11204_v27 = vpop.f32.mrf.mxu0 }
0x48de   : > { %v5587_v11 = vadd.f32 %v15900_v17, %v11204_v27  ;;  %12458 = vtanh.f32 %v5576_v59 }
0x48df   : > { %v5578_v33 = vpop.f32.mrf.mxu0 }
0x48e0   : > { %v5579_v29 = vadd.f32 %v15900_v17, %v5578_v33  ;;  %12460 = vtanh.f32 %v5587_v11 }
0x48e2   : > { %12462 = vtanh.f32 %v5579_v29 }
0x48e3   : > { %12464 = vtanh.f32 %v5584_v39 }
0x48eb   : > { %v12459_v16 = vpop.eup %12458 }
0x48ed   : > { %v12461_v55 = vpop.eup %12460 }
0x48ef   : > { %v12463_v25 = vpop.eup %12462 }
0x48f0   : > { %v12465_v28 = vpop.eup %12464  ;;  %v5594_v32 = vpack.c.bf16 %v12463_v25, %v12459_v16 }
0x48f1   : > { %v5595_v34 = vpack.c.bf16 %v12461_v55, %v12465_v28 }
0x48f2   : > { %11221 = vmatprep.mubr.bf16.mxu1 %v5594_v32 }
0x48f3   : > { %11222 = vmatmul.mubr.bf16.vlgmr.msra.gmra.mxu1 %v5595_v34 }
0x48f4   : > { %11246 = vmatpush3.bf16.msra.mxu1 %v15817_v45 }
0x48f5   : > { %11247 = vmatprep.subr.bf16.mxu1 %v15820_v54 }
0x48f8   : > { %11248 = vmatpush3.bf16.msra.mxu1 %v15820_v54 }
0x48f9   : > { %11249 = vmatprep.subr.bf16.mxu1 %v15824_v14 }
0x48fc   : > { %11250 = vmatpush3.bf16.msra.mxu1 %v15824_v14 }
0x48fd   : > { %11251 = vmatprep.subr.bf16.mxu1 %v15828_v3 }
0x4900   : > { %11252 = vmatpush3.bf16.msra.mxu1 %v15828_v3 }
0x4901   : > { %11253 = vmatprep.subr.bf16.mxu1 %v15832_v51 }
0x4904   : > { %11254 = vmatpush3.bf16.msra.mxu1 %v15832_v51 }
0x4905   : > { %11255 = vmatprep.subr.bf16.mxu1 %v15836_v41 }
0x4908   : > { %11256 = vmatpush3.bf16.msra.mxu1 %v15836_v41 }
0x4909   : > { %11257 = vmatprep.subr.bf16.mxu1 %v15840_v22 }
0x490c   : > { %11258 = vmatpush3.bf16.msra.mxu1 %v15840_v22 }
0x490d   : > { %11259 = vmatprep.subr.bf16.mxu1 %v15844_v58 }
0x4910   : > { %11260 = vmatpush3.bf16.msra.mxu1 %v15844_v58 }
0x4911   : > { %11285 = vmatprep.subr.bf16.mxu1 %v15817_v45 }
0x49b3   : > { %v11223_v26 = vpop.f32.mrf.mxu1 }
0x49b4   : > { %v5639_v42 = vadd.f32 %v15926_v40, %v11223_v26 }
0x49b5   : > { %v5630_v8 = vpop.f32.mrf.mxu1 }
0x49b6   : > { %v5631_v38 = vadd.f32 %v15926_v40, %v5630_v8  ;;  %v5647_v61 = vadd.f32 %v5639_v42, %v15937_v52 }
0x49b7   : > { %v11224_v10 = vpop.f32.mrf.mxu1 }
0x49b8   : > { %v5645_v47 = vadd.f32 %v5631_v38, %v15940_v31  ;;  %v5642_v23 = vadd.f32 %v15926_v40, %v11224_v10  ;;  %v5651_v43 = vmul.f32 0.010416667, %v5647_v61 }
0x49b9   : > { %v5633_v50 = vpop.f32.mrf.mxu1 }
0x49ba   : > { %v5648_v6 = vadd.f32 %v5642_v23, %v15943_v13  ;;  %v5634_v4 = vadd.f32 %v15926_v40, %v5633_v50  ;;  %v5649_v44 = vmul.f32 0.010416667, %v5645_v47  ;;  %v16005_v52 = vadd.f32 %v5651_v43, %v15731_v9 }
0x49bc   : > { %v5652_v19 = vmul.f32 0.010416667, %v5648_v6  ;;  %v5646_v15 = vadd.f32 %v5634_v4, %v15948_v12  ;;  %v15999_v31 = vadd.f32 %v5649_v44, %v15725_v0 }
0x49be   : > { %v5650_v57 = vmul.f32 0.010416667, %v5646_v15  ;;  %v15996_v48 = vadd.f32 %v5652_v19, %v15722_v7 }
0x49c0   : > { %v16002_v21 = vadd.f32 %v5650_v57, %v15728_v53  ;;  %v5658_v60 = vpack.c.bf16 %v15996_v48, %v16005_v52 }
0x49c2   : > { %v5657_v13 = vpack.c.bf16 %v16002_v21, %v15999_v31 }
0x49c4   : > { %11241 = vmatprep.mubr.bf16.mxu0 %v5657_v13 }
0x49c5   : > { %11242 = vmatmul.mubr.bf16.vlgmr.msra.gmra.mxu0 %v5658_v60 }
0x49c6   : > { %11266 = vmatpush3.bf16.msra.mxu0 %v15793_v2 }
0x49c7   : > { %11267 = vmatprep.subr.bf16.mxu0 %v15796_v49 }
0x49ca   : > { %11268 = vmatpush3.bf16.msra.mxu0 %v15796_v49 }
0x49cb   : > { %11269 = vmatprep.subr.bf16.mxu0 %v15872_v1 }
0x49ce   : > { %11270 = vmatpush3.bf16.msra.mxu0 %v15872_v1 }
0x49cf   : > { %11271 = vmatprep.subr.bf16.mxu0 %v15876_v37 }
0x49d2   : > { %11272 = vmatpush3.bf16.msra.mxu0 %v15876_v37 }
0x49d3   : > { %11273 = vmatprep.subr.bf16.mxu0 %v15880_v35 }
0x49d6   : > { %11274 = vmatpush3.bf16.msra.mxu0 %v15880_v35 }
0x49d7   : > { %11275 = vmatprep.subr.bf16.mxu0 %v15884_v63 }
0x49da   : > { %11276 = vmatpush3.bf16.msra.mxu0 %v15884_v63 }
0x49db   : > { %11277 = vmatprep.subr.bf16.mxu0 %v15888_v24 }
0x49de   : > { %11278 = vmatpush3.bf16.msra.mxu0 %v15888_v24 }
0x49df   : > { %11279 = vmatprep.subr.bf16.mxu0 %v15892_v5 }
0x49e2   : > { %11280 = vmatpush3.bf16.msra.mxu0 %v15892_v5 }
0x49e3   : > { %11305 = vmatprep.subr.bf16.mxu0 %v15793_v2 }
0x4a85   : > { %v11243_v7 = vpop.f32.mrf.mxu0 }
0x4a86   : > { %v5702_v56 = vadd.f32 %v15900_v17, %v11243_v7 }
0x4a87   : > { %v5693_v0 = vpop.f32.mrf.mxu0 }
0x4a88   : > { %v5694_v53 = vadd.f32 %v15900_v17, %v5693_v0 }
0x4a89   : > { %v11244_v9 = vpop.f32.mrf.mxu0 }
0x4a8a   : > { %v5705_v20 = vadd.f32 %v15900_v17, %v11244_v9  ;;  %12466 = vtanh.f32 %v5694_v53 }
0x4a8b   : > { %v5696_v12 = vpop.f32.mrf.mxu0 }
0x4a8c   : > { %v5697_v62 = vadd.f32 %v15900_v17, %v5696_v12  ;;  %12468 = vtanh.f32 %v5705_v20 }
0x4a8e   : > { %12470 = vtanh.f32 %v5697_v62 }
0x4a8f   : > { %12472 = vtanh.f32 %v5702_v56 }
0x4a97   : > { %v12467_v18 = vpop.eup %12466 }
0x4a99   : > { %v12469_v30 = vpop.eup %12468 }
0x4a9b   : > { %v12471_v36 = vpop.eup %12470 }
0x4a9c   : > { %v12473_v46 = vpop.eup %12472  ;;  %v5712_v59 = vpack.c.bf16 %v12471_v36, %v12467_v18 }
0x4a9d   : > { %v5713_v27 = vpack.c.bf16 %v12469_v30, %v12473_v46 }
0x4a9e   : > { %11261 = vmatprep.mubr.bf16.mxu1 %v5712_v59 }
0x4a9f   : > { %11262 = vmatmul.mubr.bf16.vlgmr.msra.gmra.mxu1 %v5713_v27 }
0x4aa0   : > { %11286 = vmatpush3.bf16.msra.mxu1 %v15817_v45 }
0x4aa1   : > { %11287 = vmatprep.subr.bf16.mxu1 %v15820_v54 }
0x4aa4   : > { %11288 = vmatpush3.bf16.msra.mxu1 %v15820_v54 }
0x4aa5   : > { %11289 = vmatprep.subr.bf16.mxu1 %v15824_v14 }
0x4aa8   : > { %11290 = vmatpush3.bf16.msra.mxu1 %v15824_v14 }
0x4aa9   : > { %11291 = vmatprep.subr.bf16.mxu1 %v15828_v3 }
0x4aac   : > { %11292 = vmatpush3.bf16.msra.mxu1 %v15828_v3 }
0x4aad   : > { %11293 = vmatprep.subr.bf16.mxu1 %v15832_v51 }
0x4ab0   : > { %11294 = vmatpush3.bf16.msra.mxu1 %v15832_v51 }
0x4ab1   : > { %11295 = vmatprep.subr.bf16.mxu1 %v15836_v41 }
0x4ab4   : > { %11296 = vmatpush3.bf16.msra.mxu1 %v15836_v41 }
0x4ab5   : > { %11297 = vmatprep.subr.bf16.mxu1 %v15840_v22 }
0x4ab8   : > { %11298 = vmatpush3.bf16.msra.mxu1 %v15840_v22 }
0x4ab9   : > { %11299 = vmatprep.subr.bf16.mxu1 %v15844_v58 }
0x4abc   : > { %11300 = vmatpush3.bf16.msra.mxu1 %v15844_v58 }
0x4abd   : > { %11325 = vmatprep.subr.bf16.mxu1 %v15817_v45 }
0x4b5f   : > { %v11263_v11 = vpop.f32.mrf.mxu1 }
0x4b60   : > { %v16051_v29 = vadd.f32 %v15926_v40, %v11263_v11 }
0x4b61   : > { %v5748_v39 = vpop.f32.mrf.mxu1 }
0x4b62   : > { %v16048_v33 = vadd.f32 %v15926_v40, %v5748_v39  ;;  %v5765_v26 = vmul.f32 0.03125, %v16051_v29 }
0x4b63   : > { %v11264_v16 = vpop.f32.mrf.mxu1 }
0x4b64   : > { %v16054_v55 = vadd.f32 %v15926_v40, %v11264_v16  ;;  %v5763_v28 = vmul.f32 0.03125, %v16048_v33  ;;  %v5769_v47 = vadd.f32 %v5765_v26, %v16005_v52 }
0x4b65   : > { %v5751_v25 = vpop.f32.mrf.mxu1 }
0x4b66   : > { %v5766_v32 = vmul.f32 0.03125, %v16054_v55  ;;  %v16059_v34 = vadd.f32 %v15926_v40, %v5751_v25  ;;  %v5767_v38 = vadd.f32 %v5763_v28, %v15999_v31 }
0x4b68   : > { %v5764_v42 = vmul.f32 0.03125, %v16059_v34  ;;  %v5770_v8 = vadd.f32 %v5766_v32, %v15996_v48 }
0x4b6a   : > { %v5768_v10 = vadd.f32 %v5764_v42, %v16002_v21  ;;  %v5772_v61 = vpack.c.bf16 %v5770_v8, %v5769_v47 }
0x4b6c   : > { %v5771_v23 = vpack.c.bf16 %v5768_v10, %v5767_v38 }
0x4b6e   : > { %11281 = vmatprep.mubr.bf16.mxu0 %v5771_v23 }
0x4b6f   : > { %11282 = vmatmul.mubr.bf16.vlgmr.msra.gmra.mxu0 %v5772_v61 }
0x4b70   : > { %11306 = vmatpush3.bf16.msra.mxu0 %v15793_v2 }
0x4b71   : > { %11307 = vmatprep.subr.bf16.mxu0 %v15796_v49 }
0x4b74   : > { %11308 = vmatpush3.bf16.msra.mxu0 %v15796_v49 }
0x4b75   : > { %11309 = vmatprep.subr.bf16.mxu0 %v15872_v1 }
0x4b78   : > { %11310 = vmatpush3.bf16.msra.mxu0 %v15872_v1 }
0x4b79   : > { %11311 = vmatprep.subr.bf16.mxu0 %v15876_v37 }
0x4b7c   : > { %11312 = vmatpush3.bf16.msra.mxu0 %v15876_v37 }
0x4b7d   : > { %11313 = vmatprep.subr.bf16.mxu0 %v15880_v35 }
0x4b80   : > { %11314 = vmatpush3.bf16.msra.mxu0 %v15880_v35 }
0x4b81   : > { %11315 = vmatprep.subr.bf16.mxu0 %v15884_v63 }
0x4b84   : > { %11316 = vmatpush3.bf16.msra.mxu0 %v15884_v63 }
0x4b85   : > { %11317 = vmatprep.subr.bf16.mxu0 %v15888_v24 }
0x4b88   : > { %11318 = vmatpush3.bf16.msra.mxu0 %v15888_v24 }
0x4b89   : > { %11319 = vmatprep.subr.bf16.mxu0 %v15892_v5 }
0x4b8c   : > { %11320 = vmatpush3.bf16.msra.mxu0 %v15892_v5 }
0x4b8d   : > { %11345 = vmatprep.subr.bf16.mxu0 %v15793_v2 }
0x4c2f   : > { %v11283_v50 = vpop.f32.mrf.mxu0 }
0x4c30   : > { %v5816_v15 = vadd.f32 %v15900_v17, %v11283_v50 }
0x4c31   : > { %v5807_v6 = vpop.f32.mrf.mxu0 }
0x4c32   : > { %v5808_v4 = vadd.f32 %v15900_v17, %v5807_v6 }
0x4c33   : > { %v11284_v44 = vpop.f32.mrf.mxu0 }
0x4c34   : > { %v5819_v19 = vadd.f32 %v15900_v17, %v11284_v44  ;;  %12474 = vtanh.f32 %v5808_v4 }
0x4c35   : > { %v5810_v43 = vpop.f32.mrf.mxu0 }
0x4c36   : > { %v5811_v57 = vadd.f32 %v15900_v17, %v5810_v43  ;;  %12476 = vtanh.f32 %v5819_v19 }
0x4c38   : > { %12478 = vtanh.f32 %v5811_v57 }
0x4c39   : > { %12480 = vtanh.f32 %v5816_v15 }
0x4c41   : > { %v12475_v13 = vpop.eup %12474 }
0x4c43   : > { %v12477_v60 = vpop.eup %12476 }
0x4c45   : > { %v12479_v7 = vpop.eup %12478 }
0x4c46   : > { %v12481_v0 = vpop.eup %12480  ;;  %v5826_v53 = vpack.c.bf16 %v12479_v7, %v12475_v13 }
0x4c47   : > { %v5827_v9 = vpack.c.bf16 %v12477_v60, %v12481_v0 }
0x4c48   : > { %11301 = vmatprep.mubr.bf16.mxu1 %v5826_v53 }
0x4c49   : > { %11302 = vmatmul.mubr.bf16.vlgmr.msra.gmra.mxu1 %v5827_v9 }
0x4c4a   : > { %11326 = vmatpush3.bf16.msra.mxu1 %v15817_v45 }
0x4c4b   : > { %11327 = vmatprep.subr.bf16.mxu1 %v15820_v54 }
0x4c4e   : > { %11328 = vmatpush3.bf16.msra.mxu1 %v15820_v54 }
0x4c4f   : > { %11329 = vmatprep.subr.bf16.mxu1 %v15824_v14 }
0x4c52   : > { %11330 = vmatpush3.bf16.msra.mxu1 %v15824_v14 }
0x4c53   : > { %11331 = vmatprep.subr.bf16.mxu1 %v15828_v3 }
0x4c56   : > { %11332 = vmatpush3.bf16.msra.mxu1 %v15828_v3 }
0x4c57   : > { %11333 = vmatprep.subr.bf16.mxu1 %v15832_v51 }
0x4c5a   : > { %11334 = vmatpush3.bf16.msra.mxu1 %v15832_v51 }
0x4c5b   : > { %11335 = vmatprep.subr.bf16.mxu1 %v15836_v41 }
0x4c5e   : > { %11336 = vmatpush3.bf16.msra.mxu1 %v15836_v41 }
0x4c5f   : > { %11337 = vmatprep.subr.bf16.mxu1 %v15840_v22 }
0x4c62   : > { %11338 = vmatpush3.bf16.msra.mxu1 %v15840_v22 }
0x4c63   : > { %11339 = vmatprep.subr.bf16.mxu1 %v15844_v58 }
0x4c66   : > { %11340 = vmatpush3.bf16.msra.mxu1 %v15844_v58 }
0x4c67   : > { %11365 = vmatprep.subr.bf16.mxu1 %v15817_v45 }
0x4d09   : > { %v11303_v20 = vpop.f32.mrf.mxu1 }
0x4d0a   : > { %v16107_v62 = vadd.f32 %v15926_v40, %v11303_v20 }
0x4d0b   : > { %v5862_v56 = vpop.f32.mrf.mxu1 }
0x4d0c   : > { %v16104_v12 = vadd.f32 %v15926_v40, %v5862_v56  ;;  %v5887_v27 = vmul.f32 0.03125, %v16107_v62  ;;  %v5879_v13 = vmul.f32 2.0, %v16107_v62 }
0x4d0d   : > { %v11304_v18 = vpop.f32.mrf.mxu1 }
0x4d0e   : > { %v16110_v30 = vadd.f32 %v15926_v40, %v11304_v18  ;;  %v5885_v46 = vmul.f32 0.03125, %v16104_v12  ;;  %v5891_v32 = vadd.f32 %v5887_v27, %v16005_v52  ;;  %v5877_v0 = vmul.f32 2.0, %v16104_v12 }
0x4d0f   : > { %v5865_v36 = vpop.f32.mrf.mxu1  ;;  %v5883_v18 = vadd.f32 %v5879_v13, %v16051_v29 }
0x4d10   : > { %v16114_v59 = vadd.f32 %v15926_v40, %v5865_v36  ;;  %v5888_v11 = vmul.f32 0.03125, %v16110_v30  ;;  %v5889_v25 = vadd.f32 %v5885_v46, %v15999_v31  ;;  %v5880_v53 = vmul.f32 2.0, %v16110_v30 }
0x4d11   : > { %v5881_v62 = vadd.f32 %v5877_v0, %v16048_v33 }
0x4d12   : > { %v5886_v39 = vmul.f32 0.03125, %v16114_v59  ;;  %v5892_v16 = vadd.f32 %v5888_v11, %v15996_v48  ;;  %v5878_v46 = vmul.f32 2.0, %v16114_v59 }
0x4d14   : > { %v5890_v28 = vadd.f32 %v5886_v39, %v16002_v21  ;;  %v5894_v42 = vpack.c.bf16 %v5892_v16, %v5891_v32  ;;  %v5884_v39 = vadd.f32 %v5880_v53, %v16054_v55  ;;  %v5882_v59 = vadd.f32 %v5878_v46, %v16059_v34 }
0x4d16   : > { %v5893_v26 = vpack.c.bf16 %v5890_v28, %v5889_v25 }
0x4d18   : > { %11321 = vmatprep.mubr.bf16.mxu0 %v5893_v26 }
0x4d19   : > { %11322 = vmatmul.mubr.bf16.vlgmr.msra.gmra.mxu0 %v5894_v42 }
0x4d1a   : > { %11346 = vmatpush3.bf16.msra.mxu0 %v15793_v2 }
0x4d1b   : > { %11347 = vmatprep.subr.bf16.mxu0 %v15796_v49 }
0x4d1e   : > { %11348 = vmatpush3.bf16.msra.mxu0 %v15796_v49 }
0x4d1f   : > { %11349 = vmatprep.subr.bf16.mxu0 %v15872_v1 }
0x4d22   : > { %11350 = vmatpush3.bf16.msra.mxu0 %v15872_v1 }
0x4d23   : > { %11351 = vmatprep.subr.bf16.mxu0 %v15876_v37 }
0x4d26   : > { %11352 = vmatpush3.bf16.msra.mxu0 %v15876_v37 }
0x4d27   : > { %11353 = vmatprep.subr.bf16.mxu0 %v15880_v35 }
0x4d2a   : > { %11354 = vmatpush3.bf16.msra.mxu0 %v15880_v35 }
0x4d2b   : > { %11355 = vmatprep.subr.bf16.mxu0 %v15884_v63 }
0x4d2e   : > { %11356 = vmatpush3.bf16.msra.mxu0 %v15884_v63 }
0x4d2f   : > { %11357 = vmatprep.subr.bf16.mxu0 %v15888_v24 }
0x4d32   : > { %11358 = vmatpush3.bf16.msra.mxu0 %v15888_v24 }
0x4d33   : > { %11359 = vmatprep.subr.bf16.mxu0 %v15892_v5 }
0x4d36   : > { %11360 = vmatpush3.bf16.msra.mxu0 %v15892_v5 }
0x4d37   : > { %11385 = vmatprep.subr.bf16.mxu0 %v15793_v2 }
0x4dd9   : > { %v11323_v8 = vpop.f32.mrf.mxu0 }
0x4dda   : > { %v5938_v61 = vadd.f32 %v15900_v17, %v11323_v8 }
0x4ddb   : > { %v5929_v38 = vpop.f32.mrf.mxu0 }
0x4ddc   : > { %v5930_v10 = vadd.f32 %v15900_v17, %v5929_v38 }
0x4ddd   : > { %v11324_v47 = vpop.f32.mrf.mxu0 }
0x4dde   : > { %v5941_v23 = vadd.f32 %v15900_v17, %v11324_v47  ;;  %12482 = vtanh.f32 %v5930_v10 }
0x4ddf   : > { %v5932_v50 = vpop.f32.mrf.mxu0 }
0x4de0   : > { %v5933_v6 = vadd.f32 %v15900_v17, %v5932_v50  ;;  %12484 = vtanh.f32 %v5941_v23 }
0x4de2   : > { %12486 = vtanh.f32 %v5933_v6 }
0x4de3   : > { %12488 = vtanh.f32 %v5938_v61 }
0x4deb   : > { %v12483_v4 = vpop.eup %12482 }
0x4ded   : > { %v12485_v44 = vpop.eup %12484 }
0x4def   : > { %v12487_v19 = vpop.eup %12486 }
0x4df0   : > { %v12489_v15 = vpop.eup %12488  ;;  %v5948_v43 = vpack.c.bf16 %v12487_v19, %v12483_v4 }
0x4df1   : > { %v5949_v57 = vpack.c.bf16 %v12485_v44, %v12489_v15 }
0x4df2   : > { %11341 = vmatprep.mubr.bf16.mxu1 %v5948_v43 }
0x4df3   : > { %11342 = vmatmul.mubr.bf16.vlgmr.msra.gmra.mxu1 %v5949_v57 }
0x4df4   : > { %11366 = vmatpush3.bf16.msra.mxu1 %v15817_v45 }
0x4df5   : > { %11367 = vmatprep.subr.bf16.mxu1 %v15820_v54 }
0x4df8   : > { %11368 = vmatpush3.bf16.msra.mxu1 %v15820_v54 }
0x4df9   : > { %11369 = vmatprep.subr.bf16.mxu1 %v15824_v14 }
0x4dfc   : > { %11370 = vmatpush3.bf16.msra.mxu1 %v15824_v14 }
0x4dfd   : > { %11371 = vmatprep.subr.bf16.mxu1 %v15828_v3 }
0x4e00   : > { %11372 = vmatpush3.bf16.msra.mxu1 %v15828_v3 }
0x4e01   : > { %11373 = vmatprep.subr.bf16.mxu1 %v15832_v51 }
0x4e04   : > { %11374 = vmatpush3.bf16.msra.mxu1 %v15832_v51 }
0x4e05   : > { %11375 = vmatprep.subr.bf16.mxu1 %v15836_v41 }
0x4e08   : > { %11376 = vmatpush3.bf16.msra.mxu1 %v15836_v41 }
0x4e09   : > { %11377 = vmatprep.subr.bf16.mxu1 %v15840_v22 }
0x4e0c   : > { %11378 = vmatpush3.bf16.msra.mxu1 %v15840_v22 }
0x4e0d   : > { %11379 = vmatprep.subr.bf16.mxu1 %v15844_v58 }
0x4e10   : > { %11380 = vmatpush3.bf16.msra.mxu1 %v15844_v58 }
0x4e11   : > { %11405 = vmatprep.subr.bf16.mxu1 %v15817_v45 }
0x4eb3   : > { %v11343_v60 = vpop.f32.mrf.mxu1 }
0x4eb4   : > { %v5993_v7 = vadd.f32 %v15926_v40, %v11343_v60 }
0x4eb5   : > { %v5984_v9 = vpop.f32.mrf.mxu1 }
0x4eb6   : > { %v6001_v20 = vmul.f32 2.0, %v5993_v7  ;;  %v5985_v56 = vadd.f32 %v15926_v40, %v5984_v9  ;;  %v6009_v26 = vmul.f32 0.0625, %v5993_v7 }
0x4eb7   : > { %v11344_v36 = vpop.f32.mrf.mxu1 }
0x4eb8   : > { %v5999_v27 = vmul.f32 2.0, %v5985_v56  ;;  %v5996_v11 = vadd.f32 %v15926_v40, %v11344_v36  ;;  %v16169_v12 = vadd.f32 %v6001_v20, %v5883_v18  ;;  %v6007_v30 = vmul.f32 0.0625, %v5985_v56 }
0x4eb9   : > { %v5987_v16 = vpop.f32.mrf.mxu1  ;;  %v6013_v23 = vadd.f32 %v6009_v26, %v16005_v52 }
0x4eba   : > { %v6002_v25 = vmul.f32 2.0, %v5996_v11  ;;  %v6010_v28 = vmul.f32 0.0625, %v5996_v11  ;;  %v5988_v32 = vadd.f32 %v15926_v40, %v5987_v16  ;;  %v16172_v29 = vadd.f32 %v5999_v27, %v5881_v62 }
0x4ebb   : > { %v6011_v55 = vadd.f32 %v6007_v30, %v15999_v31 }
0x4ebc   : > { %v6000_v42 = vmul.f32 2.0, %v5988_v32  ;;  %v6008_v8 = vmul.f32 0.0625, %v5988_v32  ;;  %v16175_v38 = vadd.f32 %v6002_v25, %v5884_v39  ;;  %v6014_v33 = vadd.f32 %v6010_v28, %v15996_v48  ;;  %v16243_v25 = vld [vmem:[#allocation5 + $0x38] sm:$0xff]  }
0x4ebe   : > { %v6012_v10 = vadd.f32 %v6008_v8, %v16002_v21  ;;  %v16180_v47 = vadd.f32 %v6000_v42, %v5882_v59  ;;  %v6016_v50 = vpack.c.bf16 %v6014_v33, %v6013_v23  ;;  %v16267_v42 = vld [vmem:[#allocation7 + $0x38] sm:$0xff]   ;;  %v16270_v8 = vld [vmem:[#allocation7 + $0x30] sm:$0xff]  }
0x4ebf   : > { %v16282_v33 = vld [vmem:[#allocation7 + $0x18] sm:$0xff]  }
0x4ec0   : > { %v6015_v61 = vpack.c.bf16 %v6012_v10, %v6011_v55  ;;  %v16286_v55 = vld [vmem:[#allocation7 + $0x10] sm:$0xff]   ;;  %v16290_v10 = vld [vmem:[#allocation7 + $0x8] sm:$0xff]  }
0x4ec2   : > { %11361 = vmatprep.mubr.bf16.mxu0 %v6015_v61 }
0x4ec3   : > { %11362 = vmatmul.mubr.bf16.vlgmr.msra.gmra.mxu0 %v6016_v50 }
0x4ec4   : > { %11386 = vmatpush3.bf16.msra.mxu0 %v15793_v2 }
0x4ec5   : > { %11387 = vmatprep.subr.bf16.mxu0 %v15796_v49 }
0x4ec8   : > { %11388 = vmatpush3.bf16.msra.mxu0 %v15796_v49 }
0x4ec9   : > { %11389 = vmatprep.subr.bf16.mxu0 %v15872_v1 }
0x4ecc   : > { %11390 = vmatpush3.bf16.msra.mxu0 %v15872_v1 }
0x4ecd   : > { %11391 = vmatprep.subr.bf16.mxu0 %v15876_v37 }
0x4ed0   : > { %11392 = vmatpush3.bf16.msra.mxu0 %v15876_v37 }
0x4ed1   : > { %11393 = vmatprep.subr.bf16.mxu0 %v15880_v35 }
0x4ed4   : > { %11394 = vmatpush3.bf16.msra.mxu0 %v15880_v35 }
0x4ed5   : > { %11395 = vmatprep.subr.bf16.mxu0 %v15884_v63 }
0x4ed8   : > { %11396 = vmatpush3.bf16.msra.mxu0 %v15884_v63 }
0x4ed9   : > { %11397 = vmatprep.subr.bf16.mxu0 %v15888_v24 }
0x4edc   : > { %11398 = vmatpush3.bf16.msra.mxu0 %v15888_v24 }
0x4edd   : > { %11399 = vmatprep.subr.bf16.mxu0 %v15892_v5 }
0x4ee0   : > { %11400 = vmatpush3.bf16.msra.mxu0 %v15892_v5 }
0x4ee1   : > { %11425 = vmatprep.subr.bf16.mxu0 %v15793_v2 }
0x4f83   : > { %v11363_v49 = vpop.f32.mrf.mxu0 }
0x4f84   : > { %v6060_v19 = vadd.f32 %v15900_v17, %v11363_v49 }
0x4f85   : > { %v6051_v34 = vpop.f32.mrf.mxu0 }
0x4f86   : > { %v6052_v6 = vadd.f32 %v15900_v17, %v6051_v34 }
0x4f87   : > { %v11364_v4 = vpop.f32.mrf.mxu0 }
0x4f88   : > { %v6063_v44 = vadd.f32 %v15900_v17, %v11364_v4  ;;  %12490 = vtanh.f32 %v6052_v6 }
0x4f89   : > { %v6054_v15 = vpop.f32.mrf.mxu0 }
0x4f8a   : > { %v6055_v43 = vadd.f32 %v15900_v17, %v6054_v15  ;;  %12492 = vtanh.f32 %v6063_v44 }
0x4f8c   : > { %12494 = vtanh.f32 %v6055_v43 }
0x4f8d   : > { %12496 = vtanh.f32 %v6060_v19 }
0x4f95   : > { %v12491_v57 = vpop.eup %12490 }
0x4f97   : > { %v12493_v13 = vpop.eup %12492 }
0x4f99   : > { %v12495_v60 = vpop.eup %12494 }
0x4f9a   : > { %v12497_v2 = vpop.eup %12496  ;;  %v6070_v7 = vpack.c.bf16 %v12495_v60, %v12491_v57 }
0x4f9b   : > { %v6071_v0 = vpack.c.bf16 %v12493_v13, %v12497_v2 }
0x4f9c   : > { %11381 = vmatprep.mubr.bf16.mxu1 %v6070_v7 }
0x4f9d   : > { %11382 = vmatmul.mubr.bf16.vlgmr.msra.gmra.mxu1 %v6071_v0 }
0x4f9e   : > { %11406 = vmatpush3.bf16.msra.mxu1 %v15817_v45 }
0x4f9f   : > { %11407 = vmatprep.subr.bf16.mxu1 %v15820_v54 }
0x4fa2   : > { %11408 = vmatpush3.bf16.msra.mxu1 %v15820_v54 }
0x4fa3   : > { %11409 = vmatprep.subr.bf16.mxu1 %v15824_v14 }
0x4fa6   : > { %11410 = vmatpush3.bf16.msra.mxu1 %v15824_v14 }
0x4fa7   : > { %11411 = vmatprep.subr.bf16.mxu1 %v15828_v3 }
0x4faa   : > { %11412 = vmatpush3.bf16.msra.mxu1 %v15828_v3 }
0x4fab   : > { %11413 = vmatprep.subr.bf16.mxu1 %v15832_v51 }
0x4fae   : > { %11414 = vmatpush3.bf16.msra.mxu1 %v15832_v51 }
0x4faf   : > { %11415 = vmatprep.subr.bf16.mxu1 %v15836_v41 }
0x4fb2   : > { %11416 = vmatpush3.bf16.msra.mxu1 %v15836_v41 }
0x4fb3   : > { %11417 = vmatprep.subr.bf16.mxu1 %v15840_v22 }
0x4fb6   : > { %11418 = vmatpush3.bf16.msra.mxu1 %v15840_v22 }
0x4fb7   : > { %11419 = vmatprep.subr.bf16.mxu1 %v15844_v58 }
0x4fba   : > { %11420 = vmatpush3.bf16.msra.mxu1 %v15844_v58 }
0x4fbb   : > { %11445 = vmatprep.subr.bf16.mxu1 %v15817_v45 }
0x505d   : > { %v11383_v54 = vpop.f32.mrf.mxu1 }
0x505e   : > { %v6115_v14 = vadd.f32 %v15926_v40, %v11383_v54 }
0x505f   : > { %v6106_v3 = vpop.f32.mrf.mxu1 }
0x5060   : > { %v6107_v51 = vadd.f32 %v15926_v40, %v6106_v3  ;;  %v6123_v20 = vadd.f32 %v6115_v14, %v16169_v12  ;;  %v16326_v14 = vld [vmem:[#allocation5 + $0x20] sm:$0xff]   ;;  %v16330_v3 = vld [vmem:[#allocation5 + $0x18] sm:$0xff]  }
0x5061   : > { %v11384_v53 = vpop.f32.mrf.mxu1 }
0x5062   : > { %v6121_v9 = vadd.f32 %v6107_v51, %v16172_v29  ;;  %v6118_v41 = vadd.f32 %v15926_v40, %v11384_v53  ;;  %v6127_v46 = vmul.f32 0.010416667, %v6123_v20  ;;  %v16334_v51 = vld [vmem:[#allocation5 + $0x10] sm:$0xff]   ;;  %v16338_v53 = vld [vmem:[#allocation5 + $0x8] sm:$0xff]  }
0x5063   : > { %v6109_v22 = vpop.f32.mrf.mxu1 }
0x5064   : > { %v6124_v56 = vadd.f32 %v6118_v41, %v16175_v38  ;;  %v6110_v58 = vadd.f32 %v15926_v40, %v6109_v22  ;;  %v6125_v18 = vmul.f32 0.010416667, %v6121_v9  ;;  %v16237_v16 = vadd.f32 %v6127_v46, %v16005_v52  ;;  %v16278_v38 = vld [vmem:[#allocation7 + $0x20] sm:$0xff]  }
0x5065   : > { %v16342_v9 = vld [vmem:[#allocation5] sm:$0xff]  }
0x5066   : > { %v6128_v45 = vmul.f32 0.010416667, %v6124_v56  ;;  %v6122_v36 = vadd.f32 %v6110_v58, %v16180_v47  ;;  %v16231_v62 = vadd.f32 %v6125_v18, %v15999_v31  ;;  %v16294_v47 = vld [vmem:[#allocation7] sm:$0xff]  }
0x5067   : > { %v16350_v22 = vld [vmem:[%s17232_s2] ss:$0 sm:$0xff] }
0x5068   : > { %v6126_v27 = vmul.f32 0.010416667, %v6122_v36  ;;  %v16228_v11 = vadd.f32 %v6128_v45, %v15996_v48  ;;  %v16246_v48 = vld [vmem:[#allocation5 + $0x30] sm:$0xff]  }
0x506a   : > { %v16234_v39 = vadd.f32 %v6126_v27, %v16002_v21  ;;  %v6134_v30 = vpack.c.bf16 %v16228_v11, %v16237_v16 }
0x506c   : > { %v6133_v12 = vpack.c.bf16 %v16234_v39, %v16231_v62 }
0x506e   : > { %11401 = vmatprep.mubr.bf16.mxu0 %v6133_v12 }
0x506f   : > { %11402 = vmatmul.mubr.bf16.vlgmr.msra.gmra.mxu0 %v6134_v30 }
0x5070   : > { %11426 = vmatpush3.bf16.msra.mxu0 %v16243_v25 }
0x5071   : > { %11427 = vmatprep.subr.bf16.mxu0 %v16246_v48 }
0x5074   : > { %11428 = vmatpush3.bf16.msra.mxu0 %v16246_v48 }
0x5075   : > { %11429 = vmatprep.subr.bf16.mxu0 %v15872_v1 }
0x5078   : > { %11430 = vmatpush3.bf16.msra.mxu0 %v15872_v1 }
0x5079   : > { %11431 = vmatprep.subr.bf16.mxu0 %v15876_v37 }
0x507c   : > { %11432 = vmatpush3.bf16.msra.mxu0 %v15876_v37 }
0x507d   : > { %11433 = vmatprep.subr.bf16.mxu0 %v15880_v35 }
0x5080   : > { %11434 = vmatpush3.bf16.msra.mxu0 %v15880_v35 }
0x5081   : > { %11435 = vmatprep.subr.bf16.mxu0 %v15884_v63 }
0x5084   : > { %11436 = vmatpush3.bf16.msra.mxu0 %v15884_v63 }
0x5085   : > { %11437 = vmatprep.subr.bf16.mxu0 %v15888_v24 }
0x5088   : > { %11438 = vmatpush3.bf16.msra.mxu0 %v15888_v24 }
0x5089   : > { %11439 = vmatprep.subr.bf16.mxu0 %v15892_v5 }
0x508c   : > { %11440 = vmatpush3.bf16.msra.mxu0 %v15892_v5 }
0x508d   : > { %11465 = vmatprep.subr.bf16.mxu0 %v16243_v25 }
0x512f   : > { %v11403_v1 = vpop.f32.mrf.mxu0 }
0x5130   : > { %v6178_v52 = vadd.f32 %v15900_v17, %v11403_v1 }
0x5131   : > { %v6169_v37 = vpop.f32.mrf.mxu0 }
0x5132   : > { %v6170_v31 = vadd.f32 %v15900_v17, %v6169_v37 }
0x5133   : > { %v11404_v21 = vpop.f32.mrf.mxu0 }
0x5134   : > { %v6181_v35 = vadd.f32 %v15900_v17, %v11404_v21  ;;  %12498 = vtanh.f32 %v6170_v31 }
0x5135   : > { %v6172_v63 = vpop.f32.mrf.mxu0 }
0x5136   : > { %v6173_v28 = vadd.f32 %v15900_v17, %v6172_v63  ;;  %12500 = vtanh.f32 %v6181_v35  ;;  %v16274_v17 = vld [vmem:[#allocation7 + $0x28] sm:$0xff]  }
0x5138   : > { %12502 = vtanh.f32 %v6173_v28 }
0x5139   : > { %12504 = vtanh.f32 %v6178_v52  ;;  %v16375_v52 = vld [vmem:[%s17234_s4] ss:$0 sm:$0xff] }
0x5141   : > { %v12499_v24 = vpop.eup %12498 }
0x5143   : > { %v12501_v5 = vpop.eup %12500 }
0x5145   : > { %v12503_v32 = vpop.eup %12502 }
0x5146   : > { %v12505_v26 = vpop.eup %12504  ;;  %v6188_v29 = vpack.c.bf16 %v12503_v32, %v12499_v24 }
0x5147   : > { %v6189_v59 = vpack.c.bf16 %v12501_v5, %v12505_v26 }
0x5148   : > { %11421 = vmatprep.mubr.bf16.mxu1 %v6188_v29 }
0x5149   : > { %11422 = vmatmul.mubr.bf16.vlgmr.msra.gmra.mxu1 %v6189_v59 }
0x514a   : > { %11446 = vmatpush3.bf16.msra.mxu1 %v16267_v42 }
0x514b   : > { %11447 = vmatprep.subr.bf16.mxu1 %v16270_v8 }
0x514e   : > { %11448 = vmatpush3.bf16.msra.mxu1 %v16270_v8 }
0x514f   : > { %11449 = vmatprep.subr.bf16.mxu1 %v16274_v17 }
0x5152   : > { %11450 = vmatpush3.bf16.msra.mxu1 %v16274_v17 }
0x5153   : > { %11451 = vmatprep.subr.bf16.mxu1 %v16278_v38 }
0x5156   : > { %11452 = vmatpush3.bf16.msra.mxu1 %v16278_v38 }
0x5157   : > { %11453 = vmatprep.subr.bf16.mxu1 %v16282_v33 }
0x515a   : > { %11454 = vmatpush3.bf16.msra.mxu1 %v16282_v33 }
0x515b   : > { %11455 = vmatprep.subr.bf16.mxu1 %v16286_v55 }
0x515e   : > { %11456 = vmatpush3.bf16.msra.mxu1 %v16286_v55 }
0x515f   : > { %11457 = vmatprep.subr.bf16.mxu1 %v16290_v10 }
0x5162   : > { %11458 = vmatpush3.bf16.msra.mxu1 %v16290_v10 }
0x5163   : > { %11459 = vmatprep.subr.bf16.mxu1 %v16294_v47 }
0x5166   : > { %11460 = vmatpush3.bf16.msra.mxu1 %v16294_v47 }
0x5167   : > { %11485 = vmatprep.subr.bf16.mxu1 %v16267_v42 }
0x5209   : > { %v11423_v23 = vpop.f32.mrf.mxu1 }
0x520a   : > { %v16303_v49 = vadd.f32 %v15926_v40, %v11423_v23 }
0x520b   : > { %v6224_v61 = vpop.f32.mrf.mxu1 }
0x520c   : > { %v16300_v50 = vadd.f32 %v15926_v40, %v6224_v61  ;;  %v6241_v43 = vmul.f32 0.03125, %v16303_v49 }
0x520d   : > { %v11424_v34 = vpop.f32.mrf.mxu1 }
0x520e   : > { %v16306_v6 = vadd.f32 %v15926_v40, %v11424_v34  ;;  %v6239_v44 = vmul.f32 0.03125, %v16300_v50  ;;  %v6245_v7 = vadd.f32 %v6241_v43, %v16237_v16 }
0x520f   : > { %v6227_v4 = vpop.f32.mrf.mxu1 }
0x5210   : > { %v6242_v19 = vmul.f32 0.03125, %v16306_v6  ;;  %v16311_v15 = vadd.f32 %v15926_v40, %v6227_v4  ;;  %v6243_v60 = vadd.f32 %v6239_v44, %v16231_v62  ;;  %v16322_v40 = vld [vmem:[#allocation5 + $0x28] sm:$0xff]  }
0x5212   : > { %v6240_v57 = vmul.f32 0.03125, %v16311_v15  ;;  %v6246_v13 = vadd.f32 %v6242_v19, %v16228_v11 }
0x5214   : > { %v6244_v2 = vadd.f32 %v6240_v57, %v16234_v39  ;;  %v6248_v54 = vpack.c.bf16 %v6246_v13, %v6245_v7 }
0x5216   : > { %v6247_v0 = vpack.c.bf16 %v6244_v2, %v6243_v60 }
0x5218   : > { %11441 = vmatprep.mubr.bf16.mxu0 %v6247_v0 }
0x5219   : > { %11442 = vmatmul.mubr.bf16.vlgmr.msra.gmra.mxu0 %v6248_v54 }
0x521a   : > { %11466 = vmatpush3.bf16.msra.mxu0 %v16243_v25 }
0x521b   : > { %11467 = vmatprep.subr.bf16.mxu0 %v16246_v48 }
0x521e   : > { %11468 = vmatpush3.bf16.msra.mxu0 %v16246_v48 }
0x521f   : > { %11469 = vmatprep.subr.bf16.mxu0 %v16322_v40 }
0x5222   : > { %11470 = vmatpush3.bf16.msra.mxu0 %v16322_v40 }
0x5223   : > { %11471 = vmatprep.subr.bf16.mxu0 %v16326_v14 }
0x5226   : > { %11472 = vmatpush3.bf16.msra.mxu0 %v16326_v14 }
0x5227   : > { %11473 = vmatprep.subr.bf16.mxu0 %v16330_v3 }
0x522a   : > { %11474 = vmatpush3.bf16.msra.mxu0 %v16330_v3 }
0x522b   : > { %11475 = vmatprep.subr.bf16.mxu0 %v16334_v51 }
0x522e   : > { %11476 = vmatpush3.bf16.msra.mxu0 %v16334_v51 }
0x522f   : > { %11477 = vmatprep.subr.bf16.mxu0 %v16338_v53 }
0x5232   : > { %11478 = vmatpush3.bf16.msra.mxu0 %v16338_v53 }
0x5233   : > { %11479 = vmatprep.subr.bf16.mxu0 %v16342_v9 }
0x5236   : > { %11480 = vmatpush3.bf16.msra.mxu0 %v16342_v9 }
0x5237   : > { %11505 = vmatprep.subr.bf16.mxu0 %v16243_v25 }
0x52d9   : > { %v11443_v41 = vpop.f32.mrf.mxu0 }
0x52da   : > { %v6292_v45 = vadd.f32 %v16350_v22, %v11443_v41 }
0x52db   : > { %v6283_v20 = vpop.f32.mrf.mxu0 }
0x52dc   : > { %v6284_v56 = vadd.f32 %v16350_v22, %v6283_v20 }
0x52dd   : > { %v11444_v58 = vpop.f32.mrf.mxu0 }
0x52de   : > { %v6295_v18 = vadd.f32 %v16350_v22, %v11444_v58  ;;  %12506 = vtanh.f32 %v6284_v56 }
0x52df   : > { %v6286_v36 = vpop.f32.mrf.mxu0 }
0x52e0   : > { %v6287_v46 = vadd.f32 %v16350_v22, %v6286_v36  ;;  %12508 = vtanh.f32 %v6295_v18 }
0x52e2   : > { %12510 = vtanh.f32 %v6287_v46 }
0x52e3   : > { %12512 = vtanh.f32 %v6292_v45 }
0x52eb   : > { %v12507_v27 = vpop.eup %12506 }
0x52ed   : > { %v12509_v12 = vpop.eup %12508 }
0x52ef   : > { %v12511_v30 = vpop.eup %12510 }
0x52f0   : > { %v12513_v1 = vpop.eup %12512  ;;  %v6302_v37 = vpack.c.bf16 %v12511_v30, %v12507_v27 }
0x52f1   : > { %v6303_v31 = vpack.c.bf16 %v12509_v12, %v12513_v1 }
0x52f2   : > { %11461 = vmatprep.mubr.bf16.mxu1 %v6302_v37 }
0x52f3   : > { %11462 = vmatmul.mubr.bf16.vlgmr.msra.gmra.mxu1 %v6303_v31 }
0x52f4   : > { %11486 = vmatpush3.bf16.msra.mxu1 %v16267_v42 }
0x52f5   : > { %11487 = vmatprep.subr.bf16.mxu1 %v16270_v8 }
0x52f8   : > { %11488 = vmatpush3.bf16.msra.mxu1 %v16270_v8 }
0x52f9   : > { %11489 = vmatprep.subr.bf16.mxu1 %v16274_v17 }
0x52fc   : > { %11490 = vmatpush3.bf16.msra.mxu1 %v16274_v17 }
0x52fd   : > { %11491 = vmatprep.subr.bf16.mxu1 %v16278_v38 }
0x5300   : > { %11492 = vmatpush3.bf16.msra.mxu1 %v16278_v38 }
0x5301   : > { %11493 = vmatprep.subr.bf16.mxu1 %v16282_v33 }
0x5304   : > { %11494 = vmatpush3.bf16.msra.mxu1 %v16282_v33 }
0x5305   : > { %11495 = vmatprep.subr.bf16.mxu1 %v16286_v55 }
0x5308   : > { %11496 = vmatpush3.bf16.msra.mxu1 %v16286_v55 }
0x5309   : > { %11497 = vmatprep.subr.bf16.mxu1 %v16290_v10 }
0x530c   : > { %11498 = vmatpush3.bf16.msra.mxu1 %v16290_v10 }
0x530d   : > { %11499 = vmatprep.subr.bf16.mxu1 %v16294_v47 }
0x5310   : > { %11500 = vmatpush3.bf16.msra.mxu1 %v16294_v47 }
0x5311   : > { %11525 = vmatprep.subr.bf16.mxu1 %v16267_v42 }
0x53b3   : > { %v11463_v21 = vpop.f32.mrf.mxu1 }
0x53b4   : > { %v16381_v28 = vadd.f32 %v16375_v52, %v11463_v21 }
0x53b5   : > { %v6338_v35 = vpop.f32.mrf.mxu1 }
0x53b6   : > { %v16378_v63 = vadd.f32 %v16375_v52, %v6338_v35  ;;  %v6363_v59 = vmul.f32 0.03125, %v16381_v28  ;;  %v6355_v27 = vmul.f32 2.0, %v16381_v28 }
0x53b7   : > { %v11464_v24 = vpop.f32.mrf.mxu1 }
0x53b8   : > { %v16384_v5 = vadd.f32 %v16375_v52, %v11464_v24  ;;  %v6361_v26 = vmul.f32 0.03125, %v16378_v63  ;;  %v6367_v19 = vadd.f32 %v6363_v59, %v16237_v16  ;;  %v6353_v1 = vmul.f32 2.0, %v16378_v63 }
0x53b9   : > { %v6341_v32 = vpop.f32.mrf.mxu1  ;;  %v6359_v24 = vadd.f32 %v6355_v27, %v16303_v49 }
0x53ba   : > { %v16388_v29 = vadd.f32 %v16375_v52, %v6341_v32  ;;  %v6364_v23 = vmul.f32 0.03125, %v16384_v5  ;;  %v6365_v4 = vadd.f32 %v6361_v26, %v16231_v62  ;;  %v6356_v37 = vmul.f32 2.0, %v16384_v5 }
0x53bb   : > { %v6357_v28 = vadd.f32 %v6353_v1, %v16300_v50 }
0x53bc   : > { %v6362_v61 = vmul.f32 0.03125, %v16388_v29  ;;  %v6368_v34 = vadd.f32 %v6364_v23, %v16228_v11  ;;  %v6354_v26 = vmul.f32 2.0, %v16388_v29 }
0x53be   : > { %v6366_v44 = vadd.f32 %v6362_v61, %v16234_v39  ;;  %v6370_v57 = vpack.c.bf16 %v6368_v34, %v6367_v19  ;;  %v6360_v61 = vadd.f32 %v6356_v37, %v16306_v6  ;;  %v6358_v29 = vadd.f32 %v6354_v26, %v16311_v15 }
0x53c0   : > { %v6369_v43 = vpack.c.bf16 %v6366_v44, %v6365_v4 }
0x53c2   : > { %11481 = vmatprep.mubr.bf16.mxu0 %v6369_v43 }
0x53c3   : > { %11482 = vmatmul.mubr.bf16.vlgmr.msra.gmra.mxu0 %v6370_v57 }
0x53c4   : > { %11506 = vmatpush3.bf16.msra.mxu0 %v16243_v25 }
0x53c5   : > { %11507 = vmatprep.subr.bf16.mxu0 %v16246_v48 }
0x53c8   : > { %11508 = vmatpush3.bf16.msra.mxu0 %v16246_v48 }
0x53c9   : > { %11509 = vmatprep.subr.bf16.mxu0 %v16322_v40 }
0x53cc   : > { %11510 = vmatpush3.bf16.msra.mxu0 %v16322_v40 }
0x53cd   : > { %11511 = vmatprep.subr.bf16.mxu0 %v16326_v14 }
0x53d0   : > { %11512 = vmatpush3.bf16.msra.mxu0 %v16326_v14 }
0x53d1   : > { %11513 = vmatprep.subr.bf16.mxu0 %v16330_v3 }
0x53d4   : > { %11514 = vmatpush3.bf16.msra.mxu0 %v16330_v3 }
0x53d5   : > { %11515 = vmatprep.subr.bf16.mxu0 %v16334_v51 }
0x53d8   : > { %11516 = vmatpush3.bf16.msra.mxu0 %v16334_v51 }
0x53d9   : > { %11517 = vmatprep.subr.bf16.mxu0 %v16338_v53 }
0x53dc   : > { %11518 = vmatpush3.bf16.msra.mxu0 %v16338_v53 }
0x53dd   : > { %11519 = vmatprep.subr.bf16.mxu0 %v16342_v9 }
0x53e0   : > { %11520 = vmatpush3.bf16.msra.mxu0 %v16342_v9 }
0x53e1   : > { %11545 = vmatprep.subr.bf16.mxu0 %v16243_v25 }
0x5483   : > { %v11483_v13 = vpop.f32.mrf.mxu0 }
0x5484   : > { %v6414_v54 = vadd.f32 %v16350_v22, %v11483_v13 }
0x5485   : > { %v6405_v60 = vpop.f32.mrf.mxu0 }
0x5486   : > { %v6406_v2 = vadd.f32 %v16350_v22, %v6405_v60 }
0x5487   : > { %v11484_v7 = vpop.f32.mrf.mxu0 }
0x5488   : > { %v6417_v0 = vadd.f32 %v16350_v22, %v11484_v7  ;;  %12514 = vtanh.f32 %v6406_v2 }
0x5489   : > { %v6408_v41 = vpop.f32.mrf.mxu0 }
0x548a   : > { %v6409_v20 = vadd.f32 %v16350_v22, %v6408_v41  ;;  %12516 = vtanh.f32 %v6417_v0 }
0x548c   : > { %12518 = vtanh.f32 %v6409_v20 }
0x548d   : > { %12520 = vtanh.f32 %v6414_v54 }
0x5495   : > { %v12515_v56 = vpop.eup %12514 }
0x5497   : > { %v12517_v58 = vpop.eup %12516 }
0x5499   : > { %v12519_v18 = vpop.eup %12518 }
0x549a   : > { %v12521_v45 = vpop.eup %12520  ;;  %v6424_v36 = vpack.c.bf16 %v12519_v18, %v12515_v56 }
0x549b   : > { %v6425_v46 = vpack.c.bf16 %v12517_v58, %v12521_v45 }
0x549c   : > { %11501 = vmatprep.mubr.bf16.mxu1 %v6424_v36 }
0x549d   : > { %11502 = vmatmul.mubr.bf16.vlgmr.msra.gmra.mxu1 %v6425_v46 }
0x549e   : > { %11526 = vmatpush3.bf16.msra.mxu1 %v16267_v42 }
0x549f   : > { %11527 = vmatprep.subr.bf16.mxu1 %v16270_v8 }
0x54a2   : > { %11528 = vmatpush3.bf16.msra.mxu1 %v16270_v8 }
0x54a3   : > { %11529 = vmatprep.subr.bf16.mxu1 %v16274_v17 }
0x54a6   : > { %11530 = vmatpush3.bf16.msra.mxu1 %v16274_v17 }
0x54a7   : > { %11531 = vmatprep.subr.bf16.mxu1 %v16278_v38 }
0x54aa   : > { %11532 = vmatpush3.bf16.msra.mxu1 %v16278_v38 }
0x54ab   : > { %11533 = vmatprep.subr.bf16.mxu1 %v16282_v33 }
0x54ae   : > { %11534 = vmatpush3.bf16.msra.mxu1 %v16282_v33 }
0x54af   : > { %11535 = vmatprep.subr.bf16.mxu1 %v16286_v55 }
0x54b2   : > { %11536 = vmatpush3.bf16.msra.mxu1 %v16286_v55 }
0x54b3   : > { %11537 = vmatprep.subr.bf16.mxu1 %v16290_v10 }
0x54b6   : > { %11538 = vmatpush3.bf16.msra.mxu1 %v16290_v10 }
0x54b7   : > { %11539 = vmatprep.subr.bf16.mxu1 %v16294_v47 }
0x54ba   : > { %11540 = vmatpush3.bf16.msra.mxu1 %v16294_v47 }
0x54bb   : > { %11565 = vmatprep.subr.bf16.mxu1 %v16267_v42 }
0x555d   : > { %v11503_v12 = vpop.f32.mrf.mxu1 }
0x555e   : > { %v6469_v30 = vadd.f32 %v16375_v52, %v11503_v12 }
0x555f   : > { %v6460_v31 = vpop.f32.mrf.mxu1 }
0x5560   : > { %v6477_v21 = vmul.f32 2.0, %v6469_v30  ;;  %v6461_v35 = vadd.f32 %v16375_v52, %v6460_v31  ;;  %v6485_v43 = vmul.f32 0.0625, %v6469_v30 }
0x5561   : > { %v11504_v32 = vpop.f32.mrf.mxu1 }
0x5562   : > { %v6475_v59 = vmul.f32 2.0, %v6461_v35  ;;  %v6472_v23 = vadd.f32 %v16375_v52, %v11504_v32  ;;  %v16443_v63 = vadd.f32 %v6477_v21, %v6359_v24  ;;  %v6483_v5 = vmul.f32 0.0625, %v6461_v35 }
0x5563   : > { %v6463_v34 = vpop.f32.mrf.mxu1  ;;  %v6489_v0 = vadd.f32 %v6485_v43, %v16237_v16 }
0x5564   : > { %v6478_v4 = vmul.f32 2.0, %v6472_v23  ;;  %v6486_v44 = vmul.f32 0.0625, %v6472_v23  ;;  %v6464_v19 = vadd.f32 %v16375_v52, %v6463_v34  ;;  %v16446_v49 = vadd.f32 %v6475_v59, %v6357_v28 }
0x5565   : > { %v6487_v6 = vadd.f32 %v6483_v5, %v16231_v62 }
0x5566   : > { %v6476_v57 = vmul.f32 2.0, %v6464_v19  ;;  %v6484_v13 = vmul.f32 0.0625, %v6464_v19  ;;  %v16449_v60 = vadd.f32 %v6478_v4, %v6360_v61  ;;  %v6490_v50 = vadd.f32 %v6486_v44, %v16228_v11 }
0x5568   : > { %v6488_v2 = vadd.f32 %v6484_v13, %v16234_v39  ;;  %v16454_v7 = vadd.f32 %v6476_v57, %v6358_v29  ;;  %v6492_v41 = vpack.c.bf16 %v6490_v50, %v6489_v0 }
0x556a   : > { %v6491_v54 = vpack.c.bf16 %v6488_v2, %v6487_v6 }
0x556c   : > { %11521 = vmatprep.mubr.bf16.mxu0 %v6491_v54 }
0x556d   : > { %11522 = vmatmul.mubr.bf16.vlgmr.msra.gmra.mxu0 %v6492_v41 }
0x556e   : > { %11546 = vmatpush3.bf16.msra.mxu0 %v16243_v25 }
0x556f   : > { %11547 = vmatprep.subr.bf16.mxu0 %v16246_v48 }
0x5572   : > { %11548 = vmatpush3.bf16.msra.mxu0 %v16246_v48 }
0x5573   : > { %11549 = vmatprep.subr.bf16.mxu0 %v16322_v40 }
0x5576   : > { %11550 = vmatpush3.bf16.msra.mxu0 %v16322_v40 }
0x5577   : > { %11551 = vmatprep.subr.bf16.mxu0 %v16326_v14 }
0x557a   : > { %11552 = vmatpush3.bf16.msra.mxu0 %v16326_v14 }
0x557b   : > { %11553 = vmatprep.subr.bf16.mxu0 %v16330_v3 }
0x557e   : > { %11554 = vmatpush3.bf16.msra.mxu0 %v16330_v3 }
0x557f   : > { %11555 = vmatprep.subr.bf16.mxu0 %v16334_v51 }
0x5582   : > { %11556 = vmatpush3.bf16.msra.mxu0 %v16334_v51 }
0x5583   : > { %11557 = vmatprep.subr.bf16.mxu0 %v16338_v53 }
0x5586   : > { %11558 = vmatpush3.bf16.msra.mxu0 %v16338_v53 }
0x5587   : > { %11559 = vmatprep.subr.bf16.mxu0 %v16342_v9 }
0x558a   : > { %11560 = vmatpush3.bf16.msra.mxu0 %v16342_v9 }
0x558b   : > { %11585 = vmatprep.subr.bf16.mxu0 %v16243_v25 }
0x562d   : > { %v11523_v15 = vpop.f32.mrf.mxu0 }
0x562e   : > { %v6536_v45 = vadd.f32 %v16350_v22, %v11523_v15 }
0x562f   : > { %v6527_v20 = vpop.f32.mrf.mxu0 }
0x5630   : > { %v6528_v56 = vadd.f32 %v16350_v22, %v6527_v20 }
0x5631   : > { %v11524_v58 = vpop.f32.mrf.mxu0 }
0x5632   : > { %v6539_v18 = vadd.f32 %v16350_v22, %v11524_v58  ;;  %12522 = vtanh.f32 %v6528_v56 }
0x5633   : > { %v6530_v36 = vpop.f32.mrf.mxu0 }
0x5634   : > { %v6531_v46 = vadd.f32 %v16350_v22, %v6530_v36  ;;  %12524 = vtanh.f32 %v6539_v18 }
0x5636   : > { %12526 = vtanh.f32 %v6531_v46 }
0x5637   : > { %12528 = vtanh.f32 %v6536_v45 }
0x563f   : > { %v12523_v27 = vpop.eup %12522 }
0x5641   : > { %v12525_v12 = vpop.eup %12524 }
0x5643   : > { %v12527_v30 = vpop.eup %12526 }
0x5644   : > { %v12529_v1 = vpop.eup %12528  ;;  %v6546_v37 = vpack.c.bf16 %v12527_v30, %v12523_v27 }
0x5645   : > { %v6547_v31 = vpack.c.bf16 %v12525_v12, %v12529_v1 }
0x5646   : > { %11541 = vmatprep.mubr.bf16.mxu1 %v6546_v37 }
0x5647   : > { %11542 = vmatmul.mubr.bf16.vlgmr.msra.gmra.mxu1 %v6547_v31 }
0x5648   : > { %11566 = vmatpush3.bf16.msra.mxu1 %v16267_v42 }
0x5649   : > { %11567 = vmatprep.subr.bf16.mxu1 %v16270_v8 }
0x564c   : > { %11568 = vmatpush3.bf16.msra.mxu1 %v16270_v8 }
0x564d   : > { %11569 = vmatprep.subr.bf16.mxu1 %v16274_v17 }
0x5650   : > { %11570 = vmatpush3.bf16.msra.mxu1 %v16274_v17 }
0x5651   : > { %11571 = vmatprep.subr.bf16.mxu1 %v16278_v38 }
0x5654   : > { %11572 = vmatpush3.bf16.msra.mxu1 %v16278_v38 }
0x5655   : > { %11573 = vmatprep.subr.bf16.mxu1 %v16282_v33 }
0x5658   : > { %11574 = vmatpush3.bf16.msra.mxu1 %v16282_v33 }
0x5659   : > { %11575 = vmatprep.subr.bf16.mxu1 %v16286_v55 }
0x565c   : > { %11576 = vmatpush3.bf16.msra.mxu1 %v16286_v55 }
0x565d   : > { %11577 = vmatprep.subr.bf16.mxu1 %v16290_v10 }
0x5660   : > { %11578 = vmatpush3.bf16.msra.mxu1 %v16290_v10 }
0x5661   : > { %11579 = vmatprep.subr.bf16.mxu1 %v16294_v47 }
0x5664   : > { %11580 = vmatpush3.bf16.msra.mxu1 %v16294_v47 }
0x5665   : > { %11605 = vmatprep.subr.bf16.mxu1 %v16267_v42 }
0x5707   : > { %v11543_v21 = vpop.f32.mrf.mxu1 }
0x5708   : > { %v6591_v35 = vadd.f32 %v16375_v52, %v11543_v21 }
0x5709   : > { %v6582_v24 = vpop.f32.mrf.mxu1 }
0x570a   : > { %v6583_v32 = vadd.f32 %v16375_v52, %v6582_v24  ;;  %v6599_v28 = vadd.f32 %v6591_v35, %v16443_v63 }
0x570b   : > { %v11544_v26 = vpop.f32.mrf.mxu1 }
0x570c   : > { %v6597_v59 = vadd.f32 %v6583_v32, %v16446_v49  ;;  %v6594_v23 = vadd.f32 %v16375_v52, %v11544_v26  ;;  %v6603_v43 = vmul.f32 0.010416667, %v6599_v28 }
0x570d   : > { %v6585_v61 = vpop.f32.mrf.mxu1 }
0x570e   : > { %v6600_v34 = vadd.f32 %v6594_v23, %v16449_v60  ;;  %v6586_v5 = vadd.f32 %v16375_v52, %v6585_v61  ;;  %v6601_v4 = vmul.f32 0.010416667, %v6597_v59  ;;  %v16511_v63 = vadd.f32 %v6603_v43, %v16237_v16 }
0x5710   : > { %v6604_v44 = vmul.f32 0.010416667, %v6600_v34  ;;  %v6598_v19 = vadd.f32 %v6586_v5, %v16454_v7  ;;  %v16505_v49 = vadd.f32 %v6601_v4, %v16231_v62 }
0x5712   : > { %v6602_v29 = vmul.f32 0.010416667, %v6598_v19  ;;  %v16502_v57 = vadd.f32 %v6604_v44, %v16228_v11 }
0x5714   : > { %v16508_v13 = vadd.f32 %v6602_v29, %v16234_v39  ;;  %v6610_v50 = vpack.c.bf16 %v16502_v57, %v16511_v63 }
0x5716   : > { %v6609_v60 = vpack.c.bf16 %v16508_v13, %v16505_v49 }
0x5718   : > { %11561 = vmatprep.mubr.bf16.mxu0 %v6609_v60 }
0x5719   : > { %11562 = vmatmul.mubr.bf16.vlgmr.msra.gmra.mxu0 %v6610_v50 }
0x571a   : > { %11586 = vmatpush3.bf16.msra.mxu0 %v16243_v25 }
0x571b   : > { %11587 = vmatprep.subr.bf16.mxu0 %v16246_v48 }
0x571e   : > { %11588 = vmatpush3.bf16.msra.mxu0 %v16246_v48 }
0x571f   : > { %11589 = vmatprep.subr.bf16.mxu0 %v16322_v40 }
0x5722   : > { %11590 = vmatpush3.bf16.msra.mxu0 %v16322_v40 }
0x5723   : > { %11591 = vmatprep.subr.bf16.mxu0 %v16326_v14 }
0x5726   : > { %11592 = vmatpush3.bf16.msra.mxu0 %v16326_v14 }
0x5727   : > { %11593 = vmatprep.subr.bf16.mxu0 %v16330_v3 }
0x572a   : > { %11594 = vmatpush3.bf16.msra.mxu0 %v16330_v3 }
0x572b   : > { %11595 = vmatprep.subr.bf16.mxu0 %v16334_v51 }
0x572e   : > { %11596 = vmatpush3.bf16.msra.mxu0 %v16334_v51 }
0x572f   : > { %11597 = vmatprep.subr.bf16.mxu0 %v16338_v53 }
0x5732   : > { %11598 = vmatpush3.bf16.msra.mxu0 %v16338_v53 }
0x5733   : > { %11599 = vmatprep.subr.bf16.mxu0 %v16342_v9 }
0x5736   : > { %11600 = vmatpush3.bf16.msra.mxu0 %v16342_v9 }
0x5737   : > { %11625 = vmatprep.subr.bf16.mxu0 %v16243_v25 }
0x57d9   : > { %v11563_v11 = vpop.f32.mrf.mxu0 }
0x57da   : > { %v6654_v2 = vadd.f32 %v16350_v22, %v11563_v11 }
0x57db   : > { %v6645_v62 = vpop.f32.mrf.mxu0 }
0x57dc   : > { %v6646_v39 = vadd.f32 %v16350_v22, %v6645_v62 }
0x57dd   : > { %v11564_v16 = vpop.f32.mrf.mxu0 }
0x57de   : > { %v6657_v6 = vadd.f32 %v16350_v22, %v11564_v16  ;;  %12530 = vtanh.f32 %v6646_v39 }
0x57df   : > { %v6648_v7 = vpop.f32.mrf.mxu0 }
0x57e0   : > { %v6649_v0 = vadd.f32 %v16350_v22, %v6648_v7  ;;  %12532 = vtanh.f32 %v6657_v6 }
0x57e2   : > { %12534 = vtanh.f32 %v6649_v0 }
0x57e3   : > { %12536 = vtanh.f32 %v6654_v2 }
0x57eb   : > { %v12531_v54 = vpop.eup %12530 }
0x57ed   : > { %v12533_v41 = vpop.eup %12532 }
0x57ef   : > { %v12535_v15 = vpop.eup %12534 }
0x57f0   : > { %v12537_v20 = vpop.eup %12536  ;;  %v6664_v56 = vpack.c.bf16 %v12535_v15, %v12531_v54 }
0x57f1   : > { %v6665_v58 = vpack.c.bf16 %v12533_v41, %v12537_v20 }
0x57f2   : > { %11581 = vmatprep.mubr.bf16.mxu1 %v6664_v56 }
0x57f3   : > { %11582 = vmatmul.mubr.bf16.vlgmr.msra.gmra.mxu1 %v6665_v58 }
0x57f4   : > { %11606 = vmatpush3.bf16.msra.mxu1 %v16267_v42 }
0x57f5   : > { %11607 = vmatprep.subr.bf16.mxu1 %v16270_v8 }
0x57f8   : > { %11608 = vmatpush3.bf16.msra.mxu1 %v16270_v8 }
0x57f9   : > { %11609 = vmatprep.subr.bf16.mxu1 %v16274_v17 }
0x57fc   : > { %11610 = vmatpush3.bf16.msra.mxu1 %v16274_v17 }
0x57fd   : > { %11611 = vmatprep.subr.bf16.mxu1 %v16278_v38 }
0x5800   : > { %11612 = vmatpush3.bf16.msra.mxu1 %v16278_v38 }
0x5801   : > { %11613 = vmatprep.subr.bf16.mxu1 %v16282_v33 }
0x5804   : > { %11614 = vmatpush3.bf16.msra.mxu1 %v16282_v33 }
0x5805   : > { %11615 = vmatprep.subr.bf16.mxu1 %v16286_v55 }
0x5808   : > { %11616 = vmatpush3.bf16.msra.mxu1 %v16286_v55 }
0x5809   : > { %11617 = vmatprep.subr.bf16.mxu1 %v16290_v10 }
0x580c   : > { %11618 = vmatpush3.bf16.msra.mxu1 %v16290_v10 }
0x580d   : > { %11619 = vmatprep.subr.bf16.mxu1 %v16294_v47 }
0x5810   : > { %11620 = vmatpush3.bf16.msra.mxu1 %v16294_v47 }
0x5811   : > { %11645 = vmatprep.subr.bf16.mxu1 %v16267_v42 }
0x58b3   : > { %v11583_v18 = vpop.f32.mrf.mxu1 }
0x58b4   : > { %v16557_v46 = vadd.f32 %v16375_v52, %v11583_v18 }
0x58b5   : > { %v6700_v45 = vpop.f32.mrf.mxu1 }
0x58b6   : > { %v16554_v36 = vadd.f32 %v16375_v52, %v6700_v45  ;;  %v6717_v21 = vmul.f32 0.03125, %v16557_v46 }
0x58b7   : > { %v11584_v27 = vpop.f32.mrf.mxu1 }
0x58b8   : > { %v16560_v12 = vadd.f32 %v16375_v52, %v11584_v27  ;;  %v6715_v1 = vmul.f32 0.03125, %v16554_v36  ;;  %v6721_v59 = vadd.f32 %v6717_v21, %v16511_v63 }
0x58b9   : > { %v6703_v30 = vpop.f32.mrf.mxu1 }
0x58ba   : > { %v6718_v37 = vmul.f32 0.03125, %v16560_v12  ;;  %v16565_v31 = vadd.f32 %v16375_v52, %v6703_v30  ;;  %v6719_v32 = vadd.f32 %v6715_v1, %v16505_v49 }
0x58bc   : > { %v6716_v35 = vmul.f32 0.03125, %v16565_v31  ;;  %v6722_v24 = vadd.f32 %v6718_v37, %v16502_v57 }
0x58be   : > { %v6720_v26 = vadd.f32 %v6716_v35, %v16508_v13  ;;  %v6724_v28 = vpack.c.bf16 %v6722_v24, %v6721_v59 }
0x58c0   : > { %v6723_v23 = vpack.c.bf16 %v6720_v26, %v6719_v32 }
0x58c2   : > { %11601 = vmatprep.mubr.bf16.mxu0 %v6723_v23 }
0x58c3   : > { %11602 = vmatmul.mubr.bf16.vlgmr.msra.gmra.mxu0 %v6724_v28 }
0x58c4   : > { %11626 = vmatpush3.bf16.msra.mxu0 %v16243_v25 }
0x58c5   : > { %11627 = vmatprep.subr.bf16.mxu0 %v16246_v48 }
0x58c8   : > { %11628 = vmatpush3.bf16.msra.mxu0 %v16246_v48 }
0x58c9   : > { %11629 = vmatprep.subr.bf16.mxu0 %v16322_v40 }
0x58cc   : > { %11630 = vmatpush3.bf16.msra.mxu0 %v16322_v40 }
0x58cd   : > { %11631 = vmatprep.subr.bf16.mxu0 %v16326_v14 }
0x58d0   : > { %11632 = vmatpush3.bf16.msra.mxu0 %v16326_v14 }
0x58d1   : > { %11633 = vmatprep.subr.bf16.mxu0 %v16330_v3 }
0x58d4   : > { %11634 = vmatpush3.bf16.msra.mxu0 %v16330_v3 }
0x58d5   : > { %11635 = vmatprep.subr.bf16.mxu0 %v16334_v51 }
0x58d8   : > { %11636 = vmatpush3.bf16.msra.mxu0 %v16334_v51 }
0x58d9   : > { %11637 = vmatprep.subr.bf16.mxu0 %v16338_v53 }
0x58dc   : > { %11638 = vmatpush3.bf16.msra.mxu0 %v16338_v53 }
0x58dd   : > { %11639 = vmatprep.subr.bf16.mxu0 %v16342_v9 }
0x58e0   : > { %11640 = vmatpush3.bf16.msra.mxu0 %v16342_v9 }
0x58e1   : > { %11665 = vmatprep.subr.bf16.mxu0 %v16243_v25 }
0x5983   : > { %v11603_v61 = vpop.f32.mrf.mxu0 }
0x5984   : > { %v6768_v19 = vadd.f32 %v16350_v22, %v11603_v61 }
0x5985   : > { %v6759_v34 = vpop.f32.mrf.mxu0 }
0x5986   : > { %v6760_v5 = vadd.f32 %v16350_v22, %v6759_v34 }
0x5987   : > { %v11604_v4 = vpop.f32.mrf.mxu0 }
0x5988   : > { %v6771_v44 = vadd.f32 %v16350_v22, %v11604_v4  ;;  %12538 = vtanh.f32 %v6760_v5 }
0x5989   : > { %v6762_v43 = vpop.f32.mrf.mxu0 }
0x598a   : > { %v6763_v29 = vadd.f32 %v16350_v22, %v6762_v43  ;;  %12540 = vtanh.f32 %v6771_v44 }
0x598c   : > { %12542 = vtanh.f32 %v6763_v29 }
0x598d   : > { %12544 = vtanh.f32 %v6768_v19 }
0x5995   : > { %v12539_v60 = vpop.eup %12538 }
0x5997   : > { %v12541_v50 = vpop.eup %12540 }
0x5999   : > { %v12543_v11 = vpop.eup %12542 }
0x599a   : > { %v12545_v62 = vpop.eup %12544  ;;  %v6778_v39 = vpack.c.bf16 %v12543_v11, %v12539_v60 }
0x599b   : > { %v6779_v16 = vpack.c.bf16 %v12541_v50, %v12545_v62 }
0x599c   : > { %11621 = vmatprep.mubr.bf16.mxu1 %v6778_v39 }
0x599d   : > { %11622 = vmatmul.mubr.bf16.vlgmr.msra.gmra.mxu1 %v6779_v16 }
0x599e   : > { %11646 = vmatpush3.bf16.msra.mxu1 %v16267_v42 }
0x599f   : > { %11647 = vmatprep.subr.bf16.mxu1 %v16270_v8 }
0x59a2   : > { %11648 = vmatpush3.bf16.msra.mxu1 %v16270_v8 }
0x59a3   : > { %11649 = vmatprep.subr.bf16.mxu1 %v16274_v17 }
0x59a6   : > { %11650 = vmatpush3.bf16.msra.mxu1 %v16274_v17 }
0x59a7   : > { %11651 = vmatprep.subr.bf16.mxu1 %v16278_v38 }
0x59aa   : > { %11652 = vmatpush3.bf16.msra.mxu1 %v16278_v38 }
0x59ab   : > { %11653 = vmatprep.subr.bf16.mxu1 %v16282_v33 }
0x59ae   : > { %11654 = vmatpush3.bf16.msra.mxu1 %v16282_v33 }
0x59af   : > { %11655 = vmatprep.subr.bf16.mxu1 %v16286_v55 }
0x59b2   : > { %11656 = vmatpush3.bf16.msra.mxu1 %v16286_v55 }
0x59b3   : > { %11657 = vmatprep.subr.bf16.mxu1 %v16290_v10 }
0x59b6   : > { %11658 = vmatpush3.bf16.msra.mxu1 %v16290_v10 }
0x59b7   : > { %11659 = vmatprep.subr.bf16.mxu1 %v16294_v47 }
0x59ba   : > { %11660 = vmatpush3.bf16.msra.mxu1 %v16294_v47 }
0x59bb   : > { %11685 = vmatprep.subr.bf16.mxu1 %v16267_v42 }
0x5a5d   : > { %v11623_v6 = vpop.f32.mrf.mxu1 }
0x5a5e   : > { %v16613_v0 = vadd.f32 %v16375_v52, %v11623_v6 }
0x5a5f   : > { %v6814_v2 = vpop.f32.mrf.mxu1 }
0x5a60   : > { %v16610_v7 = vadd.f32 %v16375_v52, %v6814_v2  ;;  %v6839_v58 = vmul.f32 0.03125, %v16613_v0 }
0x5a61   : > { %v11624_v54 = vpop.f32.mrf.mxu1 }
0x5a62   : > { %v16616_v41 = vadd.f32 %v16375_v52, %v11624_v54  ;;  %v6837_v20 = vmul.f32 0.03125, %v16610_v7  ;;  %v6843_v37 = vadd.f32 %v6839_v58, %v16511_v63 }
0x5a63   : > { %v6817_v15 = vpop.f32.mrf.mxu1 }
0x5a64   : > { %v16620_v56 = vadd.f32 %v16375_v52, %v6817_v15  ;;  %v6840_v18 = vmul.f32 0.03125, %v16616_v41  ;;  %v6841_v30 = vadd.f32 %v6837_v20, %v16505_v49  ;;  %v6832_v43 = vmul.f32 2.0, %v16616_v41 }
0x5a66   : > { %v6838_v45 = vmul.f32 0.03125, %v16620_v56  ;;  %v6844_v27 = vadd.f32 %v6840_v18, %v16502_v57  ;;  %v6836_v39 = vadd.f32 %v6832_v43, %v16560_v12 }
0x5a68   : > { %v6842_v1 = vadd.f32 %v6838_v45, %v16508_v13  ;;  %v6846_v35 = vpack.c.bf16 %v6844_v27, %v6843_v37  ;;  %v16689_v37 = vld [vmem:[#allocation5 + $0x38] sm:$0xff]  }
0x5a6a   : > { %v6845_v21 = vpack.c.bf16 %v6842_v1, %v6841_v30 }
0x5a6c   : > { %11641 = vmatprep.mubr.bf16.mxu0 %v6845_v21 }
0x5a6d   : > { %11642 = vmatmul.mubr.bf16.vlgmr.msra.gmra.mxu0 %v6846_v35 }
0x5a6e   : > { %11666 = vmatpush3.bf16.msra.mxu0 %v16243_v25 }
0x5a6f   : > { %11667 = vmatprep.subr.bf16.mxu0 %v16246_v48 }
0x5a72   : > { %11668 = vmatpush3.bf16.msra.mxu0 %v16246_v48 }
0x5a73   : > { %11669 = vmatprep.subr.bf16.mxu0 %v16322_v40 }
0x5a76   : > { %11670 = vmatpush3.bf16.msra.mxu0 %v16322_v40 }
0x5a77   : > { %11671 = vmatprep.subr.bf16.mxu0 %v16326_v14 }
0x5a7a   : > { %11672 = vmatpush3.bf16.msra.mxu0 %v16326_v14 }
0x5a7b   : > { %11673 = vmatprep.subr.bf16.mxu0 %v16330_v3 }
0x5a7e   : > { %11674 = vmatpush3.bf16.msra.mxu0 %v16330_v3 }
0x5a7f   : > { %11675 = vmatprep.subr.bf16.mxu0 %v16334_v51 }
0x5a82   : > { %11676 = vmatpush3.bf16.msra.mxu0 %v16334_v51 }
0x5a83   : > { %11677 = vmatprep.subr.bf16.mxu0 %v16338_v53 }
0x5a86   : > { %11678 = vmatpush3.bf16.msra.mxu0 %v16338_v53 }
0x5a87   : > { %11679 = vmatprep.subr.bf16.mxu0 %v16342_v9 }
0x5a8a   : > { %11680 = vmatpush3.bf16.msra.mxu0 %v16342_v9 }
0x5a8b   : > { %11705 = vmatprep.subr.bf16.mxu0 %v16243_v25 }
0x5b2d   : > { %v11643_v48 = vpop.f32.mrf.mxu0 }
0x5b2e   : > { %v6890_v23 = vadd.f32 %v16350_v22, %v11643_v48 }
0x5b2f   : > { %v6881_v24 = vpop.f32.mrf.mxu0 }
0x5b30   : > { %v6882_v32 = vadd.f32 %v16350_v22, %v6881_v24 }
0x5b31   : > { %v11644_v26 = vpop.f32.mrf.mxu0 }
0x5b32   : > { %v6893_v59 = vadd.f32 %v16350_v22, %v11644_v26  ;;  %12546 = vtanh.f32 %v6882_v32 }
0x5b33   : > { %v6884_v28 = vpop.f32.mrf.mxu0 }
0x5b34   : > { %v6885_v61 = vadd.f32 %v16350_v22, %v6884_v28  ;;  %12548 = vtanh.f32 %v6893_v59  ;;  %v16713_v28 = vld [vmem:[#allocation7 + $0x38] sm:$0xff]  }
0x5b36   : > { %12550 = vtanh.f32 %v6885_v61  ;;  %v16716_v61 = vld [vmem:[#allocation7 + $0x30] sm:$0xff]  }
0x5b37   : > { %12552 = vtanh.f32 %v6890_v23 }
0x5b3f   : > { %v12547_v34 = vpop.eup %12546 }
0x5b41   : > { %v12549_v5 = vpop.eup %12548 }
0x5b43   : > { %v12551_v4 = vpop.eup %12550 }
0x5b44   : > { %v12553_v25 = vpop.eup %12552  ;;  %v6900_v44 = vpack.c.bf16 %v12551_v4, %v12547_v34  ;;  %v16724_v34 = vld [vmem:[#allocation7 + $0x20] sm:$0xff]   ;;  %v16732_v4 = vld [vmem:[#allocation7 + $0x10] sm:$0xff]  }
0x5b45   : > { %v6901_v19 = vpack.c.bf16 %v12549_v5, %v12553_v25  ;;  %v16728_v5 = vld [vmem:[#allocation7 + $0x18] sm:$0xff]   ;;  %v16736_v25 = vld [vmem:[#allocation7 + $0x8] sm:$0xff]  }
0x5b46   : > { %11661 = vmatprep.mubr.bf16.mxu1 %v6900_v44  ;;  %v16740_v44 = vld [vmem:[#allocation7] sm:$0xff]  }
0x5b47   : > { %11662 = vmatmul.mubr.bf16.vlgmr.msra.gmra.mxu1 %v6901_v19 }
0x5b48   : > { %11686 = vmatpush3.bf16.msra.mxu1 %v16267_v42 }
0x5b49   : > { %11687 = vmatprep.subr.bf16.mxu1 %v16270_v8 }
0x5b4c   : > { %11688 = vmatpush3.bf16.msra.mxu1 %v16270_v8  ;;  %v6831_v8 = vmul.f32 2.0, %v16613_v0 }
0x5b4d   : > { %11689 = vmatprep.subr.bf16.mxu1 %v16274_v17 }
0x5b50   : > { %11690 = vmatpush3.bf16.msra.mxu1 %v16274_v17 }
0x5b51   : > { %11691 = vmatprep.subr.bf16.mxu1 %v16278_v38 }
0x5b54   : > { %11692 = vmatpush3.bf16.msra.mxu1 %v16278_v38 }
0x5b55   : > { %11693 = vmatprep.subr.bf16.mxu1 %v16282_v33 }
0x5b58   : > { %11694 = vmatpush3.bf16.msra.mxu1 %v16282_v33  ;;  %v6829_v33 = vmul.f32 2.0, %v16610_v7 }
0x5b59   : > { %11695 = vmatprep.subr.bf16.mxu1 %v16286_v55 }
0x5b5a   : > { %v6833_v62 = vadd.f32 %v6829_v33, %v16554_v36 }
0x5b5c   : > { %11696 = vmatpush3.bf16.msra.mxu1 %v16286_v55 }
0x5b5d   : > { %11697 = vmatprep.subr.bf16.mxu1 %v16290_v10 }
0x5b60   : > { %11698 = vmatpush3.bf16.msra.mxu1 %v16290_v10  ;;  %v6835_v10 = vadd.f32 %v6831_v8, %v16557_v46 }
0x5b61   : > { %11699 = vmatprep.subr.bf16.mxu1 %v16294_v47 }
0x5b64   : > { %11700 = vmatpush3.bf16.msra.mxu1 %v16294_v47  ;;  %v6830_v47 = vmul.f32 2.0, %v16620_v56 }
0x5b65   : > { %11725 = vmatprep.subr.bf16.mxu1 %v16267_v42 }
0x5b66   : > { %v6834_v15 = vadd.f32 %v6830_v47, %v16565_v31  ;;  %v16692_v31 = vld [vmem:[#allocation5 + $0x30] sm:$0xff]  }
0x5c07   : > { %v11663_v17 = vpop.f32.mrf.mxu1 }
0x5c08   : > { %v6945_v38 = vadd.f32 %v16375_v52, %v11663_v17 }
0x5c09   : > { %v6936_v55 = vpop.f32.mrf.mxu1 }
0x5c0a   : > { %v6953_v29 = vmul.f32 2.0, %v6945_v38  ;;  %v6937_v60 = vadd.f32 %v16375_v52, %v6936_v55  ;;  %v6961_v41 = vmul.f32 0.0625, %v6945_v38 }
0x5c0b   : > { %v11664_v50 = vpop.f32.mrf.mxu1 }
0x5c0c   : > { %v6951_v11 = vmul.f32 2.0, %v6937_v60  ;;  %v6948_v42 = vadd.f32 %v16375_v52, %v11664_v50  ;;  %v16675_v6 = vadd.f32 %v6953_v29, %v6835_v10  ;;  %v6959_v2 = vmul.f32 0.0625, %v6937_v60 }
0x5c0d   : > { %v6939_v16 = vpop.f32.mrf.mxu1  ;;  %v6965_v27 = vadd.f32 %v6961_v41, %v16511_v63  ;;  %v16792_v41 = vld [vmem:[#allocation5] sm:$0xff]  }
0x5c0e   : > { %v6954_v7 = vmul.f32 2.0, %v6948_v42  ;;  %v6962_v0 = vmul.f32 0.0625, %v6948_v42  ;;  %v6940_v54 = vadd.f32 %v16375_v52, %v6939_v16  ;;  %v16678_v46 = vadd.f32 %v6951_v11, %v6833_v62 }
0x5c0f   : > { %v6963_v12 = vadd.f32 %v6959_v2, %v16505_v49 }
0x5c10   : > { %v6952_v20 = vmul.f32 2.0, %v6940_v54  ;;  %v6960_v56 = vmul.f32 0.0625, %v6940_v54  ;;  %v16681_v58 = vadd.f32 %v6954_v7, %v6836_v39  ;;  %v6966_v36 = vadd.f32 %v6962_v0, %v16502_v57  ;;  %v16788_v54 = vld [vmem:[#allocation5 + $0x8] sm:$0xff]  }
0x5c12   : > { %v6964_v18 = vadd.f32 %v6960_v56, %v16508_v13  ;;  %v16686_v45 = vadd.f32 %v6952_v20, %v6834_v15  ;;  %v6968_v1 = vpack.c.bf16 %v6966_v36, %v6965_v27  ;;  %v16800_v20 = vld [vmem:[%s17232_s2] ss:$0 sm:$0xff] }
0x5c14   : > { %v6967_v30 = vpack.c.bf16 %v6964_v18, %v6963_v12 }
0x5c16   : > { %11681 = vmatprep.mubr.bf16.mxu0 %v6967_v30 }
0x5c17   : > { %11682 = vmatmul.mubr.bf16.vlgmr.msra.gmra.mxu0 %v6968_v1 }
0x5c18   : > { %11706 = vmatpush3.bf16.msra.mxu0 %v16689_v37 }
0x5c19   : > { %11707 = vmatprep.subr.bf16.mxu0 %v16692_v31 }
0x5c1c   : > { %11708 = vmatpush3.bf16.msra.mxu0 %v16692_v31 }
0x5c1d   : > { %11709 = vmatprep.subr.bf16.mxu0 %v16322_v40 }
0x5c20   : > { %11710 = vmatpush3.bf16.msra.mxu0 %v16322_v40 }
0x5c21   : > { %11711 = vmatprep.subr.bf16.mxu0 %v16326_v14 }
0x5c24   : > { %11712 = vmatpush3.bf16.msra.mxu0 %v16326_v14 }
0x5c25   : > { %11713 = vmatprep.subr.bf16.mxu0 %v16330_v3 }
0x5c28   : > { %11714 = vmatpush3.bf16.msra.mxu0 %v16330_v3 }
0x5c29   : > { %11715 = vmatprep.subr.bf16.mxu0 %v16334_v51 }
0x5c2c   : > { %11716 = vmatpush3.bf16.msra.mxu0 %v16334_v51 }
0x5c2d   : > { %11717 = vmatprep.subr.bf16.mxu0 %v16338_v53 }
0x5c30   : > { %11718 = vmatpush3.bf16.msra.mxu0 %v16338_v53 }
0x5c31   : > { %11719 = vmatprep.subr.bf16.mxu0 %v16342_v9 }
0x5c34   : > { %11720 = vmatpush3.bf16.msra.mxu0 %v16342_v9 }
0x5c35   : > { %11745 = vmatprep.subr.bf16.mxu0 %v16689_v37 }
0x5cd7   : > { %v11683_v40 = vpop.f32.mrf.mxu0 }
0x5cd8   : > { %v7012_v48 = vadd.f32 %v16350_v22, %v11683_v40 }
0x5cd9   : > { %v7003_v14 = vpop.f32.mrf.mxu0 }
0x5cda   : > { %v7004_v21 = vadd.f32 %v16350_v22, %v7003_v14 }
0x5cdb   : > { %v11684_v35 = vpop.f32.mrf.mxu0 }
0x5cdc   : > { %v7015_v3 = vadd.f32 %v16350_v22, %v11684_v35  ;;  %12554 = vtanh.f32 %v7004_v21 }
0x5cdd   : > { %v7006_v51 = vpop.f32.mrf.mxu0 }
0x5cde   : > { %v7007_v24 = vadd.f32 %v16350_v22, %v7006_v51  ;;  %12556 = vtanh.f32 %v7015_v3  ;;  %v16720_v22 = vld [vmem:[#allocation7 + $0x28] sm:$0xff]  }
0x5ce0   : > { %12558 = vtanh.f32 %v7007_v24 }
0x5ce1   : > { %12560 = vtanh.f32 %v7012_v48  ;;  %v16825_v48 = vld [vmem:[%s17234_s4] ss:$0 sm:$0xff] }
0x5ce9   : > { %v12555_v53 = vpop.eup %12554 }
0x5ceb   : > { %v12557_v9 = vpop.eup %12556 }
0x5ced   : > { %v12559_v32 = vpop.eup %12558 }
0x5cee   : > { %v12561_v26 = vpop.eup %12560  ;;  %v7022_v59 = vpack.c.bf16 %v12559_v32, %v12555_v53 }
0x5cef   : > { %v7023_v23 = vpack.c.bf16 %v12557_v9, %v12561_v26 }
0x5cf0   : > { %11701 = vmatprep.mubr.bf16.mxu1 %v7022_v59 }
0x5cf1   : > { %11702 = vmatmul.mubr.bf16.vlgmr.msra.gmra.mxu1 %v7023_v23 }
0x5cf2   : > { %11726 = vmatpush3.bf16.msra.mxu1 %v16713_v28 }
0x5cf3   : > { %11727 = vmatprep.subr.bf16.mxu1 %v16716_v61 }
0x5cf6   : > { %11728 = vmatpush3.bf16.msra.mxu1 %v16716_v61 }
0x5cf7   : > { %11729 = vmatprep.subr.bf16.mxu1 %v16720_v22 }
0x5cfa   : > { %11730 = vmatpush3.bf16.msra.mxu1 %v16720_v22 }
0x5cfb   : > { %11731 = vmatprep.subr.bf16.mxu1 %v16724_v34 }
0x5cfe   : > { %11732 = vmatpush3.bf16.msra.mxu1 %v16724_v34 }
0x5cff   : > { %11733 = vmatprep.subr.bf16.mxu1 %v16728_v5 }
0x5d02   : > { %11734 = vmatpush3.bf16.msra.mxu1 %v16728_v5 }
0x5d03   : > { %11735 = vmatprep.subr.bf16.mxu1 %v16732_v4 }
0x5d06   : > { %11736 = vmatpush3.bf16.msra.mxu1 %v16732_v4 }
0x5d07   : > { %11737 = vmatprep.subr.bf16.mxu1 %v16736_v25 }
0x5d0a   : > { %11738 = vmatpush3.bf16.msra.mxu1 %v16736_v25 }
0x5d0b   : > { %11739 = vmatprep.subr.bf16.mxu1 %v16740_v44 }
0x5d0e   : > { %11740 = vmatpush3.bf16.msra.mxu1 %v16740_v44 }
0x5d0f   : > { %11765 = vmatprep.subr.bf16.mxu1 %v16713_v28 }
0x5db1   : > { %v11703_v19 = vpop.f32.mrf.mxu1 }
0x5db2   : > { %v7067_v8 = vadd.f32 %v16375_v52, %v11703_v19 }
0x5db3   : > { %v7058_v17 = vpop.f32.mrf.mxu1 }
0x5db4   : > { %v7059_v38 = vadd.f32 %v16375_v52, %v7058_v17  ;;  %v7075_v29 = vadd.f32 %v7067_v8, %v16675_v6 }
0x5db5   : > { %v11704_v33 = vpop.f32.mrf.mxu1 }
0x5db6   : > { %v7073_v43 = vadd.f32 %v7059_v38, %v16678_v46  ;;  %v7070_v55 = vadd.f32 %v16375_v52, %v11704_v33  ;;  %v7079_v62 = vmul.f32 0.010416667, %v7075_v29 }
0x5db7   : > { %v7061_v60 = vpop.f32.mrf.mxu1 }
0x5db8   : > { %v7076_v10 = vadd.f32 %v7070_v55, %v16681_v58  ;;  %v7062_v50 = vadd.f32 %v16375_v52, %v7061_v60  ;;  %v7077_v47 = vmul.f32 0.010416667, %v7073_v43  ;;  %v16763_v6 = vadd.f32 %v7079_v62, %v16511_v63  ;;  %v16784_v63 = vld [vmem:[#allocation5 + $0x10] sm:$0xff]  }
0x5dba   : > { %v7080_v11 = vmul.f32 0.010416667, %v7076_v10  ;;  %v7074_v42 = vadd.f32 %v7062_v50, %v16686_v45  ;;  %v16757_v2 = vadd.f32 %v7077_v47, %v16505_v49  ;;  %v16776_v49 = vld [vmem:[#allocation5 + $0x20] sm:$0xff]  }
0x5dbc   : > { %v7078_v39 = vmul.f32 0.010416667, %v7074_v42  ;;  %v16754_v16 = vadd.f32 %v7080_v11, %v16502_v57  ;;  %v16772_v57 = vld [vmem:[#allocation5 + $0x28] sm:$0xff]  }
0x5dbe   : > { %v16760_v7 = vadd.f32 %v7078_v39, %v16508_v13  ;;  %v7086_v0 = vpack.c.bf16 %v16754_v16, %v16763_v6  ;;  %v16780_v13 = vld [vmem:[#allocation5 + $0x18] sm:$0xff]  }
0x5dc0   : > { %v7085_v52 = vpack.c.bf16 %v16760_v7, %v16757_v2 }
0x5dc2   : > { %11721 = vmatprep.mubr.bf16.mxu0 %v7085_v52 }
0x5dc3   : > { %11722 = vmatmul.mubr.bf16.vlgmr.msra.gmra.mxu0 %v7086_v0 }
0x5dc4   : > { %11746 = vmatpush3.bf16.msra.mxu0 %v16689_v37 }
0x5dc5   : > { %11747 = vmatprep.subr.bf16.mxu0 %v16692_v31 }
0x5dc8   : > { %11748 = vmatpush3.bf16.msra.mxu0 %v16692_v31 }
0x5dc9   : > { %11749 = vmatprep.subr.bf16.mxu0 %v16772_v57 }
0x5dcc   : > { %11750 = vmatpush3.bf16.msra.mxu0 %v16772_v57 }
0x5dcd   : > { %11751 = vmatprep.subr.bf16.mxu0 %v16776_v49 }
0x5dd0   : > { %11752 = vmatpush3.bf16.msra.mxu0 %v16776_v49 }
0x5dd1   : > { %11753 = vmatprep.subr.bf16.mxu0 %v16780_v13 }
0x5dd4   : > { %11754 = vmatpush3.bf16.msra.mxu0 %v16780_v13 }
0x5dd5   : > { %11755 = vmatprep.subr.bf16.mxu0 %v16784_v63 }
0x5dd8   : > { %11756 = vmatpush3.bf16.msra.mxu0 %v16784_v63 }
0x5dd9   : > { %11757 = vmatprep.subr.bf16.mxu0 %v16788_v54 }
0x5ddc   : > { %11758 = vmatpush3.bf16.msra.mxu0 %v16788_v54 }
0x5ddd   : > { %11759 = vmatprep.subr.bf16.mxu0 %v16792_v41 }
0x5de0   : > { %11760 = vmatpush3.bf16.msra.mxu0 %v16792_v41 }
0x5de1   : > { %11785 = vmatprep.subr.bf16.mxu0 %v16689_v37 }
0x5e83   : > { %v11723_v46 = vpop.f32.mrf.mxu0 }
0x5e84   : > { %v7130_v12 = vadd.f32 %v16800_v20, %v11723_v46 }
0x5e85   : > { %v7121_v15 = vpop.f32.mrf.mxu0 }
0x5e86   : > { %v7122_v56 = vadd.f32 %v16800_v20, %v7121_v15 }
0x5e87   : > { %v11724_v58 = vpop.f32.mrf.mxu0 }
0x5e88   : > { %v7133_v36 = vadd.f32 %v16800_v20, %v11724_v58  ;;  %12562 = vtanh.f32 %v7122_v56 }
0x5e89   : > { %v7124_v18 = vpop.f32.mrf.mxu0 }
0x5e8a   : > { %v7125_v45 = vadd.f32 %v16800_v20, %v7124_v18  ;;  %12564 = vtanh.f32 %v7133_v36 }
0x5e8c   : > { %12566 = vtanh.f32 %v7125_v45 }
0x5e8d   : > { %12568 = vtanh.f32 %v7130_v12 }
0x5e95   : > { %v12563_v27 = vpop.eup %12562 }
0x5e97   : > { %v12565_v30 = vpop.eup %12564 }
0x5e99   : > { %v12567_v1 = vpop.eup %12566 }
0x5e9a   : > { %v12569_v40 = vpop.eup %12568  ;;  %v7140_v14 = vpack.c.bf16 %v12567_v1, %v12563_v27 }
0x5e9b   : > { %v7141_v21 = vpack.c.bf16 %v12565_v30, %v12569_v40 }
0x5e9c   : > { %11741 = vmatprep.mubr.bf16.mxu1 %v7140_v14 }
0x5e9d   : > { %11742 = vmatmul.mubr.bf16.vlgmr.msra.gmra.mxu1 %v7141_v21 }
0x5e9e   : > { %11766 = vmatpush3.bf16.msra.mxu1 %v16713_v28 }
0x5e9f   : > { %11767 = vmatprep.subr.bf16.mxu1 %v16716_v61 }
0x5ea2   : > { %11768 = vmatpush3.bf16.msra.mxu1 %v16716_v61 }
0x5ea3   : > { %11769 = vmatprep.subr.bf16.mxu1 %v16720_v22 }
0x5ea6   : > { %11770 = vmatpush3.bf16.msra.mxu1 %v16720_v22 }
0x5ea7   : > { %11771 = vmatprep.subr.bf16.mxu1 %v16724_v34 }
0x5eaa   : > { %11772 = vmatpush3.bf16.msra.mxu1 %v16724_v34 }
0x5eab   : > { %11773 = vmatprep.subr.bf16.mxu1 %v16728_v5 }
0x5eae   : > { %11774 = vmatpush3.bf16.msra.mxu1 %v16728_v5 }
0x5eaf   : > { %11775 = vmatprep.subr.bf16.mxu1 %v16732_v4 }
0x5eb2   : > { %11776 = vmatpush3.bf16.msra.mxu1 %v16732_v4 }
0x5eb3   : > { %11777 = vmatprep.subr.bf16.mxu1 %v16736_v25 }
0x5eb6   : > { %11778 = vmatpush3.bf16.msra.mxu1 %v16736_v25 }
0x5eb7   : > { %11779 = vmatprep.subr.bf16.mxu1 %v16740_v44 }
0x5eba   : > { %11780 = vmatpush3.bf16.msra.mxu1 %v16740_v44 }
0x5ebb   : > { %11805 = vmatprep.subr.bf16.mxu1 %v16713_v28 }
0x5f5d   : > { %v11743_v35 = vpop.f32.mrf.mxu1 }
0x5f5e   : > { %v16831_v24 = vadd.f32 %v16825_v48, %v11743_v35 }
0x5f5f   : > { %v7176_v3 = vpop.f32.mrf.mxu1 }
0x5f60   : > { %v16828_v51 = vadd.f32 %v16825_v48, %v7176_v3  ;;  %v7193_v19 = vmul.f32 0.03125, %v16831_v24 }
0x5f61   : > { %v11744_v53 = vpop.f32.mrf.mxu1 }
0x5f62   : > { %v16834_v9 = vadd.f32 %v16825_v48, %v11744_v53  ;;  %v7191_v26 = vmul.f32 0.03125, %v16828_v51  ;;  %v7197_v43 = vadd.f32 %v7193_v19, %v16763_v6 }
0x5f63   : > { %v7179_v32 = vpop.f32.mrf.mxu1 }
0x5f64   : > { %v7194_v59 = vmul.f32 0.03125, %v16834_v9  ;;  %v16839_v23 = vadd.f32 %v16825_v48, %v7179_v32  ;;  %v7195_v38 = vadd.f32 %v7191_v26, %v16757_v2 }
0x5f66   : > { %v7192_v8 = vmul.f32 0.03125, %v16839_v23  ;;  %v7198_v17 = vadd.f32 %v7194_v59, %v16754_v16 }
0x5f68   : > { %v7196_v33 = vadd.f32 %v7192_v8, %v16760_v7  ;;  %v7200_v29 = vpack.c.bf16 %v7198_v17, %v7197_v43 }
0x5f6a   : > { %v7199_v55 = vpack.c.bf16 %v7196_v33, %v7195_v38 }
0x5f6c   : > { %11761 = vmatprep.mubr.bf16.mxu0 %v7199_v55 }
0x5f6d   : > { %11762 = vmatmul.mubr.bf16.vlgmr.msra.gmra.mxu0 %v7200_v29 }
0x5f6e   : > { %11786 = vmatpush3.bf16.msra.mxu0 %v16689_v37 }
0x5f6f   : > { %11787 = vmatprep.subr.bf16.mxu0 %v16692_v31 }
0x5f72   : > { %11788 = vmatpush3.bf16.msra.mxu0 %v16692_v31 }
0x5f73   : > { %11789 = vmatprep.subr.bf16.mxu0 %v16772_v57 }
0x5f76   : > { %11790 = vmatpush3.bf16.msra.mxu0 %v16772_v57 }
0x5f77   : > { %11791 = vmatprep.subr.bf16.mxu0 %v16776_v49 }
0x5f7a   : > { %11792 = vmatpush3.bf16.msra.mxu0 %v16776_v49 }
0x5f7b   : > { %11793 = vmatprep.subr.bf16.mxu0 %v16780_v13 }
0x5f7e   : > { %11794 = vmatpush3.bf16.msra.mxu0 %v16780_v13 }
0x5f7f   : > { %11795 = vmatprep.subr.bf16.mxu0 %v16784_v63 }
0x5f82   : > { %11796 = vmatpush3.bf16.msra.mxu0 %v16784_v63 }
0x5f83   : > { %11797 = vmatprep.subr.bf16.mxu0 %v16788_v54 }
0x5f86   : > { %11798 = vmatpush3.bf16.msra.mxu0 %v16788_v54 }
0x5f87   : > { %11799 = vmatprep.subr.bf16.mxu0 %v16792_v41 }
0x5f8a   : > { %11800 = vmatpush3.bf16.msra.mxu0 %v16792_v41 }
0x5f8b   : > { %11825 = vmatprep.subr.bf16.mxu0 %v16689_v37 }
0x602d   : > { %v11763_v60 = vpop.f32.mrf.mxu0 }
0x602e   : > { %v7244_v42 = vadd.f32 %v16800_v20, %v11763_v60 }
0x602f   : > { %v7235_v10 = vpop.f32.mrf.mxu0 }
0x6030   : > { %v7236_v50 = vadd.f32 %v16800_v20, %v7235_v10 }
0x6031   : > { %v11764_v47 = vpop.f32.mrf.mxu0 }
0x6032   : > { %v7247_v11 = vadd.f32 %v16800_v20, %v11764_v47  ;;  %12570 = vtanh.f32 %v7236_v50 }
0x6033   : > { %v7238_v62 = vpop.f32.mrf.mxu0 }
0x6034   : > { %v7239_v39 = vadd.f32 %v16800_v20, %v7238_v62  ;;  %12572 = vtanh.f32 %v7247_v11 }
0x6036   : > { %12574 = vtanh.f32 %v7239_v39 }
0x6037   : > { %12576 = vtanh.f32 %v7244_v42 }
0x603f   : > { %v12571_v52 = vpop.eup %12570 }
0x6041   : > { %v12573_v0 = vpop.eup %12572 }
0x6043   : > { %v12575_v46 = vpop.eup %12574 }
0x6044   : > { %v12577_v15 = vpop.eup %12576  ;;  %v7254_v56 = vpack.c.bf16 %v12575_v46, %v12571_v52 }
0x6045   : > { %v7255_v58 = vpack.c.bf16 %v12573_v0, %v12577_v15 }
0x6046   : > { %11781 = vmatprep.mubr.bf16.mxu1 %v7254_v56 }
0x6047   : > { %11782 = vmatmul.mubr.bf16.vlgmr.msra.gmra.mxu1 %v7255_v58 }
0x6048   : > { %11806 = vmatpush3.bf16.msra.mxu1 %v16713_v28 }
0x6049   : > { %11807 = vmatprep.subr.bf16.mxu1 %v16716_v61 }
0x604c   : > { %11808 = vmatpush3.bf16.msra.mxu1 %v16716_v61 }
0x604d   : > { %11809 = vmatprep.subr.bf16.mxu1 %v16720_v22 }
0x6050   : > { %11810 = vmatpush3.bf16.msra.mxu1 %v16720_v22 }
0x6051   : > { %11811 = vmatprep.subr.bf16.mxu1 %v16724_v34 }
0x6054   : > { %11812 = vmatpush3.bf16.msra.mxu1 %v16724_v34 }
0x6055   : > { %11813 = vmatprep.subr.bf16.mxu1 %v16728_v5 }
0x6058   : > { %11814 = vmatpush3.bf16.msra.mxu1 %v16728_v5 }
0x6059   : > { %11815 = vmatprep.subr.bf16.mxu1 %v16732_v4 }
0x605c   : > { %11816 = vmatpush3.bf16.msra.mxu1 %v16732_v4 }
0x605d   : > { %11817 = vmatprep.subr.bf16.mxu1 %v16736_v25 }
0x6060   : > { %11818 = vmatpush3.bf16.msra.mxu1 %v16736_v25 }
0x6061   : > { %11819 = vmatprep.subr.bf16.mxu1 %v16740_v44 }
0x6064   : > { %11820 = vmatpush3.bf16.msra.mxu1 %v16740_v44 }
0x6065   : > { %11845 = vmatprep.subr.bf16.mxu1 %v16713_v28 }
0x6107   : > { %v11783_v36 = vpop.f32.mrf.mxu1 }
0x6108   : > { %v16887_v45 = vadd.f32 %v16825_v48, %v11783_v36 }
0x6109   : > { %v7290_v12 = vpop.f32.mrf.mxu1 }
0x610a   : > { %v16884_v18 = vadd.f32 %v16825_v48, %v7290_v12  ;;  %v7315_v21 = vmul.f32 0.03125, %v16887_v45  ;;  %v7307_v52 = vmul.f32 2.0, %v16887_v45 }
0x610b   : > { %v11784_v27 = vpop.f32.mrf.mxu1 }
0x610c   : > { %v16890_v30 = vadd.f32 %v16825_v48, %v11784_v27  ;;  %v7313_v40 = vmul.f32 0.03125, %v16884_v18  ;;  %v7319_v59 = vadd.f32 %v7315_v21, %v16763_v6  ;;  %v7305_v15 = vmul.f32 2.0, %v16884_v18 }
0x610d   : > { %v7293_v1 = vpop.f32.mrf.mxu1  ;;  %v7311_v27 = vadd.f32 %v7307_v52, %v16831_v24 }
0x610e   : > { %v16894_v14 = vadd.f32 %v16825_v48, %v7293_v1  ;;  %v7316_v35 = vmul.f32 0.03125, %v16890_v30  ;;  %v7317_v32 = vadd.f32 %v7313_v40, %v16757_v2  ;;  %v7308_v56 = vmul.f32 2.0, %v16890_v30 }
0x610f   : > { %v7309_v45 = vadd.f32 %v7305_v15, %v16828_v51 }
0x6110   : > { %v7314_v3 = vmul.f32 0.03125, %v16894_v14  ;;  %v7320_v53 = vadd.f32 %v7316_v35, %v16754_v16  ;;  %v7306_v40 = vmul.f32 2.0, %v16894_v14 }
0x6112   : > { %v7318_v26 = vadd.f32 %v7314_v3, %v16760_v7  ;;  %v7322_v8 = vpack.c.bf16 %v7320_v53, %v7319_v59  ;;  %v7312_v3 = vadd.f32 %v7308_v56, %v16834_v9  ;;  %v7310_v14 = vadd.f32 %v7306_v40, %v16839_v23 }
0x6114   : > { %v7321_v19 = vpack.c.bf16 %v7318_v26, %v7317_v32 }
0x6116   : > { %11801 = vmatprep.mubr.bf16.mxu0 %v7321_v19 }
0x6117   : > { %11802 = vmatmul.mubr.bf16.vlgmr.msra.gmra.mxu0 %v7322_v8 }
0x6118   : > { %11826 = vmatpush3.bf16.msra.mxu0 %v16689_v37 }
0x6119   : > { %11827 = vmatprep.subr.bf16.mxu0 %v16692_v31 }
0x611c   : > { %11828 = vmatpush3.bf16.msra.mxu0 %v16692_v31 }
0x611d   : > { %11829 = vmatprep.subr.bf16.mxu0 %v16772_v57 }
0x6120   : > { %11830 = vmatpush3.bf16.msra.mxu0 %v16772_v57 }
0x6121   : > { %11831 = vmatprep.subr.bf16.mxu0 %v16776_v49 }
0x6124   : > { %11832 = vmatpush3.bf16.msra.mxu0 %v16776_v49 }
0x6125   : > { %11833 = vmatprep.subr.bf16.mxu0 %v16780_v13 }
0x6128   : > { %11834 = vmatpush3.bf16.msra.mxu0 %v16780_v13 }
0x6129   : > { %11835 = vmatprep.subr.bf16.mxu0 %v16784_v63 }
0x612c   : > { %11836 = vmatpush3.bf16.msra.mxu0 %v16784_v63 }
0x612d   : > { %11837 = vmatprep.subr.bf16.mxu0 %v16788_v54 }
0x6130   : > { %11838 = vmatpush3.bf16.msra.mxu0 %v16788_v54 }
0x6131   : > { %11839 = vmatprep.subr.bf16.mxu0 %v16792_v41 }
0x6134   : > { %11840 = vmatpush3.bf16.msra.mxu0 %v16792_v41 }
0x6135   : > { %11865 = vmatprep.subr.bf16.mxu0 %v16689_v37 }
0x61d7   : > { %v11803_v17 = vpop.f32.mrf.mxu0 }
0x61d8   : > { %v7366_v29 = vadd.f32 %v16800_v20, %v11803_v17 }
0x61d9   : > { %v7357_v38 = vpop.f32.mrf.mxu0 }
0x61da   : > { %v7358_v33 = vadd.f32 %v16800_v20, %v7357_v38 }
0x61db   : > { %v11804_v43 = vpop.f32.mrf.mxu0 }
0x61dc   : > { %v7369_v55 = vadd.f32 %v16800_v20, %v11804_v43  ;;  %12578 = vtanh.f32 %v7358_v33 }
0x61dd   : > { %v7360_v60 = vpop.f32.mrf.mxu0 }
0x61de   : > { %v7361_v10 = vadd.f32 %v16800_v20, %v7360_v60  ;;  %12580 = vtanh.f32 %v7369_v55 }
0x61e0   : > { %12582 = vtanh.f32 %v7361_v10 }
0x61e1   : > { %12584 = vtanh.f32 %v7366_v29 }
0x61e9   : > { %v12579_v50 = vpop.eup %12578 }
0x61eb   : > { %v12581_v47 = vpop.eup %12580 }
0x61ed   : > { %v12583_v11 = vpop.eup %12582 }
0x61ee   : > { %v12585_v42 = vpop.eup %12584  ;;  %v7376_v62 = vpack.c.bf16 %v12583_v11, %v12579_v50 }
0x61ef   : > { %v7377_v39 = vpack.c.bf16 %v12581_v47, %v12585_v42 }
0x61f0   : > { %11821 = vmatprep.mubr.bf16.mxu1 %v7376_v62 }
0x61f1   : > { %11822 = vmatmul.mubr.bf16.vlgmr.msra.gmra.mxu1 %v7377_v39 }
0x61f2   : > { %11846 = vmatpush3.bf16.msra.mxu1 %v16713_v28 }
0x61f3   : > { %11847 = vmatprep.subr.bf16.mxu1 %v16716_v61 }
0x61f6   : > { %11848 = vmatpush3.bf16.msra.mxu1 %v16716_v61 }
0x61f7   : > { %11849 = vmatprep.subr.bf16.mxu1 %v16720_v22 }
0x61fa   : > { %11850 = vmatpush3.bf16.msra.mxu1 %v16720_v22 }
0x61fb   : > { %11851 = vmatprep.subr.bf16.mxu1 %v16724_v34 }
0x61fe   : > { %11852 = vmatpush3.bf16.msra.mxu1 %v16724_v34 }
0x61ff   : > { %11853 = vmatprep.subr.bf16.mxu1 %v16728_v5 }
0x6202   : > { %11854 = vmatpush3.bf16.msra.mxu1 %v16728_v5 }
0x6203   : > { %11855 = vmatprep.subr.bf16.mxu1 %v16732_v4 }
0x6206   : > { %11856 = vmatpush3.bf16.msra.mxu1 %v16732_v4 }
0x6207   : > { %11857 = vmatprep.subr.bf16.mxu1 %v16736_v25 }
0x620a   : > { %11858 = vmatpush3.bf16.msra.mxu1 %v16736_v25 }
0x620b   : > { %11859 = vmatprep.subr.bf16.mxu1 %v16740_v44 }
0x620e   : > { %11860 = vmatpush3.bf16.msra.mxu1 %v16740_v44 }
0x620f   : > { %11885 = vmatprep.subr.bf16.mxu1 %v16713_v28 }
0x62b1   : > { %v11823_v0 = vpop.f32.mrf.mxu1 }
0x62b2   : > { %v7421_v46 = vadd.f32 %v16825_v48, %v11823_v0 }
0x62b3   : > { %v7412_v58 = vpop.f32.mrf.mxu1 }
0x62b4   : > { %v7429_v36 = vmul.f32 2.0, %v7421_v46  ;;  %v7413_v12 = vadd.f32 %v16825_v48, %v7412_v58  ;;  %v7437_v19 = vmul.f32 0.0625, %v7421_v46 }
0x62b5   : > { %v11824_v1 = vpop.f32.mrf.mxu1 }
0x62b6   : > { %v7427_v21 = vmul.f32 2.0, %v7413_v12  ;;  %v7424_v35 = vadd.f32 %v16825_v48, %v11824_v1  ;;  %v16949_v18 = vadd.f32 %v7429_v36, %v7311_v27  ;;  %v7435_v30 = vmul.f32 0.0625, %v7413_v12 }
0x62b7   : > { %v7415_v53 = vpop.f32.mrf.mxu1  ;;  %v7441_v55 = vadd.f32 %v7437_v19, %v16763_v6 }
0x62b8   : > { %v7430_v32 = vmul.f32 2.0, %v7424_v35  ;;  %v7438_v26 = vmul.f32 0.0625, %v7424_v35  ;;  %v7416_v59 = vadd.f32 %v16825_v48, %v7415_v53  ;;  %v16952_v24 = vadd.f32 %v7427_v21, %v7309_v45 }
0x62b9   : > { %v7439_v9 = vadd.f32 %v7435_v30, %v16757_v2 }
0x62ba   : > { %v7428_v8 = vmul.f32 2.0, %v7416_v59  ;;  %v7436_v17 = vmul.f32 0.0625, %v7416_v59  ;;  %v16955_v38 = vadd.f32 %v7430_v32, %v7312_v3  ;;  %v7442_v51 = vadd.f32 %v7438_v26, %v16754_v16 }
0x62bc   : > { %v7440_v33 = vadd.f32 %v7436_v17, %v16760_v7  ;;  %v16960_v43 = vadd.f32 %v7428_v8, %v7310_v14  ;;  %v7444_v60 = vpack.c.bf16 %v7442_v51, %v7441_v55 }
0x62be   : > { %v7443_v29 = vpack.c.bf16 %v7440_v33, %v7439_v9 }
0x62c0   : > { %11841 = vmatprep.mubr.bf16.mxu0 %v7443_v29 }
0x62c1   : > { %11842 = vmatmul.mubr.bf16.vlgmr.msra.gmra.mxu0 %v7444_v60 }
0x62c2   : > { %11866 = vmatpush3.bf16.msra.mxu0 %v16689_v37 }
0x62c3   : > { %11867 = vmatprep.subr.bf16.mxu0 %v16692_v31 }
0x62c6   : > { %11868 = vmatpush3.bf16.msra.mxu0 %v16692_v31 }
0x62c7   : > { %11869 = vmatprep.subr.bf16.mxu0 %v16772_v57 }
0x62ca   : > { %11870 = vmatpush3.bf16.msra.mxu0 %v16772_v57 }
0x62cb   : > { %11871 = vmatprep.subr.bf16.mxu0 %v16776_v49 }
0x62ce   : > { %11872 = vmatpush3.bf16.msra.mxu0 %v16776_v49 }
0x62cf   : > { %11873 = vmatprep.subr.bf16.mxu0 %v16780_v13 }
0x62d2   : > { %11874 = vmatpush3.bf16.msra.mxu0 %v16780_v13 }
0x62d3   : > { %11875 = vmatprep.subr.bf16.mxu0 %v16784_v63 }
0x62d6   : > { %11876 = vmatpush3.bf16.msra.mxu0 %v16784_v63 }
0x62d7   : > { %11877 = vmatprep.subr.bf16.mxu0 %v16788_v54 }
0x62da   : > { %11878 = vmatpush3.bf16.msra.mxu0 %v16788_v54 }
0x62db   : > { %11879 = vmatprep.subr.bf16.mxu0 %v16792_v41 }
0x62de   : > { %11880 = vmatpush3.bf16.msra.mxu0 %v16792_v41 }
0x62df   : > { %11905 = vmatprep.subr.bf16.mxu0 %v16689_v37 }
0x6381   : > { %v11843_v23 = vpop.f32.mrf.mxu0 }
0x6382   : > { %v7488_v42 = vadd.f32 %v16800_v20, %v11843_v23 }
0x6383   : > { %v7479_v10 = vpop.f32.mrf.mxu0 }
0x6384   : > { %v7480_v50 = vadd.f32 %v16800_v20, %v7479_v10 }
0x6385   : > { %v11844_v47 = vpop.f32.mrf.mxu0 }
0x6386   : > { %v7491_v11 = vadd.f32 %v16800_v20, %v11844_v47  ;;  %12586 = vtanh.f32 %v7480_v50 }
0x6387   : > { %v7482_v62 = vpop.f32.mrf.mxu0 }
0x6388   : > { %v7483_v39 = vadd.f32 %v16800_v20, %v7482_v62  ;;  %12588 = vtanh.f32 %v7491_v11 }
0x638a   : > { %12590 = vtanh.f32 %v7483_v39 }
0x638b   : > { %12592 = vtanh.f32 %v7488_v42 }
0x6393   : > { %v12587_v52 = vpop.eup %12586 }
0x6395   : > { %v12589_v0 = vpop.eup %12588 }
0x6397   : > { %v12591_v46 = vpop.eup %12590 }
0x6398   : > { %v12593_v15 = vpop.eup %12592  ;;  %v7498_v56 = vpack.c.bf16 %v12591_v46, %v12587_v52 }
0x6399   : > { %v7499_v58 = vpack.c.bf16 %v12589_v0, %v12593_v15 }
0x639a   : > { %11861 = vmatprep.mubr.bf16.mxu1 %v7498_v56 }
0x639b   : > { %11862 = vmatmul.mubr.bf16.vlgmr.msra.gmra.mxu1 %v7499_v58 }
0x639c   : > { %11886 = vmatpush3.bf16.msra.mxu1 %v16713_v28 }
0x639d   : > { %11887 = vmatprep.subr.bf16.mxu1 %v16716_v61 }
0x63a0   : > { %11888 = vmatpush3.bf16.msra.mxu1 %v16716_v61 }
0x63a1   : > { %11889 = vmatprep.subr.bf16.mxu1 %v16720_v22 }
0x63a4   : > { %11890 = vmatpush3.bf16.msra.mxu1 %v16720_v22 }
0x63a5   : > { %11891 = vmatprep.subr.bf16.mxu1 %v16724_v34 }
0x63a8   : > { %11892 = vmatpush3.bf16.msra.mxu1 %v16724_v34 }
0x63a9   : > { %11893 = vmatprep.subr.bf16.mxu1 %v16728_v5 }
0x63ac   : > { %11894 = vmatpush3.bf16.msra.mxu1 %v16728_v5 }
0x63ad   : > { %11895 = vmatprep.subr.bf16.mxu1 %v16732_v4 }
0x63b0   : > { %11896 = vmatpush3.bf16.msra.mxu1 %v16732_v4 }
0x63b1   : > { %11897 = vmatprep.subr.bf16.mxu1 %v16736_v25 }
0x63b4   : > { %11898 = vmatpush3.bf16.msra.mxu1 %v16736_v25 }
0x63b5   : > { %11899 = vmatprep.subr.bf16.mxu1 %v16740_v44 }
0x63b8   : > { %11900 = vmatpush3.bf16.msra.mxu1 %v16740_v44 }
0x63b9   : > { %11925 = vmatprep.subr.bf16.mxu1 %v16713_v28 }
0x645b   : > { %v11863_v36 = vpop.f32.mrf.mxu1 }
0x645c   : > { %v7543_v12 = vadd.f32 %v16825_v48, %v11863_v36 }
0x645d   : > { %v7534_v27 = vpop.f32.mrf.mxu1 }
0x645e   : > { %v7535_v1 = vadd.f32 %v16825_v48, %v7534_v27  ;;  %v7551_v45 = vadd.f32 %v7543_v12, %v16949_v18 }
0x645f   : > { %v11864_v40 = vpop.f32.mrf.mxu1 }
0x6460   : > { %v7549_v21 = vadd.f32 %v7535_v1, %v16952_v24  ;;  %v7546_v35 = vadd.f32 %v16825_v48, %v11864_v40  ;;  %v7555_v19 = vmul.f32 0.010416667, %v7551_v45 }
0x6461   : > { %v7537_v3 = vpop.f32.mrf.mxu1 }
0x6462   : > { %v7552_v53 = vadd.f32 %v7546_v35, %v16955_v38  ;;  %v7538_v30 = vadd.f32 %v16825_v48, %v7537_v3  ;;  %v7553_v32 = vmul.f32 0.010416667, %v7549_v21  ;;  %v17017_v18 = vadd.f32 %v7555_v19, %v16763_v6 }
0x6464   : > { %v7556_v26 = vmul.f32 0.010416667, %v7552_v53  ;;  %v7550_v59 = vadd.f32 %v7538_v30, %v16960_v43  ;;  %v17011_v24 = vadd.f32 %v7553_v32, %v16757_v2 }
0x6466   : > { %v7554_v14 = vmul.f32 0.010416667, %v7550_v59  ;;  %v17008_v8 = vadd.f32 %v7556_v26, %v16754_v16 }
0x6468   : > { %v17014_v17 = vadd.f32 %v7554_v14, %v16760_v7  ;;  %v7562_v51 = vpack.c.bf16 %v17008_v8, %v17017_v18 }
0x646a   : > { %v7561_v38 = vpack.c.bf16 %v17014_v17, %v17011_v24 }
0x646c   : > { %11881 = vmatprep.mubr.bf16.mxu0 %v7561_v38 }
0x646d   : > { %11882 = vmatmul.mubr.bf16.vlgmr.msra.gmra.mxu0 %v7562_v51 }
0x646e   : > { %11906 = vmatpush3.bf16.msra.mxu0 %v16689_v37 }
0x646f   : > { %11907 = vmatprep.subr.bf16.mxu0 %v16692_v31 }
0x6472   : > { %11908 = vmatpush3.bf16.msra.mxu0 %v16692_v31 }
0x6473   : > { %11909 = vmatprep.subr.bf16.mxu0 %v16772_v57 }
0x6476   : > { %11910 = vmatpush3.bf16.msra.mxu0 %v16772_v57 }
0x6477   : > { %11911 = vmatprep.subr.bf16.mxu0 %v16776_v49 }
0x647a   : > { %11912 = vmatpush3.bf16.msra.mxu0 %v16776_v49 }
0x647b   : > { %11913 = vmatprep.subr.bf16.mxu0 %v16780_v13 }
0x647e   : > { %11914 = vmatpush3.bf16.msra.mxu0 %v16780_v13 }
0x647f   : > { %11915 = vmatprep.subr.bf16.mxu0 %v16784_v63 }
0x6482   : > { %11916 = vmatpush3.bf16.msra.mxu0 %v16784_v63 }
0x6483   : > { %11917 = vmatprep.subr.bf16.mxu0 %v16788_v54 }
0x6486   : > { %11918 = vmatpush3.bf16.msra.mxu0 %v16788_v54 }
0x6487   : > { %11919 = vmatprep.subr.bf16.mxu0 %v16792_v41 }
0x648a   : > { %11920 = vmatpush3.bf16.msra.mxu0 %v16792_v41 }
0x648b   : > { %11945 = vmatprep.subr.bf16.mxu0 %v16689_v37 }
0x652d   : > { %v11883_v16 = vpop.f32.mrf.mxu0 }
0x652e   : > { %v7606_v33 = vadd.f32 %v16800_v20, %v11883_v16 }
0x652f   : > { %v7597_v2 = vpop.f32.mrf.mxu0 }
0x6530   : > { %v7598_v7 = vadd.f32 %v16800_v20, %v7597_v2 }
0x6531   : > { %v11884_v6 = vpop.f32.mrf.mxu0 }
0x6532   : > { %v7609_v9 = vadd.f32 %v16800_v20, %v11884_v6  ;;  %12594 = vtanh.f32 %v7598_v7 }
0x6533   : > { %v7600_v43 = vpop.f32.mrf.mxu0 }
0x6534   : > { %v7601_v55 = vadd.f32 %v16800_v20, %v7600_v43  ;;  %12596 = vtanh.f32 %v7609_v9 }
0x6536   : > { %12598 = vtanh.f32 %v7601_v55 }
0x6537   : > { %12600 = vtanh.f32 %v7606_v33 }
0x653f   : > { %v12595_v29 = vpop.eup %12594 }
0x6541   : > { %v12597_v60 = vpop.eup %12596 }
0x6543   : > { %v12599_v23 = vpop.eup %12598 }
0x6544   : > { %v12601_v10 = vpop.eup %12600  ;;  %v7616_v50 = vpack.c.bf16 %v12599_v23, %v12595_v29 }
0x6545   : > { %v7617_v47 = vpack.c.bf16 %v12597_v60, %v12601_v10 }
0x6546   : > { %11901 = vmatprep.mubr.bf16.mxu1 %v7616_v50  ;;  %v12770_v50 = vld [vmem:[#allocation5 + $0x38] sm:$0xff]  }
0x6547   : > { %11902 = vmatmul.mubr.bf16.vlgmr.msra.gmra.mxu1 %v7617_v47  ;;  %v12771_v47 = vld [vmem:[#allocation5 + $0x30] sm:$0xff]  }
0x6548   : > { %11926 = vmatpush3.bf16.msra.mxu1 %v16713_v28 }
0x6549   : > { %11927 = vmatprep.subr.bf16.mxu1 %v16716_v61 }
0x654c   : > { %11928 = vmatpush3.bf16.msra.mxu1 %v16716_v61 }
0x654d   : > { %11929 = vmatprep.subr.bf16.mxu1 %v16720_v22 }
0x6550   : > { %11930 = vmatpush3.bf16.msra.mxu1 %v16720_v22 }
0x6551   : > { %11931 = vmatprep.subr.bf16.mxu1 %v16724_v34 }
0x6554   : > { %11932 = vmatpush3.bf16.msra.mxu1 %v16724_v34 }
0x6555   : > { %11933 = vmatprep.subr.bf16.mxu1 %v16728_v5 }
0x6558   : > { %11934 = vmatpush3.bf16.msra.mxu1 %v16728_v5 }
0x6559   : > { %11935 = vmatprep.subr.bf16.mxu1 %v16732_v4 }
0x655c   : > { %11936 = vmatpush3.bf16.msra.mxu1 %v16732_v4 }
0x655d   : > { %11937 = vmatprep.subr.bf16.mxu1 %v16736_v25 }
0x6560   : > { %11938 = vmatpush3.bf16.msra.mxu1 %v16736_v25 }
0x6561   : > { %11939 = vmatprep.subr.bf16.mxu1 %v16740_v44 }
0x6564   : > { %11940 = vmatpush3.bf16.msra.mxu1 %v16740_v44 }
0x6565   : > { %11965 = vmatprep.subr.bf16.mxu1 %v16713_v28 }
0x6607   : > { %v11903_v11 = vpop.f32.mrf.mxu1 }
0x6608   : > { %v17063_v39 = vadd.f32 %v16825_v48, %v11903_v11 }
0x6609   : > { %v7652_v42 = vpop.f32.mrf.mxu1 }
0x660a   : > { %v17060_v62 = vadd.f32 %v16825_v48, %v7652_v42  ;;  %v7669_v36 = vmul.f32 0.03125, %v17063_v39 }
0x660b   : > { %v11904_v52 = vpop.f32.mrf.mxu1 }
0x660c   : > { %v17066_v0 = vadd.f32 %v16825_v48, %v11904_v52  ;;  %v7667_v15 = vmul.f32 0.03125, %v17060_v62  ;;  %v7673_v21 = vadd.f32 %v7669_v36, %v17017_v18 }
0x660d   : > { %v7655_v46 = vpop.f32.mrf.mxu1 }
0x660e   : > { %v7670_v56 = vmul.f32 0.03125, %v17066_v0  ;;  %v17071_v58 = vadd.f32 %v16825_v48, %v7655_v46  ;;  %v7671_v1 = vadd.f32 %v7667_v15, %v17011_v24 }
0x6610   : > { %v7668_v12 = vmul.f32 0.03125, %v17071_v58  ;;  %v7674_v27 = vadd.f32 %v7670_v56, %v17008_v8 }
0x6612   : > { %v7672_v40 = vadd.f32 %v7668_v12, %v17014_v17  ;;  %v7676_v45 = vpack.c.bf16 %v7674_v27, %v7673_v21  ;;  %v12772_v27 = vld [vmem:[#allocation7 + $0x38] sm:$0xff]  }
0x6613   : > { %v12776_v21 = vld [vmem:[#allocation7 + $0x18] sm:$0xff]  }
0x6614   : > { %v7675_v35 = vpack.c.bf16 %v7672_v40, %v7671_v1  ;;  %v12773_v1 = vld [vmem:[#allocation7 + $0x30] sm:$0xff]   ;;  %v12774_v40 = vld [vmem:[#allocation7 + $0x28] sm:$0xff]  }
0x6616   : > { %11921 = vmatprep.mubr.bf16.mxu0 %v7675_v35  ;;  %v12777_v35 = vld [vmem:[#allocation7 + $0x10] sm:$0xff]  }
0x6617   : > { %11922 = vmatmul.mubr.bf16.vlgmr.msra.gmra.mxu0 %v7676_v45  ;;  %v12778_v45 = vld [vmem:[#allocation7 + $0x8] sm:$0xff]  }
0x6618   : > { %11946 = vmatpush3.bf16.msra.mxu0 %v16689_v37 }
0x6619   : > { %11947 = vmatprep.subr.bf16.mxu0 %v16692_v31 }
0x661c   : > { %11948 = vmatpush3.bf16.msra.mxu0 %v16692_v31 }
0x661d   : > { %11949 = vmatprep.subr.bf16.mxu0 %v16772_v57 }
0x6620   : > { %11950 = vmatpush3.bf16.msra.mxu0 %v16772_v57 }
0x6621   : > { %11951 = vmatprep.subr.bf16.mxu0 %v16776_v49 }
0x6624   : > { %11952 = vmatpush3.bf16.msra.mxu0 %v16776_v49 }
0x6625   : > { %11953 = vmatprep.subr.bf16.mxu0 %v16780_v13 }
0x6628   : > { %11954 = vmatpush3.bf16.msra.mxu0 %v16780_v13 }
0x6629   : > { %11955 = vmatprep.subr.bf16.mxu0 %v16784_v63 }
0x662c   : > { %11956 = vmatpush3.bf16.msra.mxu0 %v16784_v63 }
0x662d   : > { %11957 = vmatprep.subr.bf16.mxu0 %v16788_v54 }
0x6630   : > { %11958 = vmatpush3.bf16.msra.mxu0 %v16788_v54 }
0x6631   : > { %11959 = vmatprep.subr.bf16.mxu0 %v16792_v41 }
0x6634   : > { %11960 = vmatpush3.bf16.msra.mxu0 %v16792_v41 }
0x6635   : > { %11985 = vmatprep.subr.bf16.mxu0 %v16689_v37 }
0x66d7   : > { %v11923_v31 = vpop.f32.mrf.mxu0 }
0x66d8   : > { %v7720_v26 = vadd.f32 %v16800_v20, %v11923_v31  ;;  %v12779_v31 = vld [vmem:[#allocation7] sm:$0xff]  }
0x66d9   : > { %v7711_v3 = vpop.f32.mrf.mxu0 }
0x66da   : > { %v7712_v53 = vadd.f32 %v16800_v20, %v7711_v3 }
0x66db   : > { %v11924_v30 = vpop.f32.mrf.mxu0 }
0x66dc   : > { %v7723_v32 = vadd.f32 %v16800_v20, %v11924_v30  ;;  %12602 = vtanh.f32 %v7712_v53 }
0x66dd   : > { %v7714_v59 = vpop.f32.mrf.mxu0 }
0x66de   : > { %v7715_v19 = vadd.f32 %v16800_v20, %v7714_v59  ;;  %12604 = vtanh.f32 %v7723_v32 }
0x66e0   : > { %12606 = vtanh.f32 %v7715_v19 }
0x66e1   : > { %12608 = vtanh.f32 %v7720_v26 }
0x66e9   : > { %v12603_v14 = vpop.eup %12602 }
0x66eb   : > { %v12605_v38 = vpop.eup %12604 }
0x66ed   : > { %v12607_v51 = vpop.eup %12606 }
0x66ee   : > { %v12609_v37 = vpop.eup %12608  ;;  %v7730_v16 = vpack.c.bf16 %v12607_v51, %v12603_v14 }
0x66ef   : > { %v7731_v2 = vpack.c.bf16 %v12605_v38, %v12609_v37 }
0x66f0   : > { %11941 = vmatprep.mubr.bf16.mxu1 %v7730_v16 }
0x66f1   : > { %11942 = vmatmul.mubr.bf16.vlgmr.msra.gmra.mxu1 %v7731_v2 }
0x66f2   : > { %11966 = vmatpush3.bf16.msra.mxu1 %v16713_v28 }
0x66f3   : > { %11967 = vmatprep.subr.bf16.mxu1 %v16716_v61 }
0x66f6   : > { %11968 = vmatpush3.bf16.msra.mxu1 %v16716_v61 }
0x66f7   : > { %11969 = vmatprep.subr.bf16.mxu1 %v16720_v22 }
0x66fa   : > { %11970 = vmatpush3.bf16.msra.mxu1 %v16720_v22 }
0x66fb   : > { %11971 = vmatprep.subr.bf16.mxu1 %v16724_v34 }
0x66fe   : > { %11972 = vmatpush3.bf16.msra.mxu1 %v16724_v34 }
0x66ff   : > { %11973 = vmatprep.subr.bf16.mxu1 %v16728_v5 }
0x6702   : > { %11974 = vmatpush3.bf16.msra.mxu1 %v16728_v5 }
0x6703   : > { %11975 = vmatprep.subr.bf16.mxu1 %v16732_v4 }
0x6706   : > { %11976 = vmatpush3.bf16.msra.mxu1 %v16732_v4 }
0x6707   : > { %11977 = vmatprep.subr.bf16.mxu1 %v16736_v25 }
0x670a   : > { %11978 = vmatpush3.bf16.msra.mxu1 %v16736_v25 }
0x670b   : > { %11979 = vmatprep.subr.bf16.mxu1 %v16740_v44 }
0x670e   : > { %11980 = vmatpush3.bf16.msra.mxu1 %v16740_v44 }
0x670f   : > { %12005 = vmatprep.subr.bf16.mxu1 %v16713_v28 }
0x67b1   : > { %v11943_v61 = vpop.f32.mrf.mxu1 }
0x67b2   : > { %v17119_v5 = vadd.f32 %v16825_v48, %v11943_v61 }
0x67b3   : > { %v7766_v22 = vpop.f32.mrf.mxu1 }
0x67b4   : > { %v17116_v34 = vadd.f32 %v16825_v48, %v7766_v22  ;;  %v7791_v28 = vmul.f32 0.03125, %v17119_v5  ;;  %v7783_v3 = vmul.f32 2.0, %v17119_v5 }
0x67b5   : > { %v11944_v7 = vpop.f32.mrf.mxu1 }
0x67b6   : > { %v17122_v4 = vadd.f32 %v16825_v48, %v11944_v7  ;;  %v7789_v25 = vmul.f32 0.03125, %v17116_v34  ;;  %v7795_v60 = vadd.f32 %v7791_v28, %v17017_v18  ;;  %v7781_v32 = vmul.f32 2.0, %v17116_v34 }
0x67b7   : > { %v7769_v6 = vpop.f32.mrf.mxu1  ;;  %v7787_v38 = vadd.f32 %v7783_v3, %v17063_v39 }
0x67b8   : > { %v17126_v9 = vadd.f32 %v16825_v48, %v7769_v6  ;;  %v7792_v44 = vmul.f32 0.03125, %v17122_v4  ;;  %v7793_v55 = vadd.f32 %v7789_v25, %v17011_v24  ;;  %v7784_v26 = vmul.f32 2.0, %v17122_v4 }
0x67b9   : > { %v7785_v61 = vadd.f32 %v7781_v32, %v17060_v62 }
0x67ba   : > { %v7790_v33 = vmul.f32 0.03125, %v17126_v9  ;;  %v7796_v43 = vadd.f32 %v7792_v44, %v17008_v8  ;;  %v7782_v37 = vmul.f32 2.0, %v17126_v9  ;;  %v7788_v22 = vadd.f32 %v7784_v26, %v17066_v0 }
0x67bc   : > { %v7794_v29 = vadd.f32 %v7790_v33, %v17014_v17  ;;  %v7798_v10 = vpack.c.bf16 %v7796_v43, %v7795_v60  ;;  %v7786_v39 = vadd.f32 %v7782_v37, %v17071_v58  ;;  %v12780_v58 = vld [vmem:[%s17232_s2] ss:$0 sm:$0xff] }
0x67be   : > { %v7797_v23 = vpack.c.bf16 %v7794_v29, %v7793_v55 }
0x67c0   : > { %11961 = vmatprep.mubr.bf16.mxu0 %v7797_v23 }
0x67c1   : > { %11962 = vmatmul.mubr.bf16.vlgmr.msra.gmra.mxu0 %v7798_v10 }
0x67c2   : > { %11986 = vmatpush3.bf16.msra.mxu0 %v12770_v50 }
0x67c3   : > { %11987 = vmatprep.subr.bf16.mxu0 %v12771_v47 }
0x67c6   : > { %11988 = vmatpush3.bf16.msra.mxu0 %v12771_v47 }
0x67c7   : > { %11989 = vmatprep.subr.bf16.mxu0 %v16772_v57 }
0x67ca   : > { %11990 = vmatpush3.bf16.msra.mxu0 %v16772_v57 }
0x67cb   : > { %11991 = vmatprep.subr.bf16.mxu0 %v16776_v49 }
0x67ce   : > { %11992 = vmatpush3.bf16.msra.mxu0 %v16776_v49 }
0x67cf   : > { %11993 = vmatprep.subr.bf16.mxu0 %v16780_v13 }
0x67d2   : > { %11994 = vmatpush3.bf16.msra.mxu0 %v16780_v13 }
0x67d3   : > { %11995 = vmatprep.subr.bf16.mxu0 %v16784_v63 }
0x67d6   : > { %11996 = vmatpush3.bf16.msra.mxu0 %v16784_v63 }
0x67d7   : > { %11997 = vmatprep.subr.bf16.mxu0 %v16788_v54 }
0x67da   : > { %11998 = vmatpush3.bf16.msra.mxu0 %v16788_v54 }
0x67db   : > { %11999 = vmatprep.subr.bf16.mxu0 %v16792_v41 }
0x67de   : > { %12000 = vmatpush3.bf16.msra.mxu0 %v16792_v41 }
0x6881   : > { %v11963_v57 = vpop.f32.mrf.mxu0 }
0x6882   : > { %v7842_v13 = vadd.f32 %v16800_v20, %v11963_v57 }
0x6883   : > { %v7833_v11 = vpop.f32.mrf.mxu0 }
0x6884   : > { %v7834_v49 = vadd.f32 %v16800_v20, %v7833_v11 }
0x6885   : > { %v11964_v42 = vpop.f32.mrf.mxu0 }
0x6886   : > { %v7845_v52 = vadd.f32 %v16800_v20, %v11964_v42  ;;  %12610 = vtanh.f32 %v7834_v49 }
0x6887   : > { %v7836_v46 = vpop.f32.mrf.mxu0 }
0x6888   : > { %v7837_v63 = vadd.f32 %v16800_v20, %v7836_v46  ;;  %12612 = vtanh.f32 %v7845_v52  ;;  %v12775_v20 = vld [vmem:[#allocation7 + $0x20] sm:$0xff]  }
0x688a   : > { %12614 = vtanh.f32 %v7837_v63 }
0x688b   : > { %12616 = vtanh.f32 %v7842_v13 }
0x6893   : > { %v12611_v54 = vpop.eup %12610 }
0x6895   : > { %v12613_v15 = vpop.eup %12612 }
0x6897   : > { %v12615_v56 = vpop.eup %12614 }
0x6898   : > { %v12617_v41 = vpop.eup %12616  ;;  %v7852_v36 = vpack.c.bf16 %v12615_v56, %v12611_v54 }
0x6899   : > { %v7853_v12 = vpack.c.bf16 %v12613_v15, %v12617_v41 }
0x689a   : > { %11981 = vmatprep.mubr.bf16.mxu1 %v7852_v36 }
0x689b   : > { %11982 = vmatmul.mubr.bf16.vlgmr.msra.gmra.mxu1 %v7853_v12 }
0x689c   : > { %12006 = vmatpush3.bf16.msra.mxu1 %v12772_v27 }
0x689d   : > { %12007 = vmatprep.subr.bf16.mxu1 %v12773_v1 }
0x68a0   : > { %12008 = vmatpush3.bf16.msra.mxu1 %v12773_v1 }
0x68a1   : > { %12009 = vmatprep.subr.bf16.mxu1 %v12774_v40 }
0x68a4   : > { %12010 = vmatpush3.bf16.msra.mxu1 %v12774_v40 }
0x68a5   : > { %12011 = vmatprep.subr.bf16.mxu1 %v12775_v20 }
0x68a8   : > { %12012 = vmatpush3.bf16.msra.mxu1 %v12775_v20 }
0x68a9   : > { %12013 = vmatprep.subr.bf16.mxu1 %v12776_v21 }
0x68ac   : > { %12014 = vmatpush3.bf16.msra.mxu1 %v12776_v21 }
0x68ad   : > { %12015 = vmatprep.subr.bf16.mxu1 %v12777_v35 }
0x68b0   : > { %12016 = vmatpush3.bf16.msra.mxu1 %v12777_v35 }
0x68b1   : > { %12017 = vmatprep.subr.bf16.mxu1 %v12778_v45 }
0x68b4   : > { %12018 = vmatpush3.bf16.msra.mxu1 %v12778_v45  ;;  %v12781_v45 = vld [vmem:[%s17234_s4] ss:$0 sm:$0xff] }
0x68b5   : > { %12019 = vmatprep.subr.bf16.mxu1 %v12779_v31 }
0x68b8   : > { %12020 = vmatpush3.bf16.msra.mxu1 %v12779_v31 }
0x695b   : > { %v11983_v53 = vpop.f32.mrf.mxu1 }
0x695c   : > { %v7897_v30 = vadd.f32 %v16825_v48, %v11983_v53 }
0x695d   : > { %v7888_v59 = vpop.f32.mrf.mxu1 }
0x695e   : > { %v7905_v19 = vmul.f32 2.0, %v7897_v30  ;;  %v7889_v14 = vadd.f32 %v16825_v48, %v7888_v59  ;;  %v7913_v28 = vmul.f32 0.0625, %v7897_v30 }
0x695f   : > { %v11984_v51 = vpop.f32.mrf.mxu1 }
0x6960   : > { %v7903_v16 = vmul.f32 2.0, %v7889_v14  ;;  %v7900_v2 = vadd.f32 %v16825_v48, %v11984_v51  ;;  %v7909_v34 = vadd.f32 %v7905_v19, %v7787_v38  ;;  %v7911_v7 = vmul.f32 0.0625, %v7889_v14 }
0x6961   : > { %v7891_v5 = vpop.f32.mrf.mxu1  ;;  %v7917_v60 = vadd.f32 %v7913_v28, %v17017_v18 }
0x6962   : > { %v7906_v4 = vmul.f32 2.0, %v7900_v2  ;;  %v7914_v6 = vmul.f32 0.0625, %v7900_v2  ;;  %v7892_v25 = vadd.f32 %v16825_v48, %v7891_v5  ;;  %v7907_v44 = vadd.f32 %v7903_v16, %v7785_v61 }
0x6963   : > { %v7915_v62 = vadd.f32 %v7911_v7, %v17011_v24 }
0x6964   : > { %v7904_v33 = vmul.f32 2.0, %v7892_v25  ;;  %v7912_v9 = vmul.f32 0.0625, %v7892_v25  ;;  %v7910_v43 = vadd.f32 %v7906_v4, %v7788_v22  ;;  %v7918_v55 = vadd.f32 %v7914_v6, %v17008_v8 }
0x6966   : > { %v7916_v0 = vadd.f32 %v7912_v9, %v17014_v17  ;;  %v7908_v29 = vadd.f32 %v7904_v33, %v7786_v39  ;;  %v7920_v10 = vpack.c.bf16 %v7918_v55, %v7917_v60 }
0x6968   : > { %v7919_v23 = vpack.c.bf16 %v7916_v0, %v7915_v62 }
0x696a   : > { %12001 = vmatprep.mubr.bf16.mxu0 %v7919_v23 }
0x696b   : > { %12002 = vmatmul.mubr.bf16.vlgmr.msra.gmra.mxu0 %v7920_v10 }
0x6a2b   : > { %v12003_v50 = vpop.f32.mrf.mxu0 }
0x6a2c   : > { %v7964_v42 = vadd.f32 %v12780_v58, %v12003_v50 }
0x6a2d   : > { %v7955_v47 = vpop.f32.mrf.mxu0 }
0x6a2e   : > { %v7956_v57 = vadd.f32 %v12780_v58, %v7955_v47 }
0x6a2f   : > { %v12004_v11 = vpop.f32.mrf.mxu0 }
0x6a30   : > { %v7967_v49 = vadd.f32 %v12780_v58, %v12004_v11  ;;  %12618 = vtanh.f32 %v7956_v57 }
0x6a31   : > { %v7958_v52 = vpop.f32.mrf.mxu0 }
0x6a32   : > { %v7959_v13 = vadd.f32 %v12780_v58, %v7958_v52  ;;  %12620 = vtanh.f32 %v7967_v49 }
0x6a34   : > { %12622 = vtanh.f32 %v7959_v13 }
0x6a35   : > { %12624 = vtanh.f32 %v7964_v42 }
0x6a3d   : > { %v12619_v46 = vpop.eup %12618 }
0x6a3f   : > { %v12621_v63 = vpop.eup %12620 }
0x6a41   : > { %v12623_v54 = vpop.eup %12622 }
0x6a42   : > { %v12625_v15 = vpop.eup %12624  ;;  %v7974_v56 = vpack.c.bf16 %v12623_v54, %v12619_v46 }
0x6a43   : > { %v7975_v41 = vpack.c.bf16 %v12621_v63, %v12625_v15 }
0x6a44   : > { %12021 = vmatprep.mubr.bf16.mxu1 %v7974_v56 }
0x6a45   : > { %12022 = vmatmul.mubr.bf16.vlgmr.msra.gmra.mxu1 %v7975_v41 }
0x6b05   : > { %v12023_v36 = vpop.f32.mrf.mxu1 }
0x6b06   : > { %v8019_v12 = vadd.f32 %v16825_v48, %v12023_v36 }
0x6b07   : > { %v8010_v27 = vpop.f32.mrf.mxu1 }
0x6b08   : > { %v8027_v1 = vadd.f32 %v8019_v12, %v7909_v34  ;;  %v8011_v40 = vadd.f32 %v16825_v48, %v8010_v27 }
0x6b09   : > { %v12024_v20 = vpop.f32.mrf.mxu1 }
0x6b0a   : > { %v8031_v21 = vmul.f32 0.010416667, %v8027_v1  ;;  %v8025_v35 = vadd.f32 %v8011_v40, %v7907_v44  ;;  %v8022_v31 = vadd.f32 %v12781_v45, %v12024_v20 }
0x6b0b   : > { %v8013_v3 = vpop.f32.mrf.mxu1 }
0x6b0c   : > { %v8035_v53 = vadd.f32 %v8031_v21, %v17017_v18  ;;  %v8029_v30 = vmul.f32 0.010416667, %v8025_v35  ;;  %v8028_v32 = vadd.f32 %v8022_v31, %v7910_v43  ;;  %v8014_v26 = vadd.f32 %v12781_v45, %v8013_v3 }
0x6b0e   : > { %8039 = vst [vmem:[%s271_s29 + $0x10] sm:$0xff] %v8035_v53  ;;  %v8033_v48 = vadd.f32 %v8029_v30, %v17011_v24  ;;  %v8032_v59 = vmul.f32 0.010416667, %v8028_v32  ;;  %v8026_v19 = vadd.f32 %v8014_v26, %v7908_v29 }
0x6b10   : > { %8037 = vst [vmem:[%s271_s29] sm:$0xff] %v8033_v48  ;;  %v8036_v18 = vadd.f32 %v8032_v59, %v17008_v8  ;;  %v8030_v14 = vmul.f32 0.010416667, %v8026_v19 }
0x6b12   : > { %8040 = vst [vmem:[%s271_s29 + $0x18] sm:$0xff] %v8036_v18  ;;  %v8034_v24 = vadd.f32 %v8030_v14, %v17014_v17 }
0x6b14   : > { %8038 = vst [vmem:[%s271_s29 + $0x8] sm:$0xff] %v8034_v24 }
0x6b15   : > { %12875 = shalt.err (!%p12872_p9)
}
0x6b16   : > { %s12876_s6 = scalar_lea.hbm %s17186_s17, 512  ;;  %s12880_s13 = scalar_lea.hbm %s17235_s5, 1024 }
0x6b17   : > { %p12877_p13 = scmp.ne.s32.totalorder %s17186_s17, %s12876_s6  ;;  %p12881_p4 = scmp.lt.s32.totalorder %s17186_s17, %s17235_s5 }
0x6b18   : > { %p12882_p8 = scmp.lt.s32.totalorder %s12880_s13, %s12876_s6 }
0x6b19   : > { %p12878_p5 = pnand %p12877_p13, %p17251_p10 }
0x6b1a   : > { %p12883_p3 = por %p12882_p8, %p12881_p4 }
0x6b1b   : > { %p12879_p0 = pneg %p12878_p5 }
0x6b1d   : > { %p12884_p11 = pnand %p12883_p3, %p12879_p0 }
0x6b1f   : > { %12887 = shalt.err (!%p12884_p11)
}
0x6b20   : > { %s12940_s24 = smov 128   ;;  %s12941_s26 = smov 8  }
0x6b21   : > { %12035 = dma.vmem_to_hbm [thread:$0]  (%p17251_p10), %s17180_s30, 512, %s17186_s17, %s8042_s10, %s12940_s24, %s12940_s24, %s12941_s26  }
0x6b22 PF: > { %s8070_s8 = sand.u32 1, %s12918_s18   ;;  %p17252_p1 = scmp.ne.s32.totalorder %s17241_s25, 0 }
0x6b23   : > { %p17253_p2 = scmp.ge.s32.totalorder %s12930_s21, 2  ;;  %s8071_s22 = scalar_lea.sflag [#allocation4], %s8070_s8 }
0x6b25   : > { %p12049_p6 = pnand %p17253_p2, %p17252_p1 }
0x6b27   : > { %p12050_p12 = pneg %p12049_p6 }
0x6b29   : > { %12913 = dma.done.wait (%p12050_p12), %s8071_s22, 512  }
0x6b2a   : > { %12915 = vsyncadd (%p12050_p12), %s8071_s22, 4294966784  ;;  %p19_p7 = scmp.ge.s32.totalorder %s13044_s15, 4   ;;  %s17254_s18 = smov %s12922_s19 }
0x6b2b   : > { %s17255_s19 = smov %s12926_s20  ;;  %s17256_s20 = smov %s13060_s27 }
0x6b2c   : > { %s17257_s21 = smov %s13044_s15  ;;  %21 = sbr.rel (!%p19_p7) target bundleno = 6 (0x6), region = 93 }
0x6b31   :  { %8076 = vsyncpa [#allocation3], 1 }
0x6b32   :  { %8078 = vsyncpa [#allocation3 + $0x1], 1 }
0x6b33   :  { %8079 = vsyncpa [#allocation6], 1 }
0x6b34   :  { %8080 = vsyncpa [#allocation4], 1 }
0x6b35   :  { %8082 = vsyncpa [#allocation4 + $0x1], 1 }

</bundles_post_ra>
